<compile_context>
chip_gen: v5e
topology: v5e:2x2
jax: 0.10.0
libtpu: 0.0.40
codegen_flags: <defaults>
</compile_context>

<pallas_src>
import math

import jax
import jax.numpy as jnp
from jax import lax
from jax.experimental import pallas as pl
from jax.experimental.pallas import tpu as pltpu

LN_EPS = 1e-5  # nn.LayerNorm default


def _layernorm(x, gamma, beta):
    mu = jnp.mean(x, axis=-1, keepdims=True)
    var = jnp.mean((x - mu) ** 2, axis=-1, keepdims=True)
    return (x - mu) * lax.rsqrt(var + LN_EPS) * gamma + beta


def dgg_kernel(thr_ref, x_ref, vcol_ref, vrow_ref,
               w1_ref, b1_ref, g1_ref, bt1_ref,
               w2_ref, b2_ref,
               wf_ref, bf_ref, we2_ref,
               wop_ref, bop_ref, g2_ref, bt2_ref,
               out_ref, adj_ref):
    Bt, N, D = x_ref.shape          # batch-tile, dancers, input dim
    H = w1_ref.shape[1]             # hidden dim
    bf16 = jnp.bfloat16

    # All per-token work runs with Bt*N rows at once (leading-dim collapse only).
    x = x_ref[...].reshape(Bt * N, D).astype(bf16)

    # ---- feature_transform: Linear -> LayerNorm -> ReLU -> (Dropout=id) -> Linear ----
    h = jnp.dot(x, w1_ref[...], preferred_element_type=jnp.float32) + b1_ref[...]
    h = jnp.maximum(_layernorm(h, g1_ref[...], bt1_ref[...]), 0.0)
    # TODO(synk): dropout is treated as eval-mode identity (no RNG mask applied).
    f = jnp.dot(h.astype(bf16), w2_ref[...],
                preferred_element_type=jnp.float32) + b2_ref[...]                # (Bt*N, H)

    # ---- fused projection [we1a | we1b | wgc]: one lane-dense (H, 3H) bf16 matmul ----
    uvg = jnp.dot(f.astype(bf16), wf_ref[...],
                  preferred_element_type=jnp.float32) + bf_ref[...]              # (Bt*N, 3H)
    u = uvg[:, :H].reshape(Bt, N, H)          # edge_predictor first linear, i-branch (+be1)
    v = uvg[:, H:2 * H].reshape(Bt, N, H)     # edge_predictor first linear, j-branch
    gc = uvg[:, 2 * H:].reshape(Bt, N, H)     # graph_conv(features)

    # ---- edge predictor on all ordered pairs; threshold applied in logit space ----
    # Kept f32: dominant VPU stage but v5e has no bf16 VALU and f32 keeps adj stable.
    ph = jnp.maximum(u[:, :, None, :] + v[:, None, :, :], 0.0)       # (Bt, N, N, H)
    logits = jnp.sum(ph * we2_ref[...], axis=-1)                     # (Bt, N, N)

    # ---- adjacency: logit-threshold, force self-loops, mask invalid dancers ----
    rows = lax.broadcasted_iota(jnp.int32, (N, N), 0)
    cols = lax.broadcasted_iota(jnp.int32, (N, N), 1)
    eye = rows == cols
    thr = thr_ref[0]                                                 # logit(threshold) - be2
    vmask = vcol_ref[...] * vrow_ref[...]                            # (Bt,N,1)*(Bt,1,N)
    adj = ((logits > thr) | eye[None, :, :]).astype(jnp.float32) * vmask

    # ---- degree-normalized graph convolution ----
    deg = jnp.maximum(jnp.sum(adj, axis=-1, keepdims=True), 1.0)
    norm_adj = adj * (1.0 / deg)

    # Unrolled VPU broadcast-FMA over j (N is small & static): avoids an underfilled
    # batched (N,N)x(N,H) MXU matmul and its per-matmul push/drain latency.
    graph_out = norm_adj[:, :, 0:1] * gc[:, 0:1, :]                  # (Bt, N, H)
    for j in range(1, N):
        graph_out = graph_out + norm_adj[:, :, j:j + 1] * gc[:, j:j + 1, :]

    # ---- output_proj: Linear -> LayerNorm -> (Dropout=id) -> ReLU ----
    o = jnp.dot(graph_out.reshape(Bt * N, H).astype(bf16), wop_ref[...],
                preferred_element_type=jnp.float32) + bop_ref[...]
    o = jnp.maximum(_layernorm(o, g2_ref[...], bt2_ref[...]), 0.0)

    out_ref[...] = o.reshape(Bt, N, D)
    adj_ref[...] = adj


def _pick_batch_tile(B, N, rows_target=256, rows_cap=2048):
    """Generation-aware batch tile: fewer, fatter grid steps.

    Small batches (B*N <= rows_target rows): single grid step -- v5e/v6e have one
    TensorCore, so splitting tiny matmuls only adds per-step pipeline overhead and
    halves the MXU M-dim.  Larger batches: biggest divisor of B that keeps >= 2 grid
    steps (both v7x TensorCores busy) under a per-step row cap (VMEM headroom).
    """
    if B * N <= rows_target:
        return B
    best = 1
    for bt in range(1, B):
        if B % bt == 0 and B // bt >= 2 and bt * N <= rows_cap:
            best = bt
    return best


def prepare_params(params, threshold=0.5):
    """One-time per-parameter-set preprocessing (hoisted out of the per-call path).

    * Fuses the three H->H projections of f into one (H, 3H) weight / (1, 3H) bias.
    * Folds sigmoid + threshold + edge bias be2 into one logit-space scalar.
    * Casts all MXU weight operands to bf16 (in-kernel accumulation stays f32);
      biases / LayerNorm params / we2 stay f32.
    """
    bf16, f32 = jnp.bfloat16, jnp.float32
    t = min(max(float(threshold), 1e-7), 1.0 - 1e-7)
    logit_thr = math.log(t) - math.log1p(-t)
    # TODO(synk): assumes be2 is a true (1,1) scalar bias, as in the PyTorch module.
    thr = jnp.float32(logit_thr) - params["be2"].astype(f32).reshape(-1)         # (1,)
    w_fused = jnp.concatenate([params["we1a"], params["we1b"], params["wgc"]], axis=1)
    b_fused = jnp.concatenate([params["be1"], jnp.zeros_like(params["be1"]),
                               params["bgc"]], axis=1)
    return dict(
        thr=thr,
        w1=params["w1"].astype(bf16), b1=params["b1"].astype(f32),
        g1=params["g1"].astype(f32), bt1=params["bt1"].astype(f32),
        w2=params["w2"].astype(bf16), b2=params["b2"].astype(f32),
        wf=w_fused.astype(bf16), bf=b_fused.astype(f32),
        we2=params["we2"].astype(f32),
        wop=params["wop"].astype(bf16), bop=params["bop"].astype(f32),
        g2=params["g2"].astype(f32), bt2=params["bt2"].astype(f32),
    )


def dynamic_graph_generator(x, valid, prep, batch_tile=None):
    """x: (B, N, D_in); valid: (B, N) bool; prep: output of prepare_params()."""
    B, N, D = x.shape
    x = x.astype(jnp.float32)

    if batch_tile is None:
        batch_tile = _pick_batch_tile(B, N)
    assert B % batch_tile == 0, "batch_tile must divide batch size"
    num_tiles = B // batch_tile

    # No (B,N,N) mask materialization: two tiny views of valid, outer product in-kernel.
    valid_f = valid.astype(jnp.float32)
    valid_col = valid_f[:, :, None]                                   # (B, N, 1) masks rows i
    valid_row = valid_f[:, None, :]                                   # (B, 1, N) masks cols j

    weights = [prep["w1"], prep["b1"], prep["g1"], prep["bt1"],
               prep["w2"], prep["b2"],
               prep["wf"], prep["bf"], prep["we2"],
               prep["wop"], prep["bop"], prep["g2"], prep["bt2"]]

    def const_spec(shape):
        nd = len(shape)
        return pl.BlockSpec(tuple(shape), lambda b, n=nd: (0,) * n)

    in_specs = ([pl.BlockSpec(memory_space=pltpu.MemorySpace.SMEM)]            # thr scalar
                + [pl.BlockSpec((batch_tile, N, D), lambda b: (b, 0, 0)),       # x
                   pl.BlockSpec((batch_tile, N, 1), lambda b: (b, 0, 0)),       # valid (rows)
                   pl.BlockSpec((batch_tile, 1, N), lambda b: (b, 0, 0))]       # valid (cols)
                + [const_spec(w.shape) for w in weights])

    out_shape = (jax.ShapeDtypeStruct((B, N, D), jnp.float32),
                 jax.ShapeDtypeStruct((B, N, N), jnp.float32))
    out_specs = [pl.BlockSpec((batch_tile, N, D), lambda b: (b, 0, 0)),
                 pl.BlockSpec((batch_tile, N, N), lambda b: (b, 0, 0))]

    return pl.pallas_call(
        dgg_kernel,
        out_shape=out_shape,
        grid_spec=pltpu.PrefetchScalarGridSpec(
            num_scalar_prefetch=0,
            grid=(num_tiles,),
            in_specs=in_specs,
            out_specs=out_specs),
        compiler_params=pltpu.CompilerParams(
            dimension_semantics=("parallel",)),
    )(prep["thr"], x, valid_col, valid_row, *weights)


# ----------------------------- references (pure JAX) ------------------------------

def _ln(t, g, b):
    mu = t.mean(-1, keepdims=True)
    var = ((t - mu) ** 2).mean(-1, keepdims=True)
    return (t - mu) / jnp.sqrt(var + LN_EPS) * g + b


def reference_f32(x, valid, params, threshold=0.5):
    """Full-f32 reference (exact PyTorch-module math, eval mode).  Not asserted against:
    the adjacency threshold is discontinuous, so bf16 MXU operands can legitimately flip
    edges sitting exactly at the boundary, which then changes whole output rows."""
    p = params
    h = jnp.maximum(_ln(x @ p["w1"] + p["b1"], p["g1"], p["bt1"]), 0.0)
    f = h @ p["w2"] + p["b2"]
    u = f @ p["we1a"] + p["be1"]
    v = f @ p["we1b"]
    ph = jnp.maximum(u[:, :, None, :] + v[:, None, :, :], 0.0)
    edges = jax.nn.sigmoid(jnp.sum(ph * p["we2"], -1) + p["be2"])
    adj = (edges > threshold).astype(jnp.float32)
    eye = jnp.eye(x.shape[1], dtype=jnp.float32)[None]
    adj = ((adj + eye) > 0.0).astype(jnp.float32)
    vm = (valid[:, :, None] & valid[:, None, :]).astype(jnp.float32)
    adj = adj * vm
    deg = jnp.maximum(adj.sum(-1, keepdims=True), 1.0)
    graph_out = (adj / deg) @ (f @ p["wgc"] + p["bgc"])
    o = jnp.maximum(_ln(graph_out @ p["wop"] + p["bop"], p["g2"], p["bt2"]), 0.0)
    return o, adj


def reference_mixed(x, valid, params, threshold=0.5):
    """Mixed-precision reference mirroring the kernel's bf16 matmul operands
    (f32 accumulation, f32 everything else)."""
    p = params
    bf16 = jnp.bfloat16

    def mm(a, w):
        return jnp.dot(a.astype(bf16), w.astype(bf16), preferred_element_type=jnp.float32)

    h = jnp.maximum(_ln(mm(x, p["w1"]) + p["b1"], p["g1"], p["bt1"]), 0.0)
    f = mm(h, p["w2"]) + p["b2"]
    u = mm(f, p["we1a"]) + p["be1"]
    v = mm(f, p["we1b"])
    gc = mm(f, p["wgc"]) + p["bgc"]
    ph = jnp.maximum(u[:, :, None, :] + v[:, None, :, :], 0.0)
    logits = jnp.sum(ph * p["we2"], -1)
    t = min(max(float(threshold), 1e-7), 1.0 - 1e-7)
    thr = jnp.float32(math.log(t) - math.log1p(-t)) - p["be2"].reshape(())
    eye = jnp.eye(x.shape[1], dtype=bool)[None]
    vm = (valid[:, :, None] & valid[:, None, :]).astype(jnp.float32)
    adj = ((logits > thr) | eye).astype(jnp.float32) * vm
    deg = jnp.maximum(adj.sum(-1, keepdims=True), 1.0)
    graph_out = (adj / deg) @ gc
    o = jnp.maximum(_ln(mm(graph_out, p["wop"]) + p["bop"], p["g2"], p["bt2"]), 0.0)
    return o, adj


def make_params(key, input_dim, hidden_dim):
    D, H = input_dim, hidden_dim
    ks = jax.random.split(key, 12)

    def lin(k, fan_in, shape):
        return (jax.random.normal(k, shape, jnp.float32) / jnp.sqrt(fan_in)).astype(jnp.float32)

    we1_full = lin(ks[4], 2 * H, (2 * H, H))
    return {
        "w1":  lin(ks[0], D, (D, H)),     "b1":  lin(ks[1], D, (1, H)),
        "g1":  jnp.ones((1, H), jnp.float32), "bt1": jnp.zeros((1, H), jnp.float32),
        "w2":  lin(ks[2], H, (H, H)),     "b2":  lin(ks[3], H, (1, H)),
        "we1a": we1_full[:H],             "we1b": we1_full[H:],
        "be1": lin(ks[5], 2 * H, (1, H)),
        "we2": lin(ks[6], H, (1, H)),     "be2": lin(ks[7], H, (1, 1)),
        "wgc": lin(ks[8], H, (H, H)),     "bgc": lin(ks[9], H, (1, H)),
        "wop": lin(ks[10], H, (H, D)),    "bop": lin(ks[11], H, (1, D)),
        "g2":  jnp.ones((1, D), jnp.float32), "bt2": jnp.zeros((1, D), jnp.float32),
    }


if __name__ == "__main__":
    B, N, D_IN, HID = 2, 8, 128, 64
    key = jax.random.PRNGKey(0)
    kx, kp = jax.random.split(key)

    x = jax.random.normal(kx, (B, N, D_IN), jnp.float32)
    # batch 0: all dancers valid; batch 1: last two dancers invalid.
    valid = jnp.arange(N)[None, :] < jnp.array([[N], [N - 2]])
    params = make_params(kp, D_IN, HID)

    prep = prepare_params(params, threshold=0.5)      # hoisted: reuse across calls
    out, adj = dynamic_graph_generator(x, valid, prep)
    out, adj = jax.block_until_ready((out, adj))
    assert out.shape == (B, N, D_IN) and adj.shape == (B, N, N)

    # Compare against a pure-JAX reference that mirrors the kernel's bf16 matmul
    # operands (so the discrete adjacency decision is made at matched precision).
    ref_out, ref_adj = reference_mixed(x, valid, params, threshold=0.5)
    assert jnp.array_equal(adj, ref_adj), "adjacency mismatch"
    assert jnp.allclose(out, ref_out, atol=1e-3, rtol=1e-3), "output mismatch"
    print("KERNEL_OK")
</pallas_src>

<mosaic_0001>
module attributes {stable_mosaic.version = 11 : i64} {
  func.func @dgg_kernel(%arg0: i32, %arg1: memref<1xf32, #tpu.memory_space<smem>>, %arg2: memref<2x8x128xf32, #tpu.memory_space<vmem>>, %arg3: memref<2x8x1xf32, #tpu.memory_space<vmem>>, %arg4: memref<2x1x8xf32, #tpu.memory_space<vmem>>, %arg5: memref<128x64xbf16, #tpu.memory_space<vmem>>, %arg6: memref<1x64xf32, #tpu.memory_space<vmem>>, %arg7: memref<1x64xf32, #tpu.memory_space<vmem>>, %arg8: memref<1x64xf32, #tpu.memory_space<vmem>>, %arg9: memref<64x64xbf16, #tpu.memory_space<vmem>>, %arg10: memref<1x64xf32, #tpu.memory_space<vmem>>, %arg11: memref<64x192xbf16, #tpu.memory_space<vmem>>, %arg12: memref<1x192xf32, #tpu.memory_space<vmem>>, %arg13: memref<1x64xf32, #tpu.memory_space<vmem>>, %arg14: memref<64x128xbf16, #tpu.memory_space<vmem>>, %arg15: memref<1x128xf32, #tpu.memory_space<vmem>>, %arg16: memref<1x128xf32, #tpu.memory_space<vmem>>, %arg17: memref<1x128xf32, #tpu.memory_space<vmem>>, %arg18: memref<2x8x128xf32, #tpu.memory_space<vmem>>, %arg19: memref<2x8x8xf32, #tpu.memory_space<vmem>>) attributes {dimension_semantics = [#tpu.dimension_semantics<parallel>], iteration_bounds = array<i64: 1>, scalar_prefetch = 0 : i64, scratch_operands = 0 : i64, tpu.core_type = #tpu.core_type<tc>, window_params = [{transform_indices = @transform_0, window_bounds = array<i64: 1>}, {transform_indices = @transform_1, window_bounds = array<i64: 2, 8, 128>}, {transform_indices = @transform_2, window_bounds = array<i64: 2, 8, 1>}, {transform_indices = @transform_3, window_bounds = array<i64: 2, 1, 8>}, {pipeline_mode = #tpu.pipeline_mode<synchronous>, transform_indices = @transform_4, window_bounds = array<i64: 128, 64>}, {pipeline_mode = #tpu.pipeline_mode<synchronous>, transform_indices = @transform_5, window_bounds = array<i64: 1, 64>}, {pipeline_mode = #tpu.pipeline_mode<synchronous>, transform_indices = @transform_6, window_bounds = array<i64: 1, 64>}, {pipeline_mode = #tpu.pipeline_mode<synchronous>, transform_indices = @transform_7, window_bounds = array<i64: 1, 64>}, {pipeline_mode = #tpu.pipeline_mode<synchronous>, transform_indices = @transform_8, window_bounds = array<i64: 64, 64>}, {pipeline_mode = #tpu.pipeline_mode<synchronous>, transform_indices = @transform_9, window_bounds = array<i64: 1, 64>}, {pipeline_mode = #tpu.pipeline_mode<synchronous>, transform_indices = @transform_10, window_bounds = array<i64: 64, 192>}, {pipeline_mode = #tpu.pipeline_mode<synchronous>, transform_indices = @transform_11, window_bounds = array<i64: 1, 192>}, {pipeline_mode = #tpu.pipeline_mode<synchronous>, transform_indices = @transform_12, window_bounds = array<i64: 1, 64>}, {pipeline_mode = #tpu.pipeline_mode<synchronous>, transform_indices = @transform_13, window_bounds = array<i64: 64, 128>}, {pipeline_mode = #tpu.pipeline_mode<synchronous>, transform_indices = @transform_14, window_bounds = array<i64: 1, 128>}, {pipeline_mode = #tpu.pipeline_mode<synchronous>, transform_indices = @transform_15, window_bounds = array<i64: 1, 128>}, {pipeline_mode = #tpu.pipeline_mode<synchronous>, transform_indices = @transform_16, window_bounds = array<i64: 1, 128>}, {transform_indices = @transform_17, window_bounds = array<i64: 2, 8, 128>}, {transform_indices = @transform_18, window_bounds = array<i64: 2, 8, 8>}]} {
    %c0 = arith.constant 0 : index
    %c0_0 = arith.constant 0 : index
    %c0_1 = arith.constant 0 : index
    %0 = vector.load %arg2[%c0, %c0_0, %c0_1] : memref<2x8x128xf32, #tpu.memory_space<vmem>>, vector<2x8x128xf32>
    %1 = vector.shape_cast %0 : vector<2x8x128xf32> to vector<16x128xf32>
    %2 = arith.truncf %1 : vector<16x128xf32> to vector<16x128xbf16>
    %c0_2 = arith.constant 0 : index
    %c0_3 = arith.constant 0 : index
    %3 = vector.load %arg5[%c0_2, %c0_3] : memref<128x64xbf16, #tpu.memory_space<vmem>>, vector<128x64xbf16>
    %cst = arith.constant dense<0.000000e+00> : vector<16x64xf32>
    %4 = tpu.matmul %2, %3, %cst {dimension_numbers = #tpu.dot_dimension_numbers<[1], [0], [0], [1], [0, 0, 1, 1], [], []>} : vector<16x128xbf16>, vector<128x64xbf16>, vector<16x64xf32> -> vector<16x64xf32>
    %c0_4 = arith.constant 0 : index
    %c0_5 = arith.constant 0 : index
    %5 = vector.load %arg6[%c0_4, %c0_5] : memref<1x64xf32, #tpu.memory_space<vmem>>, vector<1x64xf32>
    %6 = vector.broadcast %5 : vector<1x64xf32> to vector<16x64xf32>
    %7 = arith.addf %4, %6 : vector<16x64xf32>
    %c0_6 = arith.constant 0 : index
    %c0_7 = arith.constant 0 : index
    %8 = vector.load %arg7[%c0_6, %c0_7] : memref<1x64xf32, #tpu.memory_space<vmem>>, vector<1x64xf32>
    %c0_8 = arith.constant 0 : index
    %c0_9 = arith.constant 0 : index
    %9 = vector.load %arg8[%c0_8, %c0_9] : memref<1x64xf32, #tpu.memory_space<vmem>>, vector<1x64xf32>
    %cst_10 = arith.constant dense<0.000000e+00> : vector<16xf32>
    %10 = vector.multi_reduction <add>, %7, %cst_10 [1] : vector<16x64xf32> to vector<16xf32>
    %11 = vector.shape_cast %10 : vector<16xf32> to vector<16x1xf32>
    %cst_11 = arith.constant 6.400000e+01 : f32
    %12 = vector.broadcast %cst_11 : f32 to vector<16x1xf32>
    %13 = arith.divf %11, %12 : vector<16x1xf32>
    %14 = vector.broadcast %13 : vector<16x1xf32> to vector<16x64xf32>
    %15 = arith.subf %7, %14 : vector<16x64xf32>
    %16 = arith.mulf %15, %15 : vector<16x64xf32>
    %cst_12 = arith.constant dense<0.000000e+00> : vector<16xf32>
    %17 = vector.multi_reduction <add>, %16, %cst_12 [1] : vector<16x64xf32> to vector<16xf32>
    %18 = vector.shape_cast %17 : vector<16xf32> to vector<16x1xf32>
    %cst_13 = arith.constant 6.400000e+01 : f32
    %19 = vector.broadcast %cst_13 : f32 to vector<16x1xf32>
    %20 = arith.divf %18, %19 : vector<16x1xf32>
    %21 = vector.broadcast %13 : vector<16x1xf32> to vector<16x64xf32>
    %22 = arith.subf %7, %21 : vector<16x64xf32>
    %cst_14 = arith.constant 9.99999974E-6 : f32
    %23 = vector.broadcast %cst_14 : f32 to vector<16x1xf32>
    %24 = arith.addf %20, %23 : vector<16x1xf32>
    %25 = math.rsqrt %24 : vector<16x1xf32>
    %26 = vector.broadcast %25 : vector<16x1xf32> to vector<16x64xf32>
    %27 = arith.mulf %22, %26 : vector<16x64xf32>
    %28 = vector.broadcast %8 : vector<1x64xf32> to vector<16x64xf32>
    %29 = arith.mulf %27, %28 : vector<16x64xf32>
    %30 = vector.broadcast %9 : vector<1x64xf32> to vector<16x64xf32>
    %31 = arith.addf %29, %30 : vector<16x64xf32>
    %cst_15 = arith.constant 0.000000e+00 : f32
    %32 = vector.broadcast %cst_15 : f32 to vector<16x64xf32>
    %33 = arith.maximumf %31, %32 : vector<16x64xf32>
    %34 = arith.truncf %33 : vector<16x64xf32> to vector<16x64xbf16>
    %c0_16 = arith.constant 0 : index
    %c0_17 = arith.constant 0 : index
    %35 = vector.load %arg9[%c0_16, %c0_17] : memref<64x64xbf16, #tpu.memory_space<vmem>>, vector<64x64xbf16>
    %cst_18 = arith.constant dense<0.000000e+00> : vector<16x64xf32>
    %36 = tpu.matmul %34, %35, %cst_18 {dimension_numbers = #tpu.dot_dimension_numbers<[1], [0], [0], [1], [0, 0, 1, 1], [], []>} : vector<16x64xbf16>, vector<64x64xbf16>, vector<16x64xf32> -> vector<16x64xf32>
    %c0_19 = arith.constant 0 : index
    %c0_20 = arith.constant 0 : index
    %37 = vector.load %arg10[%c0_19, %c0_20] : memref<1x64xf32, #tpu.memory_space<vmem>>, vector<1x64xf32>
    %38 = vector.broadcast %37 : vector<1x64xf32> to vector<16x64xf32>
    %39 = arith.addf %36, %38 : vector<16x64xf32>
    %40 = arith.truncf %39 : vector<16x64xf32> to vector<16x64xbf16>
    %c0_21 = arith.constant 0 : index
    %c0_22 = arith.constant 0 : index
    %41 = vector.load %arg11[%c0_21, %c0_22] : memref<64x192xbf16, #tpu.memory_space<vmem>>, vector<64x192xbf16>
    %cst_23 = arith.constant dense<0.000000e+00> : vector<16x192xf32>
    %42 = tpu.matmul %40, %41, %cst_23 {dimension_numbers = #tpu.dot_dimension_numbers<[1], [0], [0], [1], [0, 0, 1, 1], [], []>} : vector<16x64xbf16>, vector<64x192xbf16>, vector<16x192xf32> -> vector<16x192xf32>
    %c0_24 = arith.constant 0 : index
    %c0_25 = arith.constant 0 : index
    %43 = vector.load %arg12[%c0_24, %c0_25] : memref<1x192xf32, #tpu.memory_space<vmem>>, vector<1x192xf32>
    %44 = vector.broadcast %43 : vector<1x192xf32> to vector<16x192xf32>
    %45 = arith.addf %42, %44 : vector<16x192xf32>
    %46 = vector.extract_strided_slice %45 {offsets = [0, 0], sizes = [16, 64], strides = [1, 1]} : vector<16x192xf32> to vector<16x64xf32>
    %47 = vector.shape_cast %46 : vector<16x64xf32> to vector<2x8x64xf32>
    %48 = vector.extract_strided_slice %45 {offsets = [0, 64], sizes = [16, 64], strides = [1, 1]} : vector<16x192xf32> to vector<16x64xf32>
    %49 = vector.shape_cast %48 : vector<16x64xf32> to vector<2x8x64xf32>
    %50 = vector.extract_strided_slice %45 {offsets = [0, 128], sizes = [16, 64], strides = [1, 1]} : vector<16x192xf32> to vector<16x64xf32>
    %51 = vector.shape_cast %50 : vector<16x64xf32> to vector<2x8x64xf32>
    %52 = vector.shape_cast %47 : vector<2x8x64xf32> to vector<2x8x1x64xf32>
    %53 = vector.shape_cast %49 : vector<2x8x64xf32> to vector<2x1x8x64xf32>
    %54 = vector.broadcast %52 : vector<2x8x1x64xf32> to vector<2x8x8x64xf32>
    %55 = vector.broadcast %53 : vector<2x1x8x64xf32> to vector<2x8x8x64xf32>
    %56 = arith.addf %54, %55 : vector<2x8x8x64xf32>
    %cst_26 = arith.constant 0.000000e+00 : f32
    %57 = vector.broadcast %cst_26 : f32 to vector<2x8x8x64xf32>
    %58 = arith.maximumf %56, %57 : vector<2x8x8x64xf32>
    %c0_27 = arith.constant 0 : index
    %c0_28 = arith.constant 0 : index
    %59 = vector.load %arg13[%c0_27, %c0_28] : memref<1x64xf32, #tpu.memory_space<vmem>>, vector<1x64xf32>
    %60 = vector.shape_cast %59 : vector<1x64xf32> to vector<1x1x1x64xf32>
    %61 = vector.broadcast %60 : vector<1x1x1x64xf32> to vector<2x8x8x64xf32>
    %62 = arith.mulf %58, %61 : vector<2x8x8x64xf32>
    %cst_29 = arith.constant dense<0.000000e+00> : vector<2x8x8xf32>
    %63 = vector.multi_reduction <add>, %62, %cst_29 [3] : vector<2x8x8x64xf32> to vector<2x8x8xf32>
    %64 = tpu.iota {dimensions = array<i32: 0>} : vector<8x8xi32>
    %65 = tpu.iota {dimensions = array<i32: 1>} : vector<8x8xi32>
    %66 = arith.cmpi eq, %64, %65 : vector<8x8xi32>
    %c0_30 = arith.constant 0 : index
    %67 = memref.load %arg1[%c0_30] : memref<1xf32, #tpu.memory_space<smem>>
    %c0_31 = arith.constant 0 : index
    %c0_32 = arith.constant 0 : index
    %c0_33 = arith.constant 0 : index
    %68 = vector.load %arg3[%c0_31, %c0_32, %c0_33] : memref<2x8x1xf32, #tpu.memory_space<vmem>>, vector<2x8x1xf32>
    %c0_34 = arith.constant 0 : index
    %c0_35 = arith.constant 0 : index
    %c0_36 = arith.constant 0 : index
    %69 = vector.load %arg4[%c0_34, %c0_35, %c0_36] : memref<2x1x8xf32, #tpu.memory_space<vmem>>, vector<2x1x8xf32>
    %70 = vector.broadcast %68 : vector<2x8x1xf32> to vector<2x8x8xf32>
    %71 = vector.broadcast %69 : vector<2x1x8xf32> to vector<2x8x8xf32>
    %72 = arith.mulf %70, %71 : vector<2x8x8xf32>
    %73 = vector.broadcast %67 : f32 to vector<2x8x8xf32>
    %74 = arith.cmpf ogt, %63, %73 : vector<2x8x8xf32>
    %75 = vector.shape_cast %66 : vector<8x8xi1> to vector<1x8x8xi1>
    %76 = vector.broadcast %75 : vector<1x8x8xi1> to vector<2x8x8xi1>
    %77 = arith.ori %74, %76 : vector<2x8x8xi1>
    %78 = arith.extui %77 : vector<2x8x8xi1> to vector<2x8x8xi32>
    %79 = arith.sitofp %78 : vector<2x8x8xi32> to vector<2x8x8xf32>
    %80 = arith.mulf %79, %72 : vector<2x8x8xf32>
    %cst_37 = arith.constant dense<0.000000e+00> : vector<2x8xf32>
    %81 = vector.multi_reduction <add>, %80, %cst_37 [2] : vector<2x8x8xf32> to vector<2x8xf32>
    %82 = vector.shape_cast %81 : vector<2x8xf32> to vector<2x8x1xf32>
    %cst_38 = arith.constant 1.000000e+00 : f32
    %83 = vector.broadcast %cst_38 : f32 to vector<2x8x1xf32>
    %84 = arith.maximumf %82, %83 : vector<2x8x1xf32>
    %cst_39 = arith.constant 1.000000e+00 : f32
    %85 = vector.broadcast %cst_39 : f32 to vector<2x8x1xf32>
    %86 = arith.divf %85, %84 : vector<2x8x1xf32>
    %87 = vector.broadcast %86 : vector<2x8x1xf32> to vector<2x8x8xf32>
    %88 = arith.mulf %80, %87 : vector<2x8x8xf32>
    %89 = vector.extract_strided_slice %88 {offsets = [0, 0, 0], sizes = [2, 8, 1], strides = [1, 1, 1]} : vector<2x8x8xf32> to vector<2x8x1xf32>
    %90 = vector.extract_strided_slice %51 {offsets = [0, 0, 0], sizes = [2, 1, 64], strides = [1, 1, 1]} : vector<2x8x64xf32> to vector<2x1x64xf32>
    %91 = vector.broadcast %89 : vector<2x8x1xf32> to vector<2x8x64xf32>
    %92 = vector.broadcast %90 : vector<2x1x64xf32> to vector<2x8x64xf32>
    %93 = arith.mulf %91, %92 : vector<2x8x64xf32>
    %94 = vector.extract_strided_slice %88 {offsets = [0, 0, 1], sizes = [2, 8, 1], strides = [1, 1, 1]} : vector<2x8x8xf32> to vector<2x8x1xf32>
    %95 = vector.extract_strided_slice %51 {offsets = [0, 1, 0], sizes = [2, 1, 64], strides = [1, 1, 1]} : vector<2x8x64xf32> to vector<2x1x64xf32>
    %96 = vector.broadcast %94 : vector<2x8x1xf32> to vector<2x8x64xf32>
    %97 = vector.broadcast %95 : vector<2x1x64xf32> to vector<2x8x64xf32>
    %98 = arith.mulf %96, %97 : vector<2x8x64xf32>
    %99 = arith.addf %93, %98 : vector<2x8x64xf32>
    %100 = vector.extract_strided_slice %88 {offsets = [0, 0, 2], sizes = [2, 8, 1], strides = [1, 1, 1]} : vector<2x8x8xf32> to vector<2x8x1xf32>
    %101 = vector.extract_strided_slice %51 {offsets = [0, 2, 0], sizes = [2, 1, 64], strides = [1, 1, 1]} : vector<2x8x64xf32> to vector<2x1x64xf32>
    %102 = vector.broadcast %100 : vector<2x8x1xf32> to vector<2x8x64xf32>
    %103 = vector.broadcast %101 : vector<2x1x64xf32> to vector<2x8x64xf32>
    %104 = arith.mulf %102, %103 : vector<2x8x64xf32>
    %105 = arith.addf %99, %104 : vector<2x8x64xf32>
    %106 = vector.extract_strided_slice %88 {offsets = [0, 0, 3], sizes = [2, 8, 1], strides = [1, 1, 1]} : vector<2x8x8xf32> to vector<2x8x1xf32>
    %107 = vector.extract_strided_slice %51 {offsets = [0, 3, 0], sizes = [2, 1, 64], strides = [1, 1, 1]} : vector<2x8x64xf32> to vector<2x1x64xf32>
    %108 = vector.broadcast %106 : vector<2x8x1xf32> to vector<2x8x64xf32>
    %109 = vector.broadcast %107 : vector<2x1x64xf32> to vector<2x8x64xf32>
    %110 = arith.mulf %108, %109 : vector<2x8x64xf32>
    %111 = arith.addf %105, %110 : vector<2x8x64xf32>
    %112 = vector.extract_strided_slice %88 {offsets = [0, 0, 4], sizes = [2, 8, 1], strides = [1, 1, 1]} : vector<2x8x8xf32> to vector<2x8x1xf32>
    %113 = vector.extract_strided_slice %51 {offsets = [0, 4, 0], sizes = [2, 1, 64], strides = [1, 1, 1]} : vector<2x8x64xf32> to vector<2x1x64xf32>
    %114 = vector.broadcast %112 : vector<2x8x1xf32> to vector<2x8x64xf32>
    %115 = vector.broadcast %113 : vector<2x1x64xf32> to vector<2x8x64xf32>
    %116 = arith.mulf %114, %115 : vector<2x8x64xf32>
    %117 = arith.addf %111, %116 : vector<2x8x64xf32>
    %118 = vector.extract_strided_slice %88 {offsets = [0, 0, 5], sizes = [2, 8, 1], strides = [1, 1, 1]} : vector<2x8x8xf32> to vector<2x8x1xf32>
    %119 = vector.extract_strided_slice %51 {offsets = [0, 5, 0], sizes = [2, 1, 64], strides = [1, 1, 1]} : vector<2x8x64xf32> to vector<2x1x64xf32>
    %120 = vector.broadcast %118 : vector<2x8x1xf32> to vector<2x8x64xf32>
    %121 = vector.broadcast %119 : vector<2x1x64xf32> to vector<2x8x64xf32>
    %122 = arith.mulf %120, %121 : vector<2x8x64xf32>
    %123 = arith.addf %117, %122 : vector<2x8x64xf32>
    %124 = vector.extract_strided_slice %88 {offsets = [0, 0, 6], sizes = [2, 8, 1], strides = [1, 1, 1]} : vector<2x8x8xf32> to vector<2x8x1xf32>
    %125 = vector.extract_strided_slice %51 {offsets = [0, 6, 0], sizes = [2, 1, 64], strides = [1, 1, 1]} : vector<2x8x64xf32> to vector<2x1x64xf32>
    %126 = vector.broadcast %124 : vector<2x8x1xf32> to vector<2x8x64xf32>
    %127 = vector.broadcast %125 : vector<2x1x64xf32> to vector<2x8x64xf32>
    %128 = arith.mulf %126, %127 : vector<2x8x64xf32>
    %129 = arith.addf %123, %128 : vector<2x8x64xf32>
    %130 = vector.extract_strided_slice %88 {offsets = [0, 0, 7], sizes = [2, 8, 1], strides = [1, 1, 1]} : vector<2x8x8xf32> to vector<2x8x1xf32>
    %131 = vector.extract_strided_slice %51 {offsets = [0, 7, 0], sizes = [2, 1, 64], strides = [1, 1, 1]} : vector<2x8x64xf32> to vector<2x1x64xf32>
    %132 = vector.broadcast %130 : vector<2x8x1xf32> to vector<2x8x64xf32>
    %133 = vector.broadcast %131 : vector<2x1x64xf32> to vector<2x8x64xf32>
    %134 = arith.mulf %132, %133 : vector<2x8x64xf32>
    %135 = arith.addf %129, %134 : vector<2x8x64xf32>
    %136 = vector.shape_cast %135 : vector<2x8x64xf32> to vector<16x64xf32>
    %137 = arith.truncf %136 : vector<16x64xf32> to vector<16x64xbf16>
    %c0_40 = arith.constant 0 : index
    %c0_41 = arith.constant 0 : index
    %138 = vector.load %arg14[%c0_40, %c0_41] : memref<64x128xbf16, #tpu.memory_space<vmem>>, vector<64x128xbf16>
    %cst_42 = arith.constant dense<0.000000e+00> : vector<16x128xf32>
    %139 = tpu.matmul %137, %138, %cst_42 {dimension_numbers = #tpu.dot_dimension_numbers<[1], [0], [0], [1], [0, 0, 1, 1], [], []>} : vector<16x64xbf16>, vector<64x128xbf16>, vector<16x128xf32> -> vector<16x128xf32>
    %c0_43 = arith.constant 0 : index
    %c0_44 = arith.constant 0 : index
    %140 = vector.load %arg15[%c0_43, %c0_44] : memref<1x128xf32, #tpu.memory_space<vmem>>, vector<1x128xf32>
    %141 = vector.broadcast %140 : vector<1x128xf32> to vector<16x128xf32>
    %142 = arith.addf %139, %141 : vector<16x128xf32>
    %c0_45 = arith.constant 0 : index
    %c0_46 = arith.constant 0 : index
    %143 = vector.load %arg16[%c0_45, %c0_46] : memref<1x128xf32, #tpu.memory_space<vmem>>, vector<1x128xf32>
    %c0_47 = arith.constant 0 : index
    %c0_48 = arith.constant 0 : index
    %144 = vector.load %arg17[%c0_47, %c0_48] : memref<1x128xf32, #tpu.memory_space<vmem>>, vector<1x128xf32>
    %cst_49 = arith.constant dense<0.000000e+00> : vector<16xf32>
    %145 = vector.multi_reduction <add>, %142, %cst_49 [1] : vector<16x128xf32> to vector<16xf32>
    %146 = vector.shape_cast %145 : vector<16xf32> to vector<16x1xf32>
    %cst_50 = arith.constant 1.280000e+02 : f32
    %147 = vector.broadcast %cst_50 : f32 to vector<16x1xf32>
    %148 = arith.divf %146, %147 : vector<16x1xf32>
    %149 = vector.broadcast %148 : vector<16x1xf32> to vector<16x128xf32>
    %150 = arith.subf %142, %149 : vector<16x128xf32>
    %151 = arith.mulf %150, %150 : vector<16x128xf32>
    %cst_51 = arith.constant dense<0.000000e+00> : vector<16xf32>
    %152 = vector.multi_reduction <add>, %151, %cst_51 [1] : vector<16x128xf32> to vector<16xf32>
    %153 = vector.shape_cast %152 : vector<16xf32> to vector<16x1xf32>
    %cst_52 = arith.constant 1.280000e+02 : f32
    %154 = vector.broadcast %cst_52 : f32 to vector<16x1xf32>
    %155 = arith.divf %153, %154 : vector<16x1xf32>
    %156 = vector.broadcast %148 : vector<16x1xf32> to vector<16x128xf32>
    %157 = arith.subf %142, %156 : vector<16x128xf32>
    %cst_53 = arith.constant 9.99999974E-6 : f32
    %158 = vector.broadcast %cst_53 : f32 to vector<16x1xf32>
    %159 = arith.addf %155, %158 : vector<16x1xf32>
    %160 = math.rsqrt %159 : vector<16x1xf32>
    %161 = vector.broadcast %160 : vector<16x1xf32> to vector<16x128xf32>
    %162 = arith.mulf %157, %161 : vector<16x128xf32>
    %163 = vector.broadcast %143 : vector<1x128xf32> to vector<16x128xf32>
    %164 = arith.mulf %162, %163 : vector<16x128xf32>
    %165 = vector.broadcast %144 : vector<1x128xf32> to vector<16x128xf32>
    %166 = arith.addf %164, %165 : vector<16x128xf32>
    %cst_54 = arith.constant 0.000000e+00 : f32
    %167 = vector.broadcast %cst_54 : f32 to vector<16x128xf32>
    %168 = arith.maximumf %166, %167 : vector<16x128xf32>
    %169 = vector.shape_cast %168 : vector<16x128xf32> to vector<2x8x128xf32>
    %c0_55 = arith.constant 0 : index
    %c0_56 = arith.constant 0 : index
    %c0_57 = arith.constant 0 : index
    %170 = vector.load %arg18[%c0_55, %c0_56, %c0_57] : memref<2x8x128xf32, #tpu.memory_space<vmem>>, vector<2x8x128xf32>
    tpu.vector_store %arg18[%c0_55, %c0_56, %c0_57], %169 {strides = array<i32>} : memref<2x8x128xf32, #tpu.memory_space<vmem>>, vector<2x8x128xf32>,
    %c0_58 = arith.constant 0 : index
    %c0_59 = arith.constant 0 : index
    %c0_60 = arith.constant 0 : index
    %171 = vector.load %arg19[%c0_58, %c0_59, %c0_60] : memref<2x8x8xf32, #tpu.memory_space<vmem>>, vector<2x8x8xf32>
    tpu.vector_store %arg19[%c0_58, %c0_59, %c0_60], %80 {strides = array<i32>} : memref<2x8x8xf32, #tpu.memory_space<vmem>>, vector<2x8x8xf32>,
    return
  }
  func.func @transform_0(%arg0: i32) -> i32 {
    %c0_i32 = arith.constant 0 : i32
    %c0_i32_0 = arith.constant 0 : i32
    return %c0_i32 : i32
  }
  func.func @transform_1(%arg0: i32) -> (i32, i32, i32) {
    %c0_i32 = arith.constant 0 : i32
    %c0_i32_0 = arith.constant 0 : i32
    %c0_i32_1 = arith.constant 0 : i32
    return %arg0, %c0_i32, %c0_i32_0 : i32, i32, i32
  }
  func.func @transform_2(%arg0: i32) -> (i32, i32, i32) {
    %c0_i32 = arith.constant 0 : i32
    %c0_i32_0 = arith.constant 0 : i32
    %c0_i32_1 = arith.constant 0 : i32
    return %arg0, %c0_i32, %c0_i32_0 : i32, i32, i32
  }
  func.func @transform_3(%arg0: i32) -> (i32, i32, i32) {
    %c0_i32 = arith.constant 0 : i32
    %c0_i32_0 = arith.constant 0 : i32
    %c0_i32_1 = arith.constant 0 : i32
    return %arg0, %c0_i32, %c0_i32_0 : i32, i32, i32
  }
  func.func @transform_4(%arg0: i32) -> (i32, i32) {
    %c0_i32 = arith.constant 0 : i32
    %c0_i32_0 = arith.constant 0 : i32
    %c0_i32_1 = arith.constant 0 : i32
    return %c0_i32, %c0_i32_0 : i32, i32
  }
  func.func @transform_5(%arg0: i32) -> (i32, i32) {
    %c0_i32 = arith.constant 0 : i32
    %c0_i32_0 = arith.constant 0 : i32
    %c0_i32_1 = arith.constant 0 : i32
    return %c0_i32, %c0_i32_0 : i32, i32
  }
  func.func @transform_6(%arg0: i32) -> (i32, i32) {
    %c0_i32 = arith.constant 0 : i32
    %c0_i32_0 = arith.constant 0 : i32
    %c0_i32_1 = arith.constant 0 : i32
    return %c0_i32, %c0_i32_0 : i32, i32
  }
  func.func @transform_7(%arg0: i32) -> (i32, i32) {
    %c0_i32 = arith.constant 0 : i32
    %c0_i32_0 = arith.constant 0 : i32
    %c0_i32_1 = arith.constant 0 : i32
    return %c0_i32, %c0_i32_0 : i32, i32
  }
  func.func @transform_8(%arg0: i32) -> (i32, i32) {
    %c0_i32 = arith.constant 0 : i32
    %c0_i32_0 = arith.constant 0 : i32
    %c0_i32_1 = arith.constant 0 : i32
    return %c0_i32, %c0_i32_0 : i32, i32
  }
  func.func @transform_9(%arg0: i32) -> (i32, i32) {
    %c0_i32 = arith.constant 0 : i32
    %c0_i32_0 = arith.constant 0 : i32
    %c0_i32_1 = arith.constant 0 : i32
    return %c0_i32, %c0_i32_0 : i32, i32
  }
  func.func @transform_10(%arg0: i32) -> (i32, i32) {
    %c0_i32 = arith.constant 0 : i32
    %c0_i32_0 = arith.constant 0 : i32
    %c0_i32_1 = arith.constant 0 : i32
    return %c0_i32, %c0_i32_0 : i32, i32
  }
  func.func @transform_11(%arg0: i32) -> (i32, i32) {
    %c0_i32 = arith.constant 0 : i32
    %c0_i32_0 = arith.constant 0 : i32
    %c0_i32_1 = arith.constant 0 : i32
    return %c0_i32, %c0_i32_0 : i32, i32
  }
  func.func @transform_12(%arg0: i32) -> (i32, i32) {
    %c0_i32 = arith.constant 0 : i32
    %c0_i32_0 = arith.constant 0 : i32
    %c0_i32_1 = arith.constant 0 : i32
    return %c0_i32, %c0_i32_0 : i32, i32
  }
  func.func @transform_13(%arg0: i32) -> (i32, i32) {
    %c0_i32 = arith.constant 0 : i32
    %c0_i32_0 = arith.constant 0 : i32
    %c0_i32_1 = arith.constant 0 : i32
    return %c0_i32, %c0_i32_0 : i32, i32
  }
  func.func @transform_14(%arg0: i32) -> (i32, i32) {
    %c0_i32 = arith.constant 0 : i32
    %c0_i32_0 = arith.constant 0 : i32
    %c0_i32_1 = arith.constant 0 : i32
    return %c0_i32, %c0_i32_0 : i32, i32
  }
  func.func @transform_15(%arg0: i32) -> (i32, i32) {
    %c0_i32 = arith.constant 0 : i32
    %c0_i32_0 = arith.constant 0 : i32
    %c0_i32_1 = arith.constant 0 : i32
    return %c0_i32, %c0_i32_0 : i32, i32
  }
  func.func @transform_16(%arg0: i32) -> (i32, i32) {
    %c0_i32 = arith.constant 0 : i32
    %c0_i32_0 = arith.constant 0 : i32
    %c0_i32_1 = arith.constant 0 : i32
    return %c0_i32, %c0_i32_0 : i32, i32
  }
  func.func @transform_17(%arg0: i32) -> (i32, i32, i32) {
    %c0_i32 = arith.constant 0 : i32
    %c0_i32_0 = arith.constant 0 : i32
    %c0_i32_1 = arith.constant 0 : i32
    return %arg0, %c0_i32, %c0_i32_0 : i32, i32, i32
  }
  func.func @transform_18(%arg0: i32) -> (i32, i32, i32) {
    %c0_i32 = arith.constant 0 : i32
    %c0_i32_0 = arith.constant 0 : i32
    %c0_i32_1 = arith.constant 0 : i32
    return %arg0, %c0_i32, %c0_i32_0 : i32, i32, i32
  }
}

</mosaic_0001>

<bundles_post_ra>
// kernel: tpu_custom_call.1
= control target key start
LH: loop header
LB: loop body
LE: loop exit
PB: predicated region body
PF: predicated region fallthrough
CT: control target
= control target key end

     0   :  { %s9927_s0 = inlined_call_operand.<no memory space> [shape: f32[1], index: 0, kind: input, shape index: {}]   ;;  %s9928_s1 = inlined_call_operand.vmem [shape: f32[2,8,128], index: 1, kind: input, shape index: {}]   ;;  %s9929_s2 = inlined_call_operand.vmem [shape: f32[2,8,1], index: 2, kind: input, shape index: {}]   ;;  %s9930_s3 = inlined_call_operand.vmem [shape: f32[2,1,8], index: 3, kind: input, shape index: {}]   ;;  %s9931_s4 = inlined_call_operand.vmem [shape: bf16[128,64], index: 4, kind: input, shape index: {}]   ;;  %s9932_s5 = inlined_call_operand.vmem [shape: f32[1,64], index: 5, kind: input, shape index: {}]   ;;  %s9933_s6 = inlined_call_operand.hbm [shape: f32[1,64], index: 6, kind: input, shape index: {}]   ;;  %s9934_s7 = inlined_call_operand.vmem [shape: f32[1,64], index: 7, kind: input, shape index: {}]   ;;  %s9935_s8 = inlined_call_operand.vmem [shape: bf16[64,64], index: 8, kind: input, shape index: {}]   ;;  %s9936_s9 = inlined_call_operand.vmem [shape: f32[1,64], index: 9, kind: input, shape index: {}]   ;;  %s9937_s10 = inlined_call_operand.vmem [shape: bf16[64,192], index: 10, kind: input, shape index: {}]   ;;  %s9938_s11 = inlined_call_operand.vmem [shape: f32[1,192], index: 11, kind: input, shape index: {}]   ;;  %s9939_s12 = inlined_call_operand.vmem [shape: f32[1,64], index: 12, kind: input, shape index: {}]   ;;  %s9940_s13 = inlined_call_operand.hbm [shape: bf16[64,128], index: 13, kind: input, shape index: {}]   ;;  %s9941_s14 = inlined_call_operand.vmem [shape: f32[1,128], index: 14, kind: input, shape index: {}]   ;;  %s9942_s15 = inlined_call_operand.vmem [shape: f32[1,128], index: 15, kind: input, shape index: {}]   ;;  %s9943_s16 = inlined_call_operand.vmem [shape: f32[1,128], index: 16, kind: input, shape index: {}]   ;;  %s9944_s17 = inlined_call_operand.hbm [shape: f32[2,8,128], index: 17, kind: output, shape index: {0}]   ;;  %s9945_s18 = inlined_call_operand.hbm [shape: f32[2,8,8], index: 18, kind: output, shape index: {1}]  }
   0x1   :  { %10474 = sst [smem:[#allocation164_spill]] %s9927_s0 }
   0x2   :  { %10475 = sst [smem:[#allocation165_spill]] %s9928_s1 }
   0x3   :  { %10476 = sst [smem:[#allocation166_spill]] %s9929_s2 }
   0x4   :  { %25 = vsyncpa [#allocation4], 0 }
   0x5   :  { %26 = vsyncpa [#allocation7], 0 }
   0x6   :  { %27 = vsyncpa [#allocation5], 0 }
   0x7   :  { %28 = vsyncpa [#allocation10], 0  ;;  %s46_s29 = sshll.u32 %s9933_s6, 4  ;;  %s5493_s30 = smov [#allocation3]   ;;  %s47_s29 = int_to_ptr.hbm [resolvable:$true] %s46_s29 }
   0x8   :  { %s48_s0 = sshll.u32 %s5493_s30, 4  ;;  %s68_s20 = sshll.u32 %s9940_s13, 4  ;;  %s49_s0 = int_to_ptr.vmem [resolvable:$true] %s48_s0  ;;  %s69_s20 = int_to_ptr.hbm [resolvable:$true] %s68_s20 }
   0x9   :  { %51 = dma.hbm_to_vmem [thread:$0]  %s47_s29, 16, %s49_s0, [#allocation4]  }
   0xa   :  { %s5494_s21 = smov [#allocation6]   ;;  %s5495_s2 = smov 64  }
   0xb   :  { %s70_s22 = sshll.u32 %s5494_s21, 4  ;;  %s5496_s23 = smov 4   ;;  %s71_s22 = int_to_ptr.vmem [resolvable:$true] %s70_s22 }
   0xc   :  { %76 = dma.hbm_to_vmem [thread:$0]  %s69_s20, 512, %s71_s22, [#allocation7], %s5495_s2, %s5495_s2, %s5496_s23  }
   0xd   :  { %5485 = dma.done.wait [#allocation4], 16  }
   0xe   :  { %5486 = vsyncadd [#allocation4], 4294967280 }
   0xf   :  { %5487 = dma.done.wait [#allocation7], 512  }
  0x10   :  { %5488 = vsyncadd [#allocation7], 4294966784  ;;  %v9948_v0 = vmov 0   ;;  %s10477_s24 = sld [smem:[#allocation166_spill]]  ;;  %v5199_v3 = vld [vmem:[%s9931_s4 + $0x38] sm:$0xff]  ;;  %v537_v4 = vlaneseq  ;;  %v5198_v5 = vld [vmem:[%s9931_s4 + $0x30] sm:$0xff] }
  0x11   :  { %5229 = vset.pattern.permute.xlu0 %v9948_v0  ;;  %5228 = vset.pattern.permute.xlu2 %v9948_v0  ;;  %v5197_v8 = vld [vmem:[%s9931_s4 + $0x28] sm:$0xff]  ;;  %v5196_v11 = vld [vmem:[%s9931_s4 + $0x20] sm:$0xff]  ;;  %v5195_v14 = vld [vmem:[%s9931_s4 + $0x18] sm:$0xff]  ;;  %s10479_s29 = sld [smem:[#allocation165_spill]]  ;;  %vm179_vm1 = vcmask 523264   ;;  %v5498_v59 = vmov 64.0  }
  0x12   :  { %163 = vmatpush.bf16.msra.mxu0 %v5199_v3  ;;  %v5622_v6 = vshrl.u32 %v537_v4, 7  ;;  %v5624_v7 = vand.u32 127, %v537_v4  ;;  %v5194_v16 = vld [vmem:[%s9931_s4 + $0x10] sm:$0xff]  ;;  %v5193_v18 = vld [vmem:[%s9931_s4 + $0x8] sm:$0xff]  ;;  %v5192_v20 = vld [vmem:[%s9931_s4] sm:$0xff]  ;;  %5373 = vrcp.f32 %v5498_v59  ;;  %s10580_s6 = sld [smem:[#allocation164_spill]] }
  0x13   :  { %v5363_v26 = vld [vmem:[%s9930_s3] ss:$0 sm:$0xff]  ;;  %v5364_v37 = vld [vmem:[%s9930_s3 + $0x1] ss:$0 sm:$0xff]  ;;  %s5057_s28 = sshll.u32 %s9945_s18, 4  ;;  %s5503_s30 = smov 8   ;;  %s5058_s28 = int_to_ptr.hbm [resolvable:$true] %s5057_s28 }
  0x14   :  { %10478 = vst [vmem:[#allocation15_spill] sm:$0xff] %v5624_v7  ;;  %5230 = vset.pattern.permute.xlu1 %v5622_v6  ;;  %vm541_vm0 = vcmp.eq.s32.totalorder %v5622_v6, %v5624_v7  ;;  %v5365_v48 = vld [vmem:[%s9932_s5] ss:$0 sm:$0xff] }
  0x15   :  { %v584_v9 = vsel %vm541_vm0, 1, %v9948_v0 }
  0x16   :  { %v544_v1 = vld [vmem:[%s10477_s24 + $0x8] sm:$0xff]  ;;  %v543_v2 = vld [vmem:[%s10477_s24] sm:$0xff]  ;;  %164 = vmatpush.bf16.msra.mxu0 %v5198_v5  ;;  %v585_v10 = vperm.slane %v584_v9, 0  ;;  %v592_v12 = vperm.slane %v584_v9, 1  ;;  %v627_v13 = vperm.slane %v584_v9, 6  ;;  %v599_v15 = vperm.slane %v584_v9, 2 }
  0x17   :  { %554 = vperm.xlu0 %5229, %v544_v1   ;;  %549 = vperm.xlu2 %5228, %v543_v2   ;;  %v606_v17 = vperm.slane %v584_v9, 3  ;;  %v613_v19 = vperm.slane %v584_v9, 4  ;;  %v92_v21 = vld [vmem:[%s10479_s29] sm:$0xff]  ;;  %v93_v22 = vld [vmem:[%s10479_s29 + $0x8] sm:$0xff]  ;;  %v620_v24 = vperm.slane %v584_v9, 5  ;;  %v634_v25 = vperm.slane %v584_v9, 7 }
  0x18   :  { %v94_v23 = vpack.c.bf16 %v93_v22, %v92_v21  ;;  %v5374_v60 = vpop.eup %5373  ;;  %s5502_s29 = smov 128  }
  0x19   :  { %v187_v62 = vmul.f32 64.0, %v5374_v60  ;;  %vm191_vm2 = vweird.f32 %v5374_v60 }
  0x1a   :  { %165 = vmatpush.bf16.msra.mxu0 %v5197_v8 }
  0x1b   :  { %v188_v63 = vsub.f32 1.0, %v187_v62 }
  0x1c   :  { %590 = vperm.xlu1 %5230, %v585_v10  }
  0x1d   :  { %v189_v1 = vmul.f32 %v5374_v60, %v188_v63  ;;  %v5367_v63 = vld [vmem:[%s9934_s7] ss:$0 sm:$0xff] }
  0x1e   :  { %166 = vmatpush.bf16.msra.mxu0 %v5196_v11 }
  0x1f   :  { %5231 = vset.pattern.permute.xlu2 %v5622_v6  ;;  %5232 = vset.pattern.permute.xlu0 %v5622_v6  ;;  %v190_v3 = vadd.f32 %v5374_v60, %v189_v1 }
  0x21   :  { %v192_v4 = vsel %vm191_vm2, %v5374_v60, %v190_v3 }
  0x22   :  { %167 = vmatpush.bf16.msra.mxu0 %v5195_v14 }
  0x24   :  { %604 = vperm.xlu1 %5230, %v599_v15  }
  0x26   :  { %168 = vmatpush.bf16.msra.mxu0 %v5194_v16 }
  0x27   :  { %597 = vperm.xlu2 %5231, %v592_v12   ;;  %632 = vperm.xlu0 %5232, %v627_v13  }
  0x2a   :  { %169 = vmatpush.bf16.msra.mxu0 %v5193_v18 }
  0x2c   :  { %618 = vperm.xlu1 %5230, %v613_v19  }
  0x2e   :  { %170 = vmatpush.bf16.msra.mxu0 %v5192_v20 }
  0x2f   :  { %611 = vperm.xlu2 %5231, %v606_v17  }
  0x31   :  { %171 = vmatmul.bf16.vlgmr.msra.gmra.mxu0 %v94_v23 }
  0x34   :  { %639 = vperm.xlu1 %5230, %v634_v25  }
  0x37   :  { %625 = vperm.xlu2 %5231, %v620_v24  }
  0x71   :  { %v550_v27 = vpop.permute.xlu2 %549 }
  0x72   :  { %v563_v28 = vmul.f32 %v5363_v26, %v550_v27  ;;  %v5203_v26 = vld [vmem:[%s9935_s8 + $0x18] sm:$0xff]  ;;  %v5202_v27 = vld [vmem:[%s9935_s8 + $0x10] sm:$0xff] }
  0x73   :  { %287 = vmatpush.bf16.msra.mxu1 %v5203_v26  ;;  %v5135_v26 = vld [vmem:[%s9937_s10 + $0x10] sm:$0xf] }
  0x74   :  { %v720_v29 = vperm.slane %v563_v28, 3  ;;  %v706_v30 = vperm.slane %v563_v28, 1  ;;  %v699_v31 = vperm.slane %v563_v28, 0  ;;  %v741_v32 = vperm.slane %v563_v28, 6 }
  0x75   :  { %v727_v33 = vperm.slane %v563_v28, 4  ;;  %v713_v34 = vperm.slane %v563_v28, 2  ;;  %v748_v35 = vperm.slane %v563_v28, 7  ;;  %v734_v36 = vperm.slane %v563_v28, 5  ;;  %v5201_v28 = vld [vmem:[%s9935_s8 + $0x8] sm:$0xff] }
  0x76   :  { %725 = vperm.xlu0 %5232, %v720_v29   ;;  %711 = vperm.xlu1 %5230, %v706_v30  }
  0x77   :  { %704 = vperm.xlu2 %5231, %v699_v31   ;;  %288 = vmatpush.bf16.msra.mxu1 %v5202_v27  ;;  %v5207_v27 = vld [vmem:[%s9937_s10 + $0x14] sm:$0xf0] }
  0x7b   :  { %289 = vmatpush.bf16.msra.mxu1 %v5201_v28 }
  0x7e   :  { %746 = vperm.xlu0 %5232, %v741_v32   ;;  %732 = vperm.xlu1 %5230, %v727_v33   ;;  %v5200_v32 = vld [vmem:[%s9935_s8] sm:$0xff] }
  0x7f   :  { %718 = vperm.xlu2 %5231, %v713_v34   ;;  %290 = vmatpush.bf16.msra.mxu1 %v5200_v32 }
  0x86   :  { %753 = vperm.xlu1 %5230, %v748_v35   ;;  %v5151_v35 = vld [vmem:[%s9937_s10 + $0x30] sm:$0xf] }
  0x87   :  { %739 = vperm.xlu2 %5231, %v734_v36   ;;  %v5211_v36 = vld [vmem:[%s9937_s10 + $0x34] sm:$0xf0] }
  0x89   :  { %v555_v38 = vpop.permute.xlu0 %554 }
  0x8a   :  { %v564_v39 = vmul.f32 %v5364_v37, %v555_v38  ;;  %v5210_v37 = vld [vmem:[%s9937_s10 + $0x34] sm:$0xf]  ;;  %v5152_v38 = vor.u32 %v5211_v36, %v5151_v35  ;;  %v5204_v35 = vld [vmem:[%s9937_s10 + $0x4] sm:$0xf] }
  0x8c   :  { %v762_v40 = vperm.slane %v564_v39, 1  ;;  %v769_v41 = vperm.slane %v564_v39, 2  ;;  %v755_v42 = vperm.slane %v564_v39, 0  ;;  %v783_v43 = vperm.slane %v564_v39, 4  ;;  %359 = vmatpush.bf16.msra.mxu2 %v5152_v38 }
  0x8d   :  { %v790_v44 = vperm.slane %v564_v39, 5  ;;  %v776_v45 = vperm.slane %v564_v39, 3  ;;  %v804_v46 = vperm.slane %v564_v39, 7  ;;  %v797_v47 = vperm.slane %v564_v39, 6  ;;  %v5153_v39 = vld [vmem:[%s9937_s10 + $0x38] sm:$0xf0] }
  0x8e   :  { %767 = vperm.xlu0 %5232, %v762_v40   ;;  %774 = vperm.xlu1 %5230, %v769_v41   ;;  %v5681_v17 = vpop.permute.xlu1 %590 }
  0x8f   :  { %760 = vperm.xlu2 %5231, %v755_v42   ;;  %v5156_v42 = vor.u32 %v5210_v37, %v5153_v39  ;;  %v5129_v37 = vld [vmem:[%s9937_s10 + $0x8] sm:$0xf0]  ;;  %v5764_v39 = vadd.s32 48, %v5622_v6  ;;  %vm641_vm10 = vcmp.ne.s32.totalorder %v5681_v17, 0 }
  0x90   :  { %v5132_v38 = vor.u32 %v5204_v35, %v5129_v37 }
  0x91   :  { %373 = vmatpush.bf16.msra.mxu3 %v5156_v42  ;;  %v5368_v42 = vld [vmem:[%s9936_s9] ss:$0 sm:$0xff] }
  0x96   :  { %788 = vperm.xlu0 %5232, %v783_v43   ;;  %795 = vperm.xlu1 %5230, %v790_v44   ;;  %v5683_v18 = vpop.permute.xlu1 %604 }
  0x97   :  { %781 = vperm.xlu2 %5231, %v776_v45  }
  0x99   :  { %v5667_v55 = vpop.permute.xlu0 %632 }
  0x9e   :  { %809 = vperm.xlu0 %5232, %v804_v46   ;;  %v5685_v19 = vpop.permute.xlu1 %618 }
  0x9f   :  { %802 = vperm.xlu2 %5231, %v797_v47  }
  0xa6   :  { %v5687_v20 = vpop.permute.xlu1 %639  ;;  %5238 = vset.pattern.permute.xlu0 %v5764_v39 }
  0xae   :  { %v172_v49 = vpop.f32.mrf.mxu0 }
  0xaf   :  { %v173_v50 = vadd.f32 %v5365_v48, %v172_v49 }
  0xb1   :  { %v180_v51 = vsel %vm179_vm1, %v173_v50, 0.0 }
  0xb6   :  { %v174_v52 = vpop.f32.mrf.mxu0 }
  0xb7   :  { %v175_v53 = vadd.f32 %v5365_v48, %v174_v52 }
  0xb9   :  { %v183_v54 = vsel %vm179_vm1, %v175_v53, 0.0 }
  0xc8   :  { %181 = vadd.xlane.f32.xlu0 %v180_v51 }
  0xd0   :  { %184 = vadd.xlane.f32.xlu0 %v183_v54  ;;  %v5366_v54 = vld [vmem:[#allocation3] ss:$0 sm:$0xff] }
  0xe8   :  { %v5669_v56 = vpop.permute.xlu0 %725  ;;  %v5689_v21 = vpop.permute.xlu1 %711 }
  0xf0   :  { %v5671_v57 = vpop.permute.xlu0 %746  ;;  %v5691_v22 = vpop.permute.xlu1 %732 }
  0xf8   :  { %v5693_v23 = vpop.permute.xlu1 %753 }
 0x100   :  { %v5673_v58 = vpop.permute.xlu0 %767  ;;  %v5695_v24 = vpop.permute.xlu1 %774 }
 0x108   :  { %v5675_v61 = vpop.permute.xlu0 %788  ;;  %v5697_v25 = vpop.permute.xlu1 %795 }
 0x110   :  { %v5677_v2 = vpop.permute.xlu0 %809 }
 0x13b   :  { %v182_v5 = vpop.xlane.xlu0 %181 }
 0x13c   :  { %v193_v8 = vmul.f32 %v192_v4, %v182_v5 }
 0x13e   :  { %v195_v9 = vsub.f32 %v173_v50, %v193_v8 }
 0x140   :  { %v197_v10 = vmul.f32 %v195_v9, %v195_v9 }
 0x142   :  { %v199_v11 = vsel %vm179_vm1, %v197_v10, 0.0 }
 0x143   :  { %200 = vadd.xlane.f32.xlu1 %v199_v11  ;;  %v185_v12 = vpop.xlane.xlu0 %184 }
 0x144   :  { %v194_v13 = vmul.f32 %v192_v4, %v185_v12 }
 0x146   :  { %v196_v14 = vsub.f32 %v175_v53, %v194_v13  ;;  %v5209_v13 = vld [vmem:[%s9937_s10 + $0x24] sm:$0xf0] }
 0x148   :  { %v198_v15 = vmul.f32 %v196_v14, %v196_v14 }
 0x14a   :  { %v202_v16 = vsel %vm179_vm1, %v198_v15, 0.0 }
 0x14b   :  { %203 = vadd.xlane.f32.xlu1 %v202_v16  ;;  %v5145_v16 = vld [vmem:[%s9937_s10 + $0x28] sm:$0xf0] }
 0x1b6   :  { %v201_v29 = vpop.xlane.xlu1 %200 }
 0x1b7   :  { %v205_v30 = vmul.f32 %v201_v29, %v192_v4  ;;  %v5206_v29 = vld [vmem:[%s9937_s10 + $0x14] sm:$0xf] }
 0x1b9   :  { %v207_v31 = vadd.f32 1e-05, %v205_v30  ;;  %v5137_v30 = vld [vmem:[%s9937_s10 + $0x18] sm:$0xf0] }
 0x1ba   :  { %v5140_v32 = vor.u32 %v5206_v29, %v5137_v30 }
 0x1bb   :  { %5375 = vrsqrt.f32 %v207_v31  ;;  %vm215_vm4 = vweird.f32 %v207_v31 }
 0x1be   :  { %v204_v33 = vpop.xlane.xlu1 %203 }
 0x1bf   :  { %v206_v34 = vmul.f32 %v204_v33, %v192_v4  ;;  %v5127_v33 = vld [vmem:[%s9937_s10] sm:$0xf] }
 0x1c1   :  { %v5376_v40 = vpop.eup %5375  ;;  %v208_v41 = vadd.f32 1e-05, %v206_v34  ;;  %v5205_v34 = vld [vmem:[%s9937_s10 + $0x4] sm:$0xf0] }
 0x1c2   :  { %v210_v43 = vmul.f32 %v5376_v40, %v207_v31  ;;  %vm216_vm3 = vweird.f32 %v5376_v40  ;;  %v5136_v31 = vor.u32 %v5207_v27, %v5135_v26  ;;  %v5128_v36 = vor.u32 %v5205_v34, %v5127_v33 }
 0x1c3   :  { %5377 = vrsqrt.f32 %v208_v41  ;;  %vm217_vm5 = vmor %vm215_vm4, %vm216_vm3  ;;  %vm225_vm7 = vweird.f32 %v208_v41 }
 0x1c4   :  { %v211_v44 = vmul.f32 %v5376_v40, %v210_v43 }
 0x1c6   :  { %v212_v45 = vmul.f32 0.5, %v211_v44 }
 0x1c8   :  { %v213_v46 = vsub.f32 1.5, %v212_v45 }
 0x1c9   :  { %v5378_v47 = vpop.eup %5377 }
 0x1ca   :  { %v214_v48 = vmul.f32 %v5376_v40, %v213_v46  ;;  %v220_v49 = vmul.f32 %v5378_v47, %v208_v41  ;;  %vm226_vm6 = vweird.f32 %v5378_v47 }
 0x1cb   :  { %vm227_vm8 = vmor %vm225_vm7, %vm226_vm6 }
 0x1cc   :  { %v218_v50 = vsel %vm217_vm5, %v5376_v40, %v214_v48  ;;  %v221_v51 = vmul.f32 %v5378_v47, %v220_v49  ;;  %v5767_v40 = vadd.s32 56, %v5622_v6 }
 0x1cd   :  { %v229_v53 = vmul.f32 %v218_v50, %v195_v9  ;;  %v5143_v9 = vld [vmem:[%s9937_s10 + $0x20] sm:$0xf] }
 0x1ce   :  { %v222_v52 = vmul.f32 0.5, %v221_v51  ;;  %v5144_v15 = vor.u32 %v5209_v13, %v5143_v9  ;;  %5239 = vset.pattern.permute.xlu1 %v5767_v40 }
 0x1cf   :  { %v234_v62 = vmul.f32 %v5366_v54, %v229_v53 }
 0x1d0   :  { %v223_v59 = vsub.f32 1.5, %v222_v52  ;;  %360 = vmatpush.bf16.msra.mxu2 %v5144_v15 }
 0x1d1   :  { %v239_v5 = vadd.f32 %v5367_v63, %v234_v62 }
 0x1d2   :  { %v224_v60 = vmul.f32 %v5378_v47, %v223_v59  ;;  %v5795_v59 = vadd.s32 32, %v5622_v6 }
 0x1d3   :  { %v241_v10 = vmax.f32 %v239_v5, 0.0 }
 0x1d4   :  { %v228_v1 = vsel %vm227_vm8, %v5378_v47, %v224_v60  ;;  %361 = vmatpush.bf16.msra.mxu2 %v5136_v31  ;;  %v5779_v47 = vld [vmem:[%s9938_s11] sm:$0x3]  ;;  %v5800_v60 = vadd.s32 8, %v5622_v6  ;;  %vm647_vm8 = vcmp.ne.s32.totalorder %v5667_v55, 0 }
 0x1d5   :  { %v230_v3 = vmul.f32 %v228_v1, %v196_v14  ;;  %v5208_v14 = vld [vmem:[%s9937_s10 + $0x24] sm:$0xf]  ;;  %v9950_v48 = vperm.slane %v5779_v47, 0  ;;  %v309_v49 = vperm.slane %v5779_v47, 1  ;;  %v5808_v1 = vadd.s32 24, %v5622_v6 }
 0x1d6   :  { %v5148_v28 = vor.u32 %v5208_v14, %v5145_v16  ;;  %v5905_v16 = vpop.permute.xlu2 %597 }
 0x1d7   :  { %v235_v4 = vmul.f32 %v5366_v54, %v230_v3 }
 0x1d8   :  { %374 = vmatpush.bf16.msra.mxu3 %v5148_v28  ;;  %362 = vmatpush.bf16.msra.mxu2 %v5128_v36 }
 0x1d9   :  { %v240_v8 = vadd.f32 %v5367_v63, %v235_v4  ;;  %v5805_v63 = vadd.s32 16, %v5622_v6  ;;  %v5818_v4 = vadd.s32 40, %v5622_v6 }
 0x1db   :  { %v242_v11 = vmax.f32 %v240_v8, 0.0 }
 0x1dc   :  { %375 = vmatpush.bf16.msra.mxu3 %v5140_v32 }
 0x1dd   :  { %v243_v12 = vpack.c.bf16 %v242_v11, %v241_v10 }
 0x1de   :  { %v5914_v27 = vpop.permute.xlu2 %611 }
 0x1df   :  { %5124 = vmatmul.msk.bf16.vlgmr.msra.gmra.mxu1 %vm179_vm1, %v243_v12  ;;  %vm644_vm13 = vcmp.ne.s32.totalorder %v5914_v27, 0 }
 0x1e0   :  { %376 = vmatpush.bf16.msra.mxu3 %v5132_v38 }
 0x1e6   :  { %v5921_v28 = vpop.permute.xlu2 %625 }
 0x1e7   :  { %vm646_vm0 = vcmp.ne.s32.totalorder %v5921_v28, 0 }
 0x1ee   :  { %v5926_v29 = vpop.permute.xlu2 %704 }
 0x1f6   :  { %v5934_v31 = vpop.permute.xlu2 %718 }
 0x1fe   :  { %v5943_v33 = vpop.permute.xlu2 %739 }
 0x206   :  { %v5950_v34 = vpop.permute.xlu2 %760 }
 0x20e   :  { %v5958_v36 = vpop.permute.xlu2 %781 }
 0x216   :  { %v5963_v37 = vpop.permute.xlu2 %802 }
 0x25c   :  { %v292_v41 = vpop.f32.mrf.mxu1 }
 0x25d   :  { %v293_v44 = vadd.f32 %v5368_v42, %v292_v41 }
 0x264   :  { %v294_v43 = vpop.f32.mrf.mxu1 }
 0x265   :  { %v295_v45 = vadd.f32 %v5368_v42, %v294_v43 }
 0x267   :  { %v297_v46 = vpack.c.bf16 %v295_v45, %v293_v44 }
 0x269   :  { %5157 = vmatmul.msk.bf16.vlgmr.msra.gmra.mxu2 %vm179_vm1, %v297_v46  ;;  %5158 = vmatmul.msk.bf16.vlgmr.msra.gmra.mxu3 %vm179_vm1, %v297_v46 }
 0x2ec   :  { %v364_v50 = vpop.f32.mrf.mxu2  ;;  %v378_v51 = vpop.f32.mrf.mxu3 }
 0x2ed   :  { %v5785_v52 = vadd.f32 %v364_v50, %v9950_v48  ;;  %v5789_v53 = vadd.f32 %v378_v51, %v309_v49 }
 0x2ef   :  { %431 = vrot.lane.b32.xlu2 %v5785_v52, %s5495_s2  ;;  %v1051_v54 = vperm.slane %v5789_v53, 0  ;;  %v1311_v62 = vperm.slane %v5789_v53, 1  ;;  %v5814_v3 = vperm.slane %v5789_v53, 2  ;;  %v5824_v5 = vperm.slane %v5789_v53, 3 }
 0x2f0   :  { %v5835_v8 = vperm.slane %v5789_v53, 4  ;;  %v5848_v10 = vperm.slane %v5789_v53, 5  ;;  %v5861_v11 = vperm.slane %v5789_v53, 6  ;;  %v5870_v12 = vperm.slane %v5789_v53, 7 }
 0x2f1   :  { %1101 = vperm.xlu1 %5239, %v1051_v54   ;;  %1095 = vperm.xlu0 %5238, %v1051_v54  }
 0x2f4   :  { %v380_v9 = vpop.f32.mrf.mxu3 }
 0x2f5   :  { %v5879_v13 = vadd.f32 %v380_v9, %v309_v49 }
 0x2f7   :  { %1059 = vperm.xlu2 %5231, %v1051_v54   ;;  %v5883_v14 = vperm.slane %v5879_v13, 0  ;;  %v5892_v15 = vperm.slane %v5879_v13, 1  ;;  %v5909_v26 = vperm.slane %v5879_v13, 2  ;;  %v5930_v30 = vperm.slane %v5879_v13, 3 }
 0x2f8   :  { %v5941_v32 = vperm.slane %v5879_v13, 4  ;;  %v5954_v35 = vperm.slane %v5879_v13, 5  ;;  %v5975_v41 = vperm.slane %v5879_v13, 6  ;;  %v5998_v46 = vperm.slane %v5879_v13, 7 }
 0x2f9   :  { %5240 = vset.pattern.permute.xlu1 %v5622_v6  ;;  %5244 = vset.pattern.permute.xlu0 %v5795_v59 }
 0x2ff   :  { %5233 = vset.pattern.permute.xlu2 %v5800_v60 }
 0x301   :  { %1319 = vperm.xlu1 %5240, %v1311_v62   ;;  %1343 = vperm.xlu0 %5244, %v1311_v62  }
 0x307   :  { %1065 = vperm.xlu2 %5233, %v1051_v54  }
 0x309   :  { %5242 = vset.pattern.permute.xlu1 %v5805_v63  ;;  %5251 = vset.pattern.permute.xlu0 %v5808_v1 }
 0x30f   :  { %5234 = vset.pattern.permute.xlu2 %v5805_v63 }
 0x311   :  { %1331 = vperm.xlu1 %5242, %v1311_v62   ;;  %1725 = vperm.xlu0 %5251, %v5814_v3  }
 0x317   :  { %1071 = vperm.xlu2 %5234, %v1051_v54  }
 0x319   :  { %5245 = vset.pattern.permute.xlu1 %v5818_v4  ;;  %5258 = vset.pattern.permute.xlu0 %v5805_v63 }
 0x31f   :  { %5235 = vset.pattern.permute.xlu2 %v5808_v1 }
 0x321   :  { %1349 = vperm.xlu1 %5245, %v1311_v62   ;;  %2107 = vperm.xlu0 %5258, %v5824_v5  }
 0x327   :  { %1077 = vperm.xlu2 %5235, %v1051_v54  }
 0x329   :  { %5247 = vset.pattern.permute.xlu1 %v5767_v40  ;;  %5263 = vset.pattern.permute.xlu0 %v5767_v40 }
 0x32f   :  { %5236 = vset.pattern.permute.xlu2 %v5795_v59 }
 0x331   :  { %1361 = vperm.xlu1 %5247, %v1311_v62   ;;  %2137 = vperm.xlu0 %5263, %v5824_v5  }
 0x337   :  { %1083 = vperm.xlu2 %5236, %v1051_v54  }
 0x339   :  { %5249 = vset.pattern.permute.xlu1 %v5800_v60  ;;  %5265 = vset.pattern.permute.xlu0 %v5800_v60 }
 0x33f   :  { %5237 = vset.pattern.permute.xlu2 %v5818_v4 }
 0x341   :  { %1713 = vperm.xlu1 %5249, %v5814_v3   ;;  %2489 = vperm.xlu0 %5265, %v5835_v8  }
 0x347   :  { %1089 = vperm.xlu2 %5237, %v1051_v54  }
 0x349   :  { %5252 = vset.pattern.permute.xlu1 %v5795_v59  ;;  %5270 = vset.pattern.permute.xlu0 %v5764_v39  ;;  %v5968_v38 = vpop.permute.xlu2 %431 }
 0x34f   :  { %5241 = vset.pattern.permute.xlu2 %v5800_v60 }
 0x351   :  { %1731 = vperm.xlu1 %5252, %v5814_v3   ;;  %2519 = vperm.xlu0 %5270, %v5835_v8   ;;  %v5977_v42 = vpop.permute.xlu2 %1059 }
 0x352   :  { %10480 = vst [vmem:[#allocation16_spill] sm:$0xff] %v5977_v42 }
 0x357   :  { %1325 = vperm.xlu2 %5241, %v1311_v62  }
 0x359   :  { %5254 = vset.pattern.permute.xlu1 %v5764_v39  ;;  %5272 = vset.pattern.permute.xlu0 %v5622_v6 }
 0x35f   :  { %5243 = vset.pattern.permute.xlu2 %v5808_v1 }
 0x361   :  { %1743 = vperm.xlu1 %5254, %v5814_v3   ;;  %2871 = vperm.xlu0 %5272, %v5848_v10   ;;  %v5982_v43 = vpop.permute.xlu2 %1065 }
 0x362   :  { %10481 = vst [vmem:[#allocation17_spill] sm:$0xff] %v5982_v43 }
 0x367   :  { %1337 = vperm.xlu2 %5243, %v1311_v62  }
 0x369   :  { %5256 = vset.pattern.permute.xlu1 %v5622_v6  ;;  %5277 = vset.pattern.permute.xlu0 %v5818_v4 }
 0x36f   :  { %5246 = vset.pattern.permute.xlu2 %v5764_v39 }
 0x371   :  { %2095 = vperm.xlu1 %5256, %v5824_v5   ;;  %2901 = vperm.xlu0 %5277, %v5848_v10   ;;  %v5987_v44 = vpop.permute.xlu2 %1071 }
 0x372   :  { %10482 = vst [vmem:[#allocation18_spill] sm:$0xff] %v5987_v44 }
 0x377   :  { %1355 = vperm.xlu2 %5246, %v1311_v62  }
 0x379   :  { %5259 = vset.pattern.permute.xlu1 %v5808_v1  ;;  %5284 = vset.pattern.permute.xlu0 %v5795_v59 }
 0x37f   :  { %5248 = vset.pattern.permute.xlu2 %v5622_v6 }
 0x381   :  { %2113 = vperm.xlu1 %5259, %v5824_v5   ;;  %3283 = vperm.xlu0 %5284, %v5861_v11   ;;  %v5992_v45 = vpop.permute.xlu2 %1077 }
 0x382   :  { %10483 = vst [vmem:[#allocation19_spill] sm:$0xff] %v5992_v45 }
 0x387   :  { %1707 = vperm.xlu2 %5248, %v5814_v3  }
 0x389   :  { %5261 = vset.pattern.permute.xlu1 %v5818_v4  ;;  %5291 = vset.pattern.permute.xlu0 %v5808_v1 }
 0x38f   :  { %5250 = vset.pattern.permute.xlu2 %v5805_v63 }
 0x391   :  { %2125 = vperm.xlu1 %5261, %v5824_v5   ;;  %3665 = vperm.xlu0 %5291, %v5870_v12   ;;  %v6000_v49 = vpop.permute.xlu2 %1083 }
 0x392   :  { %10484 = vst [vmem:[#allocation20_spill] sm:$0xff] %v6000_v49 }
 0x397   :  { %1719 = vperm.xlu2 %5250, %v5814_v3  }
 0x399   :  { %5266 = vset.pattern.permute.xlu1 %v5805_v63  ;;  %5303 = vset.pattern.permute.xlu0 %v5767_v40 }
 0x39f   :  { %5253 = vset.pattern.permute.xlu2 %v5818_v4 }
 0x3a1   :  { %2495 = vperm.xlu1 %5266, %v5835_v8   ;;  %1149 = vperm.xlu0 %5303, %v5883_v14   ;;  %v6005_v50 = vpop.permute.xlu2 %1089 }
 0x3a2   :  { %10485 = vst [vmem:[#allocation21_spill] sm:$0xff] %v6005_v50 }
 0x3a7   :  { %1737 = vperm.xlu2 %5253, %v5814_v3  }
 0x3a9   :  { %5268 = vset.pattern.permute.xlu1 %v5795_v59  ;;  %5305 = vset.pattern.permute.xlu0 %v5800_v60 }
 0x3af   :  { %5255 = vset.pattern.permute.xlu2 %v5767_v40 }
 0x3b1   :  { %2507 = vperm.xlu1 %5268, %v5835_v8   ;;  %1373 = vperm.xlu0 %5305, %v5892_v15   ;;  %v6010_v51 = vpop.permute.xlu2 %1325 }
 0x3b2   :  { %10486 = vst [vmem:[#allocation22_spill] sm:$0xff] %v6010_v51 }
 0x3b7   :  { %1749 = vperm.xlu2 %5255, %v5814_v3   ;;  %v399_v3 = vperm.slane %v5785_v52, 0 }
 0x3b9   :  { %5271 = vset.pattern.permute.xlu1 %v5767_v40  ;;  %5310 = vset.pattern.permute.xlu0 %v5764_v39 }
 0x3bf   :  { %5257 = vset.pattern.permute.xlu2 %v5800_v60 }
 0x3c1   :  { %2525 = vperm.xlu1 %5271, %v5835_v8   ;;  %1403 = vperm.xlu0 %5310, %v5892_v15   ;;  %v6015_v53 = vpop.permute.xlu2 %1337 }
 0x3c2   :  { %10487 = vst [vmem:[#allocation23_spill] sm:$0xff] %v6015_v53 }
 0x3c7   :  { %2101 = vperm.xlu2 %5257, %v5824_v5  }
 0x3c9   :  { %5273 = vset.pattern.permute.xlu1 %v5800_v60  ;;  %5312 = vset.pattern.permute.xlu0 %v5622_v6 }
 0x3cf   :  { %5260 = vset.pattern.permute.xlu2 %v5795_v59 }
 0x3d1   :  { %2877 = vperm.xlu1 %5273, %v5848_v10   ;;  %1755 = vperm.xlu0 %5312, %v5909_v26   ;;  %v6020_v54 = vpop.permute.xlu2 %1355 }
 0x3d2   :  { %10488 = vst [vmem:[#allocation24_spill] sm:$0xff] %v6020_v54 }
 0x3d7   :  { %2119 = vperm.xlu2 %5260, %v5824_v5  }
 0x3d9   :  { %5275 = vset.pattern.permute.xlu1 %v5808_v1  ;;  %5317 = vset.pattern.permute.xlu0 %v5818_v4 }
 0x3df   :  { %5262 = vset.pattern.permute.xlu2 %v5764_v39 }
 0x3e1   :  { %2889 = vperm.xlu1 %5275, %v5848_v10   ;;  %1785 = vperm.xlu0 %5317, %v5909_v26   ;;  %v6024_v62 = vpop.permute.xlu2 %1707 }
 0x3e2   :  { %10489 = vst [vmem:[#allocation25_spill] sm:$0xff] %v6024_v62 }
 0x3e7   :  { %2131 = vperm.xlu2 %5262, %v5824_v5   ;;  %v437_v5 = vadd.f32 %v5968_v38, %v399_v3  ;;  %v389_v3 = vrot.slane %v5785_v52, 5 }
 0x3e9   :  { %5278 = vset.pattern.permute.xlu1 %v5764_v39  ;;  %5324 = vset.pattern.permute.xlu0 %v5795_v59  ;;  %v453_v9 = vmax.f32 %v437_v5, 0.0  ;;  %v404_v54 = vperm.slane %v389_v3, 0 }
 0x3ef   :  { %5264 = vset.pattern.permute.xlu2 %v5622_v6 }
 0x3f1   :  { %2907 = vperm.xlu1 %5278, %v5848_v10   ;;  %2167 = vperm.xlu0 %5324, %v5930_v30  }
 0x3f7   :  { %2483 = vperm.xlu2 %5264, %v5835_v8  }
 0x3f9   :  { %5280 = vset.pattern.permute.xlu1 %v5622_v6  ;;  %5331 = vset.pattern.permute.xlu0 %v5808_v1 }
 0x3ff   :  { %5267 = vset.pattern.permute.xlu2 %v5808_v1 }
 0x401   :  { %3259 = vperm.xlu1 %5280, %v5861_v11   ;;  %2549 = vperm.xlu0 %5331, %v5941_v32  }
 0x407   :  { %2501 = vperm.xlu2 %5267, %v5835_v8  }
 0x409   :  { %5282 = vset.pattern.permute.xlu1 %v5805_v63  ;;  %5338 = vset.pattern.permute.xlu0 %v5805_v63 }
 0x40f   :  { %5269 = vset.pattern.permute.xlu2 %v5818_v4 }
 0x411   :  { %3271 = vperm.xlu1 %5282, %v5861_v11   ;;  %2931 = vperm.xlu0 %5338, %v5954_v35  }
 0x417   :  { %2513 = vperm.xlu2 %5269, %v5835_v8   ;;  %v387_v8 = vrot.slane %v5785_v52, 3 }
 0x419   :  { %5285 = vset.pattern.permute.xlu1 %v5818_v4  ;;  %5343 = vset.pattern.permute.xlu0 %v5767_v40  ;;  %v402_v13 = vperm.slane %v387_v8, 0  ;;  %v442_v8 = vadd.f32 %v5968_v38, %v404_v54 }
 0x41b   :  { %v440_v48 = vadd.f32 %v5968_v38, %v402_v13  ;;  %v458_v51 = vmax.f32 %v442_v8, 0.0 }
 0x41d   :  { %v456_v49 = vmax.f32 %v440_v48, 0.0 }
 0x41f   :  { %5274 = vset.pattern.permute.xlu2 %v5805_v63 }
 0x421   :  { %3289 = vperm.xlu1 %5285, %v5861_v11   ;;  %2961 = vperm.xlu0 %5343, %v5954_v35  }
 0x427   :  { %2883 = vperm.xlu2 %5274, %v5848_v10  }
 0x429   :  { %5287 = vset.pattern.permute.xlu1 %v5767_v40  ;;  %5345 = vset.pattern.permute.xlu0 %v5800_v60 }
 0x42f   :  { %5276 = vset.pattern.permute.xlu2 %v5795_v59 }
 0x431   :  { %3301 = vperm.xlu1 %5287, %v5861_v11   ;;  %3313 = vperm.xlu0 %5345, %v5975_v41  }
 0x437   :  { %2895 = vperm.xlu2 %5276, %v5848_v10  }
 0x439   :  { %5289 = vset.pattern.permute.xlu1 %v5800_v60  ;;  %5350 = vset.pattern.permute.xlu0 %v5764_v39 }
 0x43f   :  { %5279 = vset.pattern.permute.xlu2 %v5767_v40 }
 0x441   :  { %3653 = vperm.xlu1 %5289, %v5870_v12   ;;  %3343 = vperm.xlu0 %5350, %v5975_v41  }
 0x447   :  { %2913 = vperm.xlu2 %5279, %v5848_v10   ;;  %v6031_v10 = vpop.permute.xlu2 %1719 }
 0x448   :  { %10490 = vst [vmem:[#allocation26_spill] sm:$0xff] %v6031_v10 }
 0x449   :  { %5292 = vset.pattern.permute.xlu1 %v5795_v59  ;;  %5352 = vset.pattern.permute.xlu0 %v5622_v6 }
 0x44f   :  { %5281 = vset.pattern.permute.xlu2 %v5800_v60  ;;  %v6043_v50 = vpop.permute.xlu2 %1737 }
 0x450   :  { %10491 = vst [vmem:[#allocation27_spill] sm:$0xff] %v6043_v50 }
 0x451   :  { %3671 = vperm.xlu1 %5292, %v5870_v12   ;;  %3695 = vperm.xlu0 %5352, %v5998_v46  }
 0x457   :  { %3265 = vperm.xlu2 %5281, %v5861_v11   ;;  %v6051_v13 = vpop.permute.xlu2 %1749 }
 0x458   :  { %10492 = vst [vmem:[#allocation28_spill] sm:$0xff] %v6051_v13 }
 0x459   :  { %5294 = vset.pattern.permute.xlu1 %v5764_v39  ;;  %5357 = vset.pattern.permute.xlu0 %v5818_v4 }
 0x45f   :  { %5283 = vset.pattern.permute.xlu2 %v5808_v1 }
 0x461   :  { %3683 = vperm.xlu1 %5294, %v5870_v12   ;;  %3725 = vperm.xlu0 %5357, %v5998_v46  }
 0x467   :  { %3277 = vperm.xlu2 %5283, %v5861_v11  }
 0x469   :  { %5299 = vset.pattern.permute.xlu1 %v5808_v1  ;;  %5362 = vset.pattern.permute.xlu0 %v9948_v0 }
 0x46f   :  { %5286 = vset.pattern.permute.xlu2 %v5764_v39 }
 0x471   :  { %1125 = vperm.xlu1 %5299, %v5883_v14  }
 0x477   :  { %3295 = vperm.xlu2 %5286, %v5861_v11   ;;  %v6037_v11 = vld [vmem:[%s9939_s12] ss:$0 sm:$0xff] }
 0x478   :  { %v473_v0 = vmul.f32 %v6037_v11, %v453_v9  ;;  %v476_v62 = vmul.f32 %v6037_v11, %v456_v49  ;;  %v391_v9 = vrot.slane %v5785_v52, 7  ;;  %v478_v48 = vmul.f32 %v6037_v11, %v458_v51  ;;  %v6058_v49 = vpop.permute.xlu2 %2101 }
 0x479   :  { %5301 = vset.pattern.permute.xlu1 %v5818_v4  ;;  %10493 = vst [vmem:[#allocation29_spill] sm:$0xff] %v6058_v49 }
 0x47a   :  { %v489_v5 = vsel %vm179_vm1, %v473_v0, 0.0  ;;  %v498_v50 = vsel %vm179_vm1, %v476_v62, 0.0  ;;  %v406_v0 = vperm.slane %v391_v9, 0  ;;  %v504_v54 = vsel %vm179_vm1, %v478_v48, 0.0 }
 0x47c   :  { %v444_v3 = vadd.f32 %v5968_v38, %v406_v0  ;;  %v10498_v0 = vperm.slane %v5779_v47, 0 }
 0x47f   :  { %5288 = vset.pattern.permute.xlu2 %v5622_v6 }
 0x481   :  { %1137 = vperm.xlu1 %5301, %v5883_v14  }
 0x487   :  { %3647 = vperm.xlu2 %5288, %v5870_v12  }
 0x489   :  { %5306 = vset.pattern.permute.xlu1 %v5805_v63 }
 0x48b   :  { %490 = vadd.xlane.f32.xlu0 %v489_v5  ;;  %v460_v5 = vmax.f32 %v444_v3, 0.0 }
 0x48d   :  { %v480_v13 = vmul.f32 %v6037_v11, %v460_v5 }
 0x48f   :  { %5290 = vset.pattern.permute.xlu2 %v5805_v63  ;;  %v510_v51 = vsel %vm179_vm1, %v480_v13, 0.0  ;;  %v366_v13 = vpop.f32.mrf.mxu2 }
 0x490   :  { %v6082_v48 = vadd.f32 %v366_v13, %v10498_v0 }
 0x491   :  { %1379 = vperm.xlu1 %5306, %v5892_v15  }
 0x493   :  { %499 = vadd.xlane.f32.xlu0 %v498_v50  ;;  %v6064_v50 = vpop.permute.xlu2 %2119 }
 0x494   :  { %10494 = vst [vmem:[#allocation30_spill] sm:$0xff] %v6064_v50 }
 0x497   :  { %3659 = vperm.xlu2 %5290, %v5870_v12  }
 0x499   :  { %5308 = vset.pattern.permute.xlu1 %v5795_v59 }
 0x49b   :  { %505 = vadd.xlane.f32.xlu0 %v504_v54  ;;  %v6069_v62 = vpop.permute.xlu2 %2131 }
 0x49c   :  { %10495 = vst [vmem:[#allocation31_spill] sm:$0xff] %v6069_v62 }
 0x49f   :  { %5293 = vset.pattern.permute.xlu2 %v5818_v4 }
 0x4a1   :  { %1391 = vperm.xlu1 %5308, %v5892_v15  }
 0x4a3   :  { %511 = vadd.xlane.f32.xlu0 %v510_v51  ;;  %v6073_v8 = vpop.permute.xlu2 %2483 }
 0x4a4   :  { %10496 = vst [vmem:[#allocation32_spill] sm:$0xff] %v6073_v8 }
 0x4a7   :  { %3677 = vperm.xlu2 %5293, %v5870_v12  }
 0x4a9   :  { %5311 = vset.pattern.permute.xlu1 %v5767_v40 }
 0x4ab   :  { %v6077_v9 = vpop.permute.xlu2 %2501 }
 0x4ac   :  { %10497 = vst [vmem:[#allocation33_spill] sm:$0xff] %v6077_v9 }
 0x4af   :  { %5295 = vset.pattern.permute.xlu2 %v5767_v40 }
 0x4b1   :  { %1409 = vperm.xlu1 %5311, %v5892_v15  }
 0x4b3   :  { %v6087_v3 = vpop.permute.xlu2 %2513 }
 0x4b4   :  { %10499 = vst [vmem:[#allocation34_spill] sm:$0xff] %v6087_v3 }
 0x4b7   :  { %3689 = vperm.xlu2 %5295, %v5870_v12  }
 0x4b9   :  { %5313 = vset.pattern.permute.xlu1 %v5800_v60 }
 0x4bb   :  { %v6091_v12 = vpop.permute.xlu2 %2883 }
 0x4bc   :  { %10500 = vst [vmem:[#allocation35_spill] sm:$0xff] %v6091_v12 }
 0x4bf   :  { %5296 = vset.pattern.permute.xlu2 %v5622_v6 }
 0x4c0   :  { %433 = vrot.lane.b32.xlu2 %v6082_v48, %s5495_s2 }
 0x4c1   :  { %1761 = vperm.xlu1 %5313, %v5909_v26  }
 0x4c3   :  { %v6095_v47 = vpop.permute.xlu2 %2895 }
 0x4c4   :  { %10501 = vst [vmem:[#allocation36_spill] sm:$0xff] %v6095_v47  ;;  %v6118_v47 = vpop.permute.xlu1 %1101 }
 0x4c5   :  { %10507 = vst [vmem:[#allocation42_spill] sm:$0xff] %v6118_v47  ;;  %v392_v47 = vrot.slane %v6082_v48, 1 }
 0x4c8   :  { %1107 = vperm.xlu2 %5296, %v5883_v14  }
 0x4c9   :  { %5315 = vset.pattern.permute.xlu1 %v5808_v1 }
 0x4cb   :  { %v6099_v54 = vpop.permute.xlu2 %2913 }
 0x4cc   :  { %10502 = vst [vmem:[#allocation37_spill] sm:$0xff] %v6099_v54  ;;  %v6124_v50 = vpop.permute.xlu1 %1319 }
 0x4cd   :  { %10509 = vst [vmem:[#allocation44_spill] sm:$0xff] %v6124_v50 }
 0x4d0   :  { %5297 = vset.pattern.permute.xlu2 %v5800_v60 }
 0x4d1   :  { %1773 = vperm.xlu1 %5315, %v5909_v26  }
 0x4d3   :  { %v6103_v5 = vpop.permute.xlu2 %3265 }
 0x4d4   :  { %10503 = vst [vmem:[#allocation38_spill] sm:$0xff] %v6103_v5  ;;  %v6130_v54 = vpop.permute.xlu1 %1331  ;;  %v394_v5 = vrot.slane %v6082_v48, 3 }
 0x4d5   :  { %10511 = vst [vmem:[#allocation46_spill] sm:$0xff] %v6130_v54 }
 0x4d6   :  { %v410_v49 = vperm.slane %v394_v5, 0 }
 0x4d8   :  { %1113 = vperm.xlu2 %5297, %v5883_v14  }
 0x4d9   :  { %5318 = vset.pattern.permute.xlu1 %v5764_v39 }
 0x4db   :  { %v6107_v51 = vpop.permute.xlu2 %3277 }
 0x4dc   :  { %10504 = vst [vmem:[#allocation39_spill] sm:$0xff] %v6107_v51 }
 0x4e0   :  { %5298 = vset.pattern.permute.xlu2 %v5805_v63 }
 0x4e1   :  { %1791 = vperm.xlu1 %5318, %v5909_v26  }
 0x4e3   :  { %v6111_v13 = vpop.permute.xlu2 %3295 }
 0x4e4   :  { %10505 = vst [vmem:[#allocation40_spill] sm:$0xff] %v6111_v13 }
 0x4e8   :  { %1119 = vperm.xlu2 %5298, %v5883_v14  }
 0x4e9   :  { %5320 = vset.pattern.permute.xlu1 %v5622_v6 }
 0x4eb   :  { %v6115_v0 = vpop.permute.xlu2 %3647 }
 0x4ec   :  { %10506 = vst [vmem:[#allocation41_spill] sm:$0xff] %v6115_v0  ;;  %v6137_v0 = vpop.permute.xlu1 %1349 }
 0x4ed   :  { %10513 = vst [vmem:[#allocation48_spill] sm:$0xff] %v6137_v0  ;;  %v397_v0 = vrot.slane %v6082_v48, 6 }
 0x4ef   :  { %v413_v51 = vperm.slane %v397_v0, 0 }
 0x4f0   :  { %5300 = vset.pattern.permute.xlu2 %v5795_v59 }
 0x4f1   :  { %2143 = vperm.xlu1 %5320, %v5930_v30  }
 0x4f3   :  { %v6121_v3 = vpop.permute.xlu2 %3659 }
 0x4f4   :  { %10508 = vst [vmem:[#allocation43_spill] sm:$0xff] %v6121_v3 }
 0x4f8   :  { %1131 = vperm.xlu2 %5300, %v5883_v14  }
 0x4f9   :  { %5322 = vset.pattern.permute.xlu1 %v5805_v63 }
 0x500   :  { %5302 = vset.pattern.permute.xlu2 %v5764_v39 }
 0x501   :  { %2155 = vperm.xlu1 %5322, %v5930_v30   ;;  %v6127_v13 = vpop.permute.xlu2 %3677 }
 0x502   :  { %10510 = vst [vmem:[#allocation45_spill] sm:$0xff] %v6127_v13 }
 0x508   :  { %1143 = vperm.xlu2 %5302, %v5883_v14   ;;  %v408_v14 = vperm.slane %v392_v47, 0 }
 0x509   :  { %5325 = vset.pattern.permute.xlu1 %v5818_v4 }
 0x510   :  { %5304 = vset.pattern.permute.xlu2 %v5622_v6 }
 0x511   :  { %2173 = vperm.xlu1 %5325, %v5930_v30   ;;  %v6134_v62 = vpop.permute.xlu2 %3689 }
 0x512   :  { %10512 = vst [vmem:[#allocation47_spill] sm:$0xff] %v6134_v62  ;;  %v6146_v62 = vpop.permute.xlu1 %1361 }
 0x513   :  { %10514 = vst [vmem:[#allocation49_spill] sm:$0xff] %v6146_v62 }
 0x518   :  { %1367 = vperm.xlu2 %5304, %v5892_v15  }
 0x519   :  { %5327 = vset.pattern.permute.xlu1 %v5767_v40 }
 0x51a   :  { %v6142_v13 = vpop.permute.xlu2 %433 }
 0x51b   :  { %v446_v8 = vadd.f32 %v6142_v13, %v408_v14  ;;  %v448_v43 = vadd.f32 %v6142_v13, %v410_v49  ;;  %v6155_v49 = vpop.permute.xlu1 %1713 }
 0x51c   :  { %10515 = vst [vmem:[#allocation50_spill] sm:$0xff] %v6155_v49 }
 0x51d   :  { %v462_v50 = vmax.f32 %v446_v8, 0.0  ;;  %v464_v3 = vmax.f32 %v448_v43, 0.0  ;;  %v451_v8 = vadd.f32 %v6142_v13, %v413_v51 }
 0x51f   :  { %v482_v42 = vmul.f32 %v6037_v11, %v462_v50  ;;  %v484_v5 = vmul.f32 %v6037_v11, %v464_v3  ;;  %v467_v14 = vmax.f32 %v451_v8, 0.0 }
 0x520   :  { %5307 = vset.pattern.permute.xlu2 %v5808_v1 }
 0x521   :  { %2185 = vperm.xlu1 %5327, %v5930_v30   ;;  %v516_v47 = vsel %vm179_vm1, %v482_v42, 0.0  ;;  %v522_v50 = vsel %vm179_vm1, %v484_v5, 0.0  ;;  %v487_v62 = vmul.f32 %v6037_v11, %v467_v14 }
 0x522   :  { %517 = vadd.xlane.f32.xlu0 %v516_v47 }
 0x523   :  { %v6161_v42 = vpop.permute.xlu1 %1731  ;;  %v531_v43 = vsel %vm179_vm1, %v487_v62, 0.0 }
 0x524   :  { %10516 = vst [vmem:[#allocation51_spill] sm:$0xff] %v6161_v42 }
 0x528   :  { %1385 = vperm.xlu2 %5307, %v5892_v15  }
 0x529   :  { %5329 = vset.pattern.permute.xlu1 %v5800_v60 }
 0x52a   :  { %523 = vadd.xlane.f32.xlu0 %v522_v50 }
 0x52b   :  { %v6166_v3 = vpop.permute.xlu1 %1743 }
 0x52c   :  { %10517 = vst [vmem:[#allocation52_spill] sm:$0xff] %v6166_v3 }
 0x530   :  { %5309 = vset.pattern.permute.xlu2 %v5818_v4 }
 0x531   :  { %2537 = vperm.xlu1 %5329, %v5941_v32  }
 0x532   :  { %532 = vadd.xlane.f32.xlu0 %v531_v43 }
 0x533   :  { %v6170_v51 = vpop.permute.xlu1 %2095 }
 0x534   :  { %10518 = vst [vmem:[#allocation53_spill] sm:$0xff] %v6170_v51 }
 0x538   :  { %1397 = vperm.xlu2 %5309, %v5892_v15  }
 0x539   :  { %5332 = vset.pattern.permute.xlu1 %v5795_v59 }
 0x53b   :  { %v6174_v0 = vpop.permute.xlu1 %2113 }
 0x53c   :  { %10519 = vst [vmem:[#allocation54_spill] sm:$0xff] %v6174_v0 }
 0x540   :  { %5314 = vset.pattern.permute.xlu2 %v5805_v63 }
 0x541   :  { %2555 = vperm.xlu1 %5332, %v5941_v32  }
 0x543   :  { %v6178_v62 = vpop.permute.xlu1 %2125 }
 0x544   :  { %10520 = vst [vmem:[#allocation55_spill] sm:$0xff] %v6178_v62 }
 0x548   :  { %1767 = vperm.xlu2 %5314, %v5909_v26  }
 0x549   :  { %5334 = vset.pattern.permute.xlu1 %v5764_v39 }
 0x54b   :  { %v6182_v15 = vpop.permute.xlu1 %2495 }
 0x54c   :  { %10521 = vst [vmem:[#allocation56_spill] sm:$0xff] %v6182_v15 }
 0x550   :  { %5316 = vset.pattern.permute.xlu2 %v5795_v59 }
 0x551   :  { %2567 = vperm.xlu1 %5334, %v5941_v32  }
 0x553   :  { %v6186_v47 = vpop.permute.xlu1 %2507 }
 0x554   :  { %10522 = vst [vmem:[#allocation57_spill] sm:$0xff] %v6186_v47 }
 0x558   :  { %1779 = vperm.xlu2 %5316, %v5909_v26  }
 0x559   :  { %5336 = vset.pattern.permute.xlu1 %v5622_v6 }
 0x55b   :  { %v6190_v5 = vpop.permute.xlu1 %2525 }
 0x55c   :  { %10523 = vst [vmem:[#allocation58_spill] sm:$0xff] %v6190_v5 }
 0x560   :  { %5319 = vset.pattern.permute.xlu2 %v5767_v40 }
 0x561   :  { %2919 = vperm.xlu1 %5336, %v5954_v35  }
 0x563   :  { %v6194_v8 = vpop.permute.xlu1 %2877 }
 0x564   :  { %10524 = vst [vmem:[#allocation59_spill] sm:$0xff] %v6194_v8 }
 0x568   :  { %1797 = vperm.xlu2 %5319, %v5909_v26   ;;  %v6206_v26 = vpop.permute.xlu0 %1095 }
 0x569   :  { %5339 = vset.pattern.permute.xlu1 %v5808_v1  ;;  %10527 = vst [vmem:[#allocation62_spill] sm:$0xff] %v6206_v26 }
 0x56b   :  { %v6198_v50 = vpop.permute.xlu1 %2889 }
 0x56c   :  { %10525 = vst [vmem:[#allocation60_spill] sm:$0xff] %v6198_v50 }
 0x570   :  { %5321 = vset.pattern.permute.xlu2 %v5800_v60  ;;  %v6212_v47 = vpop.permute.xlu0 %1343 }
 0x571   :  { %2937 = vperm.xlu1 %5339, %v5954_v35   ;;  %10529 = vst [vmem:[#allocation64_spill] sm:$0xff] %v6212_v47 }
 0x573   :  { %v6202_v14 = vpop.permute.xlu1 %2907 }
 0x574   :  { %10526 = vst [vmem:[#allocation61_spill] sm:$0xff] %v6202_v14 }
 0x578   :  { %2149 = vperm.xlu2 %5321, %v5930_v30   ;;  %v6218_v42 = vpop.permute.xlu0 %1725 }
 0x579   :  { %5341 = vset.pattern.permute.xlu1 %v5818_v4  ;;  %10531 = vst [vmem:[#allocation66_spill] sm:$0xff] %v6218_v42 }
 0x57b   :  { %v6208_v43 = vpop.permute.xlu1 %3259 }
 0x57c   :  { %10528 = vst [vmem:[#allocation63_spill] sm:$0xff] %v6208_v43 }
 0x580   :  { %5323 = vset.pattern.permute.xlu2 %v5808_v1  ;;  %v6224_v5 = vpop.permute.xlu0 %2107 }
 0x581   :  { %2949 = vperm.xlu1 %5341, %v5954_v35   ;;  %10533 = vst [vmem:[#allocation68_spill] sm:$0xff] %v6224_v5 }
 0x583   :  { %v6214_v62 = vpop.permute.xlu1 %3271 }
 0x584   :  { %10530 = vst [vmem:[#allocation65_spill] sm:$0xff] %v6214_v62 }
 0x588   :  { %2161 = vperm.xlu2 %5323, %v5930_v30   ;;  %v6230_v47 = vpop.permute.xlu0 %2137 }
 0x589   :  { %5346 = vset.pattern.permute.xlu1 %v5805_v63  ;;  %10535 = vst [vmem:[#allocation70_spill] sm:$0xff] %v6230_v47 }
 0x58b   :  { %v6220_v14 = vpop.permute.xlu1 %3289 }
 0x58c   :  { %10532 = vst [vmem:[#allocation67_spill] sm:$0xff] %v6220_v14 }
 0x590   :  { %5326 = vset.pattern.permute.xlu2 %v5764_v39  ;;  %v6236_v14 = vpop.permute.xlu0 %2489 }
 0x591   :  { %3319 = vperm.xlu1 %5346, %v5975_v41   ;;  %10537 = vst [vmem:[#allocation72_spill] sm:$0xff] %v6236_v14  ;;  %v10553_v14 = vmov 0  }
 0x593   :  { %v6226_v3 = vpop.permute.xlu1 %3301 }
 0x594   :  { %10534 = vst [vmem:[#allocation69_spill] sm:$0xff] %v6226_v3 }
 0x598   :  { %2179 = vperm.xlu2 %5326, %v5930_v30   ;;  %v6242_v3 = vpop.permute.xlu0 %2519 }
 0x599   :  { %5348 = vset.pattern.permute.xlu1 %v5795_v59  ;;  %10539 = vst [vmem:[#allocation74_spill] sm:$0xff] %v6242_v3 }
 0x59b   :  { %v6232_v26 = vpop.permute.xlu1 %3653 }
 0x59c   :  { %10536 = vst [vmem:[#allocation71_spill] sm:$0xff] %v6232_v26 }
 0x5a0   :  { %5328 = vset.pattern.permute.xlu2 %v5622_v6  ;;  %v6248_v47 = vpop.permute.xlu0 %2871 }
 0x5a1   :  { %3331 = vperm.xlu1 %5348, %v5975_v41   ;;  %10541 = vst [vmem:[#allocation76_spill] sm:$0xff] %v6248_v47 }
 0x5a3   :  { %v6238_v30 = vpop.permute.xlu1 %3671 }
 0x5a4   :  { %10538 = vst [vmem:[#allocation73_spill] sm:$0xff] %v6238_v30 }
 0x5a8   :  { %2531 = vperm.xlu2 %5328, %v5941_v32   ;;  %v6254_v30 = vpop.permute.xlu0 %2901 }
 0x5a9   :  { %5351 = vset.pattern.permute.xlu1 %v5767_v40  ;;  %10543 = vst [vmem:[#allocation78_spill] sm:$0xff] %v6254_v30 }
 0x5ab   :  { %v6244_v43 = vpop.permute.xlu1 %3683 }
 0x5ac   :  { %10540 = vst [vmem:[#allocation75_spill] sm:$0xff] %v6244_v43 }
 0x5b0   :  { %5330 = vset.pattern.permute.xlu2 %v5805_v63  ;;  %v6260_v43 = vpop.permute.xlu0 %3283 }
 0x5b1   :  { %3349 = vperm.xlu1 %5351, %v5975_v41   ;;  %10545 = vst [vmem:[#allocation80_spill] sm:$0xff] %v6260_v43 }
 0x5b3   :  { %v6250_v26 = vpop.permute.xlu1 %1125 }
 0x5b4   :  { %10542 = vst [vmem:[#allocation77_spill] sm:$0xff] %v6250_v26 }
 0x5b8   :  { %2543 = vperm.xlu2 %5330, %v5941_v32   ;;  %v6266_v26 = vpop.permute.xlu0 %3665 }
 0x5b9   :  { %5353 = vset.pattern.permute.xlu1 %v5800_v60  ;;  %10547 = vst [vmem:[#allocation82_spill] sm:$0xff] %v6266_v26 }
 0x5bb   :  { %v6256_v8 = vpop.permute.xlu1 %1137 }
 0x5bc   :  { %10544 = vst [vmem:[#allocation79_spill] sm:$0xff] %v6256_v8 }
 0x5c0   :  { %5333 = vset.pattern.permute.xlu2 %v5818_v4  ;;  %v6272_v8 = vpop.permute.xlu0 %1149 }
 0x5c1   :  { %3701 = vperm.xlu1 %5353, %v5998_v46   ;;  %10549 = vst [vmem:[#allocation84_spill] sm:$0xff] %v6272_v8 }
 0x5c3   :  { %v6262_v3 = vpop.permute.xlu1 %1379 }
 0x5c4   :  { %10546 = vst [vmem:[#allocation81_spill] sm:$0xff] %v6262_v3 }
 0x5c8   :  { %2561 = vperm.xlu2 %5333, %v5941_v32   ;;  %v6278_v3 = vpop.permute.xlu0 %1373 }
 0x5c9   :  { %5355 = vset.pattern.permute.xlu1 %v5808_v1  ;;  %10551 = vst [vmem:[#allocation86_spill] sm:$0xff] %v6278_v3 }
 0x5cb   :  { %v6268_v47 = vpop.permute.xlu1 %1391 }
 0x5cc   :  { %10548 = vst [vmem:[#allocation83_spill] sm:$0xff] %v6268_v47 }
 0x5d0   :  { %5335 = vset.pattern.permute.xlu2 %v5767_v40  ;;  %v6284_v47 = vpop.permute.xlu0 %1403 }
 0x5d1   :  { %3713 = vperm.xlu1 %5355, %v5998_v46   ;;  %10554 = vst [vmem:[#allocation88_spill] sm:$0xff] %v6284_v47  ;;  %v388_v47 = vrot.slane %v5785_v52, 4 }
 0x5d3   :  { %v6274_v30 = vpop.permute.xlu1 %1409  ;;  %v403_v26 = vperm.slane %v388_v47, 0 }
 0x5d4   :  { %10550 = vst [vmem:[#allocation85_spill] sm:$0xff] %v6274_v30 }
 0x5d5   :  { %v441_v50 = vadd.f32 %v5968_v38, %v403_v26 }
 0x5d8   :  { %2573 = vperm.xlu2 %5335, %v5941_v32   ;;  %v6289_v8 = vpop.permute.xlu0 %1755 }
 0x5d9   :  { %5358 = vset.pattern.permute.xlu1 %v5764_v39  ;;  %10556 = vst [vmem:[#allocation90_spill] sm:$0xff] %v6289_v8 }
 0x5db   :  { %v6280_v43 = vpop.permute.xlu1 %1761 }
 0x5dc   :  { %10552 = vst [vmem:[#allocation87_spill] sm:$0xff] %v6280_v43 }
 0x5e0   :  { %5337 = vset.pattern.permute.xlu2 %v5800_v60  ;;  %v385_v60 = vrot.slane %v5785_v52, 1  ;;  %v6295_v3 = vpop.permute.xlu0 %1785 }
 0x5e1   :  { %3731 = vperm.xlu1 %5358, %v5998_v46   ;;  %10558 = vst [vmem:[#allocation92_spill] sm:$0xff] %v6295_v3 }
 0x5e2   :  { %v400_v43 = vperm.slane %v385_v60, 0  ;;  %v390_v60 = vrot.slane %v5785_v52, 6 }
 0x5e3   :  { %v6286_v32 = vpop.permute.xlu1 %1773 }
 0x5e4   :  { %10555 = vst [vmem:[#allocation89_spill] sm:$0xff] %v6286_v32  ;;  %v438_v49 = vadd.f32 %v5968_v38, %v400_v43  ;;  %v457_v43 = vmax.f32 %v441_v50, 0.0 }
 0x5e6   :  { %v454_v8 = vmax.f32 %v438_v49, 0.0  ;;  %v477_v49 = vmul.f32 %v6037_v11, %v457_v43 }
 0x5e8   :  { %2925 = vperm.xlu2 %5337, %v5954_v35   ;;  %v6302_v32 = vpop.permute.xlu0 %2167  ;;  %v474_v62 = vmul.f32 %v6037_v11, %v454_v8 }
 0x5e9   :  { %5360 = vset.pattern.permute.xlu1 %v10553_v14  ;;  %10560 = vst [vmem:[#allocation94_spill] sm:$0xff] %v6302_v32 }
 0x5eb   :  { %v6291_v30 = vpop.permute.xlu1 %1791 }
 0x5ec   :  { %10557 = vst [vmem:[#allocation91_spill] sm:$0xff] %v6291_v30 }
 0x5f0   :  { %5340 = vset.pattern.permute.xlu2 %v5795_v59  ;;  %v6310_v3 = vpop.permute.xlu0 %2549 }
 0x5f1   :  { %10562 = vst [vmem:[#allocation96_spill] sm:$0xff] %v6310_v3  ;;  %v407_v3 = vperm.slane %v6082_v48, 0 }
 0x5f3   :  { %v6297_v51 = vpop.permute.xlu1 %2143 }
 0x5f4   :  { %10559 = vst [vmem:[#allocation93_spill] sm:$0xff] %v6297_v51  ;;  %v405_v51 = vperm.slane %v390_v60, 0  ;;  %v445_v60 = vadd.f32 %v6142_v13, %v407_v3  ;;  %v395_v3 = vrot.slane %v6082_v48, 4 }
 0x5f6   :  { %v443_v47 = vadd.f32 %v5968_v38, %v405_v51  ;;  %v393_v51 = vrot.slane %v6082_v48, 2  ;;  %v461_v43 = vmax.f32 %v445_v60, 0.0 }
 0x5f8   :  { %2943 = vperm.xlu2 %5340, %v5954_v35   ;;  %v6318_v8 = vpop.permute.xlu0 %2931  ;;  %v459_v26 = vmax.f32 %v443_v47, 0.0 }
 0x5f9   :  { %10564 = vst [vmem:[#allocation98_spill] sm:$0xff] %v6318_v8 }
 0x5fa   :  { %v479_v50 = vmul.f32 %v6037_v11, %v459_v26 }
 0x5fb   :  { %v6304_v30 = vpop.permute.xlu1 %2155 }
 0x5fc   :  { %10561 = vst [vmem:[#allocation95_spill] sm:$0xff] %v6304_v30 }
 0x600   :  { %5342 = vset.pattern.permute.xlu2 %v5764_v39  ;;  %v492_v39 = vsel %vm179_vm1, %v474_v62, 0.0 }
 0x603   :  { %v6313_v32 = vpop.permute.xlu1 %2173 }
 0x604   :  { %10563 = vst [vmem:[#allocation97_spill] sm:$0xff] %v6313_v32 }
 0x608   :  { %2955 = vperm.xlu2 %5342, %v5954_v35   ;;  %v501_v35 = vsel %vm179_vm1, %v477_v49, 0.0  ;;  %v409_v49 = vperm.slane %v393_v51, 0 }
 0x60a   :  { %v447_v32 = vadd.f32 %v6142_v13, %v409_v49 }
 0x60b   :  { %493 = vadd.xlane.f32.xlu1 %v492_v39  ;;  %v6322_v62 = vpop.permute.xlu1 %2185  ;;  %v6328_v39 = vpop.permute.xlu0 %2961 }
 0x60c   :  { %10565 = vst [vmem:[#allocation99_spill] sm:$0xff] %v6322_v62 }
 0x60d   :  { %10566 = vst [vmem:[#allocation100_spill] sm:$0xff] %v6328_v39  ;;  %v463_v39 = vmax.f32 %v447_v32, 0.0 }
 0x60f   :  { %v483_v51 = vmul.f32 %v6037_v11, %v463_v39 }
 0x610   :  { %5344 = vset.pattern.permute.xlu2 %v5622_v6  ;;  %v507_v6 = vsel %vm179_vm1, %v479_v50, 0.0  ;;  %v411_v50 = vperm.slane %v395_v3, 0 }
 0x611   :  { %v519_v49 = vsel %vm179_vm1, %v483_v51, 0.0 }
 0x613   :  { %502 = vadd.xlane.f32.xlu1 %v501_v35  ;;  %v6331_v47 = vpop.permute.xlu1 %2537  ;;  %v481_v35 = vmul.f32 %v6037_v11, %v461_v43  ;;  %v6337_v26 = vpop.permute.xlu0 %3313  ;;  %v398_v43 = vrot.slane %v6082_v48, 7 }
 0x614   :  { %10567 = vst [vmem:[#allocation101_spill] sm:$0xff] %v6331_v47 }
 0x615   :  { %10568 = vst [vmem:[#allocation102_spill] sm:$0xff] %v6337_v26  ;;  %v513_v62 = vsel %vm179_vm1, %v481_v35, 0.0  ;;  %v6349_v35 = vpop.permute.xlu2 %1107  ;;  %v414_v32 = vperm.slane %v398_v43, 0 }
 0x616   :  { %10571 = vst [vmem:[#allocation105_spill] sm:$0xff] %v6349_v35 }
 0x617   :  { %v452_v39 = vadd.f32 %v6142_v13, %v414_v32 }
 0x618   :  { %3307 = vperm.xlu2 %5344, %v5975_v41  }
 0x61b   :  { %508 = vadd.xlane.f32.xlu1 %v507_v6  ;;  %v6340_v60 = vpop.permute.xlu1 %2555  ;;  %v449_v6 = vadd.f32 %v6142_v13, %v411_v50 }
 0x61c   :  { %10569 = vst [vmem:[#allocation103_spill] sm:$0xff] %v6340_v60 }
 0x61d   :  { %v465_v8 = vmax.f32 %v449_v6, 0.0  ;;  %v6359_v51 = vpop.permute.xlu2 %1113 }
 0x61e   :  { %10574 = vst [vmem:[#allocation108_spill] sm:$0xff] %v6359_v51 }
 0x61f   :  { %v485_v3 = vmul.f32 %v6037_v11, %v465_v8 }
 0x620   :  { %5347 = vset.pattern.permute.xlu2 %v5808_v1  ;;  %v6346_v1 = vpop.permute.xlu0 %3343 }
 0x621   :  { %10570 = vst [vmem:[#allocation104_spill] sm:$0xff] %v6346_v1  ;;  %v525_v60 = vsel %vm179_vm1, %v485_v3, 0.0  ;;  %v468_v1 = vmax.f32 %v452_v39, 0.0 }
 0x623   :  { %514 = vadd.xlane.f32.xlu1 %v513_v62  ;;  %v6351_v62 = vpop.permute.xlu1 %2567  ;;  %v488_v43 = vmul.f32 %v6037_v11, %v468_v1  ;;  %v6378_v1 = vstv %s10580_s6 }
 0x624   :  { %10572 = vst [vmem:[#allocation106_spill] sm:$0xff] %v6351_v62 }
 0x625   :  { %v534_v8 = vsel %vm179_vm1, %v488_v43, 0.0 }
 0x628   :  { %3325 = vperm.xlu2 %5347, %v5975_v41   ;;  %v6356_v50 = vpop.permute.xlu0 %3695 }
 0x629   :  { %10573 = vst [vmem:[#allocation107_spill] sm:$0xff] %v6356_v50 }
 0x62b   :  { %520 = vadd.xlane.f32.xlu1 %v519_v49  ;;  %v6361_v6 = vpop.permute.xlu1 %2919 }
 0x62c   :  { %10575 = vst [vmem:[#allocation109_spill] sm:$0xff] %v6361_v6  ;;  %v10622_v6 = vld [vmem:[#allocation39_spill] sm:$0xff] }
 0x630   :  { %5349 = vset.pattern.permute.xlu2 %v5818_v4  ;;  %v6365_v49 = vpop.permute.xlu0 %3725  ;;  %v6368_v4 = vpop.permute.xlu2 %1119 }
 0x631   :  { %10576 = vst [vmem:[#allocation110_spill] sm:$0xff] %v6365_v49 }
 0x632   :  { %10577 = vst [vmem:[#allocation111_spill] sm:$0xff] %v6368_v4 }
 0x633   :  { %526 = vadd.xlane.f32.xlu1 %v525_v60  ;;  %v6370_v32 = vpop.permute.xlu1 %2937 }
 0x634   :  { %10578 = vst [vmem:[#allocation112_spill] sm:$0xff] %v6370_v32 }
 0x638   :  { %3337 = vperm.xlu2 %5349, %v5975_v41   ;;  %v491_v60 = vpop.xlane.xlu0 %490  ;;  %v6373_v3 = vpop.permute.xlu2 %1131 }
 0x639   :  { %10579 = vst [vmem:[#allocation113_spill] sm:$0xff] %v6373_v3  ;;  %vm566_vm9 = vcmp.gt.f32.partialorder %v491_v60, %v6378_v1 }
 0x63a   :  { %vm649_vm11 = vmor %vm566_vm9, %vm641_vm10 }
 0x63b   :  { %535 = vadd.xlane.f32.xlu1 %v534_v8  ;;  %v6380_v41 = vpop.permute.xlu1 %2949  ;;  %v10033_v8 = vmov 0.0  }
 0x63c   :  { %10581 = vst [vmem:[#allocation114_spill] sm:$0xff] %v6380_v41  ;;  %v5159_v49 = vsel %vm649_vm11, 1.0, %v10033_v8  ;;  %vm642_vm11 = vcmp.ne.s32.totalorder %v5905_v16, 0 }
 0x63d   :  { %v6395_v41 = vmul.f32 %v5159_v49, %v5926_v29 }
 0x640   :  { %5354 = vset.pattern.permute.xlu2 %v5805_v63  ;;  %v500_v63 = vpop.xlane.xlu0 %499  ;;  %v6387_v39 = vpop.permute.xlu2 %1143 }
 0x641   :  { %10582 = vst [vmem:[#allocation115_spill] sm:$0xff] %v6387_v39  ;;  %vm569_vm12 = vcmp.gt.f32.partialorder %v500_v63, %v6378_v1 }
 0x642   :  { %vm652_vm14 = vmor %vm569_vm12, %vm644_vm13 }
 0x643   :  { %v6389_v43 = vpop.permute.xlu1 %3319  ;;  %v5162_v39 = vsel %vm652_vm14, 1.0, %v10033_v8  ;;  %vm645_vm14 = vcmp.ne.s32.totalorder %v5685_v19, 0 }
 0x644   :  { %10583 = vst [vmem:[#allocation116_spill] sm:$0xff] %v6389_v43 }
 0x648   :  { %3707 = vperm.xlu2 %5354, %v5998_v46   ;;  %v6400_v60 = vpop.permute.xlu2 %1367  ;;  %v506_v3 = vpop.xlane.xlu0 %505 }
 0x649   :  { %10584 = vst [vmem:[#allocation117_spill] sm:$0xff] %v6400_v60  ;;  %vm571_vm15 = vcmp.gt.f32.partialorder %v506_v3, %v6378_v1 }
 0x64a   :  { %vm654_vm2 = vmor %vm571_vm15, %vm646_vm0 }
 0x64b   :  { %v6403_v62 = vpop.permute.xlu1 %3331  ;;  %v5164_v63 = vsel %vm654_vm2, 1.0, %v10033_v8 }
 0x64c   :  { %10585 = vst [vmem:[#allocation118_spill] sm:$0xff] %v6403_v62  ;;  %v6422_v3 = vmul.f32 %v5164_v63, %v5943_v33 }
 0x650   :  { %5356 = vset.pattern.permute.xlu2 %v5795_v59  ;;  %v6409_v59 = vmul.f32 %v5162_v39, %v5669_v56  ;;  %v6414_v29 = vpop.permute.xlu2 %1385 }
 0x651   :  { %10586 = vst [vmem:[#allocation119_spill] sm:$0xff] %v6414_v29 }
 0x653   :  { %v6417_v49 = vpop.permute.xlu1 %3349 }
 0x654   :  { %860 = vperm.xlu1 %5360, %v6395_v41   ;;  %10587 = vst [vmem:[#allocation120_spill] sm:$0xff] %v6417_v49  ;;  %v6442_v49 = vpop.xlane.xlu0 %511 }
 0x658   :  { %3719 = vperm.xlu2 %5356, %v5998_v46   ;;  %v6424_v56 = vpop.permute.xlu2 %1397 }
 0x659   :  { %10588 = vst [vmem:[#allocation121_spill] sm:$0xff] %v6424_v56  ;;  %v386_v56 = vrot.slane %v5785_v52, 2 }
 0x65b   :  { %v6427_v39 = vpop.permute.xlu1 %3701  ;;  %v401_v32 = vperm.slane %v386_v56, 0 }
 0x65c   :  { %869 = vperm.xlu1 %5360, %v6409_v59   ;;  %10589 = vst [vmem:[#allocation122_spill] sm:$0xff] %v6427_v39  ;;  %v518_v29 = vpop.xlane.xlu0 %517 }
 0x660   :  { %5359 = vset.pattern.permute.xlu2 %v5767_v40  ;;  %v6430_v62 = vpop.permute.xlu2 %1767 }
 0x661   :  { %10590 = vst [vmem:[#allocation123_spill] sm:$0xff] %v6430_v62 }
 0x663   :  { %v6432_v43 = vpop.permute.xlu1 %3713 }
 0x664   :  { %875 = vperm.xlu1 %5360, %v6422_v3   ;;  %10591 = vst [vmem:[#allocation124_spill] sm:$0xff] %v6432_v43  ;;  %v396_v43 = vrot.slane %v6082_v48, 5  ;;  %v524_v50 = vpop.xlane.xlu0 %523 }
 0x665   :  { %vm577_vm5 = vcmp.gt.f32.partialorder %v524_v50, %v6378_v1 }
 0x666   :  { %vm660_vm6 = vmor %vm577_vm5, %vm644_vm13 }
 0x668   :  { %3737 = vperm.xlu2 %5359, %v5998_v46   ;;  %v6435_v8 = vpop.permute.xlu2 %1779  ;;  %v439_v46 = vadd.f32 %v5968_v38, %v401_v32 }
 0x669   :  { %10592 = vst [vmem:[#allocation125_spill] sm:$0xff] %v6435_v8  ;;  %v412_v8 = vperm.slane %v396_v43, 0 }
 0x66b   :  { %v6437_v40 = vpop.permute.xlu1 %3731 }
 0x66c   :  { %10593 = vst [vmem:[#allocation126_spill] sm:$0xff] %v6437_v40 }
 0x670   :  { %5361 = vset.pattern.permute.xlu2 %v10553_v14  ;;  %v6439_v33 = vpop.permute.xlu2 %1797  ;;  %v455_v14 = vmax.f32 %v439_v46, 0.0 }
 0x671   :  { %10594 = vst [vmem:[#allocation127_spill] sm:$0xff] %v6439_v33  ;;  %v450_v33 = vadd.f32 %v6142_v13, %v412_v8  ;;  %v10598_v13 = vmov 0.0  }
 0x672   :  { %v475_v40 = vmul.f32 %v6037_v11, %v455_v14  ;;  %v5170_v17 = vsel %vm660_vm6, 1.0, %v10598_v13 }
 0x673   :  { %v466_v56 = vmax.f32 %v450_v33, 0.0  ;;  %v6473_v50 = vmul.f32 %v5170_v17, %v5958_v36 }
 0x674   :  { %v495_v39 = vsel %vm179_vm1, %v475_v40, 0.0 }
 0x675   :  { %v486_v38 = vmul.f32 %v6037_v11, %v466_v56 }
 0x677   :  { %v528_v32 = vsel %vm179_vm1, %v486_v38, 0.0 }
 0x678   :  { %v6444_v30 = vpop.permute.xlu2 %2149 }
 0x679   :  { %10595 = vst [vmem:[#allocation128_spill] sm:$0xff] %v6444_v30 }
 0x67e   :  { %v494_v63 = vpop.xlane.xlu1 %493 }
 0x680   :  { %v6448_v4 = vpop.permute.xlu2 %2161 }
 0x681   :  { %10596 = vst [vmem:[#allocation129_spill] sm:$0xff] %v6448_v4 }
 0x686   :  { %v503_v62 = vpop.xlane.xlu1 %502 }
 0x687   :  { %vm570_vm13 = vcmp.gt.f32.partialorder %v503_v62, %v6378_v1 }
 0x688   :  { %v6453_v26 = vpop.permute.xlu2 %2179  ;;  %vm653_vm15 = vmor %vm570_vm13, %vm645_vm14 }
 0x689   :  { %10597 = vst [vmem:[#allocation130_spill] sm:$0xff] %v6453_v26  ;;  %v5163_v46 = vsel %vm653_vm15, 1.0, %v10598_v13 }
 0x68a   :  { %v6506_v14 = vmul.f32 %v5163_v46, %v5691_v22 }
 0x68e   :  { %v509_v52 = vpop.xlane.xlu1 %508 }
 0x68f   :  { %vm572_vm2 = vcmp.gt.f32.partialorder %v509_v52, %v6378_v1 }
 0x690   :  { %v6467_v11 = vpop.permute.xlu2 %2531 }
 0x691   :  { %496 = vadd.xlane.f32.xlu2 %v495_v39  ;;  %10599 = vst [vmem:[#allocation131_spill] sm:$0xff] %v6467_v11  ;;  %v533_v39 = vpop.xlane.xlu0 %532  ;;  %v10623_v11 = vld [vmem:[#allocation43_spill] sm:$0xff] }
 0x692   :  { %vm580_vm7 = vcmp.gt.f32.partialorder %v533_v39, %v6378_v1 }
 0x693   :  { %vm663_vm9 = vmor %vm580_vm7, %vm647_vm8 }
 0x694   :  { %v5173_v27 = vsel %vm663_vm9, 1.0, %v10598_v13  ;;  %vm648_vm9 = vcmp.ne.s32.totalorder %v5687_v20, 0 }
 0x695   :  { %v6487_v36 = vmul.f32 %v5173_v27, %v5963_v37 }
 0x696   :  { %v515_v48 = vpop.xlane.xlu1 %514 }
 0x697   :  { %vm574_vm3 = vcmp.gt.f32.partialorder %v515_v48, %v6378_v1 }
 0x698   :  { %vm657_vm4 = vmor %vm574_vm3, %vm641_vm10  ;;  %vm567_vm10 = vcmp.gt.f32.partialorder %v494_v63, %v6378_v1 }
 0x699   :  { %v5167_v43 = vsel %vm657_vm4, 1.0, %v10598_v13  ;;  %529 = vadd.xlane.f32.xlu2 %v528_v32  ;;  %vm650_vm12 = vmor %vm567_vm10, %vm642_vm11  ;;  %vm575_vm4 = vcmp.gt.f32.partialorder %v518_v29, %v6378_v1 }
 0x69a   :  { %v6463_v8 = vmul.f32 %v5167_v43, %v5950_v34  ;;  %v6478_v34 = vpop.permute.xlu2 %2543  ;;  %v5160_v33 = vsel %vm650_vm12, 1.0, %v10598_v13  ;;  %vm655_vm3 = vmor %vm572_vm2, %vm647_vm8 }
 0x69b   :  { %10600 = vst [vmem:[#allocation132_spill] sm:$0xff] %v6478_v34  ;;  %v6495_v63 = vmul.f32 %v5160_v33, %v5689_v21  ;;  %v5165_v56 = vsel %vm655_vm3, 1.0, %v10598_v13  ;;  %vm658_vm5 = vmor %vm575_vm4, %vm642_vm11  ;;  %vm643_vm11 = vcmp.ne.s32.totalorder %v5683_v18, 0 }
 0x69c   :  { %884 = vperm.xlu1 %5360, %v6463_v8   ;;  %v6516_v38 = vmul.f32 %v5165_v56, %v5671_v57  ;;  %v5168_v55 = vsel %vm658_vm5, 1.0, %v10598_v13 }
 0x69d   :  { %v6526_v48 = vmul.f32 %v5168_v55, %v5673_v58 }
 0x69e   :  { %v521_v62 = vpop.xlane.xlu1 %520 }
 0x69f   :  { %vm576_vm2 = vcmp.gt.f32.partialorder %v521_v62, %v6378_v1 }
 0x6a0   :  { %vm659_vm3 = vmor %vm576_vm2, %vm643_vm11 }
 0x6a1   :  { %v5169_v55 = vsel %vm659_vm3, 1.0, %v10598_v13 }
 0x6a2   :  { %v6489_v40 = vpop.permute.xlu2 %2561  ;;  %v6579_v20 = vmul.f32 %v5169_v55, %v5695_v24 }
 0x6a3   :  { %10601 = vst [vmem:[#allocation133_spill] sm:$0xff] %v6489_v40 }
 0x6a4   :  { %893 = vperm.xlu1 %5360, %v6473_v50  }
 0x6a6   :  { %v527_v22 = vpop.xlane.xlu1 %526 }
 0x6a7   :  { %vm578_vm6 = vcmp.gt.f32.partialorder %v527_v22, %v6378_v1 }
 0x6a8   :  { %vm661_vm7 = vmor %vm578_vm6, %vm645_vm14  ;;  %vm573_vm14 = vcmp.gt.f32.partialorder %v6442_v49, %v6378_v1  ;;  %vm923_vm6 = vcmask 1041409  }
 0x6a9   :  { %v5171_v29 = vsel %vm661_vm7, 1.0, %v10598_v13  ;;  %vm656_vm15 = vmor %vm573_vm14, %vm648_vm9  ;;  %vm927_vm7 = vcmask 1043459  }
 0x6aa   :  { %v6501_v37 = vpop.permute.xlu2 %2573  ;;  %v6536_v32 = vmul.f32 %v5171_v29, %v5675_v61  ;;  %v5166_v22 = vsel %vm656_vm15, 1.0, %v10598_v13 }
 0x6ab   :  { %10602 = vst [vmem:[#allocation134_spill] sm:$0xff] %v6501_v37  ;;  %v6573_v18 = vmul.f32 %v5166_v22, %v5693_v23 }
 0x6ac   :  { %902 = vperm.xlu1 %5360, %v6487_v36  }
 0x6ae   :  { %v536_v57 = vpop.xlane.xlu1 %535 }
 0x6af   :  { %vm581_vm8 = vcmp.gt.f32.partialorder %v536_v57, %v6378_v1 }
 0x6b0   :  { %vm664_vm10 = vmor %vm581_vm8, %vm648_vm9  ;;  %vm929_vm8 = vcmask 1044484   ;;  %vm931_vm9 = vcmask 1045509  }
 0x6b1   :  { %863 = vperm.xlu2 %5361, %v6495_v63   ;;  %v5174_v19 = vsel %vm664_vm10, 1.0, %v10598_v13  ;;  %vm933_vm10 = vcmask 1046534  }
 0x6b2   :  { %v6511_v21 = vpop.permute.xlu2 %2925  ;;  %v6546_v43 = vmul.f32 %v5174_v19, %v5677_v2 }
 0x6b3   :  { %10603 = vst [vmem:[#allocation135_spill] sm:$0xff] %v6511_v21 }
 0x6b9   :  { %872 = vperm.xlu2 %5361, %v6506_v14  }
 0x6ba   :  { %v6522_v52 = vpop.permute.xlu2 %2943 }
 0x6bb   :  { %10604 = vst [vmem:[#allocation136_spill] sm:$0xff] %v6522_v52 }
 0x6c1   :  { %878 = vperm.xlu2 %5361, %v6516_v38  }
 0x6c2   :  { %v6531_v16 = vpop.permute.xlu2 %2955 }
 0x6c3   :  { %10605 = vst [vmem:[#allocation137_spill] sm:$0xff] %v6531_v16 }
 0x6c6   :  { %v861_v57 = vpop.permute.xlu1 %860 }
 0x6c7   :  { %v907_v28 = vperm.slane %v861_v57, %v5624_v7 }
 0x6c9   :  { %887 = vperm.xlu2 %5361, %v6526_v48  }
 0x6ca   :  { %v6542_v58 = vpop.permute.xlu2 %3307 }
 0x6cb   :  { %10606 = vst [vmem:[#allocation138_spill] sm:$0xff] %v6542_v58  ;;  %v10621_v58 = vld [vmem:[#allocation65_spill] sm:$0xff] }
 0x6ce   :  { %v870_v19 = vpop.permute.xlu1 %869 }
 0x6d1   :  { %896 = vperm.xlu2 %5361, %v6536_v32  }
 0x6d2   :  { %v6549_v39 = vpop.permute.xlu2 %3325 }
 0x6d3   :  { %10607 = vst [vmem:[#allocation139_spill] sm:$0xff] %v6549_v39 }
 0x6d9   :  { %905 = vperm.xlu2 %5361, %v6546_v43  }
 0x6da   :  { %v6551_v61 = vpop.permute.xlu2 %3337 }
 0x6db   :  { %10608 = vst [vmem:[#allocation140_spill] sm:$0xff] %v6551_v61 }
 0x6e2   :  { %v6553_v17 = vpop.permute.xlu2 %3707 }
 0x6e3   :  { %10609 = vst [vmem:[#allocation141_spill] sm:$0xff] %v6553_v17  ;;  %v10618_v17 = vld [vmem:[#allocation60_spill] sm:$0xff] }
 0x6ea   :  { %v6555_v27 = vpop.permute.xlu2 %3719 }
 0x6eb   :  { %10610 = vst [vmem:[#allocation142_spill] sm:$0xff] %v6555_v27 }
 0x6f2   :  { %v6557_v33 = vpop.permute.xlu2 %3737 }
 0x6f3   :  { %10611 = vst [vmem:[#allocation143_spill] sm:$0xff] %v6557_v33 }
 0x704   :  { %v497_v46 = vpop.xlane.xlu2 %496 }
 0x705   :  { %vm568_vm12 = vcmp.gt.f32.partialorder %v497_v46, %v6378_v1  ;;  %v876_v46 = vpop.permute.xlu1 %875 }
 0x706   :  { %vm651_vm13 = vmor %vm568_vm12, %vm643_vm11  ;;  %v912_v57 = vperm.slane %v876_v46, %v5624_v7  ;;  %vm935_vm11 = vcmask 1047559   ;;  %vm946_vm12 = vcmask 64512  }
 0x707   :  { %v5161_v2 = vsel %vm651_vm13, 1.0, %v10598_v13 }
 0x708   :  { %v6565_v56 = vmul.f32 %v5161_v2, %v5934_v31 }
 0x70a   :  { %866 = vperm.xlu0 %5362, %v6565_v56  }
 0x70c   :  { %v530_v49 = vpop.xlane.xlu2 %529 }
 0x70d   :  { %vm579_vm4 = vcmp.gt.f32.partialorder %v530_v49, %v6378_v1 }
 0x70e   :  { %vm662_vm5 = vmor %vm579_vm4, %vm646_vm0  ;;  %vm925_vm0 = vcmask 1042434   ;;  %v885_v49 = vpop.permute.xlu1 %884 }
 0x70f   :  { %v5172_v31 = vsel %vm662_vm5, 1.0, %v10598_v13 }
 0x710   :  { %v6586_v23 = vmul.f32 %v5172_v31, %v5697_v25  ;;  %v910_v25 = vperm.slane %v870_v19, %v5624_v7 }
 0x712   :  { %881 = vperm.xlu0 %5362, %v6573_v18  }
 0x714   :  { %v864_v62 = vpop.permute.xlu2 %863 }
 0x715   :  { %v908_v24 = vperm.slane %v864_v62, %v5624_v7 }
 0x716   :  { %v894_v46 = vpop.permute.xlu1 %893 }
 0x717   :  { %v924_v22 = vsel %vm923_vm6, %v908_v24, %v907_v28 }
 0x71a   :  { %890 = vperm.xlu0 %5362, %v6579_v20  }
 0x71c   :  { %v873_v29 = vpop.permute.xlu2 %872 }
 0x71d   :  { %v911_v55 = vperm.slane %v873_v29, %v5624_v7 }
 0x722   :  { %899 = vperm.xlu0 %5362, %v6586_v23  }
 0x724   :  { %v879_v1 = vpop.permute.xlu2 %878 }
 0x725   :  { %v913_v19 = vperm.slane %v879_v1, %v5624_v7  ;;  %v915_v1 = vperm.slane %v885_v49, %v5624_v7 }
 0x72c   :  { %v888_v27 = vpop.permute.xlu2 %887 }
 0x77c   :  { %v867_v2 = vpop.permute.xlu0 %866 }
 0x77d   :  { %v909_v13 = vperm.slane %v867_v2, %v5624_v7 }
 0x77f   :  { %v926_v31 = vsel %vm925_vm0, %v909_v13, %v924_v22  ;;  %v897_v22 = vpop.permute.xlu2 %896 }
 0x780   :  { %v928_v62 = vsel %vm927_vm7, %v910_v25, %v926_v31 }
 0x781   :  { %v930_v61 = vsel %vm929_vm8, %v911_v55, %v928_v62 }
 0x782   :  { %v932_v2 = vsel %vm931_vm9, %v912_v57, %v930_v61  ;;  %v916_v61 = vperm.slane %v888_v27, %v5624_v7 }
 0x783   :  { %v934_v29 = vsel %vm933_vm10, %v913_v19, %v932_v2  ;;  %v918_v2 = vperm.slane %v894_v46, %v5624_v7  ;;  %v903_v19 = vpop.permute.xlu1 %902 }
 0x784   :  { %v882_v24 = vpop.permute.xlu0 %881  ;;  %v937_v62 = vsel %vm923_vm6, %v916_v61, %v915_v1 }
 0x785   :  { %v914_v28 = vperm.slane %v882_v24, %v5624_v7 }
 0x787   :  { %v936_v13 = vsel %vm935_vm11, %v914_v28, %v934_v29  ;;  %v919_v28 = vperm.slane %v897_v22, %v5624_v7  ;;  %v906_v29 = vpop.permute.xlu2 %905 }
 0x788   :  { %v947_v25 = vsel %vm946_vm12, %v936_v13, 0.0  ;;  %5036 = vst.msk [vmem:[#allocation9] sm:$0xff] %vm946_vm12, %v936_v13 }
 0x789   :  { %948 = vadd.xlane.f32.xlu0 %v947_v25  ;;  %v921_v25 = vperm.slane %v903_v19, %v5624_v7 }
 0x78c   :  { %v891_v55 = vpop.permute.xlu0 %890 }
 0x78d   :  { %v917_v31 = vperm.slane %v891_v55, %v5624_v7  ;;  %v922_v55 = vperm.slane %v906_v29, %v5624_v7 }
 0x78f   :  { %v938_v57 = vsel %vm925_vm0, %v917_v31, %v937_v62 }
 0x790   :  { %v939_v24 = vsel %vm927_vm7, %v918_v2, %v938_v57 }
 0x791   :  { %v940_v49 = vsel %vm929_vm8, %v919_v28, %v939_v24 }
 0x794   :  { %v900_v13 = vpop.permute.xlu0 %899 }
 0x795   :  { %v920_v27 = vperm.slane %v900_v13, %v5624_v7 }
 0x797   :  { %v941_v61 = vsel %vm931_vm9, %v920_v27, %v940_v49 }
 0x798   :  { %v942_v1 = vsel %vm933_vm10, %v921_v25, %v941_v61 }
 0x799   :  { %v943_v46 = vsel %vm935_vm11, %v922_v55, %v942_v1 }
 0x79a   :  { %v950_v31 = vsel %vm946_vm12, %v943_v46, 0.0  ;;  %5037 = vst.msk [vmem:[#allocation9 + $0x8] sm:$0xff] %vm946_vm12, %v943_v46 }
 0x79b   :  { %951 = vadd.xlane.f32.xlu1 %v950_v31 }
 0x7fc   :  { %v949_v22 = vpop.xlane.xlu0 %948 }
 0x7fd   :  { %v953_v62 = vmax.f32 %v949_v22, 1.0 }
 0x7ff   :  { %5379 = vrcp.f32 %v953_v62  ;;  %v966_v24 = vand.u32 2147483648, %v953_v62  ;;  %v964_v29 = vand.u32 2147483647, %v953_v62  ;;  %vm960_vm14 = vweird.f32 %v953_v62 }
 0x801   :  { %v967_v27 = vor.u32 1.1754944e-38, %v966_v24  ;;  %vm965_vm2 = vcmp.eq.f32.partialorder %v964_v29, 8.507059e+37 }
 0x805   :  { %v5380_v57 = vpop.eup %5379 }
 0x806   :  { %v956_v2 = vmul.f32 %v5380_v57, %v953_v62  ;;  %vm961_vm13 = vweird.f32 %v5380_v57 }
 0x807   :  { %vm962_vm15 = vmor %vm960_vm14, %vm961_vm13  ;;  %vm4666_vm13 = vcmask 130112   ;;  %vm4670_vm14 = vcmask 195712  }
 0x808   :  { %v957_v19 = vsub.f32 1.0, %v956_v2 }
 0x80a   :  { %v958_v28 = vmul.f32 %v5380_v57, %v957_v19 }
 0x80c   :  { %v959_v13 = vadd.f32 %v5380_v57, %v958_v28 }
 0x80e   :  { %v963_v25 = vsel %vm962_vm15, %v5380_v57, %v959_v13  ;;  %v952_v49 = vpop.xlane.xlu1 %951  ;;  %vm4674_vm15 = vcmask 261312  }
 0x80f   :  { %v968_v55 = vsel %vm965_vm2, %v967_v27, %v963_v25  ;;  %v6623_v61 = vmax.f32 %v952_v49, 1.0  ;;  %vm4678_vm2 = vcmask 326912  }
 0x810   :  { %v987_v1 = vperm.slane %v968_v55, 0  ;;  %v988_v46 = vperm.slane %v968_v55, 1  ;;  %v989_v31 = vperm.slane %v968_v55, 2  ;;  %v990_v22 = vperm.slane %v968_v55, 3 }
 0x811   :  { %v991_v52 = vperm.slane %v968_v55, 4  ;;  %v992_v2 = vperm.slane %v968_v55, 5  ;;  %v993_v40 = vperm.slane %v968_v55, 6  ;;  %v994_v19 = vperm.slane %v968_v55, 7 }
 0x812   :  { %v1019_v33 = vmul.f32 %v987_v1, %v6395_v41  ;;  %v6627_v62 = vmul.f32 %v988_v46, %v6495_v63  ;;  %v6630_v57 = vmul.f32 %v989_v31, %v6565_v56  ;;  %v6633_v24 = vmul.f32 %v990_v22, %v6409_v59 }
 0x813   :  { %v6636_v28 = vmul.f32 %v991_v52, %v6506_v14  ;;  %v6639_v29 = vmul.f32 %v992_v2, %v6422_v3  ;;  %v6642_v13 = vmul.f32 %v993_v40, %v6516_v38  ;;  %v6645_v41 = vmul.f32 %v994_v19, %v6573_v18 }
 0x814   :  { %10612 = vst [vmem:[#allocation144_spill] sm:$0xff] %v6630_v57  ;;  %5381 = vrcp.f32 %v6623_v61  ;;  %v981_v63 = vand.u32 2147483648, %v6623_v61  ;;  %v6649_v56 = vperm.slane %v1019_v33, 0  ;;  %v6651_v59 = vperm.slane %v1019_v33, 1 }
 0x815   :  { %10613 = vst [vmem:[#allocation145_spill] sm:$0xff] %v6633_v24  ;;  %v6653_v27 = vperm.slane %v1019_v33, 2  ;;  %v6655_v14 = vperm.slane %v1019_v33, 3  ;;  %v979_v3 = vand.u32 2147483647, %v6623_v61  ;;  %v6658_v40 = vperm.slane %v1019_v33, 4 }
 0x816   :  { %10614 = vst [vmem:[#allocation146_spill] sm:$0xff] %v6636_v28  ;;  %v982_v52 = vor.u32 1.1754944e-38, %v981_v63  ;;  %v6660_v38 = vperm.slane %v1019_v33, 5  ;;  %v1169_v18 = vmul.f32 %v5987_v44, %v6649_v56  ;;  %v1170_v25 = vmul.f32 %v5992_v45, %v6649_v56  ;;  %v10629_v28 = vld [vmem:[#allocation25_spill] sm:$0xff] }
 0x817   :  { %10615 = vst [vmem:[#allocation147_spill] sm:$0xff] %v6639_v29  ;;  %v1429_v49 = vmul.f32 %v6130_v54, %v6651_v59  ;;  %v1430_v55 = vmul.f32 %v6015_v53, %v6651_v59  ;;  %v1817_v1 = vmul.f32 %v6031_v10, %v6653_v27  ;;  %v1818_v46 = vmul.f32 %v6218_v42, %v6653_v27  ;;  %v10628_v29 = vld [vmem:[#allocation22_spill] sm:$0xff] }
 0x818   :  { %10616 = vst [vmem:[#allocation148_spill] sm:$0xff] %v6642_v13  ;;  %v2205_v31 = vmul.f32 %v6224_v5, %v6655_v14  ;;  %v2206_v22 = vmul.f32 %v6174_v0, %v6655_v14  ;;  %vm975_vm3 = vweird.f32 %v6623_v61  ;;  %v2593_v63 = vmul.f32 %v6182_v15, %v6658_v40 }
 0x819   :  { %10617 = vst [vmem:[#allocation149_spill] sm:$0xff] %v6645_v41  ;;  %v1557_v2 = vadd.f32 %v1429_v49, %v1169_v18  ;;  %v1558_v19 = vadd.f32 %v1430_v55, %v1170_v25  ;;  %v2594_v16 = vmul.f32 %v6077_v9, %v6658_v40  ;;  %v2981_v26 = vmul.f32 %v6091_v12, %v6660_v38  ;;  %v10625_v41 = vld [vmem:[#allocation16_spill] sm:$0xff] }
 0x81a   :  { %v5382_v37 = vpop.eup %5381  ;;  %v2982_v39 = vmul.f32 %v10618_v17, %v6660_v38  ;;  %v6687_v34 = vperm.slane %v1019_v33, 6  ;;  %v6689_v4 = vperm.slane %v1019_v33, 7  ;;  %vm6692_vm5 = vcmp.eq.f32.partialorder %v979_v3, 8.507059e+37  ;;  %v10624_v33 = vld [vmem:[#allocation82_spill] sm:$0xff]  ;;  %v10633_v17 = vld [vmem:[#allocation32_spill] sm:$0xff] }
 0x81b   :  { %v971_v18 = vmul.f32 %v5382_v37, %v6623_v61  ;;  %vm976_vm4 = vweird.f32 %v5382_v37  ;;  %v1945_v49 = vadd.f32 %v1817_v1, %v1557_v2  ;;  %v1946_v55 = vadd.f32 %v1818_v46, %v1558_v19  ;;  %v10626_v1 = vld [vmem:[#allocation17_spill] sm:$0xff]  ;;  %v10627_v2 = vld [vmem:[#allocation44_spill] sm:$0xff] }
 0x81c   :  { %v3369_v21 = vmul.f32 %v10621_v58, %v6687_v34  ;;  %v3370_v47 = vmul.f32 %v10622_v6, %v6687_v34  ;;  %v3757_v30 = vmul.f32 %v10623_v11, %v6689_v4  ;;  %v3758_v60 = vmul.f32 %v10624_v33, %v6689_v4  ;;  %v10632_v11 = vld [vmem:[#allocation29_spill] sm:$0xff]  ;;  %vm977_vm12 = vmor %vm975_vm3, %vm976_vm4 }
 0x81d   :  { %v972_v51 = vsub.f32 1.0, %v971_v18  ;;  %v2333_v35 = vadd.f32 %v2205_v31, %v1945_v49  ;;  %v2334_v3 = vadd.f32 %v2206_v22, %v1946_v55  ;;  %v1167_v13 = vmul.f32 %v10625_v41, %v6649_v56  ;;  %v10630_v31 = vld [vmem:[#allocation50_spill] sm:$0xff]  ;;  %v10631_v41 = vld [vmem:[#allocation53_spill] sm:$0xff] }
 0x81e   :  { %v1168_v46 = vmul.f32 %v10626_v1, %v6649_v56  ;;  %v1427_v19 = vmul.f32 %v10627_v2, %v6651_v59  ;;  %v1428_v7 = vmul.f32 %v10628_v29, %v6651_v59  ;;  %v1815_v24 = vmul.f32 %v10629_v28, %v6653_v27 }
 0x81f   :  { %v973_v57 = vmul.f32 %v5382_v37, %v972_v51  ;;  %v2721_v33 = vadd.f32 %v2593_v63, %v2333_v35  ;;  %v2722_v18 = vadd.f32 %v2594_v16, %v2334_v3  ;;  %v1816_v22 = vmul.f32 %v10630_v31, %v6653_v27 }
 0x820   :  { %v1555_v49 = vadd.f32 %v1427_v19, %v1167_v13  ;;  %v1556_v55 = vadd.f32 %v1428_v7, %v1168_v46  ;;  %v2203_v1 = vmul.f32 %v10631_v41, %v6655_v14  ;;  %v2204_v2 = vmul.f32 %v10632_v11, %v6655_v14  ;;  %v10634_v7 = vld [vmem:[#allocation72_spill] sm:$0xff] }
 0x821   :  { %v974_v6 = vadd.f32 %v5382_v37, %v973_v57  ;;  %v3109_v58 = vadd.f32 %v2981_v26, %v2721_v33  ;;  %v3110_v29 = vadd.f32 %v2982_v39, %v2722_v18  ;;  %v2591_v28 = vmul.f32 %v10633_v17, %v6658_v40  ;;  %v10635_v13 = vld [vmem:[#allocation76_spill] sm:$0xff]  ;;  %v10636_v26 = vld [vmem:[#allocation59_spill] sm:$0xff] }
 0x822   :  { %v1943_v35 = vadd.f32 %v1815_v24, %v1555_v49  ;;  %v1944_v51 = vadd.f32 %v1816_v22, %v1556_v55  ;;  %v2592_v16 = vmul.f32 %v10634_v7, %v6658_v40  ;;  %v2979_v63 = vmul.f32 %v10635_v13, %v6660_v38  ;;  %v10637_v24 = vld [vmem:[#allocation63_spill] sm:$0xff] }
 0x823   :  { %v978_v3 = vsel %vm977_vm12, %v5382_v37, %v974_v6  ;;  %v3497_v46 = vadd.f32 %v3369_v21, %v3109_v58  ;;  %v3498_v57 = vadd.f32 %v3370_v47, %v3110_v29  ;;  %v2980_v39 = vmul.f32 %v10636_v26, %v6660_v38 }
 0x824   :  { %v983_v33 = vsel %vm6692_vm5, %v982_v52, %v978_v3  ;;  %v2331_v19 = vadd.f32 %v2203_v1, %v1943_v35  ;;  %v2332_v61 = vadd.f32 %v2204_v2, %v1944_v51  ;;  %v3367_v18 = vmul.f32 %v10637_v24, %v6687_v34  ;;  %v10646_v51 = vld [vmem:[#allocation38_spill] sm:$0xff] }
 0x825   :  { %v995_v22 = vperm.slane %v983_v33, 0  ;;  %v996_v49 = vperm.slane %v983_v33, 1  ;;  %v997_v55 = vperm.slane %v983_v33, 2  ;;  %v998_v7 = vperm.slane %v983_v33, 3 }
 0x826   :  { %v999_v17 = vperm.slane %v983_v33, 4  ;;  %v1000_v13 = vperm.slane %v983_v33, 5  ;;  %v1001_v6 = vperm.slane %v983_v33, 6  ;;  %v1002_v37 = vperm.slane %v983_v33, 7 }
 0x827   :  { %v6736_v47 = vmul.f32 %v995_v22, %v6463_v8  ;;  %v6739_v21 = vmul.f32 %v996_v49, %v6526_v48  ;;  %v6742_v58 = vmul.f32 %v997_v55, %v6579_v20  ;;  %v6745_v29 = vmul.f32 %v998_v7, %v6473_v50  ;;  %v10647_v7 = vld [vmem:[#allocation41_spill] sm:$0xff]  ;;  %v10654_v22 = vld [vmem:[#allocation28_spill] sm:$0xff] }
 0x828   :  { %v6748_v52 = vmul.f32 %v999_v17, %v6536_v32  ;;  %v6751_v25 = vmul.f32 %v1000_v13, %v6586_v23  ;;  %v6754_v1 = vmul.f32 %v1001_v6, %v6487_v36  ;;  %v6757_v8 = vmul.f32 %v1002_v37, %v6546_v43  ;;  %v10648_v17 = vld [vmem:[#allocation71_spill] sm:$0xff]  ;;  %v10649_v13 = vld [vmem:[#allocation62_spill] sm:$0xff] }
 0x829   :  { %10638 = vst [vmem:[#allocation150_spill] sm:$0xff] %v6736_v47  ;;  %v3885_v48 = vadd.f32 %v3757_v30, %v3497_v46  ;;  %v3886_v2 = vadd.f32 %v3758_v60, %v3498_v57  ;;  %v2719_v35 = vadd.f32 %v2591_v28, %v2331_v19  ;;  %v2720_v20 = vadd.f32 %v2592_v16, %v2332_v61  ;;  %v10650_v30 = vld [vmem:[#allocation42_spill] sm:$0xff]  ;;  %v10651_v28 = vld [vmem:[#allocation24_spill] sm:$0xff]  ;;  %v10652_v46 = vld [vmem:[#allocation49_spill] sm:$0xff] }
 0x82a   :  { %10639 = vst [vmem:[#allocation151_spill] sm:$0xff] %v6739_v21  ;;  %v3368_v50 = vmul.f32 %v10646_v51, %v6687_v34  ;;  %v3755_v32 = vmul.f32 %v10647_v7, %v6689_v4  ;;  %v3756_v23 = vmul.f32 %v10648_v17, %v6689_v4  ;;  %v1173_v36 = vmul.f32 %v10649_v13, %v6649_v56  ;;  %v10653_v19 = vld [vmem:[#allocation52_spill] sm:$0xff]  ;;  %v10662_v47 = vld [vmem:[#allocation69_spill] sm:$0xff] }
 0x82b   :  { %10640 = vst [vmem:[#allocation152_spill] sm:$0xff] %v6742_v58  ;;  %v6767_v3 = vpack.c.bf16 %v3886_v2, %v3885_v48  ;;  %v3107_v43 = vadd.f32 %v2979_v63, %v2719_v35  ;;  %v3108_v33 = vadd.f32 %v2980_v39, %v2720_v20  ;;  %v1174_v60 = vmul.f32 %v10650_v30, %v6649_v56  ;;  %v10655_v39 = vld [vmem:[#allocation31_spill] sm:$0xff]  ;;  %v10656_v35 = vld [vmem:[#allocation70_spill] sm:$0xff]  ;;  %v10680_v30 = vld [vmem:[#allocation45_spill] sm:$0xff] }
 0x82c   :  { %10641 = vst [vmem:[#allocation153_spill] sm:$0xff] %v6745_v29  ;;  %v1433_v16 = vmul.f32 %v10651_v28, %v6651_v59  ;;  %v1434_v57 = vmul.f32 %v10652_v46, %v6651_v59  ;;  %v1821_v61 = vmul.f32 %v10653_v19, %v6653_v27  ;;  %v1822_v49 = vmul.f32 %v10654_v22, %v6653_v27  ;;  %v10658_v29 = vld [vmem:[#allocation58_spill] sm:$0xff] }
 0x82d   :  { %10642 = vst [vmem:[#allocation154_spill] sm:$0xff] %v6748_v52  ;;  %v4153_v55 = vunpack.c.l.b16 %v6767_v3  ;;  %v3495_v6 = vadd.f32 %v3367_v18, %v3107_v43  ;;  %v3496_v63 = vadd.f32 %v3368_v50, %v3108_v33  ;;  %v2209_v37 = vmul.f32 %v10655_v39, %v6655_v14  ;;  %v10659_v18 = vld [vmem:[#allocation61_spill] sm:$0xff] }
 0x82e   :  { %10643 = vst [vmem:[#allocation155_spill] sm:$0xff] %v6751_v25  ;;  %v1561_v48 = vadd.f32 %v1433_v16, %v1173_v36  ;;  %v1562_v2 = vadd.f32 %v1434_v57, %v1174_v60  ;;  %v2210_v20 = vmul.f32 %v10656_v35, %v6655_v14  ;;  %v2598_v58 = vmul.f32 %v10658_v29, %v6658_v40  ;;  %v10660_v36 = vld [vmem:[#allocation37_spill] sm:$0xff]  ;;  %v10661_v16 = vld [vmem:[#allocation40_spill] sm:$0xff] }
 0x82f   :  { %10644 = vst [vmem:[#allocation156_spill] sm:$0xff] %v6754_v1  ;;  %4286 = vperm.xlu0 %5362, %v4153_v55   ;;  %v3883_v25 = vadd.f32 %v3755_v32, %v3495_v6  ;;  %v3884_v52 = vadd.f32 %v3756_v23, %v3496_v63  ;;  %v2985_v50 = vmul.f32 %v10659_v18, %v6660_v38  ;;  %v10663_v32 = vld [vmem:[#allocation75_spill] sm:$0xff]  ;;  %v4154_v22 = vunpack.c.h.b16 %v6767_v3  ;;  %v10676_v3 = vld [vmem:[#allocation78_spill] sm:$0xff] }
 0x830   :  { %10645 = vst [vmem:[#allocation157_spill] sm:$0xff] %v6757_v8  ;;  %v10657_v8 = vld [vmem:[#allocation74_spill] sm:$0xff]  ;;  %v1949_v43 = vadd.f32 %v1821_v61, %v1561_v48  ;;  %v1950_v33 = vadd.f32 %v1822_v49, %v1562_v2  ;;  %v2986_v60 = vmul.f32 %v10660_v36, %v6660_v38  ;;  %v3373_v57 = vmul.f32 %v10661_v16, %v6687_v34  ;;  %v10664_v6 = vld [vmem:[#allocation47_spill] sm:$0xff]  ;;  %v10665_v61 = vld [vmem:[#allocation20_spill] sm:$0xff] }
 0x831   :  { %v2597_v1 = vmul.f32 %v10657_v8, %v6658_v40  ;;  %v4011_v21 = vpack.c.bf16 %v3884_v52, %v3883_v25  ;;  %v3374_v55 = vmul.f32 %v10662_v47, %v6687_v34  ;;  %v3761_v23 = vmul.f32 %v10663_v32, %v6689_v4  ;;  %v10666_v48 = vld [vmem:[#allocation21_spill] sm:$0xff]  ;;  %v10667_v52 = vld [vmem:[#allocation64_spill] sm:$0xff] }
 0x832   :  { %v3762_v63 = vmul.f32 %v10664_v6, %v6689_v4  ;;  %v2337_v29 = vadd.f32 %v2209_v37, %v1949_v43  ;;  %v2338_v18 = vadd.f32 %v2210_v20, %v1950_v33  ;;  %v1171_v49 = vmul.f32 %v10665_v61, %v6649_v56  ;;  %v10668_v47 = vld [vmem:[#allocation48_spill] sm:$0xff]  ;;  %v10669_v6 = vld [vmem:[#allocation51_spill] sm:$0xff] }
 0x833   :  { %v1172_v2 = vmul.f32 %v10666_v48, %v6649_v56  ;;  %v4152_v36 = vunpack.c.h.b16 %v4011_v21  ;;  %v4151_v16 = vunpack.c.l.b16 %v4011_v21  ;;  %v1431_v25 = vmul.f32 %v10667_v52, %v6651_v59  ;;  %v10670_v20 = vld [vmem:[#allocation27_spill] sm:$0xff]  ;;  %v10671_v21 = vld [vmem:[#allocation30_spill] sm:$0xff] }
 0x834   :  { %v1432_v8 = vmul.f32 %v10668_v47, %v6651_v59  ;;  %v2725_v32 = vadd.f32 %v2597_v1, %v2337_v29  ;;  %v2726_v35 = vadd.f32 %v2598_v58, %v2338_v18  ;;  %v1819_v37 = vmul.f32 %v10669_v6, %v6653_v27  ;;  %v10672_v59 = vld [vmem:[#allocation55_spill] sm:$0xff]  ;;  %v10673_v29 = vld [vmem:[#allocation57_spill] sm:$0xff] }
 0x835   :  { %v1820_v43 = vmul.f32 %v10670_v20, %v6653_v27  ;;  %4283 = vperm.xlu2 %5361, %v4152_v36   ;;  %4280 = vperm.xlu1 %5360, %v4151_v16   ;;  %v1559_v33 = vadd.f32 %v1431_v25, %v1171_v49  ;;  %v2207_v39 = vmul.f32 %v10671_v21, %v6655_v14  ;;  %v10674_v27 = vld [vmem:[#allocation34_spill] sm:$0xff]  ;;  %v10678_v25 = vld [vmem:[#allocation67_spill] sm:$0xff]  ;;  %vm4682_vm3 = vcmask 392512  }
 0x836   :  { %v1560_v56 = vadd.f32 %v1432_v8, %v1172_v2  ;;  %v3113_v19 = vadd.f32 %v2985_v50, %v2725_v32  ;;  %v3114_v46 = vadd.f32 %v2986_v60, %v2726_v35  ;;  %v2208_v58 = vmul.f32 %v10672_v59, %v6655_v14  ;;  %v10675_v8 = vld [vmem:[#allocation36_spill] sm:$0xff] }
 0x837   :  { %v2595_v1 = vmul.f32 %v10673_v29, %v6658_v40  ;;  %v1947_v18 = vadd.f32 %v1819_v37, %v1559_v33  ;;  %v2596_v36 = vmul.f32 %v10674_v27, %v6658_v40  ;;  %v2983_v16 = vmul.f32 %v10675_v8, %v6660_v38  ;;  %v10677_v35 = vld [vmem:[#allocation80_spill] sm:$0xff] }
 0x838   :  { %v1948_v28 = vadd.f32 %v1820_v43, %v1560_v56  ;;  %v3501_v49 = vadd.f32 %v3373_v57, %v3113_v19  ;;  %v3502_v2 = vadd.f32 %v3374_v55, %v3114_v46  ;;  %v2984_v50 = vmul.f32 %v10676_v3, %v6660_v38  ;;  %v10679_v43 = vld [vmem:[#allocation73_spill] sm:$0xff] }
 0x839   :  { %v3371_v60 = vmul.f32 %v10677_v35, %v6687_v34  ;;  %v2335_v14 = vadd.f32 %v2207_v39, %v1947_v18  ;;  %v3372_v37 = vmul.f32 %v10678_v25, %v6687_v34  ;;  %v3759_v33 = vmul.f32 %v10679_v43, %v6689_v4 }
 0x83a   :  { %v2336_v32 = vadd.f32 %v2208_v58, %v1948_v28  ;;  %v3889_v40 = vadd.f32 %v3761_v23, %v3501_v49  ;;  %v3890_v56 = vadd.f32 %v3762_v63, %v3502_v2  ;;  %v3760_v19 = vmul.f32 %v10680_v30, %v6689_v4 }
 0x83b   :  { %v6834_v46 = vperm.slane %v6627_v62, 0  ;;  %v2723_v38 = vadd.f32 %v2595_v1, %v2335_v14  ;;  %v6837_v55 = vperm.slane %v6627_v62, 1  ;;  %v6840_v28 = vperm.slane %v6627_v62, 2 }
 0x83c   :  { %v2724_v57 = vadd.f32 %v2596_v36, %v2336_v32  ;;  %v6842_v34 = vpack.c.bf16 %v3890_v56, %v3889_v40  ;;  %v6849_v4 = vperm.slane %v6627_v62, 3  ;;  %v6865_v56 = vperm.slane %v6627_v62, 4 }
 0x83d   :  { %v1177_v39 = vmul.f32 %v5987_v44, %v6834_v46  ;;  %v1178_v23 = vmul.f32 %v5992_v45, %v6834_v46  ;;  %v3111_v63 = vadd.f32 %v2983_v16, %v2723_v38  ;;  %4289 = vperm.xlu1 %5360, %v4154_v22   ;;  %v1437_v1 = vmul.f32 %v6130_v54, %v6837_v55 }
 0x83e   :  { %v3112_v58 = vadd.f32 %v2984_v50, %v2724_v57  ;;  %v1438_v18 = vmul.f32 %v6015_v53, %v6837_v55  ;;  %v4158_v36 = vunpack.c.h.b16 %v6842_v34  ;;  %v1825_v49 = vmul.f32 %v6031_v10, %v6840_v28 }
 0x83f   :  { %v1826_v2 = vmul.f32 %v6218_v42, %v6840_v28  ;;  %v2213_v14 = vmul.f32 %v6224_v5, %v6849_v4  ;;  %v3499_v16 = vadd.f32 %v3371_v60, %v3111_v63  ;;  %v1565_v22 = vadd.f32 %v1437_v1, %v1177_v39  ;;  %v10681_v63 = vld [vmem:[#allocation60_spill] sm:$0xff] }
 0x840   :  { %v3500_v50 = vadd.f32 %v3372_v37, %v3112_v58  ;;  %v1566_v32 = vadd.f32 %v1438_v18, %v1178_v23  ;;  %4301 = vperm.xlu0 %5362, %v4158_v36   ;;  %v2214_v40 = vmul.f32 %v6174_v0, %v6849_v4  ;;  %v6868_v38 = vperm.slane %v6627_v62, 5 }
 0x841   :  { %v6871_v57 = vperm.slane %v6627_v62, 6  ;;  %v3887_v13 = vadd.f32 %v3759_v33, %v3499_v16  ;;  %v1953_v5 = vadd.f32 %v1825_v49, %v1565_v22  ;;  %v2601_v37 = vmul.f32 %v6182_v15, %v6865_v56  ;;  %v10682_v33 = vld [vmem:[#allocation65_spill] sm:$0xff]  ;;  %v10683_v49 = vld [vmem:[#allocation39_spill] sm:$0xff] }
 0x842   :  { %v3888_v42 = vadd.f32 %v3760_v19, %v3500_v50  ;;  %v1954_v60 = vadd.f32 %v1826_v2, %v1566_v32  ;;  %v2602_v39 = vmul.f32 %v6077_v9, %v6865_v56  ;;  %v2989_v23 = vmul.f32 %v6091_v12, %v6868_v38 }
 0x843   :  { %v2990_v58 = vmul.f32 %v10681_v63, %v6868_v38  ;;  %v2341_v18 = vadd.f32 %v2213_v14, %v1953_v5  ;;  %v3377_v19 = vmul.f32 %v10682_v33, %v6871_v57  ;;  %v3378_v2 = vmul.f32 %v10683_v49, %v6871_v57  ;;  %v10684_v5 = vld [vmem:[#allocation43_spill] sm:$0xff]  ;;  %v10685_v14 = vld [vmem:[#allocation82_spill] sm:$0xff] }
 0x844   :  { %v4013_v1 = vpack.c.bf16 %v3888_v42, %v3887_v13  ;;  %v2342_v36 = vadd.f32 %v2214_v40, %v1954_v60  ;;  %v6886_v16 = vperm.slane %v6627_v62, 7  ;;  %v4157_v50 = vunpack.c.l.b16 %v6842_v34 }
 0x845   :  { %v1179_v22 = vmul.f32 %v10665_v61, %v6834_v46  ;;  %v2729_v12 = vadd.f32 %v2601_v37, %v2341_v18  ;;  %v1180_v60 = vmul.f32 %v10666_v48, %v6834_v46  ;;  %v1439_v62 = vmul.f32 %v10667_v52, %v6837_v55 }
 0x846   :  { %v4155_v32 = vunpack.c.l.b16 %v4013_v1  ;;  %v2730_v63 = vadd.f32 %v2602_v39, %v2342_v36  ;;  %v4156_v42 = vunpack.c.h.b16 %v4013_v1  ;;  %v3765_v13 = vmul.f32 %v10684_v5, %v6886_v16  ;;  %v10686_v39 = vld [vmem:[#allocation144_spill] sm:$0xff] }
 0x847   :  { %v3766_v40 = vmul.f32 %v10685_v14, %v6886_v16  ;;  %v3117_v34 = vadd.f32 %v2989_v23, %v2729_v12  ;;  %v1440_v37 = vmul.f32 %v10668_v47, %v6837_v55  ;;  %v6902_v1 = vperm.slane %v10686_v39, 0 }
 0x848   :  { %4292 = vperm.xlu2 %5361, %v4155_v32   ;;  %v3118_v49 = vadd.f32 %v2990_v58, %v2730_v63  ;;  %4295 = vperm.xlu1 %5360, %v4156_v42   ;;  %v1567_v18 = vadd.f32 %v1439_v62, %v1179_v22  ;;  %v1827_v36 = vmul.f32 %v10669_v6, %v6840_v28  ;;  %vm4686_vm4 = vcmask 458112  }
 0x849   :  { %v1828_v48 = vmul.f32 %v10670_v20, %v6840_v28  ;;  %v2215_v52 = vmul.f32 %v10671_v21, %v6849_v4  ;;  %v3505_v32 = vadd.f32 %v3377_v19, %v3117_v34  ;;  %v1568_v23 = vadd.f32 %v1440_v37, %v1180_v60 }
 0x84a   :  { %v3506_v12 = vadd.f32 %v3378_v2, %v3118_v49  ;;  %v2216_v63 = vmul.f32 %v10672_v59, %v6849_v4  ;;  %v1955_v58 = vadd.f32 %v1827_v36, %v1567_v18  ;;  %v2603_v42 = vmul.f32 %v10673_v29, %v6865_v56 }
 0x84b   :  { %v2604_v22 = vmul.f32 %v10674_v27, %v6865_v56  ;;  %v2991_v62 = vmul.f32 %v10675_v8, %v6868_v38  ;;  %v3893_v20 = vadd.f32 %v3765_v13, %v3505_v32  ;;  %v1956_v47 = vadd.f32 %v1828_v48, %v1568_v23  ;;  %v10687_v48 = vld [vmem:[#allocation16_spill] sm:$0xff] }
 0x84c   :  { %v3894_v6 = vadd.f32 %v3766_v40, %v3506_v12  ;;  %v2992_v19 = vmul.f32 %v10676_v3, %v6868_v38  ;;  %v2343_v49 = vadd.f32 %v2215_v52, %v1955_v58  ;;  %v3379_v2 = vmul.f32 %v10677_v35, %v6871_v57  ;;  %v10688_v52 = vld [vmem:[#allocation17_spill] sm:$0xff]  ;;  %v10689_v12 = vld [vmem:[#allocation44_spill] sm:$0xff]  ;;  %v10690_v58 = vld [vmem:[#allocation22_spill] sm:$0xff] }
 0x84d   :  { %v3380_v60 = vmul.f32 %v10678_v25, %v6871_v57  ;;  %v3767_v34 = vmul.f32 %v10679_v43, %v6886_v16  ;;  %v2344_v18 = vadd.f32 %v2216_v63, %v1956_v47  ;;  %v3768_v13 = vmul.f32 %v10680_v30, %v6886_v16 }
 0x84e   :  { %v6926_v37 = vpack.c.bf16 %v3894_v6, %v3893_v20  ;;  %v1175_v40 = vmul.f32 %v10687_v48, %v6834_v46  ;;  %v2731_v36 = vadd.f32 %v2603_v42, %v2343_v49  ;;  %v1176_v32 = vmul.f32 %v10688_v52, %v6834_v46  ;;  %v10691_v20 = vld [vmem:[#allocation25_spill] sm:$0xff] }
 0x84f   :  { %v1435_v23 = vmul.f32 %v10689_v12, %v6837_v55  ;;  %v1436_v25 = vmul.f32 %v10690_v58, %v6837_v55  ;;  %v2732_v47 = vadd.f32 %v2604_v22, %v2344_v18  ;;  %v1823_v63 = vmul.f32 %v10691_v20, %v6840_v28  ;;  %v10693_v18 = vld [vmem:[#allocation72_spill] sm:$0xff] }
 0x850   :  { %v4161_v6 = vunpack.c.l.b16 %v6926_v37  ;;  %4298 = vperm.xlu2 %5361, %v4157_v50   ;;  %v1824_v30 = vmul.f32 %v10630_v31, %v6840_v28  ;;  %v3119_v42 = vadd.f32 %v2991_v62, %v2731_v36  ;;  %v2211_v35 = vmul.f32 %v10631_v41, %v6849_v4  ;;  %v10692_v50 = vld [vmem:[#allocation32_spill] sm:$0xff] }
 0x851   :  { %v1563_v49 = vadd.f32 %v1435_v23, %v1175_v40  ;;  %v1564_v43 = vadd.f32 %v1436_v25, %v1176_v32  ;;  %v3120_v3 = vadd.f32 %v2992_v19, %v2732_v47  ;;  %v2212_v8 = vmul.f32 %v10632_v11, %v6849_v4  ;;  %v10694_v62 = vld [vmem:[#allocation76_spill] sm:$0xff] }
 0x852   :  { %4310 = vperm.xlu0 %5362, %v4161_v6   ;;  %v2599_v22 = vmul.f32 %v10692_v50, %v6865_v56  ;;  %v2600_v27 = vmul.f32 %v10693_v18, %v6865_v56  ;;  %v3507_v29 = vadd.f32 %v3379_v2, %v3119_v42  ;;  %v2987_v25 = vmul.f32 %v10694_v62, %v6868_v38 }
 0x853   :  { %v1951_v59 = vadd.f32 %v1823_v63, %v1563_v49  ;;  %v1952_v21 = vadd.f32 %v1824_v30, %v1564_v43  ;;  %v3508_v40 = vadd.f32 %v3380_v60, %v3120_v3  ;;  %v2988_v36 = vmul.f32 %v10636_v26, %v6868_v38 }
 0x854   :  { %v3375_v19 = vmul.f32 %v10637_v24, %v6871_v57  ;;  %v3376_v32 = vmul.f32 %v10646_v51, %v6871_v57  ;;  %v3895_v23 = vadd.f32 %v3767_v34, %v3507_v29  ;;  %v3763_v2 = vmul.f32 %v10647_v7, %v6886_v16 }
 0x855   :  { %v2339_v6 = vadd.f32 %v2211_v35, %v1951_v59  ;;  %v2340_v47 = vadd.f32 %v2212_v8, %v1952_v21  ;;  %v3896_v30 = vadd.f32 %v3768_v13, %v3508_v40  ;;  %v3764_v43 = vmul.f32 %v10648_v17, %v6886_v16 }
 0x856   :  { %v1183_v3 = vmul.f32 %v10687_v48, %v6902_v1  ;;  %v1184_v60 = vmul.f32 %v10688_v52, %v6902_v1  ;;  %v6968_v49 = vperm.slane %v10686_v39, 1  ;;  %v6971_v21 = vperm.slane %v10686_v39, 2 }
 0x857   :  { %v2727_v63 = vadd.f32 %v2599_v22, %v2339_v6  ;;  %v2728_v42 = vadd.f32 %v2600_v27, %v2340_v47  ;;  %v6973_v59 = vpack.c.bf16 %v3896_v30, %v3895_v23  ;;  %v6976_v29 = vperm.slane %v10686_v39, 3 }
 0x858   :  { %v6979_v8 = vperm.slane %v10686_v39, 4  ;;  %v6982_v35 = vperm.slane %v10686_v39, 5  ;;  %v1443_v27 = vmul.f32 %v10689_v12, %v6968_v49  ;;  %v1444_v22 = vmul.f32 %v10690_v58, %v6968_v49 }
 0x859   :  { %v3115_v34 = vadd.f32 %v2987_v25, %v2727_v63  ;;  %v3116_v13 = vadd.f32 %v2988_v36, %v2728_v42  ;;  %v4164_v40 = vunpack.c.h.b16 %v6973_v59  ;;  %v1831_v23 = vmul.f32 %v10691_v20, %v6971_v21 }
 0x85a   :  { %v1832_v6 = vmul.f32 %v10630_v31, %v6971_v21  ;;  %v2219_v47 = vmul.f32 %v10631_v41, %v6976_v29  ;;  %v1571_v36 = vadd.f32 %v1443_v27, %v1183_v3  ;;  %v1572_v63 = vadd.f32 %v1444_v22, %v1184_v60 }
 0x85b   :  { %v3503_v30 = vadd.f32 %v3375_v19, %v3115_v34  ;;  %v3504_v25 = vadd.f32 %v3376_v32, %v3116_v13  ;;  %4319 = vperm.xlu0 %5362, %v4164_v40   ;;  %v2220_v42 = vmul.f32 %v10632_v11, %v6976_v29  ;;  %v2607_v61 = vmul.f32 %v10692_v50, %v6979_v8 }
 0x85c   :  { %v2608_v20 = vmul.f32 %v10693_v18, %v6979_v8  ;;  %v2995_v31 = vmul.f32 %v10694_v62, %v6982_v35  ;;  %v1959_v41 = vadd.f32 %v1831_v23, %v1571_v36  ;;  %v1960_v19 = vadd.f32 %v1832_v6, %v1572_v63 }
 0x85d   :  { %v3891_v58 = vadd.f32 %v3763_v2, %v3503_v30  ;;  %v3892_v12 = vadd.f32 %v3764_v43, %v3504_v25  ;;  %v2996_v32 = vmul.f32 %v10636_v26, %v6982_v35  ;;  %v7006_v3 = vperm.slane %v10686_v39, 6 }
 0x85e   :  { %v7009_v60 = vperm.slane %v10686_v39, 7  ;;  %v4163_v34 = vunpack.c.l.b16 %v6973_v59  ;;  %v2347_v27 = vadd.f32 %v2219_v47, %v1959_v41  ;;  %v2348_v22 = vadd.f32 %v2220_v42, %v1960_v19 }
 0x85f   :  { %v4015_v13 = vpack.c.bf16 %v3892_v12, %v3891_v58  ;;  %v4162_v40 = vunpack.c.h.b16 %v6926_v37  ;;  %v3383_v2 = vmul.f32 %v10637_v24, %v7006_v3  ;;  %v3384_v43 = vmul.f32 %v10646_v51, %v7006_v3 }
 0x860   :  { %v3771_v23 = vmul.f32 %v10647_v7, %v7009_v60  ;;  %v3772_v39 = vmul.f32 %v10648_v17, %v7009_v60  ;;  %v2735_v59 = vadd.f32 %v2607_v61, %v2347_v27  ;;  %v2736_v12 = vadd.f32 %v2608_v20, %v2348_v22  ;;  %v10695_v20 = vld [vmem:[#allocation145_spill] sm:$0xff]  ;;  %v10697_v22 = vld [vmem:[#allocation68_spill] sm:$0xff] }
 0x861   :  { %v4160_v6 = vunpack.c.h.b16 %v4015_v13  ;;  %v4159_v30 = vunpack.c.l.b16 %v4015_v13  ;;  %v1185_v41 = vmul.f32 %v5987_v44, %v6902_v1  ;;  %v1186_v37 = vmul.f32 %v5992_v45, %v6902_v1  ;;  %v10696_v13 = vld [vmem:[#allocation66_spill] sm:$0xff] }
 0x862   :  { %v1445_v58 = vmul.f32 %v6130_v54, %v6968_v49  ;;  %v1446_v47 = vmul.f32 %v6015_v53, %v6968_v49  ;;  %v3123_v25 = vadd.f32 %v2995_v31, %v2735_v59  ;;  %v3124_v36 = vadd.f32 %v2996_v32, %v2736_v12  ;;  %v10698_v12 = vld [vmem:[#allocation35_spill] sm:$0xff] }
 0x863   :  { %4307 = vperm.xlu2 %5361, %v4160_v6   ;;  %4304 = vperm.xlu1 %5360, %v4159_v30   ;;  %v1833_v61 = vmul.f32 %v6031_v10, %v6971_v21  ;;  %v7032_v63 = vperm.slane %v10695_v20, 0  ;;  %v1834_v27 = vmul.f32 %v10696_v13, %v6971_v21  ;;  %v2221_v54 = vmul.f32 %v10697_v22, %v6976_v29  ;;  %v10711_v13 = vld [vmem:[#allocation61_spill] sm:$0xff] }
 0x864   :  { %v1573_v42 = vadd.f32 %v1445_v58, %v1185_v41  ;;  %v1574_v19 = vadd.f32 %v1446_v47, %v1186_v37  ;;  %v3511_v45 = vadd.f32 %v3383_v2, %v3123_v25  ;;  %v3512_v53 = vadd.f32 %v3384_v43, %v3124_v36  ;;  %v10699_v47 = vld [vmem:[#allocation60_spill] sm:$0xff] }
 0x865   :  { %v2222_v31 = vmul.f32 %v6174_v0, %v6976_v29  ;;  %v2609_v32 = vmul.f32 %v6182_v15, %v6979_v8  ;;  %v2610_v59 = vmul.f32 %v6077_v9, %v6979_v8  ;;  %v2997_v41 = vmul.f32 %v10698_v12, %v6982_v35  ;;  %v10700_v15 = vld [vmem:[#allocation39_spill] sm:$0xff]  ;;  %v10710_v0 = vld [vmem:[#allocation58_spill] sm:$0xff] }
 0x866   :  { %v1961_v6 = vadd.f32 %v1833_v61, %v1573_v42  ;;  %v1962_v30 = vadd.f32 %v1834_v27, %v1574_v19  ;;  %v3899_v37 = vadd.f32 %v3771_v23, %v3511_v45  ;;  %v3900_v58 = vadd.f32 %v3772_v39, %v3512_v53  ;;  %v10701_v53 = vld [vmem:[#allocation62_spill] sm:$0xff] }
 0x867   :  { %v2998_v2 = vmul.f32 %v10699_v47, %v6982_v35  ;;  %v3385_v43 = vmul.f32 %v10682_v33, %v7006_v3  ;;  %v3386_v61 = vmul.f32 %v10700_v15, %v7006_v3  ;;  %v3773_v42 = vmul.f32 %v10684_v5, %v7009_v60  ;;  %v10702_v39 = vld [vmem:[#allocation42_spill] sm:$0xff]  ;;  %v10706_v5 = vld [vmem:[#allocation28_spill] sm:$0xff] }
 0x868   :  { %v2349_v25 = vadd.f32 %v2221_v54, %v1961_v6  ;;  %v2350_v36 = vadd.f32 %v2222_v31, %v1962_v30  ;;  %v7054_v19 = vpack.c.bf16 %v3900_v58, %v3899_v37  ;;  %v3774_v45 = vmul.f32 %v10685_v14, %v7009_v60  ;;  %v10703_v31 = vld [vmem:[#allocation24_spill] sm:$0xff]  ;;  %v10704_v30 = vld [vmem:[#allocation49_spill] sm:$0xff] }
 0x869   :  { %v1181_v23 = vmul.f32 %v10701_v53, %v6834_v46  ;;  %v1182_v27 = vmul.f32 %v10702_v39, %v6834_v46  ;;  %v1441_v6 = vmul.f32 %v10703_v31, %v6837_v55  ;;  %v1442_v15 = vmul.f32 %v10704_v30, %v6837_v55  ;;  %v10705_v58 = vld [vmem:[#allocation52_spill] sm:$0xff]  ;;  %v10707_v46 = vld [vmem:[#allocation31_spill] sm:$0xff]  ;;  %v10708_v55 = vld [vmem:[#allocation70_spill] sm:$0xff] }
 0x86a   :  { %v2737_v33 = vadd.f32 %v2609_v32, %v2349_v25  ;;  %v2738_v54 = vadd.f32 %v2610_v59, %v2350_v36  ;;  %v4167_v37 = vunpack.c.l.b16 %v7054_v19  ;;  %v1829_v14 = vmul.f32 %v10705_v58, %v6840_v28 }
 0x86b   :  { %4316 = vperm.xlu2 %5361, %v4163_v34   ;;  %4313 = vperm.xlu1 %5360, %v4162_v40   ;;  %v1830_v47 = vmul.f32 %v10706_v5, %v6840_v28  ;;  %v2217_v32 = vmul.f32 %v10707_v46, %v6849_v4  ;;  %v1569_v36 = vadd.f32 %v1441_v6, %v1181_v23  ;;  %v10709_v34 = vld [vmem:[#allocation74_spill] sm:$0xff]  ;;  %vm4690_vm5 = vcmask 523712  }
 0x86c   :  { %v3125_v59 = vadd.f32 %v2997_v41, %v2737_v33  ;;  %v3126_v25 = vadd.f32 %v2998_v2, %v2738_v54  ;;  %v1570_v12 = vadd.f32 %v1442_v15, %v1182_v27  ;;  %4328 = vperm.xlu0 %5362, %v4167_v37   ;;  %v2218_v9 = vmul.f32 %v10708_v55, %v6849_v4  ;;  %v10712_v41 = vld [vmem:[#allocation37_spill] sm:$0xff]  ;;  %v10713_v2 = vld [vmem:[#allocation40_spill] sm:$0xff]  ;;  %v10715_v54 = vld [vmem:[#allocation75_spill] sm:$0xff] }
 0x86d   :  { %v2605_v40 = vmul.f32 %v10709_v34, %v6865_v56  ;;  %v2606_v22 = vmul.f32 %v10710_v0, %v6865_v56  ;;  %v2993_v28 = vmul.f32 %v10711_v13, %v6868_v38  ;;  %v1957_v17 = vadd.f32 %v1829_v14, %v1569_v36  ;;  %v10714_v4 = vld [vmem:[#allocation69_spill] sm:$0xff] }
 0x86e   :  { %v3513_v10 = vadd.f32 %v3385_v43, %v3125_v59  ;;  %v3514_v44 = vadd.f32 %v3386_v61, %v3126_v25  ;;  %v1958_v33 = vadd.f32 %v1830_v47, %v1570_v12  ;;  %v2994_v15 = vmul.f32 %v10712_v41, %v6868_v38  ;;  %v10716_v43 = vld [vmem:[#allocation47_spill] sm:$0xff] }
 0x86f   :  { %v3381_v23 = vmul.f32 %v10713_v2, %v6871_v57  ;;  %v3382_v27 = vmul.f32 %v10714_v4, %v6871_v57  ;;  %v3769_v6 = vmul.f32 %v10715_v54, %v6886_v16  ;;  %v2345_v7 = vadd.f32 %v2217_v32, %v1957_v17 }
 0x870   :  { %v3901_v56 = vadd.f32 %v3773_v42, %v3513_v10  ;;  %v3902_v37 = vadd.f32 %v3774_v45, %v3514_v44  ;;  %v2346_v51 = vadd.f32 %v2218_v9, %v1958_v33  ;;  %v3770_v14 = vmul.f32 %v10716_v43, %v6886_v16 }
 0x871   :  { %v1189_v12 = vmul.f32 %v10701_v53, %v6902_v1  ;;  %v1190_v38 = vmul.f32 %v10702_v39, %v6902_v1  ;;  %v1449_v47 = vmul.f32 %v10703_v31, %v6968_v49  ;;  %v2733_v61 = vadd.f32 %v2605_v40, %v2345_v7 }
 0x872   :  { %v7097_v57 = vpack.c.bf16 %v3902_v37, %v3901_v56  ;;  %v2734_v59 = vadd.f32 %v2606_v22, %v2346_v51  ;;  %v1450_v44 = vmul.f32 %v10704_v30, %v6968_v49  ;;  %v1837_v9 = vmul.f32 %v10705_v58, %v6971_v21 }
 0x873   :  { %v1577_v10 = vadd.f32 %v1449_v47, %v1189_v12  ;;  %v1838_v17 = vmul.f32 %v10706_v5, %v6971_v21  ;;  %v2225_v16 = vmul.f32 %v10707_v46, %v6976_v29  ;;  %v3121_v45 = vadd.f32 %v2993_v28, %v2733_v61 }
 0x874   :  { %v4170_v42 = vunpack.c.h.b16 %v7097_v57  ;;  %v3122_v32 = vadd.f32 %v2994_v15, %v2734_v59  ;;  %v1578_v25 = vadd.f32 %v1450_v44, %v1190_v38  ;;  %v2226_v51 = vmul.f32 %v10708_v55, %v6976_v29 }
 0x875   :  { %v1965_v7 = vadd.f32 %v1837_v9, %v1577_v10  ;;  %v2613_v22 = vmul.f32 %v10709_v34, %v6979_v8  ;;  %v2614_v36 = vmul.f32 %v10710_v0, %v6979_v8  ;;  %v3509_v40 = vadd.f32 %v3381_v23, %v3121_v45 }
 0x876   :  { %4337 = vperm.xlu0 %5362, %v4170_v42   ;;  %v3510_v33 = vadd.f32 %v3382_v27, %v3122_v32  ;;  %v1966_v56 = vadd.f32 %v1838_v17, %v1578_v25  ;;  %v3001_v37 = vmul.f32 %v10711_v13, %v6982_v35  ;;  %v3002_v15 = vmul.f32 %v10712_v41, %v6982_v35 }
 0x877   :  { %v2353_v28 = vadd.f32 %v2225_v16, %v1965_v7  ;;  %v3389_v12 = vmul.f32 %v10713_v2, %v7006_v3  ;;  %v3390_v38 = vmul.f32 %v10714_v4, %v7006_v3  ;;  %v3897_v47 = vadd.f32 %v3769_v6, %v3509_v40 }
 0x878   :  { %v3898_v61 = vadd.f32 %v3770_v14, %v3510_v33  ;;  %v2354_v59 = vadd.f32 %v2226_v51, %v1966_v56  ;;  %v3777_v23 = vmul.f32 %v10715_v54, %v7009_v60  ;;  %v3778_v44 = vmul.f32 %v10716_v43, %v7009_v60  ;;  %v10718_v33 = vld [vmem:[#allocation22_spill] sm:$0xff] }
 0x879   :  { %v2741_v27 = vadd.f32 %v2613_v22, %v2353_v28  ;;  %v4169_v10 = vunpack.c.l.b16 %v7097_v57  ;;  %v4168_v9 = vunpack.c.h.b16 %v7054_v19  ;;  %v1191_v42 = vmul.f32 %v10687_v48, %v7032_v63 }
 0x87a   :  { %v4018_v17 = vpack.c.bf16 %v3898_v61, %v3897_v47  ;;  %v2742_v16 = vadd.f32 %v2614_v36, %v2354_v59  ;;  %v1192_v6 = vmul.f32 %v10688_v52, %v7032_v63  ;;  %v7133_v45 = vperm.slane %v10695_v20, 1  ;;  %v10717_v36 = vld [vmem:[#allocation44_spill] sm:$0xff]  ;;  %v10720_v61 = vld [vmem:[#allocation50_spill] sm:$0xff] }
 0x87b   :  { %v3129_v14 = vadd.f32 %v3001_v37, %v2741_v27  ;;  %v7136_v32 = vperm.slane %v10695_v20, 2  ;;  %v7139_v25 = vperm.slane %v10695_v20, 3  ;;  %v7142_v51 = vperm.slane %v10695_v20, 4  ;;  %v10719_v37 = vld [vmem:[#allocation25_spill] sm:$0xff] }
 0x87c   :  { %v4166_v57 = vunpack.c.h.b16 %v4018_v17  ;;  %v4165_v19 = vunpack.c.l.b16 %v4018_v17  ;;  %v3130_v7 = vadd.f32 %v3002_v15, %v2742_v16  ;;  %v1451_v40 = vmul.f32 %v10717_v36, %v7133_v45  ;;  %v10721_v15 = vld [vmem:[#allocation53_spill] sm:$0xff] }
 0x87d   :  { %v3517_v22 = vadd.f32 %v3389_v12, %v3129_v14  ;;  %v1452_v56 = vmul.f32 %v10718_v33, %v7133_v45  ;;  %v1839_v28 = vmul.f32 %v10719_v37, %v7136_v32  ;;  %v1840_v59 = vmul.f32 %v10720_v61, %v7136_v32  ;;  %v10731_v61 = vld [vmem:[#allocation27_spill] sm:$0xff]  ;;  %v10732_v37 = vld [vmem:[#allocation30_spill] sm:$0xff] }
 0x87e   :  { %4325 = vperm.xlu2 %5361, %v4166_v57   ;;  %4322 = vperm.xlu1 %5360, %v4165_v19   ;;  %v3518_v47 = vadd.f32 %v3390_v38, %v3130_v7  ;;  %v2227_v27 = vmul.f32 %v10721_v15, %v7139_v25  ;;  %v7155_v12 = vperm.slane %v10695_v20, 5  ;;  %v1579_v16 = vadd.f32 %v1451_v40, %v1191_v42 }
 0x87f   :  { %v3905_v17 = vadd.f32 %v3777_v23, %v3517_v22  ;;  %v1580_v14 = vadd.f32 %v1452_v56, %v1192_v6  ;;  %v2228_v33 = vmul.f32 %v10632_v11, %v7139_v25  ;;  %v2615_v57 = vmul.f32 %v10692_v50, %v7142_v51  ;;  %v10723_v22 = vld [vmem:[#allocation20_spill] sm:$0xff]  ;;  %v10724_v56 = vld [vmem:[#allocation21_spill] sm:$0xff] }
 0x880   :  { %v3906_v36 = vadd.f32 %v3778_v44, %v3518_v47  ;;  %v2616_v38 = vmul.f32 %v10693_v18, %v7142_v51  ;;  %v3003_v19 = vmul.f32 %v10694_v62, %v7155_v12  ;;  %v1967_v7 = vadd.f32 %v1839_v28, %v1579_v16  ;;  %v10725_v16 = vld [vmem:[#allocation38_spill] sm:$0xff]  ;;  %v10728_v50 = vld [vmem:[#allocation64_spill] sm:$0xff] }
 0x881   :  { %v1968_v15 = vadd.f32 %v1840_v59, %v1580_v14  ;;  %v3004_v23 = vmul.f32 %v10636_v26, %v7155_v12  ;;  %v7168_v42 = vperm.slane %v10695_v20, 6  ;;  %v7173_v44 = vperm.slane %v10695_v20, 7  ;;  %v10727_v26 = vld [vmem:[#allocation71_spill] sm:$0xff] }
 0x882   :  { %v7170_v6 = vpack.c.bf16 %v3906_v36, %v3905_v17  ;;  %v1187_v40 = vmul.f32 %v10723_v22, %v6902_v1  ;;  %v1188_v47 = vmul.f32 %v10724_v56, %v6902_v1  ;;  %v2355_v62 = vadd.f32 %v2227_v27, %v1967_v7  ;;  %v10726_v17 = vld [vmem:[#allocation41_spill] sm:$0xff]  ;;  %v10730_v7 = vld [vmem:[#allocation51_spill] sm:$0xff] }
 0x883   :  { %v2356_v28 = vadd.f32 %v2228_v33, %v1968_v15  ;;  %v3391_v59 = vmul.f32 %v10637_v24, %v7168_v42  ;;  %v3392_v14 = vmul.f32 %v10725_v16, %v7168_v42  ;;  %v3779_v20 = vmul.f32 %v10726_v17, %v7173_v44  ;;  %v10729_v33 = vld [vmem:[#allocation48_spill] sm:$0xff] }
 0x884   :  { %10722 = vst [vmem:[#allocation144_spill] sm:$0xff] %v7170_v6  ;;  %v4173_v36 = vunpack.c.l.b16 %v7170_v6  ;;  %v3780_v18 = vmul.f32 %v10727_v26, %v7173_v44  ;;  %v1447_v11 = vmul.f32 %v10728_v50, %v6968_v49  ;;  %v2743_v1 = vadd.f32 %v2615_v57, %v2355_v62 }
 0x885   :  { %v2744_v27 = vadd.f32 %v2616_v38, %v2356_v28  ;;  %v1448_v15 = vmul.f32 %v10729_v33, %v6968_v49  ;;  %v1835_v24 = vmul.f32 %v10730_v7, %v6971_v21  ;;  %v1836_v17 = vmul.f32 %v10731_v61, %v6971_v21  ;;  %v10733_v49 = vld [vmem:[#allocation55_spill] sm:$0xff]  ;;  %v10736_v21 = vld [vmem:[#allocation36_spill] sm:$0xff] }
 0x886   :  { %4346 = vperm.xlu0 %5362, %v4173_v36   ;;  %4334 = vperm.xlu2 %5361, %v4169_v10   ;;  %v1575_v16 = vadd.f32 %v1447_v11, %v1187_v40  ;;  %v2223_v26 = vmul.f32 %v10732_v37, %v6976_v29  ;;  %v3131_v62 = vadd.f32 %v3003_v19, %v2743_v1  ;;  %v10734_v36 = vld [vmem:[#allocation57_spill] sm:$0xff]  ;;  %v10735_v11 = vld [vmem:[#allocation34_spill] sm:$0xff] }
 0x887   :  { %4331 = vperm.xlu1 %5360, %v4168_v9   ;;  %v3132_v57 = vadd.f32 %v3004_v23, %v2744_v27  ;;  %v1576_v38 = vadd.f32 %v1448_v15, %v1188_v47  ;;  %v2224_v28 = vmul.f32 %v10733_v49, %v6976_v29  ;;  %v2611_v10 = vmul.f32 %v10734_v36, %v6979_v8  ;;  %v10737_v9 = vld [vmem:[#allocation78_spill] sm:$0xff]  ;;  %v10738_v47 = vld [vmem:[#allocation80_spill] sm:$0xff]  ;;  %v10740_v1 = vld [vmem:[#allocation73_spill] sm:$0xff] }
 0x888   :  { %v1963_v48 = vadd.f32 %v1835_v24, %v1575_v16  ;;  %v2612_v40 = vmul.f32 %v10735_v11, %v6979_v8  ;;  %v2999_v43 = vmul.f32 %v10736_v21, %v6982_v35  ;;  %v3519_v54 = vadd.f32 %v3391_v59, %v3131_v62  ;;  %v10739_v24 = vld [vmem:[#allocation67_spill] sm:$0xff]  ;;  %v10741_v59 = vld [vmem:[#allocation45_spill] sm:$0xff] }
 0x889   :  { %v3520_v4 = vadd.f32 %v3392_v14, %v3132_v57  ;;  %v1964_v52 = vadd.f32 %v1836_v17, %v1576_v38  ;;  %v3000_v19 = vmul.f32 %v10737_v9, %v6982_v35  ;;  %v3387_v29 = vmul.f32 %v10738_v47, %v7006_v3 }
 0x88a   :  { %v2351_v23 = vadd.f32 %v2223_v26, %v1963_v48  ;;  %v3388_v16 = vmul.f32 %v10739_v24, %v7006_v3  ;;  %v3775_v27 = vmul.f32 %v10740_v1, %v7009_v60  ;;  %v3907_v8 = vadd.f32 %v3779_v20, %v3519_v54 }
 0x88b   :  { %v3908_v15 = vadd.f32 %v3780_v18, %v3520_v4  ;;  %v2352_v6 = vadd.f32 %v2224_v28, %v1964_v52  ;;  %v3776_v14 = vmul.f32 %v10741_v59, %v7009_v60  ;;  %v1195_v35 = vmul.f32 %v10723_v22, %v7032_v63 }
 0x88c   :  { %v2739_v17 = vadd.f32 %v2611_v10, %v2351_v23  ;;  %v1196_v26 = vmul.f32 %v10724_v56, %v7032_v63  ;;  %v1455_v48 = vmul.f32 %v10728_v50, %v7133_v45  ;;  %v1456_v18 = vmul.f32 %v10729_v33, %v7133_v45 }
 0x88d   :  { %v7223_v3 = vpack.c.bf16 %v3908_v15, %v3907_v8  ;;  %v2740_v62 = vadd.f32 %v2612_v40, %v2352_v6  ;;  %v1843_v52 = vmul.f32 %v10730_v7, %v7136_v32  ;;  %v1844_v54 = vmul.f32 %v10731_v61, %v7136_v32 }
 0x88e   :  { %v3127_v60 = vadd.f32 %v2999_v43, %v2739_v17  ;;  %v1583_v4 = vadd.f32 %v1455_v48, %v1195_v35  ;;  %v2231_v20 = vmul.f32 %v10732_v37, %v7139_v25  ;;  %v1584_v28 = vadd.f32 %v1456_v18, %v1196_v26 }
 0x88f   :  { %v4176_v57 = vunpack.c.h.b16 %v7223_v3  ;;  %v3128_v38 = vadd.f32 %v3000_v19, %v2740_v62  ;;  %v2232_v6 = vmul.f32 %v10733_v49, %v7139_v25  ;;  %v2619_v23 = vmul.f32 %v10734_v36, %v7142_v51 }
 0x890   :  { %v3515_v10 = vadd.f32 %v3387_v29, %v3127_v60  ;;  %v1971_v40 = vadd.f32 %v1843_v52, %v1583_v4  ;;  %v2620_v43 = vmul.f32 %v10735_v11, %v7142_v51  ;;  %v1972_v15 = vadd.f32 %v1844_v54, %v1584_v28 }
 0x891   :  { %4355 = vperm.xlu0 %5362, %v4176_v57   ;;  %v3516_v8 = vadd.f32 %v3388_v16, %v3128_v38  ;;  %v3007_v17 = vmul.f32 %v10736_v21, %v7155_v12  ;;  %v3008_v19 = vmul.f32 %v10737_v9, %v7155_v12  ;;  %v3395_v29 = vmul.f32 %v10738_v47, %v7168_v42 }
 0x892   :  { %v3903_v35 = vadd.f32 %v3775_v27, %v3515_v10  ;;  %v2359_v26 = vadd.f32 %v2231_v20, %v1971_v40  ;;  %v3396_v48 = vmul.f32 %v10739_v24, %v7168_v42  ;;  %v2360_v18 = vadd.f32 %v2232_v6, %v1972_v15 }
 0x893   :  { %v3904_v62 = vadd.f32 %v3776_v14, %v3516_v8  ;;  %v3783_v16 = vmul.f32 %v10740_v1, %v7173_v44  ;;  %v3784_v52 = vmul.f32 %v10741_v59, %v7173_v44  ;;  %v4175_v4 = vunpack.c.l.b16 %v7223_v3 }
 0x894   :  { %v2747_v60 = vadd.f32 %v2619_v23, %v2359_v26  ;;  %v1197_v27 = vmul.f32 %v10701_v53, %v7032_v63  ;;  %v1198_v54 = vmul.f32 %v10702_v39, %v7032_v63  ;;  %v2748_v57 = vadd.f32 %v2620_v43, %v2360_v18 }
 0x895   :  { %v4021_v20 = vpack.c.bf16 %v3904_v62, %v3903_v35  ;;  %v1457_v14 = vmul.f32 %v10703_v31, %v7133_v45  ;;  %v1458_v38 = vmul.f32 %v10704_v30, %v7133_v45  ;;  %v1845_v6 = vmul.f32 %v10705_v58, %v7136_v32 }
 0x896   :  { %v3135_v28 = vadd.f32 %v3007_v17, %v2747_v60  ;;  %v1846_v3 = vmul.f32 %v10706_v5, %v7136_v32  ;;  %v2233_v10 = vmul.f32 %v10707_v46, %v7139_v25  ;;  %v3136_v8 = vadd.f32 %v3008_v19, %v2748_v57  ;;  %v10742_v46 = vld [vmem:[#allocation146_spill] sm:$0xff] }
 0x897   :  { %v4172_v40 = vunpack.c.h.b16 %v4021_v20  ;;  %v4171_v23 = vunpack.c.l.b16 %v4021_v20  ;;  %v1585_v43 = vadd.f32 %v1457_v14, %v1197_v27  ;;  %v1586_v35 = vadd.f32 %v1458_v38, %v1198_v54  ;;  %v10744_v14 = vld [vmem:[#allocation69_spill] sm:$0xff] }
 0x898   :  { %v3523_v15 = vadd.f32 %v3395_v29, %v3135_v28  ;;  %v2234_v26 = vmul.f32 %v10708_v55, %v7139_v25  ;;  %v2621_v17 = vmul.f32 %v10709_v34, %v7142_v51  ;;  %v3524_v62 = vadd.f32 %v3396_v48, %v3136_v8 }
 0x899   :  { %4343 = vperm.xlu2 %5361, %v4172_v40   ;;  %4340 = vperm.xlu1 %5360, %v4171_v23   ;;  %v1973_v18 = vadd.f32 %v1845_v6, %v1585_v43  ;;  %v2622_v60 = vmul.f32 %v10710_v0, %v7142_v51  ;;  %v7274_v5 = vperm.slane %v10742_v46, 0  ;;  %v1974_v27 = vadd.f32 %v1846_v3, %v1586_v35  ;;  %v10745_v6 = vld [vmem:[#allocation75_spill] sm:$0xff]  ;;  %v10747_v23 = vld [vmem:[#allocation18_spill] sm:$0xff] }
 0x89a   :  { %v3911_v19 = vadd.f32 %v3783_v16, %v3523_v15  ;;  %v3009_v29 = vmul.f32 %v10711_v13, %v7155_v12  ;;  %v3010_v54 = vmul.f32 %v10712_v41, %v7155_v12  ;;  %v3912_v20 = vadd.f32 %v3784_v52, %v3524_v62  ;;  %v10746_v16 = vld [vmem:[#allocation47_spill] sm:$0xff]  ;;  %v10749_v35 = vld [vmem:[#allocation46_spill] sm:$0xff] }
 0x89b   :  { %10743 = vst [vmem:[#allocation145_spill] sm:$0xff] %v7274_v5  ;;  %v2361_v57 = vadd.f32 %v2233_v10, %v1973_v18  ;;  %v3397_v48 = vmul.f32 %v10713_v2, %v7168_v42  ;;  %v3398_v38 = vmul.f32 %v10744_v14, %v7168_v42  ;;  %v2362_v28 = vadd.f32 %v2234_v26, %v1974_v27  ;;  %v10748_v10 = vld [vmem:[#allocation19_spill] sm:$0xff] }
 0x89c   :  { %v3785_v40 = vmul.f32 %v10745_v6, %v7173_v44  ;;  %v3786_v3 = vmul.f32 %v10746_v16, %v7173_v44  ;;  %v1193_v8 = vmul.f32 %v10747_v23, %v7032_v63  ;;  %v7290_v43 = vpack.c.bf16 %v3912_v20, %v3911_v19  ;;  %v10750_v26 = vld [vmem:[#allocation23_spill] sm:$0xff]  ;;  %v10751_v6 = vld [vmem:[#allocation26_spill] sm:$0xff] }
 0x89d   :  { %v2749_v52 = vadd.f32 %v2621_v17, %v2361_v57  ;;  %v1194_v15 = vmul.f32 %v10748_v10, %v7032_v63  ;;  %v1453_v62 = vmul.f32 %v10749_v35, %v7133_v45  ;;  %v2750_v18 = vadd.f32 %v2622_v60, %v2362_v28  ;;  %v10752_v16 = vld [vmem:[#allocation66_spill] sm:$0xff]  ;;  %v10753_v57 = vld [vmem:[#allocation68_spill] sm:$0xff] }
 0x89e   :  { %v1454_v27 = vmul.f32 %v10750_v26, %v7133_v45  ;;  %v1841_v14 = vmul.f32 %v10751_v6, %v7136_v32  ;;  %v1842_v2 = vmul.f32 %v10752_v16, %v7136_v32  ;;  %v4179_v19 = vunpack.c.l.b16 %v7290_v43  ;;  %v10754_v60 = vld [vmem:[#allocation54_spill] sm:$0xff]  ;;  %v10755_v45 = vld [vmem:[#allocation56_spill] sm:$0xff]  ;;  %v10756_v32 = vld [vmem:[#allocation33_spill] sm:$0xff] }
 0x89f   :  { %v3137_v20 = vadd.f32 %v3009_v29, %v2749_v52  ;;  %v1581_v17 = vadd.f32 %v1453_v62, %v1193_v8  ;;  %v2229_v63 = vmul.f32 %v10753_v57, %v7139_v25  ;;  %v3138_v41 = vadd.f32 %v3010_v54, %v2750_v18  ;;  %v10758_v8 = vld [vmem:[#allocation144_spill] sm:$0xff] }
 0x8a0   :  { %v1582_v13 = vadd.f32 %v1454_v27, %v1194_v15  ;;  %v2230_v28 = vmul.f32 %v10754_v60, %v7139_v25  ;;  %v2617_v0 = vmul.f32 %v10755_v45, %v7142_v51  ;;  %4364 = vperm.xlu0 %5362, %v4179_v19   ;;  %v2618_v58 = vmul.f32 %v10756_v32, %v7142_v51  ;;  %v10760_v25 = vld [vmem:[#allocation35_spill] sm:$0xff]  ;;  %v10761_v18 = vld [vmem:[#allocation60_spill] sm:$0xff] }
 0x8a1   :  { %4352 = vperm.xlu2 %5361, %v4175_v4   ;;  %v3525_v34 = vadd.f32 %v3397_v48, %v3137_v20  ;;  %v1969_v55 = vadd.f32 %v1841_v14, %v1581_v17  ;;  %v7312_v29 = vperm.slane %v10742_v46, 1  ;;  %v10759_v52 = vunpack.c.h.b16 %v10758_v8  ;;  %v10762_v14 = vld [vmem:[#allocation65_spill] sm:$0xff]  ;;  %v10763_v51 = vld [vmem:[#allocation39_spill] sm:$0xff] }
 0x8a2   :  { %v3526_v54 = vadd.f32 %v3398_v38, %v3138_v41  ;;  %v1970_v15 = vadd.f32 %v1842_v2, %v1582_v13  ;;  %v3005_v62 = vmul.f32 %v10760_v25, %v7155_v12  ;;  %v3006_v27 = vmul.f32 %v10761_v18, %v7155_v12  ;;  %v10764_v8 = vld [vmem:[#allocation43_spill] sm:$0xff]  ;;  %v10765_v13 = vld [vmem:[#allocation82_spill] sm:$0xff] }
 0x8a3   :  { %10757 = vst [vmem:[#allocation146_spill] sm:$0xff] %v7312_v29  ;;  %4349 = vperm.xlu1 %5360, %v10759_v52   ;;  %v3913_v4 = vadd.f32 %v3785_v40, %v3525_v34  ;;  %v2357_v48 = vadd.f32 %v2229_v63, %v1969_v55  ;;  %v3393_v19 = vmul.f32 %v10762_v14, %v7168_v42  ;;  %v7339_v63 = vperm.slane %v10742_v46, 2 }
 0x8a4   :  { %v3394_v20 = vmul.f32 %v10763_v51, %v7168_v42  ;;  %v3914_v17 = vadd.f32 %v3786_v3, %v3526_v54  ;;  %v2358_v30 = vadd.f32 %v2230_v28, %v1970_v15  ;;  %v3781_v41 = vmul.f32 %v10764_v8, %v7173_v44 }
 0x8a5   :  { %v3782_v2 = vmul.f32 %v10765_v13, %v7173_v44  ;;  %v2745_v38 = vadd.f32 %v2617_v0, %v2357_v48  ;;  %v1201_v12 = vmul.f32 %v10747_v23, %v7274_v5  ;;  %v1202_v55 = vmul.f32 %v10748_v10, %v7274_v5  ;;  %10766 = vst [vmem:[#allocation144_spill] sm:$0xff] %v7339_v63 }
 0x8a6   :  { %v1461_v34 = vmul.f32 %v10749_v35, %v7312_v29  ;;  %v7334_v40 = vpack.c.bf16 %v3914_v17, %v3913_v4  ;;  %v2746_v42 = vadd.f32 %v2618_v58, %v2358_v30  ;;  %v1462_v3 = vmul.f32 %v10750_v26, %v7312_v29 }
 0x8a7   :  { %v3133_v44 = vadd.f32 %v3005_v62, %v2745_v38  ;;  %v7342_v28 = vperm.slane %v10742_v46, 3  ;;  %v7345_v52 = vperm.slane %v10742_v46, 4  ;;  %v1849_v30 = vmul.f32 %v10751_v6, %v7339_v63 }
 0x8a8   :  { %v1589_v0 = vadd.f32 %v1461_v34, %v1201_v12  ;;  %v4182_v54 = vunpack.c.h.b16 %v7334_v40  ;;  %v3134_v15 = vadd.f32 %v3006_v27, %v2746_v42  ;;  %v1590_v4 = vadd.f32 %v1462_v3, %v1202_v55 }
 0x8a9   :  { %10767 = vst [vmem:[#allocation158_spill] sm:$0xff] %v7342_v28  ;;  %v3521_v58 = vadd.f32 %v3393_v19, %v3133_v44  ;;  %v1850_v48 = vmul.f32 %v10752_v16, %v7339_v63  ;;  %v2237_v62 = vmul.f32 %v10753_v57, %v7342_v28  ;;  %v2238_v17 = vmul.f32 %v10754_v60, %v7342_v28 }
 0x8aa   :  { %10768 = vst [vmem:[#allocation159_spill] sm:$0xff] %v7345_v52  ;;  %4373 = vperm.xlu0 %5362, %v4182_v54   ;;  %v3522_v38 = vadd.f32 %v3394_v20, %v3134_v15  ;;  %v1977_v12 = vadd.f32 %v1849_v30, %v1589_v0  ;;  %v2625_v27 = vmul.f32 %v10755_v45, %v7345_v52  ;;  %v7361_v42 = vperm.slane %v10742_v46, 5 }
 0x8ab   :  { %v2626_v55 = vmul.f32 %v10756_v32, %v7345_v52  ;;  %v3909_v34 = vadd.f32 %v3781_v41, %v3521_v58  ;;  %v1978_v19 = vadd.f32 %v1850_v48, %v1590_v4  ;;  %v7364_v3 = vperm.slane %v10742_v46, 6 }
 0x8ac   :  { %v3910_v44 = vadd.f32 %v3782_v2, %v3522_v38  ;;  %v2365_v31 = vadd.f32 %v2237_v62, %v1977_v12  ;;  %v7367_v54 = vperm.slane %v10742_v46, 7  ;;  %v4181_v20 = vunpack.c.l.b16 %v7334_v40 }
 0x8ad   :  { %v2366_v0 = vadd.f32 %v2238_v17, %v1978_v19  ;;  %v3013_v15 = vmul.f32 %v10760_v25, %v7361_v42  ;;  %v3014_v41 = vmul.f32 %v10761_v18, %v7361_v42  ;;  %v3401_v4 = vmul.f32 %v10762_v14, %v7364_v3 }
 0x8ae   :  { %v4024_v30 = vpack.c.bf16 %v3910_v44, %v3909_v34  ;;  %v2753_v58 = vadd.f32 %v2625_v27, %v2365_v31  ;;  %v3402_v2 = vmul.f32 %v10763_v51, %v7364_v3  ;;  %v3789_v46 = vmul.f32 %v10764_v8, %v7367_v54 }
 0x8af   :  { %v2754_v48 = vadd.f32 %v2626_v55, %v2366_v0  ;;  %v3790_v40 = vmul.f32 %v10765_v13, %v7367_v54  ;;  %v4180_v62 = vunpack.c.h.b16 %v7290_v43  ;;  %v1203_v17 = vmul.f32 %v10723_v22, %v7274_v5 }
 0x8b0   :  { %v4178_v38 = vunpack.c.h.b16 %v4024_v30  ;;  %v4177_v12 = vunpack.c.l.b16 %v4024_v30  ;;  %v3141_v19 = vadd.f32 %v3013_v15, %v2753_v58  ;;  %v1204_v31 = vmul.f32 %v10724_v56, %v7274_v5  ;;  %v10769_v30 = vld [vmem:[#allocation15_spill] sm:$0xff] }
 0x8b1   :  { %v3142_v27 = vadd.f32 %v3014_v41, %v2754_v48  ;;  %v1463_v34 = vmul.f32 %v10728_v50, %v7312_v29  ;;  %v1464_v55 = vmul.f32 %v10729_v33, %v7312_v29  ;;  %v1851_v44 = vmul.f32 %v10730_v7, %v7339_v63 }
 0x8b2   :  { %4361 = vperm.xlu2 %5361, %v4178_v38   ;;  %4358 = vperm.xlu1 %5360, %v4177_v12   ;;  %v3529_v43 = vadd.f32 %v3401_v4, %v3141_v19  ;;  %v1852_v0 = vmul.f32 %v10731_v61, %v7339_v63  ;;  %v2239_v15 = vmul.f32 %v10732_v37, %v7342_v28  ;;  %v7398_v41 = vadd.s32 4294967288, %v10769_v30 }
 0x8b3   :  { %v3530_v58 = vadd.f32 %v3402_v2, %v3142_v27  ;;  %v1591_v48 = vadd.f32 %v1463_v34, %v1203_v17  ;;  %v1592_v50 = vadd.f32 %v1464_v55, %v1204_v31  ;;  %v2240_v33 = vmul.f32 %v10733_v49, %v7342_v28 }
 0x8b4   :  { %10770 = vst [vmem:[#allocation160_spill] sm:$0xff] %v7398_v41  ;;  %v3917_v56 = vadd.f32 %v3789_v46, %v3529_v43  ;;  %v2627_v38 = vmul.f32 %v10734_v36, %v7345_v52  ;;  %v2628_v4 = vmul.f32 %v10735_v11, %v7345_v52  ;;  %v3015_v12 = vmul.f32 %v10736_v21, %v7361_v42  ;;  %v10772_v43 = vld [vmem:[#allocation17_spill] sm:$0xff]  ;;  %v10778_v36 = vld [vmem:[#allocation147_spill] sm:$0xff] }
 0x8b5   :  { %v3918_v19 = vadd.f32 %v3790_v40, %v3530_v58  ;;  %v1979_v37 = vadd.f32 %v1851_v44, %v1591_v48  ;;  %v1980_v61 = vadd.f32 %v1852_v0, %v1592_v50  ;;  %v3016_v2 = vmul.f32 %v10737_v9, %v7361_v42  ;;  %v10771_v50 = vld [vmem:[#allocation16_spill] sm:$0xff]  ;;  %v10777_v21 = vld [vmem:[#allocation53_spill] sm:$0xff] }
 0x8b6   :  { %v3403_v17 = vmul.f32 %v10738_v47, %v7364_v3  ;;  %v3404_v46 = vmul.f32 %v10739_v24, %v7364_v3  ;;  %v3791_v31 = vmul.f32 %v10740_v1, %v7367_v54  ;;  %v3792_v27 = vmul.f32 %v10741_v59, %v7367_v54  ;;  %v10773_v58 = vld [vmem:[#allocation44_spill] sm:$0xff]  ;;  %v10774_v24 = vld [vmem:[#allocation22_spill] sm:$0xff]  ;;  %v10775_v1 = vld [vmem:[#allocation25_spill] sm:$0xff] }
 0x8b7   :  { %v7418_v34 = vpack.c.bf16 %v3918_v19, %v3917_v56  ;;  %v2367_v40 = vadd.f32 %v2239_v15, %v1979_v37  ;;  %v2368_v55 = vadd.f32 %v2240_v33, %v1980_v61  ;;  %v1199_v44 = vmul.f32 %v10771_v50, %v7274_v5  ;;  %v10776_v61 = vld [vmem:[#allocation50_spill] sm:$0xff] }
 0x8b8   :  { %v1200_v0 = vmul.f32 %v10772_v43, %v7274_v5  ;;  %v1459_v48 = vmul.f32 %v10773_v58, %v7312_v29  ;;  %v1460_v47 = vmul.f32 %v10774_v24, %v7312_v29  ;;  %v1847_v9 = vmul.f32 %v10775_v1, %v7339_v63  ;;  %v10779_v29 = vld [vmem:[#allocation29_spill] sm:$0xff]  ;;  %v10788_v5 = vld [vmem:[#allocation71_spill] sm:$0xff] }
 0x8b9   :  { %v4185_v56 = vunpack.c.l.b16 %v7418_v34  ;;  %v2755_v19 = vadd.f32 %v2627_v38, %v2367_v40  ;;  %v2756_v37 = vadd.f32 %v2628_v4, %v2368_v55  ;;  %v1848_v33 = vmul.f32 %v10776_v61, %v7339_v63  ;;  %v10780_v4 = vld [vmem:[#allocation32_spill] sm:$0xff] }
 0x8ba   :  { %4370 = vperm.xlu2 %5361, %v4181_v20   ;;  %4367 = vperm.xlu1 %5360, %v4180_v62   ;;  %v1587_v15 = vadd.f32 %v1459_v48, %v1199_v44  ;;  %v1588_v59 = vadd.f32 %v1460_v47, %v1200_v0  ;;  %v2235_v11 = vmul.f32 %v10777_v21, %v7342_v28  ;;  %v7436_v49 = vperm.slane %v10778_v36, 0  ;;  %v10781_v62 = vld [vmem:[#allocation72_spill] sm:$0xff]  ;;  %v7446_v48 = vpop.permute.xlu2 %4283 }
 0x8bb   :  { %4382 = vperm.xlu0 %5362, %v4185_v56   ;;  %v3143_v7 = vadd.f32 %v3015_v12, %v2755_v19  ;;  %v3144_v22 = vadd.f32 %v3016_v2, %v2756_v37  ;;  %v2236_v38 = vmul.f32 %v10779_v29, %v7342_v28  ;;  %v2623_v40 = vmul.f32 %v10780_v4, %v7345_v52  ;;  %v10782_v44 = vld [vmem:[#allocation76_spill] sm:$0xff]  ;;  %v10784_v12 = vld [vmem:[#allocation59_spill] sm:$0xff] }
 0x8bc   :  { %v1975_v55 = vadd.f32 %v1847_v9, %v1587_v15  ;;  %v1976_v20 = vadd.f32 %v1848_v33, %v1588_v59  ;;  %v2624_v47 = vmul.f32 %v10781_v62, %v7345_v52  ;;  %v3011_v0 = vmul.f32 %v10782_v44, %v7361_v42  ;;  %10783 = vst [vmem:[#allocation147_spill] sm:$0xff] %v7446_v48  ;;  %v10785_v19 = vld [vmem:[#allocation63_spill] sm:$0xff]  ;;  %v10786_v9 = vld [vmem:[#allocation38_spill] sm:$0xff]  ;;  %v10787_v33 = vld [vmem:[#allocation41_spill] sm:$0xff] }
 0x8bd   :  { %v3531_v63 = vadd.f32 %v3403_v17, %v3143_v7  ;;  %v3532_v56 = vadd.f32 %v3404_v46, %v3144_v22  ;;  %v3012_v2 = vmul.f32 %v10784_v12, %v7361_v42  ;;  %v3399_v37 = vmul.f32 %v10785_v19, %v7364_v3 }
 0x8be   :  { %v2363_v28 = vadd.f32 %v2235_v11, %v1975_v55  ;;  %v2364_v39 = vadd.f32 %v2236_v38, %v1976_v20  ;;  %v3400_v59 = vmul.f32 %v10786_v9, %v7364_v3  ;;  %v3787_v15 = vmul.f32 %v10787_v33, %v7367_v54 }
 0x8bf   :  { %v3919_v52 = vadd.f32 %v3791_v31, %v3531_v63  ;;  %v3920_v53 = vadd.f32 %v3792_v27, %v3532_v56  ;;  %v3788_v7 = vmul.f32 %v10788_v5, %v7367_v54  ;;  %v1207_v11 = vmul.f32 %v10771_v50, %v7436_v49 }
 0x8c0   :  { %v2751_v17 = vadd.f32 %v2623_v40, %v2363_v28  ;;  %v2752_v46 = vadd.f32 %v2624_v47, %v2364_v39  ;;  %v1208_v38 = vmul.f32 %v10772_v43, %v7436_v49  ;;  %v7467_v20 = vperm.slane %v10778_v36, 1 }
 0x8c1   :  { %v7464_v55 = vpack.c.bf16 %v3920_v53, %v3919_v52  ;;  %v7470_v63 = vperm.slane %v10778_v36, 2  ;;  %v7473_v31 = vperm.slane %v10778_v36, 3  ;;  %v7476_v39 = vperm.slane %v10778_v36, 4 }
 0x8c2   :  { %v3139_v27 = vadd.f32 %v3011_v0, %v2751_v17  ;;  %v3140_v28 = vadd.f32 %v3012_v2, %v2752_v46  ;;  %v7479_v40 = vperm.slane %v10778_v36, 5  ;;  %v1467_v52 = vmul.f32 %v10773_v58, %v7467_v20 }
 0x8c3   :  { %v4188_v53 = vunpack.c.h.b16 %v7464_v55  ;;  %v1468_v47 = vmul.f32 %v10774_v24, %v7467_v20  ;;  %v1855_v56 = vmul.f32 %v10775_v1, %v7470_v63  ;;  %v1856_v2 = vmul.f32 %v10776_v61, %v7470_v63 }
 0x8c4   :  { %v3527_v22 = vadd.f32 %v3399_v37, %v3139_v27  ;;  %v3528_v0 = vadd.f32 %v3400_v59, %v3140_v28  ;;  %v2243_v17 = vmul.f32 %v10777_v21, %v7473_v31  ;;  %v1595_v46 = vadd.f32 %v1467_v52, %v1207_v11 }
 0x8c5   :  { %4391 = vperm.xlu0 %5362, %v4188_v53   ;;  %v1596_v43 = vadd.f32 %v1468_v47, %v1208_v38  ;;  %v2244_v58 = vmul.f32 %v10779_v29, %v7473_v31  ;;  %v2631_v24 = vmul.f32 %v10780_v4, %v7476_v39  ;;  %v2632_v37 = vmul.f32 %v10781_v62, %v7476_v39 }
 0x8c6   :  { %v3915_v50 = vadd.f32 %v3787_v15, %v3527_v22  ;;  %v3916_v48 = vadd.f32 %v3788_v7, %v3528_v0  ;;  %v3019_v59 = vmul.f32 %v10782_v44, %v7479_v40  ;;  %v1983_v27 = vadd.f32 %v1855_v56, %v1595_v46 }
 0x8c7   :  { %v1984_v28 = vadd.f32 %v1856_v2, %v1596_v43  ;;  %v3020_v11 = vmul.f32 %v10784_v12, %v7479_v40  ;;  %v7503_v38 = vperm.slane %v10778_v36, 6  ;;  %v7506_v52 = vperm.slane %v10778_v36, 7 }
 0x8c8   :  { %v4027_v53 = vpack.c.bf16 %v3916_v48, %v3915_v50  ;;  %v4187_v15 = vunpack.c.l.b16 %v7464_v55  ;;  %v4186_v7 = vunpack.c.h.b16 %v7418_v34  ;;  %v2371_v22 = vadd.f32 %v2243_v17, %v1983_v27  ;;  %v7518_v48 = vpop.permute.xlu2 %4292 }
 0x8c9   :  { %v2372_v47 = vadd.f32 %v2244_v58, %v1984_v28  ;;  %v3407_v56 = vmul.f32 %v10785_v19, %v7503_v38  ;;  %v3408_v43 = vmul.f32 %v10786_v9, %v7503_v38  ;;  %v3795_v50 = vmul.f32 %v10787_v33, %v7506_v52  ;;  %10789 = vst [vmem:[#allocation161_spill] sm:$0xff] %v7518_v48  ;;  %v10807_v48 = vld [vmem:[#allocation58_spill] sm:$0xff] }
 0x8ca   :  { %v4184_v0 = vunpack.c.h.b16 %v4027_v53  ;;  %v4183_v2 = vunpack.c.l.b16 %v4027_v53  ;;  %v3796_v36 = vmul.f32 %v10788_v5, %v7506_v52  ;;  %v2759_v55 = vadd.f32 %v2631_v24, %v2371_v22 }
 0x8cb   :  { %v2760_v34 = vadd.f32 %v2632_v37, %v2372_v47  ;;  %v7521_v58 = vadd.s32 4294967264, %v10769_v30  ;;  %v1209_v17 = vmul.f32 %v10747_v23, %v7436_v49  ;;  %v1210_v46 = vmul.f32 %v10748_v10, %v7436_v49 }
 0x8cc   :  { %4379 = vperm.xlu2 %5361, %v4184_v0   ;;  %4376 = vperm.xlu1 %5360, %v4183_v2   ;;  %v1469_v27 = vmul.f32 %v10749_v35, %v7467_v20  ;;  %v1470_v28 = vmul.f32 %v10750_v26, %v7467_v20  ;;  %v7532_v24 = vadd.s32 4294967248, %v10769_v30  ;;  %v3147_v37 = vadd.f32 %v3019_v59, %v2759_v55 }
 0x8cd   :  { %10790 = vst [vmem:[#allocation162_spill] sm:$0xff] %v7521_v58  ;;  %v3148_v53 = vadd.f32 %v3020_v11, %v2760_v34  ;;  %v1857_v47 = vmul.f32 %v10751_v6, %v7470_v63  ;;  %v1858_v10 = vmul.f32 %v10752_v16, %v7470_v63  ;;  %v2245_v35 = vmul.f32 %v10753_v57, %v7473_v31  ;;  %v10805_v16 = vld [vmem:[#allocation159_spill] sm:$0xff]  ;;  %v10806_v6 = vld [vmem:[#allocation74_spill] sm:$0xff] }
 0x8ce   :  { %10791 = vst [vmem:[#allocation163_spill] sm:$0xff] %v7532_v24  ;;  %v1597_v0 = vadd.f32 %v1469_v27, %v1209_v17  ;;  %v1598_v2 = vadd.f32 %v1470_v28, %v1210_v46  ;;  %v3535_v26 = vadd.f32 %v3407_v56, %v3147_v37  ;;  %v2246_v59 = vmul.f32 %v10754_v60, %v7473_v31  ;;  %v10804_v60 = vld [vmem:[#allocation70_spill] sm:$0xff] }
 0x8cf   :  { %v3536_v23 = vadd.f32 %v3408_v43, %v3148_v53  ;;  %v2633_v11 = vmul.f32 %v10755_v45, %v7476_v39  ;;  %v2634_v17 = vmul.f32 %v10756_v32, %v7476_v39  ;;  %v3021_v46 = vmul.f32 %v10760_v25, %v7479_v40 }
 0x8d0   :  { %v1985_v55 = vadd.f32 %v1857_v47, %v1597_v0  ;;  %v1986_v34 = vadd.f32 %v1858_v10, %v1598_v2  ;;  %v3923_v27 = vadd.f32 %v3795_v50, %v3535_v26  ;;  %v3022_v56 = vmul.f32 %v10761_v18, %v7479_v40  ;;  %v10793_v50 = vld [vmem:[#allocation62_spill] sm:$0xff]  ;;  %v10800_v18 = vld [vmem:[#allocation52_spill] sm:$0xff]  ;;  %v7586_v5 = vpop.permute.xlu2 %4298 }
 0x8d1   :  { %v3924_v28 = vadd.f32 %v3796_v36, %v3536_v23  ;;  %v3409_v43 = vmul.f32 %v10762_v14, %v7503_v38  ;;  %v3410_v47 = vmul.f32 %v10763_v51, %v7503_v38  ;;  %v3797_v10 = vmul.f32 %v10764_v8, %v7506_v52  ;;  %v10792_v23 = vld [vmem:[#allocation145_spill] sm:$0xff]  ;;  %v10794_v2 = vld [vmem:[#allocation42_spill] sm:$0xff]  ;;  %v10799_v14 = vld [vmem:[#allocation144_spill] sm:$0xff] }
 0x8d2   :  { %v2373_v37 = vadd.f32 %v2245_v35, %v1985_v55  ;;  %v2374_v53 = vadd.f32 %v2246_v59, %v1986_v34  ;;  %v3798_v26 = vmul.f32 %v10765_v13, %v7506_v52  ;;  %v1205_v36 = vmul.f32 %v10793_v50, %v10792_v23  ;;  %v10795_v55 = vld [vmem:[#allocation146_spill] sm:$0xff]  ;;  %v10796_v34 = vld [vmem:[#allocation24_spill] sm:$0xff] }
 0x8d3   :  { %v7558_v0 = vpack.c.bf16 %v3924_v28, %v3923_v27  ;;  %v1206_v22 = vmul.f32 %v10794_v2, %v10792_v23  ;;  %v1465_v51 = vmul.f32 %v10796_v34, %v10795_v55  ;;  %v7569_v8 = vadd.s32 4294967280, %v10769_v30  ;;  %v10798_v28 = vld [vmem:[#allocation49_spill] sm:$0xff]  ;;  %v10801_v23 = vld [vmem:[#allocation28_spill] sm:$0xff]  ;;  %10808 = vst [vmem:[#allocation146_spill] sm:$0xff] %v7586_v5 }
 0x8d4   :  { %4388 = vperm.xlu2 %5361, %v4187_v15   ;;  %4385 = vperm.xlu1 %5360, %v4186_v7   ;;  %v2761_v35 = vadd.f32 %v2633_v11, %v2373_v37  ;;  %v2762_v59 = vadd.f32 %v2634_v17, %v2374_v53  ;;  %v1466_v13 = vmul.f32 %v10798_v28, %v10795_v55  ;;  %v10802_v37 = vld [vmem:[#allocation158_spill] sm:$0xff]  ;;  %v10803_v53 = vld [vmem:[#allocation31_spill] sm:$0xff]  ;;  %v7757_v5 = vadd.s32 4294967272, %v10769_v30 }
 0x8d5   :  { %10797 = vst [vmem:[#allocation145_spill] sm:$0xff] %v7569_v8  ;;  %v4191_v27 = vunpack.c.l.b16 %v7558_v0  ;;  %v1853_v25 = vmul.f32 %v10800_v18, %v10799_v14  ;;  %v1854_v15 = vmul.f32 %v10801_v23, %v10799_v14  ;;  %v1593_v17 = vadd.f32 %v1465_v51, %v1205_v36  ;;  %v10809_v51 = vld [vmem:[#allocation61_spill] sm:$0xff] }
 0x8d6   :  { %v3149_v7 = vadd.f32 %v3021_v46, %v2761_v35  ;;  %v3150_v11 = vadd.f32 %v3022_v56, %v2762_v59  ;;  %v2241_v32 = vmul.f32 %v10803_v53, %v10802_v37  ;;  %v1594_v45 = vadd.f32 %v1466_v13, %v1206_v22  ;;  %v10810_v13 = vld [vmem:[#allocation37_spill] sm:$0xff]  ;;  %v10811_v59 = vld [vmem:[#allocation40_spill] sm:$0xff]  ;;  %10845 = vst [vmem:[#allocation159_spill] sm:$0xff] %v7757_v5 }
 0x8d7   :  { %4400 = vperm.xlu0 %5362, %v4191_v27   ;;  %v2242_v57 = vmul.f32 %v10804_v60, %v10802_v37  ;;  %v2629_v55 = vmul.f32 %v10806_v6, %v10805_v16  ;;  %v2630_v58 = vmul.f32 %v10807_v48, %v10805_v16  ;;  %v1981_v56 = vadd.f32 %v1853_v25, %v1593_v17  ;;  %v10812_v37 = vld [vmem:[#allocation69_spill] sm:$0xff] }
 0x8d8   :  { %v3537_v14 = vadd.f32 %v3409_v43, %v3149_v7  ;;  %v3538_v46 = vadd.f32 %v3410_v47, %v3150_v11  ;;  %v3017_v36 = vmul.f32 %v10809_v51, %v7361_v42  ;;  %v1982_v35 = vadd.f32 %v1854_v15, %v1594_v45  ;;  %v10813_v43 = vld [vmem:[#allocation75_spill] sm:$0xff] }
 0x8d9   :  { %v3018_v22 = vmul.f32 %v10810_v13, %v7361_v42  ;;  %v3405_v27 = vmul.f32 %v10811_v59, %v7364_v3  ;;  %v3406_v33 = vmul.f32 %v10812_v37, %v7364_v3  ;;  %v2369_v19 = vadd.f32 %v2241_v32, %v1981_v56  ;;  %v10814_v7 = vld [vmem:[#allocation47_spill] sm:$0xff] }
 0x8da   :  { %v3925_v9 = vadd.f32 %v3797_v10, %v3537_v14  ;;  %v3926_v16 = vadd.f32 %v3798_v26, %v3538_v46  ;;  %v3793_v47 = vmul.f32 %v10813_v43, %v7367_v54  ;;  %v2370_v25 = vadd.f32 %v2242_v57, %v1982_v35 }
 0x8db   :  { %v3794_v11 = vmul.f32 %v10814_v7, %v7367_v54  ;;  %v1213_v42 = vmul.f32 %v10793_v50, %v7436_v49  ;;  %v2757_v17 = vadd.f32 %v2629_v55, %v2369_v19  ;;  %v1214_v3 = vmul.f32 %v10794_v2, %v7436_v49 }
 0x8dc   :  { %v7604_v15 = vpack.c.bf16 %v3926_v16, %v3925_v9  ;;  %v1473_v32 = vmul.f32 %v10796_v34, %v7467_v20  ;;  %v2758_v10 = vadd.f32 %v2630_v58, %v2370_v25  ;;  %v1474_v57 = vmul.f32 %v10798_v28, %v7467_v20 }
 0x8dd   :  { %v1861_v54 = vmul.f32 %v10800_v18, %v7470_v63  ;;  %v1862_v26 = vmul.f32 %v10801_v23, %v7470_v63  ;;  %v3145_v14 = vadd.f32 %v3017_v36, %v2757_v17  ;;  %v2249_v55 = vmul.f32 %v10803_v53, %v7473_v31 }
 0x8de   :  { %v4194_v9 = vunpack.c.h.b16 %v7604_v15  ;;  %v1601_v19 = vadd.f32 %v1473_v32, %v1213_v42  ;;  %v3146_v46 = vadd.f32 %v3018_v22, %v2758_v10  ;;  %v1602_v56 = vadd.f32 %v1474_v57, %v1214_v3  ;;  %v7631_v32 = vpop.permute.xlu0 %4286  ;;  %v7633_v10 = vpop.permute.xlu2 %4307 }
 0x8df   :  { %v2250_v58 = vmul.f32 %v10804_v60, %v7473_v31  ;;  %v2637_v35 = vmul.f32 %v10806_v6, %v7476_v39  ;;  %v3533_v16 = vadd.f32 %v3405_v27, %v3145_v14  ;;  %v2638_v45 = vmul.f32 %v10807_v48, %v7476_v39  ;;  %10815 = vst [vmem:[#allocation144_spill] sm:$0xff] %v7633_v10 }
 0x8e0   :  { %4409 = vperm.xlu0 %5362, %v4194_v9   ;;  %v1989_v25 = vadd.f32 %v1861_v54, %v1601_v19  ;;  %v3025_v36 = vmul.f32 %v10809_v51, %v7479_v40  ;;  %v3534_v42 = vadd.f32 %v3406_v33, %v3146_v46  ;;  %v1990_v17 = vadd.f32 %v1862_v26, %v1602_v56  ;;  %v4281_v33 = vpop.permute.xlu1 %4280  ;;  %v10838_v51 = vld [vmem:[#allocation36_spill] sm:$0xff] }
 0x8e1   :  { %v3026_v22 = vmul.f32 %v10810_v13, %v7479_v40  ;;  %v3413_v3 = vmul.f32 %v10811_v59, %v7503_v38  ;;  %v3921_v27 = vadd.f32 %v3793_v47, %v3533_v16  ;;  %v3414_v54 = vmul.f32 %v10812_v37, %v7503_v38  ;;  %v10836_v13 = vld [vmem:[#allocation57_spill] sm:$0xff] }
 0x8e2   :  { %v2377_v57 = vadd.f32 %v2249_v55, %v1989_v25  ;;  %v3801_v9 = vmul.f32 %v10813_v43, %v7506_v52  ;;  %v3922_v26 = vadd.f32 %v3794_v11, %v3534_v42  ;;  %v2378_v14 = vadd.f32 %v2250_v58, %v1990_v17  ;;  %v10816_v42 = vld [vmem:[#allocation148_spill] sm:$0xff]  ;;  %v10835_v43 = vld [vmem:[#allocation55_spill] sm:$0xff] }
 0x8e3   :  { %v3802_v19 = vmul.f32 %v10814_v7, %v7506_v52  ;;  %v4193_v46 = vunpack.c.l.b16 %v7604_v15  ;;  %v4192_v59 = vunpack.c.h.b16 %v7558_v0  ;;  %v4663_v11 = vperm.slane %v4281_v33, %v10769_v30  ;;  %v10817_v7 = vld [vmem:[#allocation147_spill] sm:$0xff]  ;;  %v10821_v55 = vld [vmem:[#allocation44_spill] sm:$0xff] }
 0x8e4   :  { %v2765_v56 = vadd.f32 %v2637_v35, %v2377_v57  ;;  %v4030_v16 = vpack.c.bf16 %v3922_v26, %v3921_v27  ;;  %v2766_v25 = vadd.f32 %v2638_v45, %v2378_v14  ;;  %v7649_v17 = vperm.slane %v10816_v42, 0  ;;  %v10820_v14 = vld [vmem:[#allocation17_spill] sm:$0xff] }
 0x8e5   :  { %v7652_v15 = vperm.slane %v10816_v42, 1  ;;  %v7655_v0 = vperm.slane %v10816_v42, 2  ;;  %v10818_v27 = vperm.slane %v10817_v7, %v7398_v41  ;;  %v3023_v48 = vmul.f32 %v10838_v51, %v7479_v40 }
 0x8e6   :  { %v3153_v58 = vadd.f32 %v3025_v36, %v2765_v56  ;;  %v4190_v35 = vunpack.c.h.b16 %v4030_v16  ;;  %v4189_v57 = vunpack.c.l.b16 %v4030_v16  ;;  %v3154_v47 = vadd.f32 %v3026_v22, %v2766_v25  ;;  %v10819_v36 = vld [vmem:[#allocation16_spill] sm:$0xff]  ;;  %v10822_v22 = vld [vmem:[#allocation22_spill] sm:$0xff] }
 0x8e7   :  { %v7661_v45 = vsel %vm4666_vm13, %v10818_v27, %v4663_v11  ;;  %v1215_v26 = vmul.f32 %v10819_v36, %v7649_v17  ;;  %v1216_v56 = vmul.f32 %v10820_v14, %v7649_v17  ;;  %v1475_v10 = vmul.f32 %v10821_v55, %v7652_v15 }
 0x8e8   :  { %v3541_v33 = vadd.f32 %v3413_v3, %v3153_v58  ;;  %4397 = vperm.xlu2 %5361, %v4190_v35   ;;  %4394 = vperm.xlu1 %5360, %v4189_v57   ;;  %v3542_v16 = vadd.f32 %v3414_v54, %v3154_v47  ;;  %v1476_v25 = vmul.f32 %v10822_v22, %v7652_v15  ;;  %v7674_v3 = vperm.slane %v10816_v42, 3 }
 0x8e9   :  { %v1863_v7 = vmul.f32 %v10775_v1, %v7655_v0  ;;  %v1603_v58 = vadd.f32 %v1475_v10, %v1215_v26  ;;  %v1864_v27 = vmul.f32 %v10776_v61, %v7655_v0  ;;  %v7679_v14 = vperm.slane %v10816_v42, 4 }
 0x8ea   :  { %v3929_v11 = vadd.f32 %v3801_v9, %v3541_v33  ;;  %v3930_v35 = vadd.f32 %v3802_v19, %v3542_v16  ;;  %v1604_v57 = vadd.f32 %v1476_v25, %v1216_v56  ;;  %v2251_v54 = vmul.f32 %v10777_v21, %v7674_v3 }
 0x8eb   :  { %v2252_v47 = vmul.f32 %v10779_v29, %v7674_v3  ;;  %v1991_v1 = vadd.f32 %v1863_v7, %v1603_v58  ;;  %v2639_v22 = vmul.f32 %v10780_v4, %v7679_v14  ;;  %v2640_v10 = vmul.f32 %v10781_v62, %v7679_v14  ;;  %v10823_v58 = vld [vmem:[#allocation20_spill] sm:$0xff]  ;;  %v10825_v4 = vld [vmem:[#allocation38_spill] sm:$0xff] }
 0x8ec   :  { %v7690_v9 = vperm.slane %v10816_v42, 5  ;;  %v7692_v33 = vpack.c.bf16 %v3930_v35, %v3929_v11  ;;  %v1992_v19 = vadd.f32 %v1864_v27, %v1604_v57  ;;  %v7695_v26 = vperm.slane %v10816_v42, 6  ;;  %v10824_v27 = vld [vmem:[#allocation63_spill] sm:$0xff] }
 0x8ed   :  { %v7698_v56 = vperm.slane %v10816_v42, 7  ;;  %v2379_v16 = vadd.f32 %v2251_v54, %v1991_v1  ;;  %v1211_v62 = vmul.f32 %v10823_v58, %v7436_v49  ;;  %v10826_v1 = vld [vmem:[#allocation41_spill] sm:$0xff] }
 0x8ee   :  { %v3027_v25 = vmul.f32 %v10782_v44, %v7690_v9  ;;  %v3028_v7 = vmul.f32 %v10784_v12, %v7690_v9  ;;  %v4197_v11 = vunpack.c.l.b16 %v7692_v33  ;;  %v2380_v35 = vadd.f32 %v2252_v47, %v1992_v19  ;;  %v10827_v44 = vld [vmem:[#allocation71_spill] sm:$0xff]  ;;  %v10828_v12 = vld [vmem:[#allocation21_spill] sm:$0xff]  ;;  %v10829_v47 = vld [vmem:[#allocation64_spill] sm:$0xff] }
 0x8ef   :  { %v3415_v57 = vmul.f32 %v10824_v27, %v7695_v26  ;;  %v3416_v42 = vmul.f32 %v10825_v4, %v7695_v26  ;;  %v2767_v29 = vadd.f32 %v2639_v22, %v2379_v16  ;;  %v3803_v54 = vmul.f32 %v10826_v1, %v7698_v56  ;;  %v10830_v27 = vld [vmem:[#allocation48_spill] sm:$0xff]  ;;  %v10832_v1 = vld [vmem:[#allocation51_spill] sm:$0xff] }
 0x8f0   :  { %v3804_v21 = vmul.f32 %v10827_v44, %v7698_v56  ;;  %v1212_v61 = vmul.f32 %v10828_v12, %v7436_v49  ;;  %4418 = vperm.xlu0 %5362, %v4197_v11   ;;  %4406 = vperm.xlu2 %5361, %v4193_v46   ;;  %v2768_v55 = vadd.f32 %v2640_v10, %v2380_v35  ;;  %v7722_v22 = vadd.s32 4294967240, %v10769_v30  ;;  %v10833_v4 = vld [vmem:[#allocation27_spill] sm:$0xff]  ;;  %v10834_v46 = vld [vmem:[#allocation30_spill] sm:$0xff] }
 0x8f1   :  { %v1471_v19 = vmul.f32 %v10829_v47, %v7467_v20  ;;  %v1472_v36 = vmul.f32 %v10830_v27, %v7467_v20  ;;  %4403 = vperm.xlu1 %5360, %v4192_v59   ;;  %v3155_v16 = vadd.f32 %v3027_v25, %v2767_v29  ;;  %v1859_v44 = vmul.f32 %v10832_v1, %v7470_v63  ;;  %v10837_v29 = vld [vmem:[#allocation34_spill] sm:$0xff] }
 0x8f2   :  { %10831 = vst [vmem:[#allocation158_spill] sm:$0xff] %v7722_v22  ;;  %v1860_v49 = vmul.f32 %v10833_v4, %v7470_v63  ;;  %v2247_v10 = vmul.f32 %v10834_v46, %v7473_v31  ;;  %v3156_v11 = vadd.f32 %v3028_v7, %v2768_v55  ;;  %v2248_v20 = vmul.f32 %v10835_v43, %v7473_v31  ;;  %v10839_v55 = vld [vmem:[#allocation78_spill] sm:$0xff]  ;;  %v10840_v7 = vld [vmem:[#allocation80_spill] sm:$0xff] }
 0x8f3   :  { %v1599_v35 = vadd.f32 %v1471_v19, %v1211_v62  ;;  %v1600_v41 = vadd.f32 %v1472_v36, %v1212_v61  ;;  %v3543_v37 = vadd.f32 %v3415_v57, %v3155_v16  ;;  %v2635_v59 = vmul.f32 %v10836_v13, %v7476_v39  ;;  %v7740_v61 = vpop.permute.xlu0 %4301  ;;  %v7742_v36 = vpop.permute.xlu2 %4316  ;;  %v10841_v19 = vld [vmem:[#allocation67_spill] sm:$0xff]  ;;  %v10842_v16 = vld [vmem:[#allocation73_spill] sm:$0xff] }
 0x8f4   :  { %v2636_v25 = vmul.f32 %v10837_v29, %v7476_v39  ;;  %v3544_v63 = vadd.f32 %v3416_v42, %v3156_v11  ;;  %v3024_v62 = vmul.f32 %v10839_v55, %v7479_v40  ;;  %v3411_v57 = vmul.f32 %v10840_v7, %v7503_v38  ;;  %v4290_v11 = vpop.permute.xlu1 %4289 }
 0x8f5   :  { %v1987_v6 = vadd.f32 %v1859_v44, %v1599_v35  ;;  %v1988_v60 = vadd.f32 %v1860_v49, %v1600_v41  ;;  %v3931_v31 = vadd.f32 %v3803_v54, %v3543_v37  ;;  %v3412_v39 = vmul.f32 %v10841_v19, %v7503_v38  ;;  %v10843_v49 = vld [vmem:[#allocation45_spill] sm:$0xff]  ;;  %v10844_v37 = vld [vmem:[#allocation162_spill] sm:$0xff] }
 0x8f6   :  { %v3799_v24 = vmul.f32 %v10842_v16, %v7506_v52  ;;  %v3932_v42 = vadd.f32 %v3804_v21, %v3544_v63  ;;  %v3800_v40 = vmul.f32 %v10843_v49, %v7506_v52  ;;  %v4673_v52 = vperm.slane %v4290_v11, %v7757_v5 }
 0x8f7   :  { %v2375_v44 = vadd.f32 %v2247_v10, %v1987_v6  ;;  %v2376_v41 = vadd.f32 %v2248_v20, %v1988_v60  ;;  %v10846_v6 = vperm.slane %v7631_v32, %v7569_v8  ;;  %v1219_v10 = vmul.f32 %v10823_v58, %v7649_v17 }
 0x8f8   :  { %v7759_v38 = vpack.c.bf16 %v3932_v42, %v3931_v31  ;;  %v1220_v20 = vmul.f32 %v10828_v12, %v7649_v17  ;;  %v1867_v42 = vmul.f32 %v10832_v1, %v7655_v0 }
 0x8f9   :  { %v2763_v53 = vadd.f32 %v2635_v59, %v2375_v44  ;;  %v2764_v21 = vadd.f32 %v2636_v25, %v2376_v41  ;;  %v4671_v60 = vsel %vm4670_vm14, %v10846_v6, %v7661_v45  ;;  %v1479_v25 = vmul.f32 %v10829_v47, %v7652_v15 }
 0x8fa   :  { %v4200_v63 = vunpack.c.h.b16 %v7759_v38  ;;  %v4675_v32 = vsel %vm4674_vm15, %v4673_v52, %v4671_v60  ;;  %v1480_v45 = vmul.f32 %v10830_v27, %v7652_v15  ;;  %v1868_v44 = vmul.f32 %v10833_v4, %v7655_v0 }
 0x8fb   :  { %v3151_v31 = vadd.f32 %v3023_v48, %v2763_v53  ;;  %v3152_v59 = vadd.f32 %v3024_v62, %v2764_v21  ;;  %v1607_v6 = vadd.f32 %v1479_v25, %v1219_v10  ;;  %v2255_v48 = vmul.f32 %v10834_v46, %v7674_v3 }
 0x8fc   :  { %4427 = vperm.xlu0 %5362, %v4200_v63   ;;  %v1608_v53 = vadd.f32 %v1480_v45, %v1220_v20  ;;  %v2256_v62 = vmul.f32 %v10835_v43, %v7674_v3  ;;  %v2643_v21 = vmul.f32 %v10836_v13, %v7679_v14  ;;  %v2644_v60 = vmul.f32 %v10837_v29, %v7679_v14 }
 0x8fd   :  { %v3539_v41 = vadd.f32 %v3411_v57, %v3151_v31  ;;  %v3540_v11 = vadd.f32 %v3412_v39, %v3152_v59  ;;  %v1995_v35 = vadd.f32 %v1867_v42, %v1607_v6  ;;  %v3031_v57 = vmul.f32 %v10838_v51, %v7690_v9  ;;  %v7791_v39 = vpop.permute.xlu0 %4310  ;;  %v7799_v59 = vpop.permute.xlu2 %4325 }
 0x8fe   :  { %v1996_v10 = vadd.f32 %v1868_v44, %v1608_v53  ;;  %v3032_v20 = vmul.f32 %v10839_v55, %v7690_v9  ;;  %v3419_v63 = vmul.f32 %v10840_v7, %v7695_v26  ;;  %v3420_v31 = vmul.f32 %v10841_v19, %v7695_v26  ;;  %10847 = vst [vmem:[#allocation148_spill] sm:$0xff] %v7799_v59 }
 0x8ff   :  { %v3927_v52 = vadd.f32 %v3799_v24, %v3539_v41  ;;  %v3928_v54 = vadd.f32 %v3800_v40, %v3540_v11  ;;  %v2383_v40 = vadd.f32 %v2255_v48, %v1995_v35  ;;  %v3807_v25 = vmul.f32 %v10842_v16, %v7698_v56 }
 0x900   :  { %v3808_v45 = vmul.f32 %v10843_v49, %v7698_v56  ;;  %v2384_v42 = vadd.f32 %v2256_v62, %v1996_v10  ;;  %v4199_v44 = vunpack.c.l.b16 %v7759_v38  ;;  %v4198_v41 = vunpack.c.h.b16 %v7692_v33  ;;  %v10849_v33 = vld [vmem:[#allocation161_spill] sm:$0xff] }
 0x901   :  { %v4033_v24 = vpack.c.bf16 %v3928_v54, %v3927_v52  ;;  %v2771_v19 = vadd.f32 %v2643_v21, %v2383_v40  ;;  %v4296_v54 = vpop.permute.xlu1 %4295  ;;  %v7812_v52 = vadd.s32 4294967256, %v10769_v30  ;;  %v10850_v62 = vperm.slane %v10849_v33, %v10844_v37 }
 0x902   :  { %v2772_v48 = vadd.f32 %v2644_v60, %v2384_v42  ;;  %v1221_v60 = vmul.f32 %v10793_v50, %v7649_v17  ;;  %v1222_v40 = vmul.f32 %v10794_v2, %v7649_v17  ;;  %v10874_v50 = vld [vmem:[#allocation54_spill] sm:$0xff] }
 0x903   :  { %v4196_v6 = vunpack.c.h.b16 %v4033_v24  ;;  %v4195_v53 = vunpack.c.l.b16 %v4033_v24  ;;  %10848 = vst [vmem:[#allocation147_spill] sm:$0xff] %v7812_v52  ;;  %v3159_v38 = vadd.f32 %v3031_v57, %v2771_v19  ;;  %v4679_v10 = vsel %vm4678_vm2, %v10850_v62, %v4675_v32 }
 0x904   :  { %v3160_v21 = vadd.f32 %v3032_v20, %v2772_v48  ;;  %v4681_v24 = vperm.slane %v4296_v54, %v7812_v52  ;;  %v1481_v19 = vmul.f32 %v10796_v34, %v7652_v15  ;;  %v1482_v57 = vmul.f32 %v10798_v28, %v7652_v15  ;;  %v10851_v54 = vld [vmem:[#allocation31_spill] sm:$0xff] }
 0x905   :  { %4415 = vperm.xlu2 %5361, %v4196_v6   ;;  %4412 = vperm.xlu1 %5360, %v4195_v53   ;;  %v3547_v42 = vadd.f32 %v3419_v63, %v3159_v38  ;;  %v1869_v32 = vmul.f32 %v10800_v18, %v7655_v0  ;;  %v1870_v53 = vmul.f32 %v10801_v23, %v7655_v0  ;;  %v10852_v63 = vld [vmem:[#allocation146_spill] sm:$0xff]  ;;  %v10853_v38 = vld [vmem:[#allocation163_spill] sm:$0xff]  ;;  %v10873_v18 = vld [vmem:[#allocation68_spill] sm:$0xff] }
 0x906   :  { %v3548_v6 = vadd.f32 %v3420_v31, %v3160_v21  ;;  %v4683_v20 = vsel %vm4682_vm3, %v4681_v24, %v4679_v10  ;;  %v2257_v48 = vmul.f32 %v10851_v54, %v7674_v3  ;;  %v10854_v62 = vperm.slane %v10852_v63, %v10853_v38  ;;  %v10857_v21 = vld [vmem:[#allocation70_spill] sm:$0xff]  ;;  %v10877_v38 = vld [vmem:[#allocation35_spill] sm:$0xff] }
 0x907   :  { %v3935_v33 = vadd.f32 %v3807_v25, %v3547_v42  ;;  %v1609_v11 = vadd.f32 %v1481_v19, %v1221_v60  ;;  %v1610_v28 = vadd.f32 %v1482_v57, %v1222_v40  ;;  %v10855_v31 = vperm.slane %v7740_v61, %v7722_v22  ;;  %v10858_v54 = vld [vmem:[#allocation74_spill] sm:$0xff]  ;;  %v10860_v60 = vld [vmem:[#allocation61_spill] sm:$0xff]  ;;  %v10862_v19 = vld [vmem:[#allocation40_spill] sm:$0xff] }
 0x908   :  { %v4687_v35 = vsel %vm4686_vm4, %v10854_v62, %v4683_v20  ;;  %v3936_v34 = vadd.f32 %v3808_v45, %v3548_v6  ;;  %v2258_v24 = vmul.f32 %v10857_v21, %v7674_v3  ;;  %v2645_v25 = vmul.f32 %v10858_v54, %v7679_v14  ;;  %v10859_v63 = vld [vmem:[#allocation58_spill] sm:$0xff]  ;;  %v10861_v61 = vld [vmem:[#allocation37_spill] sm:$0xff] }
 0x909   :  { %v7842_v10 = vsel %vm4690_vm5, %v10855_v31, %v4687_v35  ;;  %v1997_v42 = vadd.f32 %v1869_v32, %v1609_v11  ;;  %v1998_v23 = vadd.f32 %v1870_v53, %v1610_v28  ;;  %v2646_v20 = vmul.f32 %v10859_v63, %v7679_v14  ;;  %v10863_v6 = vld [vmem:[#allocation69_spill] sm:$0xff]  ;;  %v10864_v32 = vld [vmem:[#allocation75_spill] sm:$0xff] }
 0x90a   :  { %10856 = vst [vmem:[#allocation20_spill] sm:$0xff] %v7842_v10  ;;  %v3033_v45 = vmul.f32 %v10860_v60, %v7690_v9  ;;  %v7852_v40 = vpack.c.bf16 %v3936_v34, %v3935_v33  ;;  %v3034_v35 = vmul.f32 %v10861_v61, %v7690_v9  ;;  %v3421_v57 = vmul.f32 %v10862_v19, %v7695_v26  ;;  %v10865_v34 = vld [vmem:[#allocation18_spill] sm:$0xff]  ;;  %v10866_v10 = vld [vmem:[#allocation19_spill] sm:$0xff]  ;;  %v10867_v60 = vld [vmem:[#allocation149_spill] sm:$0xff] }
 0x90b   :  { %v3422_v62 = vmul.f32 %v10863_v6, %v7695_v26  ;;  %v2385_v28 = vadd.f32 %v2257_v48, %v1997_v42  ;;  %v2386_v11 = vadd.f32 %v2258_v24, %v1998_v23  ;;  %v3809_v53 = vmul.f32 %v10864_v32, %v7698_v56  ;;  %v10869_v23 = vld [vmem:[#allocation23_spill] sm:$0xff]  ;;  %v10871_v32 = vld [vmem:[#allocation26_spill] sm:$0xff] }
 0x90c   :  { %v4203_v31 = vunpack.c.l.b16 %v7852_v40  ;;  %v1217_v33 = vmul.f32 %v10865_v34, %v7649_v17  ;;  %v1218_v61 = vmul.f32 %v10866_v10, %v7649_v17  ;;  %v7868_v19 = vperm.slane %v10867_v60, 0  ;;  %v10870_v24 = vld [vmem:[#allocation47_spill] sm:$0xff]  ;;  %v10872_v17 = vld [vmem:[#allocation66_spill] sm:$0xff] }
 0x90d   :  { %4424 = vperm.xlu2 %5361, %v4199_v44   ;;  %4421 = vperm.xlu1 %5360, %v4198_v41   ;;  %v2773_v63 = vadd.f32 %v2645_v25, %v2385_v28  ;;  %v2774_v6 = vadd.f32 %v2646_v20, %v2386_v11  ;;  %v10868_v44 = vld [vmem:[#allocation46_spill] sm:$0xff]  ;;  %v1478_v48 = vmul.f32 %v10869_v23, %v7652_v15 }
 0x90e   :  { %v1477_v41 = vmul.f32 %v10868_v44, %v7652_v15  ;;  %4436 = vperm.xlu0 %5362, %v4203_v31   ;;  %v3810_v42 = vmul.f32 %v10870_v24, %v7698_v56  ;;  %v1865_v54 = vmul.f32 %v10871_v32, %v7655_v0  ;;  %v1866_v21 = vmul.f32 %v10872_v17, %v7655_v0  ;;  %v10875_v31 = vld [vmem:[#allocation56_spill] sm:$0xff]  ;;  %v10876_v24 = vld [vmem:[#allocation33_spill] sm:$0xff] }
 0x90f   :  { %v2253_v25 = vmul.f32 %v10873_v18, %v7674_v3  ;;  %v3161_v20 = vadd.f32 %v3033_v45, %v2773_v63  ;;  %v3162_v28 = vadd.f32 %v3034_v35, %v2774_v6  ;;  %v1606_v2 = vadd.f32 %v1478_v48, %v1218_v61  ;;  %v7890_v63 = vpop.permute.xlu0 %4319  ;;  %v4305_v45 = vpop.permute.xlu1 %4304  ;;  %v10878_v61 = vld [vmem:[#allocation60_spill] sm:$0xff] }
 0x910   :  { %v1605_v11 = vadd.f32 %v1477_v41, %v1217_v33  ;;  %v2254_v15 = vmul.f32 %v10874_v50, %v7674_v3  ;;  %v2641_v22 = vmul.f32 %v10875_v31, %v7679_v14  ;;  %v2642_v59 = vmul.f32 %v10876_v24, %v7679_v14  ;;  %v10879_v3 = vld [vmem:[#allocation65_spill] sm:$0xff]  ;;  %v10880_v33 = vld [vmem:[#allocation39_spill] sm:$0xff] }
 0x911   :  { %v3029_v49 = vmul.f32 %v10877_v38, %v7690_v9  ;;  %v3549_v0 = vadd.f32 %v3421_v57, %v3161_v20  ;;  %v3550_v16 = vadd.f32 %v3422_v62, %v3162_v28  ;;  %v1994_v55 = vadd.f32 %v1866_v21, %v1606_v2  ;;  %v10881_v14 = vld [vmem:[#allocation43_spill] sm:$0xff]  ;;  %v7900_v2 = vpop.permute.xlu2 %4334  ;;  %v10882_v21 = vld [vmem:[#allocation82_spill] sm:$0xff] }
 0x912   :  { %v1993_v7 = vadd.f32 %v1865_v54, %v1605_v11  ;;  %v3030_v35 = vmul.f32 %v10878_v61, %v7690_v9  ;;  %v3417_v6 = vmul.f32 %v10879_v3, %v7695_v26  ;;  %v3418_v41 = vmul.f32 %v10880_v33, %v7695_v26 }
 0x913   :  { %v3805_v48 = vmul.f32 %v10881_v14, %v7698_v56  ;;  %v3937_v51 = vadd.f32 %v3809_v53, %v3549_v0  ;;  %v3938_v57 = vadd.f32 %v3810_v42, %v3550_v16  ;;  %v2382_v54 = vadd.f32 %v2254_v15, %v1994_v55  ;;  %v10884_v16 = vld [vmem:[#allocation160_spill] sm:$0xff]  ;;  %v10929_v0 = vld [vmem:[#allocation138_spill] sm:$0xff] }
 0x914   :  { %v2381_v62 = vadd.f32 %v2253_v25, %v1993_v7  ;;  %v3806_v20 = vmul.f32 %v10882_v21, %v7698_v56  ;;  %v4701_v9 = vperm.slane %v7890_v63, %v7812_v52  ;;  %v4692_v28 = vperm.slane %v4305_v45, %v10769_v30  ;;  %v10883_v7 = vld [vmem:[#allocation144_spill] sm:$0xff]  ;;  %v10916_v63 = vld [vmem:[#allocation86_spill] sm:$0xff] }
 0x915   :  { %v1225_v26 = vmul.f32 %v10865_v34, %v7868_v19  ;;  %v7909_v11 = vpack.c.bf16 %v3938_v57, %v3937_v51  ;;  %v2770_v53 = vadd.f32 %v2642_v59, %v2382_v54  ;;  %v1226_v55 = vmul.f32 %v10866_v10, %v7868_v19 }
 0x916   :  { %v2769_v29 = vadd.f32 %v2641_v22, %v2381_v62  ;;  %v10885_v42 = vperm.slane %v10883_v7, %v10884_v16  ;;  %v7918_v25 = vperm.slane %v10867_v60, 1  ;;  %v7921_v15 = vperm.slane %v10867_v60, 2 }
 0x917   :  { %v7924_v34 = vperm.slane %v10867_v60, 3  ;;  %v4206_v51 = vunpack.c.h.b16 %v7909_v11  ;;  %v3158_v59 = vadd.f32 %v3030_v35, %v2770_v53  ;;  %v7928_v10 = vperm.slane %v10867_v60, 4 }
 0x918   :  { %v4694_v56 = vsel %vm4666_vm13, %v10885_v42, %v4692_v28  ;;  %v3157_v22 = vadd.f32 %v3029_v49, %v2769_v29  ;;  %v1485_v45 = vmul.f32 %v10868_v44, %v7918_v25  ;;  %v1486_v57 = vmul.f32 %v10869_v23, %v7918_v25 }
 0x919   :  { %v1873_v62 = vmul.f32 %v10871_v32, %v7921_v15  ;;  %4445 = vperm.xlu0 %5362, %v4206_v51   ;;  %v3546_v28 = vadd.f32 %v3418_v41, %v3158_v59  ;;  %v1874_v29 = vmul.f32 %v10872_v17, %v7921_v15  ;;  %v2261_v49 = vmul.f32 %v10873_v18, %v7924_v34  ;;  %v7964_v51 = vpop.permute.xlu2 %4343 }
 0x91a   :  { %v3545_v54 = vadd.f32 %v3417_v6, %v3157_v22  ;;  %v1613_v35 = vadd.f32 %v1485_v45, %v1225_v26  ;;  %v1614_v53 = vadd.f32 %v1486_v57, %v1226_v55  ;;  %v2262_v44 = vmul.f32 %v10874_v50, %v7924_v34  ;;  %v7962_v55 = vpop.permute.xlu0 %4328  ;;  %v4314_v45 = vpop.permute.xlu1 %4313 }
 0x91b   :  { %v2649_v23 = vmul.f32 %v10875_v31, %v7928_v10  ;;  %v3934_v42 = vadd.f32 %v3806_v20, %v3546_v28  ;;  %v7947_v32 = vperm.slane %v10867_v60, 5  ;;  %v7950_v6 = vperm.slane %v10867_v60, 6 }
 0x91c   :  { %v3933_v7 = vadd.f32 %v3805_v48, %v3545_v54  ;;  %v2001_v17 = vadd.f32 %v1873_v62, %v1613_v35  ;;  %v2002_v41 = vadd.f32 %v1874_v29, %v1614_v53  ;;  %v2650_v18 = vmul.f32 %v10876_v24, %v7928_v10 }
 0x91d   :  { %v7955_v26 = vperm.slane %v10867_v60, 7  ;;  %v3037_v31 = vmul.f32 %v10877_v38, %v7947_v32  ;;  %v3038_v48 = vmul.f32 %v10878_v61, %v7947_v32  ;;  %v4205_v20 = vunpack.c.l.b16 %v7909_v11 }
 0x91e   :  { %v4036_v50 = vpack.c.bf16 %v3934_v42, %v3933_v7  ;;  %v2389_v22 = vadd.f32 %v2261_v49, %v2001_v17  ;;  %v2390_v59 = vadd.f32 %v2262_v44, %v2002_v41  ;;  %v3425_v24 = vmul.f32 %v10879_v3, %v7950_v6 }
 0x91f   :  { %v3426_v60 = vmul.f32 %v10880_v33, %v7950_v6  ;;  %v3813_v61 = vmul.f32 %v10881_v14, %v7955_v26  ;;  %v3814_v11 = vmul.f32 %v10882_v21, %v7955_v26  ;;  %v4204_v33 = vunpack.c.h.b16 %v7852_v40 }
 0x920   :  { %v4202_v57 = vunpack.c.h.b16 %v4036_v50  ;;  %v4201_v38 = vunpack.c.l.b16 %v4036_v50  ;;  %v2777_v62 = vadd.f32 %v2649_v23, %v2389_v22  ;;  %v2778_v54 = vadd.f32 %v2650_v18, %v2390_v59  ;;  %v10889_v59 = vld [vmem:[#allocation36_spill] sm:$0xff] }
 0x921   :  { %v10886_v29 = vperm.slane %v7791_v39, %v7569_v8  ;;  %v4697_v49 = vperm.slane %v4314_v45, %v7757_v5  ;;  %v1227_v21 = vmul.f32 %v10823_v58, %v7868_v19  ;;  %v1228_v44 = vmul.f32 %v10828_v12, %v7868_v19 }
 0x922   :  { %4433 = vperm.xlu2 %5361, %v4202_v57   ;;  %4430 = vperm.xlu1 %5360, %v4201_v38   ;;  %v3165_v35 = vadd.f32 %v3037_v31, %v2777_v62  ;;  %v3166_v53 = vadd.f32 %v3038_v48, %v2778_v54  ;;  %v1487_v23 = vmul.f32 %v10829_v47, %v7918_v25  ;;  %v10888_v48 = vld [vmem:[#allocation34_spill] sm:$0xff] }
 0x923   :  { %v4696_v14 = vsel %vm4670_vm14, %v10886_v29, %v4694_v56  ;;  %v1488_v39 = vmul.f32 %v10830_v27, %v7918_v25  ;;  %v1875_v56 = vmul.f32 %v10832_v1, %v7921_v15  ;;  %v1876_v7 = vmul.f32 %v10833_v4, %v7921_v15  ;;  %v10894_v29 = vld [vmem:[#allocation45_spill] sm:$0xff] }
 0x924   :  { %v4698_v40 = vsel %vm4674_vm15, %v4697_v49, %v4696_v14  ;;  %v3553_v58 = vadd.f32 %v3425_v24, %v3165_v35  ;;  %v3554_v42 = vadd.f32 %v3426_v60, %v3166_v53  ;;  %v10887_v17 = vperm.slane %v7742_v36, %v10844_v37  ;;  %v10890_v60 = vld [vmem:[#allocation78_spill] sm:$0xff]  ;;  %v10895_v49 = vld [vmem:[#allocation16_spill] sm:$0xff] }
 0x925   :  { %v1615_v47 = vadd.f32 %v1487_v23, %v1227_v21  ;;  %v1616_v41 = vadd.f32 %v1488_v39, %v1228_v44  ;;  %v2263_v18 = vmul.f32 %v10834_v46, %v7924_v34  ;;  %v2264_v27 = vmul.f32 %v10835_v43, %v7924_v34  ;;  %v10891_v46 = vld [vmem:[#allocation80_spill] sm:$0xff]  ;;  %v10896_v35 = vld [vmem:[#allocation150_spill] sm:$0xff] }
 0x926   :  { %v8001_v12 = vsel %vm4678_vm2, %v10887_v17, %v4698_v40  ;;  %v2651_v1 = vmul.f32 %v10836_v13, %v7928_v10  ;;  %v3941_v4 = vadd.f32 %v3813_v61, %v3553_v58  ;;  %v3942_v50 = vadd.f32 %v3814_v11, %v3554_v42  ;;  %v10892_v13 = vld [vmem:[#allocation67_spill] sm:$0xff]  ;;  %v10893_v11 = vld [vmem:[#allocation73_spill] sm:$0xff] }
 0x927   :  { %v2003_v31 = vadd.f32 %v1875_v56, %v1615_v47  ;;  %v2652_v36 = vmul.f32 %v10888_v48, %v7928_v10  ;;  %v2004_v22 = vadd.f32 %v1876_v7, %v1616_v41  ;;  %v3039_v24 = vmul.f32 %v10889_v59, %v7947_v32  ;;  %v10897_v40 = vld [vmem:[#allocation17_spill] sm:$0xff]  ;;  %v10898_v56 = vld [vmem:[#allocation44_spill] sm:$0xff]  ;;  %v10899_v7 = vld [vmem:[#allocation22_spill] sm:$0xff] }
 0x928   :  { %v3040_v45 = vmul.f32 %v10890_v60, %v7947_v32  ;;  %v3427_v57 = vmul.f32 %v10891_v46, %v7950_v6  ;;  %v8017_v43 = vpack.c.bf16 %v3942_v50, %v3941_v4  ;;  %v3428_v61 = vmul.f32 %v10892_v13, %v7950_v6  ;;  %v10900_v42 = vld [vmem:[#allocation25_spill] sm:$0xff]  ;;  %v10904_v59 = vld [vmem:[#allocation32_spill] sm:$0xff] }
 0x929   :  { %v2391_v38 = vadd.f32 %v2263_v18, %v2003_v31  ;;  %v3815_v62 = vmul.f32 %v10893_v11, %v7955_v26  ;;  %v2392_v54 = vadd.f32 %v2264_v27, %v2004_v22  ;;  %v3816_v14 = vmul.f32 %v10894_v29, %v7955_v26  ;;  %v10901_v27 = vld [vmem:[#allocation50_spill] sm:$0xff]  ;;  %v10902_v4 = vld [vmem:[#allocation53_spill] sm:$0xff]  ;;  %v10905_v13 = vld [vmem:[#allocation72_spill] sm:$0xff]  ;;  %v8054_v29 = vpop.permute.xlu0 %4337 }
 0x92a   :  { %4442 = vperm.xlu2 %5361, %v4205_v20   ;;  %4439 = vperm.xlu1 %5360, %v4204_v33   ;;  %v1223_v21 = vmul.f32 %v10895_v49, %v7868_v19  ;;  %v8028_v53 = vperm.slane %v10896_v35, 0  ;;  %v4209_v44 = vunpack.c.l.b16 %v8017_v43  ;;  %v1224_v39 = vmul.f32 %v10897_v40, %v7868_v19  ;;  %v10906_v11 = vld [vmem:[#allocation76_spill] sm:$0xff] }
 0x92b   :  { %v2779_v23 = vadd.f32 %v2651_v1, %v2391_v38  ;;  %v1483_v20 = vmul.f32 %v10898_v56, %v7918_v25  ;;  %v2780_v33 = vadd.f32 %v2652_v36, %v2392_v54  ;;  %v1484_v58 = vmul.f32 %v10899_v7, %v7918_v25  ;;  %v10903_v36 = vld [vmem:[#allocation29_spill] sm:$0xff] }
 0x92c   :  { %v1871_v17 = vmul.f32 %v10900_v42, %v7921_v15  ;;  %v8040_v47 = vperm.slane %v10896_v35, 1  ;;  %4454 = vperm.xlu0 %5362, %v4209_v44   ;;  %v1872_v1 = vmul.f32 %v10901_v27, %v7921_v15  ;;  %v2259_v50 = vmul.f32 %v10902_v4, %v7924_v34  ;;  %v10928_v27 = vld [vmem:[#allocation135_spill] sm:$0xff] }
 0x92d   :  { %v3167_v41 = vadd.f32 %v3039_v24, %v2779_v23  ;;  %v1611_v18 = vadd.f32 %v1483_v20, %v1223_v21  ;;  %v3168_v31 = vadd.f32 %v3040_v45, %v2780_v33  ;;  %v1612_v48 = vadd.f32 %v1484_v58, %v1224_v39  ;;  %v10907_v45 = vld [vmem:[#allocation59_spill] sm:$0xff]  ;;  %v8060_v39 = vpop.permute.xlu2 %4352  ;;  %v10909_v33 = vld [vmem:[#allocation38_spill] sm:$0xff]  ;;  %v10910_v58 = vld [vmem:[#allocation41_spill] sm:$0xff] }
 0x92e   :  { %v2260_v22 = vmul.f32 %v10903_v36, %v7924_v34  ;;  %v2647_v60 = vmul.f32 %v10904_v59, %v7928_v10  ;;  %v2648_v24 = vmul.f32 %v10905_v13, %v7928_v10  ;;  %v3035_v54 = vmul.f32 %v10906_v11, %v7947_v32  ;;  %v10908_v23 = vld [vmem:[#allocation63_spill] sm:$0xff]  ;;  %v10913_v36 = vld [vmem:[#allocation105_spill] sm:$0xff]  ;;  %v10914_v59 = vld [vmem:[#allocation108_spill] sm:$0xff] }
 0x92f   :  { %v3555_v46 = vadd.f32 %v3427_v57, %v3167_v41  ;;  %v1999_v38 = vadd.f32 %v1871_v17, %v1611_v18  ;;  %v3556_v49 = vadd.f32 %v3428_v61, %v3168_v31  ;;  %v2000_v21 = vadd.f32 %v1872_v1, %v1612_v48  ;;  %v4323_v57 = vpop.permute.xlu1 %4322  ;;  %v10911_v41 = vld [vmem:[#allocation71_spill] sm:$0xff]  ;;  %v10915_v13 = vld [vmem:[#allocation117_spill] sm:$0xff] }
 0x930   :  { %v3036_v44 = vmul.f32 %v10907_v45, %v7947_v32  ;;  %v3423_v40 = vmul.f32 %v10908_v23, %v7950_v6  ;;  %v3424_v7 = vmul.f32 %v10909_v33, %v7950_v6  ;;  %v3811_v42 = vmul.f32 %v10910_v58, %v7955_v26 }
 0x931   :  { %v3943_v56 = vadd.f32 %v3815_v62, %v3555_v46  ;;  %v2387_v20 = vadd.f32 %v2259_v50, %v1999_v38  ;;  %v3944_v17 = vadd.f32 %v3816_v14, %v3556_v49  ;;  %v2388_v61 = vadd.f32 %v2260_v22, %v2000_v21  ;;  %v10912_v50 = vld [vmem:[#allocation163_spill] sm:$0xff]  ;;  %v10917_v21 = vld [vmem:[#allocation148_spill] sm:$0xff] }
 0x932   :  { %v3812_v18 = vmul.f32 %v10911_v41, %v7955_v26  ;;  %v4702_v62 = vsel %vm4682_vm3, %v4701_v9, %v8001_v12  ;;  %v4703_v31 = vperm.slane %v4323_v57, %v10912_v50  ;;  %v1231_v22 = vmul.f32 %v10913_v36, %v8028_v53 }
 0x933   :  { %v2775_v1 = vadd.f32 %v2647_v60, %v2387_v20  ;;  %v8078_v14 = vpack.c.bf16 %v3944_v17, %v3943_v56  ;;  %v2776_v48 = vadd.f32 %v2648_v24, %v2388_v61  ;;  %v1232_v60 = vmul.f32 %v10914_v59, %v8028_v53  ;;  %v10918_v24 = vld [vmem:[#allocation158_spill] sm:$0xff] }
 0x934   :  { %v4704_v38 = vsel %vm4686_vm4, %v4703_v31, %v4702_v62  ;;  %v1491_v11 = vmul.f32 %v10915_v13, %v8040_v47  ;;  %v1492_v9 = vmul.f32 %v10916_v63, %v8040_v47  ;;  %v10919_v45 = vperm.slane %v10917_v21, %v10918_v24  ;;  %v10921_v62 = vld [vmem:[#allocation87_spill] sm:$0xff]  ;;  %v10925_v21 = vld [vmem:[#allocation101_spill] sm:$0xff] }
 0x935   :  { %v3163_v46 = vadd.f32 %v3035_v54, %v2775_v1  ;;  %v4212_v12 = vunpack.c.h.b16 %v8078_v14  ;;  %v3164_v49 = vadd.f32 %v3036_v44, %v2776_v48  ;;  %v8098_v33 = vperm.slane %v10896_v35, 2  ;;  %v10920_v1 = vld [vmem:[#allocation90_spill] sm:$0xff] }
 0x936   :  { %v8094_v23 = vsel %vm4690_vm5, %v10919_v45, %v4704_v38  ;;  %v1619_v56 = vadd.f32 %v1491_v11, %v1231_v22  ;;  %v1620_v20 = vadd.f32 %v1492_v9, %v1232_v60  ;;  %v8101_v17 = vperm.slane %v10896_v35, 3  ;;  %v10922_v22 = vld [vmem:[#allocation93_spill] sm:$0xff]  ;;  %v10924_v11 = vld [vmem:[#allocation131_spill] sm:$0xff] }
 0x937   :  { %v3551_v54 = vadd.f32 %v3423_v40, %v3163_v46  ;;  %4463 = vperm.xlu0 %5362, %v4212_v12   ;;  %v3552_v58 = vadd.f32 %v3424_v7, %v3164_v49  ;;  %v8104_v44 = vperm.slane %v10896_v35, 4  ;;  %v8107_v61 = vperm.slane %v10896_v35, 5  ;;  %v10923_v46 = vld [vmem:[#allocation128_spill] sm:$0xff] }
 0x938   :  { %v1879_v40 = vmul.f32 %v10920_v1, %v8098_v33  ;;  %v1880_v31 = vmul.f32 %v10921_v62, %v8098_v33  ;;  %v8114_v48 = vperm.slane %v10896_v35, 6  ;;  %v2267_v60 = vmul.f32 %v10922_v22, %v8101_v17  ;;  %v10931_v22 = vld [vmem:[#allocation107_spill] sm:$0xff] }
 0x939   :  { %v3939_v41 = vadd.f32 %v3811_v42, %v3551_v54  ;;  %v3940_v7 = vadd.f32 %v3812_v18, %v3552_v58  ;;  %v2268_v38 = vmul.f32 %v10923_v46, %v8101_v17  ;;  %v2655_v9 = vmul.f32 %v10924_v11, %v8104_v44  ;;  %v8122_v42 = vpop.permute.xlu0 %4346  ;;  %v10926_v54 = vld [vmem:[#allocation109_spill] sm:$0xff]  ;;  %v8128_v18 = vpop.permute.xlu2 %4361  ;;  %v10930_v11 = vld [vmem:[#allocation102_spill] sm:$0xff] }
 0x93a   :  { %v2007_v12 = vadd.f32 %v1879_v40, %v1619_v56  ;;  %v2008_v49 = vadd.f32 %v1880_v31, %v1620_v20  ;;  %v2656_v45 = vmul.f32 %v10925_v21, %v8104_v44  ;;  %v3043_v3 = vmul.f32 %v10926_v54, %v8107_v61  ;;  %10927 = vst [vmem:[#allocation21_spill] sm:$0xff] %v8128_v18  ;;  %v4332_v58 = vpop.permute.xlu1 %4331  ;;  %v10940_v54 = vld [vmem:[#allocation28_spill] sm:$0xff] }
 0x93b   :  { %v4039_v4 = vpack.c.bf16 %v3940_v7, %v3939_v41  ;;  %v3044_v57 = vmul.f32 %v10928_v27, %v8107_v61  ;;  %v3431_v28 = vmul.f32 %v10929_v0, %v8114_v48  ;;  %v3432_v56 = vmul.f32 %v10930_v11, %v8114_v48 }
 0x93c   :  { %v2395_v20 = vadd.f32 %v2267_v60, %v2007_v12  ;;  %v2396_v40 = vadd.f32 %v2268_v38, %v2008_v49  ;;  %v8137_v31 = vperm.slane %v10896_v35, 7  ;;  %v4708_v7 = vperm.slane %v4332_v58, %v10884_v16  ;;  %v10932_v60 = vld [vmem:[#allocation122_spill] sm:$0xff] }
 0x93d   :  { %v4208_v21 = vunpack.c.h.b16 %v4039_v4  ;;  %v4207_v46 = vunpack.c.l.b16 %v4039_v4  ;;  %v4211_v35 = vunpack.c.l.b16 %v8078_v14  ;;  %v10933_v4 = vperm.slane %v7962_v55, %v10769_v30  ;;  %v10934_v49 = vld [vmem:[#allocation62_spill] sm:$0xff]  ;;  %v10937_v14 = vld [vmem:[#allocation24_spill] sm:$0xff]  ;;  %v10938_v55 = vld [vmem:[#allocation49_spill] sm:$0xff] }
 0x93e   :  { %v2783_v27 = vadd.f32 %v2655_v9, %v2395_v20  ;;  %v2784_v0 = vadd.f32 %v2656_v45, %v2396_v40  ;;  %v3819_v11 = vmul.f32 %v10931_v22, %v8137_v31  ;;  %v3820_v38 = vmul.f32 %v10932_v60, %v8137_v31  ;;  %v10935_v9 = vld [vmem:[#allocation42_spill] sm:$0xff] }
 0x93f   :  { %4451 = vperm.xlu2 %5361, %v4208_v21   ;;  %4448 = vperm.xlu1 %5360, %v4207_v46   ;;  %v4709_v12 = vsel %vm4666_vm13, %v4708_v7, %v10933_v4  ;;  %v1229_v58 = vmul.f32 %v10934_v49, %v7868_v19  ;;  %v1230_v45 = vmul.f32 %v10935_v9, %v7868_v19  ;;  %v10939_v4 = vld [vmem:[#allocation52_spill] sm:$0xff] }
 0x940   :  { %v3171_v20 = vadd.f32 %v3043_v3, %v2783_v27  ;;  %v3172_v40 = vadd.f32 %v3044_v57, %v2784_v0  ;;  %v10936_v41 = vperm.slane %v7900_v2, %v7569_v8  ;;  %v1489_v21 = vmul.f32 %v10937_v14, %v7918_v25  ;;  %v10941_v0 = vld [vmem:[#allocation31_spill] sm:$0xff]  ;;  %v10943_v14 = vld [vmem:[#allocation74_spill] sm:$0xff] }
 0x941   :  { %v1490_v7 = vmul.f32 %v10938_v55, %v7918_v25  ;;  %v1877_v49 = vmul.f32 %v10939_v4, %v7921_v15  ;;  %v1878_v19 = vmul.f32 %v10940_v54, %v7921_v15  ;;  %v2265_v3 = vmul.f32 %v10941_v0, %v7924_v34  ;;  %v10944_v25 = vld [vmem:[#allocation58_spill] sm:$0xff]  ;;  %v10945_v4 = vld [vmem:[#allocation61_spill] sm:$0xff] }
 0x942   :  { %v8161_v46 = vsel %vm4670_vm14, %v10936_v41, %v4709_v12  ;;  %v3559_v27 = vadd.f32 %v3431_v28, %v3171_v20  ;;  %v3560_v2 = vadd.f32 %v3432_v56, %v3172_v40  ;;  %v1617_v57 = vadd.f32 %v1489_v21, %v1229_v58  ;;  %v10942_v41 = vld [vmem:[#allocation70_spill] sm:$0xff]  ;;  %v10946_v28 = vld [vmem:[#allocation37_spill] sm:$0xff]  ;;  %v10947_v20 = vld [vmem:[#allocation40_spill] sm:$0xff] }
 0x943   :  { %v2266_v12 = vmul.f32 %v10942_v41, %v7924_v34  ;;  %v1618_v9 = vadd.f32 %v1490_v7, %v1230_v45  ;;  %v2653_v18 = vmul.f32 %v10943_v14, %v7928_v10  ;;  %v2654_v55 = vmul.f32 %v10944_v25, %v7928_v10  ;;  %v10948_v45 = vld [vmem:[#allocation69_spill] sm:$0xff]  ;;  %v10949_v21 = vld [vmem:[#allocation75_spill] sm:$0xff] }
 0x944   :  { %v3041_v60 = vmul.f32 %v10945_v4, %v7947_v32  ;;  %v3947_v15 = vadd.f32 %v3819_v11, %v3559_v27  ;;  %v3948_v54 = vadd.f32 %v3820_v38, %v3560_v2  ;;  %v2005_v22 = vadd.f32 %v1877_v49, %v1617_v57  ;;  %v10950_v11 = vld [vmem:[#allocation47_spill] sm:$0xff]  ;;  %v10953_v2 = vld [vmem:[#allocation77_spill] sm:$0xff] }
 0x945   :  { %v3042_v56 = vmul.f32 %v10946_v28, %v7947_v32  ;;  %v2006_v58 = vadd.f32 %v1878_v19, %v1618_v9  ;;  %v3429_v34 = vmul.f32 %v10947_v20, %v7950_v6  ;;  %v3430_v40 = vmul.f32 %v10948_v45, %v7950_v6  ;;  %v10951_v49 = vld [vmem:[#allocation111_spill] sm:$0xff]  ;;  %v10954_v57 = vld [vmem:[#allocation81_spill] sm:$0xff] }
 0x946   :  { %v3817_v7 = vmul.f32 %v10949_v21, %v7955_v26  ;;  %v8189_v10 = vpack.c.bf16 %v3948_v54, %v3947_v15  ;;  %v2393_v0 = vadd.f32 %v2265_v3, %v2005_v22  ;;  %v3818_v38 = vmul.f32 %v10950_v11, %v7955_v26  ;;  %v10955_v9 = vld [vmem:[#allocation151_spill] sm:$0xff]  ;;  %v10958_v15 = vld [vmem:[#allocation89_spill] sm:$0xff] }
 0x947   :  { %v1233_v27 = vmul.f32 %v10951_v49, %v8028_v53  ;;  %4460 = vperm.xlu2 %5361, %v4211_v35   ;;  %v10952_v32 = vunpack.c.h.b16 %v8017_v43  ;;  %v2394_v19 = vadd.f32 %v2266_v12, %v2006_v58  ;;  %v1234_v6 = vmul.f32 %v10953_v2, %v8028_v53  ;;  %v10956_v3 = vld [vmem:[#allocation119_spill] sm:$0xff]  ;;  %v10960_v21 = vld [vmem:[#allocation129_spill] sm:$0xff] }
 0x948   :  { %v1493_v41 = vmul.f32 %v10954_v57, %v8040_v47  ;;  %v8202_v14 = vperm.slane %v10955_v9, 0  ;;  %v4215_v22 = vunpack.c.l.b16 %v8189_v10  ;;  %v2781_v26 = vadd.f32 %v2653_v18, %v2393_v0  ;;  %v10957_v35 = vld [vmem:[#allocation123_spill] sm:$0xff]  ;;  %v10961_v0 = vld [vmem:[#allocation132_spill] sm:$0xff] }
 0x949   :  { %4457 = vperm.xlu1 %5360, %v10952_v32   ;;  %v1494_v25 = vmul.f32 %v10956_v3, %v8040_v47  ;;  %v1881_v43 = vmul.f32 %v10957_v35, %v8098_v33  ;;  %v2782_v4 = vadd.f32 %v2654_v55, %v2394_v19  ;;  %v1882_v54 = vmul.f32 %v10958_v15, %v8098_v33  ;;  %v10959_v28 = vld [vmem:[#allocation95_spill] sm:$0xff]  ;;  %v10962_v55 = vld [vmem:[#allocation96_spill] sm:$0xff]  ;;  %v10963_v19 = vld [vmem:[#allocation98_spill] sm:$0xff]  ;;  %v4356_v15 = vpop.permute.xlu0 %4355 }
 0x94a   :  { %v1621_v12 = vadd.f32 %v1493_v41, %v1233_v27  ;;  %v2269_v58 = vmul.f32 %v10959_v28, %v8101_v17  ;;  %4472 = vperm.xlu0 %5362, %v4215_v22   ;;  %v3169_v20 = vadd.f32 %v3041_v60, %v2781_v26  ;;  %v2270_v18 = vmul.f32 %v10960_v21, %v8101_v17  ;;  %v10964_v60 = vld [vmem:[#allocation112_spill] sm:$0xff] }
 0x94b   :  { %v1622_v45 = vadd.f32 %v1494_v25, %v1234_v6  ;;  %v2657_v11 = vmul.f32 %v10961_v0, %v8104_v44  ;;  %v3170_v32 = vadd.f32 %v3042_v56, %v2782_v4  ;;  %v2658_v27 = vmul.f32 %v10962_v55, %v8104_v44  ;;  %v10965_v22 = vld [vmem:[#allocation116_spill] sm:$0xff]  ;;  %v8225_v25 = vpop.permute.xlu2 %4370 }
 0x94c   :  { %v2009_v3 = vadd.f32 %v1881_v43, %v1621_v12  ;;  %v3045_v41 = vmul.f32 %v10963_v19, %v8107_v61  ;;  %v3557_v35 = vadd.f32 %v3429_v34, %v3169_v20  ;;  %v3046_v6 = vmul.f32 %v10964_v60, %v8107_v61  ;;  %v10966_v43 = vld [vmem:[#allocation139_spill] sm:$0xff]  ;;  %v10967_v12 = vld [vmem:[#allocation141_spill] sm:$0xff]  ;;  %v4341_v19 = vpop.permute.xlu1 %4340 }
 0x94d   :  { %v2010_v28 = vadd.f32 %v1882_v54, %v1622_v45  ;;  %v3433_v26 = vmul.f32 %v10965_v22, %v8114_v48  ;;  %v3558_v0 = vadd.f32 %v3430_v40, %v3170_v32  ;;  %v3434_v4 = vmul.f32 %v10966_v43, %v8114_v48  ;;  %v10968_v54 = vld [vmem:[#allocation124_spill] sm:$0xff] }
 0x94e   :  { %v2397_v56 = vadd.f32 %v2269_v58, %v2009_v3  ;;  %v3821_v55 = vmul.f32 %v10967_v12, %v8137_v31  ;;  %v3945_v21 = vadd.f32 %v3817_v7, %v3557_v35  ;;  %v3822_v20 = vmul.f32 %v10968_v54, %v8137_v31 }
 0x94f   :  { %v2398_v34 = vadd.f32 %v2270_v18, %v2010_v28  ;;  %v4723_v45 = vperm.slane %v4356_v15, %v10884_v16  ;;  %v3946_v60 = vadd.f32 %v3818_v38, %v3558_v0  ;;  %v10969_v3 = vperm.slane %v8054_v29, %v7757_v5  ;;  %v10971_v0 = vld [vmem:[#allocation115_spill] sm:$0xff]  ;;  %v10972_v29 = vld [vmem:[#allocation84_spill] sm:$0xff] }
 0x950   :  { %v2785_v22 = vadd.f32 %v2657_v11, %v2397_v56  ;;  %v10970_v7 = vperm.slane %v8060_v39, %v10769_v30  ;;  %v4714_v15 = vperm.slane %v4341_v19, %v10844_v37  ;;  %v4216_v38 = vunpack.c.h.b16 %v8189_v10  ;;  %v10973_v39 = vld [vmem:[#allocation88_spill] sm:$0xff] }
 0x951   :  { %v4713_v58 = vsel %vm4674_vm15, %v10969_v3, %v8161_v46  ;;  %v2786_v32 = vadd.f32 %v2658_v27, %v2398_v34  ;;  %v4042_v28 = vpack.c.bf16 %v3946_v60, %v3945_v21  ;;  %v1237_v11 = vmul.f32 %v10971_v0, %v8028_v53 }
 0x952   :  { %v8245_v35 = vsel %vm4666_vm13, %v4723_v45, %v10970_v7  ;;  %v3173_v18 = vadd.f32 %v3045_v41, %v2785_v22  ;;  %v1238_v56 = vmul.f32 %v10972_v29, %v8028_v53  ;;  %v4715_v27 = vsel %vm4678_vm2, %v4714_v15, %v4713_v58  ;;  %v10974_v45 = vld [vmem:[#allocation85_spill] sm:$0xff]  ;;  %v10977_v15 = vld [vmem:[#allocation127_spill] sm:$0xff] }
 0x953   :  { %v3174_v46 = vadd.f32 %v3046_v6, %v2786_v32  ;;  %v1497_v34 = vmul.f32 %v10973_v39, %v8040_v47  ;;  %v1498_v3 = vmul.f32 %v10974_v45, %v8040_v47  ;;  %v4214_v19 = vunpack.c.h.b16 %v4042_v28  ;;  %v10976_v6 = vld [vmem:[#allocation91_spill] sm:$0xff] }
 0x954   :  { %v4213_v7 = vunpack.c.l.b16 %v4042_v28  ;;  %v3561_v10 = vadd.f32 %v3433_v26, %v3173_v18  ;;  %v10975_v21 = vperm.slane %v7964_v51, %v7812_v52  ;;  %v1885_v58 = vmul.f32 %v10976_v6, %v8098_v33  ;;  %v10978_v28 = vld [vmem:[#allocation130_spill] sm:$0xff] }
 0x955   :  { %v3562_v60 = vadd.f32 %v3434_v4, %v3174_v46  ;;  %v1625_v22 = vadd.f32 %v1497_v34, %v1237_v11  ;;  %v1626_v40 = vadd.f32 %v1498_v3, %v1238_v56  ;;  %4469 = vperm.xlu2 %5361, %v4214_v19   ;;  %v1886_v30 = vmul.f32 %v10977_v15, %v8098_v33  ;;  %v10979_v4 = vld [vmem:[#allocation99_spill] sm:$0xff]  ;;  %v10980_v56 = vld [vmem:[#allocation106_spill] sm:$0xff]  ;;  %v8275_v34 = vpop.permute.xlu0 %4364 }
 0x956   :  { %v4717_v41 = vsel %vm4682_vm3, %v10975_v21, %v4715_v27  ;;  %4466 = vperm.xlu1 %5360, %v4213_v7   ;;  %v3949_v32 = vadd.f32 %v3821_v55, %v3561_v10  ;;  %v2273_v26 = vmul.f32 %v10978_v28, %v8101_v17  ;;  %v8269_v18 = vperm.slane %v10955_v9, 1  ;;  %v10981_v3 = vld [vmem:[#allocation134_spill] sm:$0xff]  ;;  %v10982_v7 = vld [vmem:[#allocation137_spill] sm:$0xff]  ;;  %v10983_v21 = vld [vmem:[#allocation100_spill] sm:$0xff] }
 0x957   :  { %v3950_v51 = vadd.f32 %v3822_v20, %v3562_v60  ;;  %v2013_v27 = vadd.f32 %v1885_v58, %v1625_v22  ;;  %v2274_v11 = vmul.f32 %v10979_v4, %v8101_v17  ;;  %v2661_v46 = vmul.f32 %v10980_v56, %v8104_v44  ;;  %v8283_v20 = vpop.permute.xlu2 %4379  ;;  %v10985_v58 = vld [vmem:[#allocation104_spill] sm:$0xff] }
 0x958   :  { %v2014_v55 = vadd.f32 %v1886_v30, %v1626_v40  ;;  %v2662_v19 = vmul.f32 %v10981_v3, %v8104_v44  ;;  %v3049_v10 = vmul.f32 %v10982_v7, %v8107_v61  ;;  %v3050_v28 = vmul.f32 %v10983_v21, %v8107_v61  ;;  %10984 = vst [vmem:[#allocation64_spill] sm:$0xff] %v8283_v20  ;;  %v10986_v56 = vld [vmem:[#allocation120_spill] sm:$0xff]  ;;  %v4350_v30 = vpop.permute.xlu1 %4349  ;;  %v10987_v3 = vld [vmem:[#allocation126_spill] sm:$0xff]  ;;  %v10988_v7 = vld [vmem:[#allocation143_spill] sm:$0xff] }
 0x959   :  { %v4044_v60 = vpack.c.bf16 %v3950_v51, %v3949_v32  ;;  %v2401_v22 = vadd.f32 %v2273_v26, %v2013_v27  ;;  %v3437_v4 = vmul.f32 %v10985_v58, %v8114_v48  ;;  %v3438_v15 = vmul.f32 %v10986_v56, %v8114_v48  ;;  %v10999_v20 = vld [vmem:[#allocation97_spill] sm:$0xff] }
 0x95a   :  { %v2402_v40 = vadd.f32 %v2274_v11, %v2014_v55  ;;  %v3825_v6 = vmul.f32 %v10987_v3, %v8137_v31  ;;  %v3826_v45 = vmul.f32 %v10988_v7, %v8137_v31  ;;  %v10989_v56 = vperm.slane %v8122_v42, %v10912_v50  ;;  %v10990_v55 = vld [vmem:[#allocation20_spill] sm:$0xff] }
 0x95b   :  { %v4218_v39 = vunpack.c.h.b16 %v4044_v60  ;;  %v4217_v32 = vunpack.c.l.b16 %v4044_v60  ;;  %v2789_v26 = vadd.f32 %v2661_v46, %v2401_v22  ;;  %v4917_v3 = vsel %vm923_vm6, %v8094_v23, %v10990_v55  ;;  %v10991_v60 = vld [vmem:[#allocation113_spill] sm:$0xff]  ;;  %v10992_v22 = vld [vmem:[#allocation79_spill] sm:$0xff] }
 0x95c   :  { %v2790_v27 = vadd.f32 %v2662_v19, %v2402_v40  ;;  %v4719_v11 = vsel %vm4686_vm4, %v10989_v56, %v4717_v41  ;;  %v4720_v7 = vperm.slane %v4350_v30, %v10918_v24  ;;  %v1235_v46 = vmul.f32 %v10991_v60, %v8028_v53  ;;  %v10993_v19 = vld [vmem:[#allocation83_spill] sm:$0xff]  ;;  %v10994_v23 = vld [vmem:[#allocation121_spill] sm:$0xff] }
 0x95d   :  { %4481 = vperm.xlu0 %5362, %v4218_v39   ;;  %v3177_v21 = vadd.f32 %v3049_v10, %v2789_v26  ;;  %v1236_v51 = vmul.f32 %v10992_v22, %v8028_v53  ;;  %v1495_v40 = vmul.f32 %v10993_v19, %v8040_v47  ;;  %4478 = vperm.xlu2 %5361, %v4217_v32   ;;  %v8315_v39 = vperm.slane %v10955_v9, 2  ;;  %v10996_v53 = vld [vmem:[#allocation125_spill] sm:$0xff] }
 0x95e   :  { %4475 = vperm.xlu1 %5360, %v4216_v38   ;;  %v3178_v42 = vadd.f32 %v3050_v28, %v2790_v27  ;;  %v4721_v41 = vsel %vm4690_vm5, %v4720_v7, %v4719_v11  ;;  %v1496_v56 = vmul.f32 %v10994_v23, %v8040_v47  ;;  %v1883_v55 = vmul.f32 %v10996_v53, %v8098_v33  ;;  %v10997_v38 = vld [vmem:[#allocation92_spill] sm:$0xff]  ;;  %v10998_v7 = vld [vmem:[#allocation94_spill] sm:$0xff] }
 0x95f   :  { %v3565_v10 = vadd.f32 %v3437_v4, %v3177_v21  ;;  %v8318_v30 = vsel %vm925_vm0, %v4721_v41, %v4917_v3  ;;  %v1623_v26 = vadd.f32 %v1495_v40, %v1235_v46  ;;  %v1884_v28 = vmul.f32 %v10997_v38, %v8098_v33  ;;  %v11000_v3 = vld [vmem:[#allocation103_spill] sm:$0xff]  ;;  %v11001_v41 = vld [vmem:[#allocation133_spill] sm:$0xff]  ;;  %v8378_v29 = vpop.permute.xlu2 %4388 }
 0x960   :  { %10995 = vst [vmem:[#allocation48_spill] sm:$0xff] %v8318_v30  ;;  %v3566_v16 = vadd.f32 %v3438_v15, %v3178_v42  ;;  %v1624_v32 = vadd.f32 %v1496_v56, %v1236_v51  ;;  %v2271_v27 = vmul.f32 %v10998_v7, %v8101_v17  ;;  %v2272_v4 = vmul.f32 %v10999_v20, %v8101_v17  ;;  %v11002_v51 = vld [vmem:[#allocation136_spill] sm:$0xff]  ;;  %v11003_v56 = vld [vmem:[#allocation114_spill] sm:$0xff] }
 0x961   :  { %v3953_v47 = vadd.f32 %v3825_v6, %v3565_v10  ;;  %v2011_v11 = vadd.f32 %v1883_v55, %v1623_v26  ;;  %v2659_v21 = vmul.f32 %v11000_v3, %v8104_v44  ;;  %v2660_v15 = vmul.f32 %v11001_v41, %v8104_v44  ;;  %v11004_v6 = vld [vmem:[#allocation118_spill] sm:$0xff]  ;;  %v11005_v17 = vld [vmem:[#allocation140_spill] sm:$0xff] }
 0x962   :  { %v3954_v46 = vadd.f32 %v3826_v45, %v3566_v16  ;;  %v2012_v40 = vadd.f32 %v1884_v28, %v1624_v32  ;;  %v3047_v42 = vmul.f32 %v11002_v51, %v8107_v61  ;;  %v3048_v30 = vmul.f32 %v11003_v56, %v8107_v61  ;;  %v11006_v45 = vld [vmem:[#allocation142_spill] sm:$0xff] }
 0x963   :  { %v2399_v33 = vadd.f32 %v2271_v27, %v2011_v11  ;;  %v3435_v10 = vmul.f32 %v11004_v6, %v8114_v48  ;;  %v3436_v26 = vmul.f32 %v11005_v17, %v8114_v48  ;;  %v3823_v32 = vmul.f32 %v11006_v45, %v8137_v31  ;;  %v11007_v44 = vld [vmem:[#allocation110_spill] sm:$0xff] }
 0x964   :  { %v8340_v55 = vpack.c.bf16 %v3954_v46, %v3953_v47  ;;  %v2400_v16 = vadd.f32 %v2272_v4, %v2012_v40  ;;  %v3824_v28 = vmul.f32 %v11007_v44, %v8137_v31  ;;  %v1239_v27 = vmul.f32 %v10913_v36, %v8202_v14 }
 0x965   :  { %v2787_v58 = vadd.f32 %v2659_v21, %v2399_v33  ;;  %v1240_v61 = vmul.f32 %v10914_v59, %v8202_v14  ;;  %v1499_v11 = vmul.f32 %v10915_v13, %v8269_v18  ;;  %v1500_v4 = vmul.f32 %v10916_v63, %v8269_v18 }
 0x966   :  { %v4221_v48 = vunpack.c.l.b16 %v8340_v55  ;;  %v2788_v47 = vadd.f32 %v2660_v15, %v2400_v16  ;;  %v1887_v46 = vmul.f32 %v10920_v1, %v8315_v39  ;;  %v1888_v40 = vmul.f32 %v10921_v62, %v8315_v39  ;;  %v8372_v62 = vpop.permute.xlu0 %4373 }
 0x967   :  { %v3175_v31 = vadd.f32 %v3047_v42, %v2787_v58  ;;  %v1627_v21 = vadd.f32 %v1499_v11, %v1239_v27  ;;  %v8360_v33 = vperm.slane %v10955_v9, 3  ;;  %v1628_v13 = vadd.f32 %v1500_v4, %v1240_v61  ;;  %v11008_v58 = vld [vmem:[#allocation93_spill] sm:$0xff]  ;;  %v11009_v27 = vld [vmem:[#allocation128_spill] sm:$0xff] }
 0x968   :  { %4490 = vperm.xlu0 %5362, %v4221_v48   ;;  %v3176_v59 = vadd.f32 %v3048_v30, %v2788_v47  ;;  %v8363_v36 = vperm.slane %v10955_v9, 4  ;;  %v8366_v15 = vperm.slane %v10955_v9, 5  ;;  %v11010_v30 = vld [vmem:[#allocation131_spill] sm:$0xff]  ;;  %v11011_v47 = vld [vmem:[#allocation101_spill] sm:$0xff] }
 0x969   :  { %v3563_v16 = vadd.f32 %v3435_v10, %v3175_v31  ;;  %v2015_v63 = vadd.f32 %v1887_v46, %v1627_v21  ;;  %v2275_v42 = vmul.f32 %v11008_v58, %v8360_v33  ;;  %v2276_v11 = vmul.f32 %v11009_v27, %v8360_v33  ;;  %v4359_v10 = vpop.permute.xlu1 %4358  ;;  %v11012_v21 = vld [vmem:[#allocation109_spill] sm:$0xff]  ;;  %v11013_v27 = vld [vmem:[#allocation135_spill] sm:$0xff] }
 0x96a   :  { %v3564_v1 = vadd.f32 %v3436_v26, %v3176_v59  ;;  %v2016_v48 = vadd.f32 %v1888_v40, %v1628_v13  ;;  %v2663_v61 = vmul.f32 %v11010_v30, %v8363_v36  ;;  %v2664_v4 = vmul.f32 %v11011_v47, %v8363_v36 }
 0x96b   :  { %v3951_v46 = vadd.f32 %v3823_v32, %v3563_v16  ;;  %v2403_v31 = vadd.f32 %v2275_v42, %v2015_v63  ;;  %v3051_v58 = vmul.f32 %v11012_v21, %v8366_v15  ;;  %v3052_v0 = vmul.f32 %v11013_v27, %v8366_v15 }
 0x96c   :  { %v3952_v54 = vadd.f32 %v3824_v28, %v3564_v1  ;;  %v2404_v59 = vadd.f32 %v2276_v11, %v2016_v48  ;;  %v8385_v13 = vperm.slane %v10955_v9, 6  ;;  %v8388_v26 = vperm.slane %v10955_v9, 7  ;;  %v11014_v1 = vld [vmem:[#allocation138_spill] sm:$0xff]  ;;  %v11016_v9 = vld [vmem:[#allocation107_spill] sm:$0xff] }
 0x96d   :  { %v2791_v40 = vadd.f32 %v2663_v61, %v2403_v31  ;;  %v4725_v32 = vperm.slane %v4359_v10, %v7569_v8  ;;  %v11015_v11 = vld [vmem:[#allocation102_spill] sm:$0xff] }
 0x96e   :  { %v4045_v16 = vpack.c.bf16 %v3952_v54, %v3951_v46  ;;  %v2792_v42 = vadd.f32 %v2664_v4, %v2404_v59  ;;  %v3439_v28 = vmul.f32 %v11014_v1, %v8385_v13  ;;  %v3440_v48 = vmul.f32 %v11015_v11, %v8385_v13  ;;  %v11017_v31 = vld [vmem:[#allocation122_spill] sm:$0xff]  ;;  %v11018_v4 = vld [vmem:[#allocation21_spill] sm:$0xff] }
 0x96f   :  { %v3179_v27 = vadd.f32 %v3051_v58, %v2791_v40  ;;  %v3827_v61 = vmul.f32 %v11016_v9, %v8388_v26  ;;  %v3828_v47 = vmul.f32 %v11017_v31, %v8388_v26  ;;  %v4726_v63 = vsel %vm4670_vm14, %v4725_v32, %v8245_v35 }
 0x970   :  { %v4220_v21 = vunpack.c.h.b16 %v4045_v16  ;;  %v4219_v10 = vunpack.c.l.b16 %v4045_v16  ;;  %v3180_v54 = vadd.f32 %v3052_v0, %v2792_v42  ;;  %v11019_v46 = vperm.slane %v11018_v4, %v7757_v5  ;;  %v11020_v16 = vld [vmem:[#allocation152_spill] sm:$0xff]  ;;  %v8429_v4 = vpop.permute.xlu0 %4382 }
 0x971   :  { %v3567_v1 = vadd.f32 %v3439_v28, %v3179_v27  ;;  %v4222_v58 = vunpack.c.h.b16 %v8340_v55  ;;  %v1243_v40 = vmul.f32 %v10991_v60, %v8202_v14  ;;  %v1244_v31 = vmul.f32 %v10992_v22, %v8202_v14  ;;  %v11044_v60 = vld [vmem:[#allocation127_spill] sm:$0xff] }
 0x972   :  { %v4728_v59 = vsel %vm4674_vm15, %v11019_v46, %v4726_v63  ;;  %4487 = vperm.xlu2 %5361, %v4220_v21   ;;  %4484 = vperm.xlu1 %5360, %v4219_v10   ;;  %v3568_v35 = vadd.f32 %v3440_v48, %v3180_v54  ;;  %v1503_v0 = vmul.f32 %v10993_v19, %v8269_v18  ;;  %v8419_v63 = vperm.slane %v11020_v16, 0 }
 0x973   :  { %v1504_v32 = vmul.f32 %v10994_v23, %v8269_v18  ;;  %v3955_v27 = vadd.f32 %v3827_v61, %v3567_v1  ;;  %v1891_v55 = vmul.f32 %v10996_v53, %v8315_v39  ;;  %v1892_v42 = vmul.f32 %v10997_v38, %v8315_v39 }
 0x974   :  { %11021 = vst [vmem:[#allocation51_spill] sm:$0xff] %v8419_v63  ;;  %v2279_v21 = vmul.f32 %v10998_v7, %v8360_v33  ;;  %v3956_v28 = vadd.f32 %v3828_v47, %v3568_v35  ;;  %v1631_v48 = vadd.f32 %v1503_v0, %v1243_v40  ;;  %v2280_v54 = vmul.f32 %v10999_v20, %v8360_v33  ;;  %v8441_v0 = vpop.permute.xlu2 %4397 }
 0x975   :  { %v1632_v10 = vadd.f32 %v1504_v32, %v1244_v31  ;;  %v2667_v1 = vmul.f32 %v11000_v3, %v8363_v36  ;;  %v2668_v61 = vmul.f32 %v11001_v41, %v8363_v36  ;;  %v3055_v46 = vmul.f32 %v11002_v51, %v8366_v15  ;;  %11022 = vst [vmem:[#allocation27_spill] sm:$0xff] %v8441_v0  ;;  %v4368_v32 = vpop.permute.xlu1 %4367 }
 0x976   :  { %v3056_v7 = vmul.f32 %v11003_v56, %v8366_v15  ;;  %v4047_v47 = vpack.c.bf16 %v3956_v28, %v3955_v27  ;;  %v2019_v40 = vadd.f32 %v1891_v55, %v1631_v48  ;;  %v3443_v35 = vmul.f32 %v11004_v6, %v8385_v13 }
 0x977   :  { %v2020_v31 = vadd.f32 %v1892_v42, %v1632_v10  ;;  %v3444_v3 = vmul.f32 %v11005_v17, %v8385_v13  ;;  %v3831_v41 = vmul.f32 %v11006_v45, %v8388_v26  ;;  %v3832_v51 = vmul.f32 %v11007_v44, %v8388_v26  ;;  %v11031_v10 = vld [vmem:[#allocation95_spill] sm:$0xff] }
 0x978   :  { %v4224_v55 = vunpack.c.h.b16 %v4047_v47  ;;  %v4223_v42 = vunpack.c.l.b16 %v4047_v47  ;;  %v2407_v28 = vadd.f32 %v2279_v21, %v2019_v40  ;;  %v11023_v6 = vperm.slane %v8275_v34, %v10844_v37  ;;  %v11026_v40 = vld [vmem:[#allocation123_spill] sm:$0xff] }
 0x979   :  { %v2408_v48 = vadd.f32 %v2280_v54, %v2020_v31  ;;  %v4731_v45 = vperm.slane %v4368_v32, %v7812_v52  ;;  %v1241_v44 = vmul.f32 %v10951_v49, %v8202_v14  ;;  %v1242_v21 = vmul.f32 %v10953_v2, %v8202_v14 }
 0x97a   :  { %v4730_v17 = vsel %vm4678_vm2, %v11023_v6, %v4728_v59  ;;  %4499 = vperm.xlu0 %5362, %v4224_v55   ;;  %4496 = vperm.xlu2 %5361, %v4223_v42   ;;  %v2795_v27 = vadd.f32 %v2667_v1, %v2407_v28  ;;  %v8463_v54 = vperm.slane %v11020_v16, 1  ;;  %v1501_v6 = vmul.f32 %v10954_v57, %v8269_v18  ;;  %v11025_v59 = vld [vmem:[#allocation119_spill] sm:$0xff] }
 0x97b   :  { %v2796_v56 = vadd.f32 %v2668_v61, %v2408_v48  ;;  %4493 = vperm.xlu1 %5360, %v4222_v58   ;;  %v4732_v34 = vsel %vm4682_vm3, %v4731_v45, %v4730_v17  ;;  %v1502_v47 = vmul.f32 %v11025_v59, %v8269_v18  ;;  %v1889_v31 = vmul.f32 %v11026_v40, %v8315_v39  ;;  %v11028_v58 = vld [vmem:[#allocation89_spill] sm:$0xff] }
 0x97c   :  { %11024 = vst [vmem:[#allocation30_spill] sm:$0xff] %v8463_v54  ;;  %v3183_v1 = vadd.f32 %v3055_v46, %v2795_v27  ;;  %v11027_v32 = vperm.slane %v8225_v25, %v10912_v50  ;;  %v1890_v42 = vmul.f32 %v11028_v58, %v8315_v39  ;;  %v11029_v17 = vperm.slane %v8372_v62, %v10918_v24  ;;  %v11032_v25 = vld [vmem:[#allocation129_spill] sm:$0xff]  ;;  %v11034_v62 = vld [vmem:[#allocation96_spill] sm:$0xff] }
 0x97d   :  { %v3184_v61 = vadd.f32 %v3056_v7, %v2796_v56  ;;  %v1629_v28 = vadd.f32 %v1501_v6, %v1241_v44  ;;  %v1630_v48 = vadd.f32 %v1502_v47, %v1242_v21  ;;  %v2277_v46 = vmul.f32 %v11031_v10, %v8360_v33  ;;  %v11036_v47 = vld [vmem:[#allocation112_spill] sm:$0xff]  ;;  %v11049_v50 = vld [vmem:[#allocation137_spill] sm:$0xff] }
 0x97e   :  { %v4734_v55 = vsel %vm4686_vm4, %v11027_v32, %v4732_v34  ;;  %v3571_v7 = vadd.f32 %v3443_v35, %v3183_v1  ;;  %v2278_v27 = vmul.f32 %v11032_v25, %v8360_v33  ;;  %v11033_v34 = vld [vmem:[#allocation132_spill] sm:$0xff]  ;;  %v2666_v53 = vmul.f32 %v11034_v62, %v8363_v36 }
 0x97f   :  { %v8482_v45 = vsel %vm4690_vm5, %v11029_v17, %v4734_v55  ;;  %v3572_v56 = vadd.f32 %v3444_v3, %v3184_v61  ;;  %v2665_v32 = vmul.f32 %v11033_v34, %v8363_v36  ;;  %v2017_v20 = vadd.f32 %v1889_v31, %v1629_v28  ;;  %v11035_v55 = vld [vmem:[#allocation98_spill] sm:$0xff]  ;;  %v11037_v3 = vld [vmem:[#allocation116_spill] sm:$0xff] }
 0x980   :  { %11030 = vst [vmem:[#allocation55_spill] sm:$0xff] %v8482_v45  ;;  %v2018_v38 = vadd.f32 %v1890_v42, %v1630_v48  ;;  %v3053_v44 = vmul.f32 %v11035_v55, %v8366_v15  ;;  %v3959_v21 = vadd.f32 %v3831_v41, %v3571_v7  ;;  %v3054_v35 = vmul.f32 %v11036_v47, %v8366_v15  ;;  %v11038_v48 = vld [vmem:[#allocation124_spill] sm:$0xff] }
 0x981   :  { %v3960_v6 = vadd.f32 %v3832_v51, %v3572_v56  ;;  %v3441_v1 = vmul.f32 %v11037_v3, %v8385_v13  ;;  %v2405_v61 = vadd.f32 %v2277_v46, %v2017_v20  ;;  %v3442_v31 = vmul.f32 %v10966_v43, %v8385_v13  ;;  %v11039_v51 = vld [vmem:[#allocation115_spill] sm:$0xff]  ;;  %v11040_v56 = vld [vmem:[#allocation84_spill] sm:$0xff] }
 0x982   :  { %v2406_v17 = vadd.f32 %v2278_v27, %v2018_v38  ;;  %v3829_v42 = vmul.f32 %v10967_v12, %v8388_v26  ;;  %v3830_v41 = vmul.f32 %v11038_v48, %v8388_v26  ;;  %v1245_v7 = vmul.f32 %v11039_v51, %v8202_v14  ;;  %v11041_v38 = vld [vmem:[#allocation88_spill] sm:$0xff]  ;;  %v11042_v27 = vld [vmem:[#allocation85_spill] sm:$0xff]  ;;  %v11045_v51 = vld [vmem:[#allocation130_spill] sm:$0xff] }
 0x983   :  { %v8502_v28 = vpack.c.bf16 %v3960_v6, %v3959_v21  ;;  %v1246_v45 = vmul.f32 %v11040_v56, %v8202_v14  ;;  %v2793_v23 = vadd.f32 %v2665_v32, %v2405_v61  ;;  %v1505_v46 = vmul.f32 %v11041_v38, %v8269_v18  ;;  %v11043_v6 = vld [vmem:[#allocation91_spill] sm:$0xff]  ;;  %v11048_v56 = vld [vmem:[#allocation134_spill] sm:$0xff] }
 0x984   :  { %v2794_v20 = vadd.f32 %v2666_v53, %v2406_v17  ;;  %v1506_v19 = vmul.f32 %v11042_v27, %v8269_v18  ;;  %v1893_v22 = vmul.f32 %v11043_v6, %v8315_v39  ;;  %v1894_v24 = vmul.f32 %v11044_v60, %v8315_v39  ;;  %v11046_v17 = vld [vmem:[#allocation99_spill] sm:$0xff]  ;;  %v11047_v18 = vld [vmem:[#allocation106_spill] sm:$0xff]  ;;  %v8529_v60 = vpop.permute.xlu0 %4391 }
 0x985   :  { %v4227_v21 = vunpack.c.l.b16 %v8502_v28  ;;  %v2281_v0 = vmul.f32 %v11045_v51, %v8360_v33  ;;  %v3181_v14 = vadd.f32 %v3053_v44, %v2793_v23  ;;  %v1633_v53 = vadd.f32 %v1505_v46, %v1245_v7 }
 0x986   :  { %v3182_v32 = vadd.f32 %v3054_v35, %v2794_v20  ;;  %v1634_v61 = vadd.f32 %v1506_v19, %v1246_v45  ;;  %v2282_v38 = vmul.f32 %v11046_v17, %v8360_v33  ;;  %v2669_v27 = vmul.f32 %v11047_v18, %v8363_v36  ;;  %v8531_v19 = vpop.permute.xlu2 %4406  ;;  %v4377_v45 = vpop.permute.xlu1 %4376  ;;  %v11050_v33 = vld [vmem:[#allocation100_spill] sm:$0xff] }
 0x987   :  { %4508 = vperm.xlu0 %5362, %v4227_v21   ;;  %v2670_v6 = vmul.f32 %v11048_v56, %v8363_v36  ;;  %v3057_v39 = vmul.f32 %v11049_v50, %v8366_v15  ;;  %v3569_v51 = vadd.f32 %v3441_v1, %v3181_v14  ;;  %v2021_v44 = vadd.f32 %v1893_v22, %v1633_v53  ;;  %v11051_v20 = vld [vmem:[#allocation104_spill] sm:$0xff]  ;;  %v11053_v50 = vld [vmem:[#allocation126_spill] sm:$0xff]  ;;  %v11055_v53 = vld [vmem:[#allocation15_spill] sm:$0xff] }
 0x988   :  { %v3570_v23 = vadd.f32 %v3442_v31, %v3182_v32  ;;  %v2022_v35 = vadd.f32 %v1894_v24, %v1634_v61  ;;  %v3058_v7 = vmul.f32 %v11050_v33, %v8366_v15  ;;  %v3445_v46 = vmul.f32 %v11051_v20, %v8385_v13  ;;  %v11052_v36 = vld [vmem:[#allocation120_spill] sm:$0xff]  ;;  %v11054_v24 = vld [vmem:[#allocation143_spill] sm:$0xff] }
 0x989   :  { %v3446_v21 = vmul.f32 %v11052_v36, %v8385_v13  ;;  %v3833_v56 = vmul.f32 %v11053_v50, %v8388_v26  ;;  %v3957_v18 = vadd.f32 %v3829_v42, %v3569_v51  ;;  %v2409_v31 = vadd.f32 %v2281_v0, %v2021_v44  ;;  %v11056_v42 = vld [vmem:[#allocation64_spill] sm:$0xff] }
 0x98a   :  { %v3958_v1 = vadd.f32 %v3830_v41, %v3570_v23  ;;  %v2410_v22 = vadd.f32 %v2282_v38, %v2022_v35  ;;  %v3834_v14 = vmul.f32 %v11054_v24, %v8388_v26  ;;  %v4737_v61 = vperm.slane %v4377_v45, %v11055_v53  ;;  %v11057_v41 = vld [vmem:[#allocation160_spill] sm:$0xff]  ;;  %v11069_v24 = vld [vmem:[#allocation117_spill] sm:$0xff] }
 0x98b   :  { %v2797_v13 = vadd.f32 %v2669_v27, %v2409_v31  ;;  %v4228_v50 = vunpack.c.h.b16 %v8502_v28  ;;  %v11058_v0 = vperm.slane %v11056_v42, %v11057_v41  ;;  %v1249_v26 = vmul.f32 %v10951_v49, %v8419_v63 }
 0x98c   :  { %v4048_v20 = vpack.c.bf16 %v3958_v1, %v3957_v18  ;;  %v2798_v36 = vadd.f32 %v2670_v6, %v2410_v22  ;;  %v1250_v38 = vmul.f32 %v10953_v2, %v8419_v63  ;;  %v1509_v23 = vmul.f32 %v10954_v57, %v8463_v54 }
 0x98d   :  { %v4739_v51 = vsel %vm4666_vm13, %v11058_v0, %v4737_v61  ;;  %v3185_v27 = vadd.f32 %v3057_v39, %v2797_v13  ;;  %v1510_v28 = vmul.f32 %v11025_v59, %v8463_v54  ;;  %v8562_v45 = vperm.slane %v11020_v16, 2 }
 0x98e   :  { %v4226_v44 = vunpack.c.h.b16 %v4048_v20  ;;  %v4225_v18 = vunpack.c.l.b16 %v4048_v20  ;;  %v3186_v6 = vadd.f32 %v3058_v7, %v2798_v36  ;;  %v1637_v35 = vadd.f32 %v1509_v23, %v1249_v26  ;;  %v8583_v26 = vpop.permute.xlu0 %4400 }
 0x98f   :  { %11059 = vst [vmem:[#allocation57_spill] sm:$0xff] %v8562_v45  ;;  %v8565_v1 = vperm.slane %v11020_v16, 3  ;;  %v3573_v31 = vadd.f32 %v3445_v46, %v3185_v27  ;;  %v8568_v61 = vperm.slane %v11020_v16, 4  ;;  %v8571_v39 = vperm.slane %v11020_v16, 5 }
 0x990   :  { %4505 = vperm.xlu2 %5361, %v4226_v44   ;;  %4502 = vperm.xlu1 %5360, %v4225_v18   ;;  %v3574_v22 = vadd.f32 %v3446_v21, %v3186_v6  ;;  %v1638_v7 = vadd.f32 %v1510_v28, %v1250_v38  ;;  %v1897_v20 = vmul.f32 %v11026_v40, %v8562_v45  ;;  %v8585_v38 = vpop.permute.xlu2 %4415  ;;  %v8594_v6 = vperm.slane %v11020_v16, 6 }
 0x991   :  { %11060 = vst [vmem:[#allocation161_spill] sm:$0xff] %v8565_v1  ;;  %v1898_v36 = vmul.f32 %v11028_v58, %v8562_v45  ;;  %v2285_v13 = vmul.f32 %v11031_v10, %v8565_v1  ;;  %v3961_v42 = vadd.f32 %v3833_v56, %v3573_v31  ;;  %v2286_v46 = vmul.f32 %v11032_v25, %v8565_v1 }
 0x992   :  { %11061 = vst [vmem:[#allocation146_spill] sm:$0xff] %v8568_v61  ;;  %v3962_v0 = vadd.f32 %v3834_v14, %v3574_v22  ;;  %v2673_v21 = vmul.f32 %v11033_v34, %v8568_v61  ;;  %v2025_v23 = vadd.f32 %v1897_v20, %v1637_v35  ;;  %v2674_v18 = vmul.f32 %v11034_v62, %v8568_v61  ;;  %v4386_v20 = vpop.permute.xlu1 %4385 }
 0x993   :  { %11062 = vst [vmem:[#allocation18_spill] sm:$0xff] %v8571_v39  ;;  %v2026_v44 = vadd.f32 %v1898_v36, %v1638_v7  ;;  %v3061_v27 = vmul.f32 %v11035_v55, %v8571_v39  ;;  %v3062_v14 = vmul.f32 %v11036_v47, %v8571_v39  ;;  %v8597_v28 = vperm.slane %v11020_v16, 7  ;;  %v11067_v7 = vld [vmem:[#allocation105_spill] sm:$0xff] }
 0x994   :  { %11063 = vst [vmem:[#allocation19_spill] sm:$0xff] %v8585_v38  ;;  %v4050_v56 = vpack.c.bf16 %v3962_v0, %v3961_v42  ;;  %v2413_v31 = vadd.f32 %v2285_v13, %v2025_v23  ;;  %v3449_v0 = vmul.f32 %v11037_v3, %v8594_v6  ;;  %v3450_v15 = vmul.f32 %v10966_v43, %v8594_v6 }
 0x995   :  { %11064 = vst [vmem:[#allocation149_spill] sm:$0xff] %v8594_v6  ;;  %v2414_v22 = vadd.f32 %v2286_v46, %v2026_v44  ;;  %v3837_v13 = vmul.f32 %v10967_v12, %v8597_v28  ;;  %v3838_v46 = vmul.f32 %v11038_v48, %v8597_v28  ;;  %v11066_v23 = vperm.slane %v8429_v4, %v7569_v8  ;;  %v11070_v4 = vld [vmem:[#allocation86_spill] sm:$0xff]  ;;  %v11077_v48 = vld [vmem:[#allocation128_spill] sm:$0xff] }
 0x996   :  { %11065 = vst [vmem:[#allocation46_spill] sm:$0xff] %v8597_v28  ;;  %v4230_v36 = vunpack.c.h.b16 %v4050_v56  ;;  %v4229_v42 = vunpack.c.l.b16 %v4050_v56  ;;  %v2801_v32 = vadd.f32 %v2673_v21, %v2413_v31  ;;  %v4742_v56 = vperm.slane %v4386_v20, %v7757_v5  ;;  %v11068_v31 = vld [vmem:[#allocation108_spill] sm:$0xff] }
 0x997   :  { %v2802_v16 = vadd.f32 %v2674_v18, %v2414_v22  ;;  %v4741_v44 = vsel %vm4670_vm14, %v11066_v23, %v4739_v51  ;;  %v1247_v35 = vmul.f32 %v11067_v7, %v8419_v63  ;;  %v1248_v22 = vmul.f32 %v11068_v31, %v8419_v63  ;;  %v11071_v51 = vld [vmem:[#allocation90_spill] sm:$0xff]  ;;  %v11072_v23 = vld [vmem:[#allocation153_spill] sm:$0xff] }
 0x998   :  { %4517 = vperm.xlu0 %5362, %v4230_v36   ;;  %4514 = vperm.xlu2 %5361, %v4229_v42   ;;  %v3189_v21 = vadd.f32 %v3061_v27, %v2801_v32  ;;  %v1507_v36 = vmul.f32 %v11069_v24, %v8463_v54  ;;  %v4743_v42 = vsel %vm4674_vm15, %v4742_v56, %v4741_v44  ;;  %v8628_v17 = vperm.slane %v11072_v23, 0  ;;  %v11075_v44 = vld [vmem:[#allocation87_spill] sm:$0xff] }
 0x999   :  { %4511 = vperm.xlu1 %5360, %v4228_v50   ;;  %v3190_v18 = vadd.f32 %v3062_v14, %v2802_v16  ;;  %v1508_v33 = vmul.f32 %v11070_v4, %v8463_v54  ;;  %v1895_v20 = vmul.f32 %v11071_v51, %v8562_v45  ;;  %v11074_v27 = vperm.slane %v8378_v29, %v10844_v37  ;;  %v11076_v54 = vld [vmem:[#allocation93_spill] sm:$0xff]  ;;  %v8642_v29 = vpop.permute.xlu0 %4409 }
 0x99a   :  { %11073 = vst [vmem:[#allocation23_spill] sm:$0xff] %v8628_v17  ;;  %v3577_v50 = vadd.f32 %v3449_v0, %v3189_v21  ;;  %v1635_v16 = vadd.f32 %v1507_v36, %v1247_v35  ;;  %v1896_v56 = vmul.f32 %v11075_v44, %v8562_v45  ;;  %v2283_v63 = vmul.f32 %v11076_v54, %v8565_v1  ;;  %v11081_v36 = vld [vmem:[#allocation135_spill] sm:$0xff] }
 0x99b   :  { %v3578_v32 = vadd.f32 %v3450_v15, %v3190_v18  ;;  %v4745_v14 = vsel %vm4678_vm2, %v11074_v27, %v4743_v42  ;;  %v1636_v38 = vadd.f32 %v1508_v33, %v1248_v22  ;;  %v2284_v12 = vmul.f32 %v11077_v48, %v8565_v1  ;;  %11078 = vst [vmem:[#allocation26_spill] sm:$0xff] %v8642_v29  ;;  %v11079_v33 = vld [vmem:[#allocation101_spill] sm:$0xff]  ;;  %v8650_v27 = vpop.permute.xlu2 %4424 }
 0x99c   :  { %v3965_v43 = vadd.f32 %v3837_v13, %v3577_v50  ;;  %v2023_v0 = vadd.f32 %v1895_v20, %v1635_v16  ;;  %v2671_v15 = vmul.f32 %v11010_v30, %v8568_v61  ;;  %v2672_v35 = vmul.f32 %v11079_v33, %v8568_v61  ;;  %v11080_v18 = vld [vmem:[#allocation109_spill] sm:$0xff]  ;;  %11082 = vst [vmem:[#allocation66_spill] sm:$0xff] %v8650_v27  ;;  %v11083_v20 = vld [vmem:[#allocation138_spill] sm:$0xff] }
 0x99d   :  { %v3966_v3 = vadd.f32 %v3838_v46, %v3578_v32  ;;  %v2024_v21 = vadd.f32 %v1896_v56, %v1636_v38  ;;  %v3059_v22 = vmul.f32 %v11080_v18, %v8571_v39  ;;  %v3060_v42 = vmul.f32 %v11081_v36, %v8571_v39  ;;  %v4395_v38 = vpop.permute.xlu1 %4394  ;;  %v11084_v61 = vld [vmem:[#allocation122_spill] sm:$0xff] }
 0x99e   :  { %v2411_v46 = vadd.f32 %v2283_v63, %v2023_v0  ;;  %v3447_v50 = vmul.f32 %v11083_v20, %v8594_v6  ;;  %v3448_v32 = vmul.f32 %v11015_v11, %v8594_v6  ;;  %v3835_v56 = vmul.f32 %v11016_v9, %v8597_v28 }
 0x99f   :  { %v4052_v13 = vpack.c.bf16 %v3966_v3, %v3965_v43  ;;  %v2412_v16 = vadd.f32 %v2284_v12, %v2024_v21  ;;  %v3836_v1 = vmul.f32 %v11084_v61, %v8597_v28  ;;  %v11085_v3 = vperm.slane %v8529_v60, %v7812_v52  ;;  %v11086_v21 = vld [vmem:[#allocation163_spill] sm:$0xff] }
 0x9a0   :  { %v2799_v43 = vadd.f32 %v2671_v15, %v2411_v46  ;;  %v4748_v6 = vperm.slane %v4395_v38, %v11086_v21  ;;  %v1255_v37 = vmul.f32 %v11067_v7, %v8628_v17  ;;  %v1256_v28 = vmul.f32 %v11068_v31, %v8628_v17 }
 0x9a1   :  { %v4233_v45 = vunpack.c.l.b16 %v4052_v13  ;;  %v4747_v0 = vsel %vm4682_vm3, %v11085_v3, %v4745_v14  ;;  %v2800_v12 = vadd.f32 %v2672_v35, %v2412_v16  ;;  %v8674_v15 = vperm.slane %v11072_v23, 1 }
 0x9a2   :  { %v3187_v39 = vadd.f32 %v3059_v22, %v2799_v43  ;;  %v8677_v46 = vperm.slane %v11072_v23, 2  ;;  %v8680_v60 = vperm.slane %v11072_v23, 3  ;;  %v4749_v35 = vsel %vm4686_vm4, %v4748_v6, %v4747_v0  ;;  %v11092_v22 = vld [vmem:[#allocation27_spill] sm:$0xff]  ;;  %v11093_v43 = vld [vmem:[#allocation158_spill] sm:$0xff] }
 0x9a3   :  { %4526 = vperm.xlu0 %5362, %v4233_v45   ;;  %11087 = vst [vmem:[#allocation68_spill] sm:$0xff] %v8674_v15  ;;  %v3188_v14 = vadd.f32 %v3060_v42, %v2800_v12  ;;  %v8684_v38 = vperm.slane %v11072_v23, 4  ;;  %v8687_v16 = vperm.slane %v11072_v23, 5  ;;  %v11094_v3 = vperm.slane %v11092_v22, %v11093_v43 }
 0x9a4   :  { %11088 = vst [vmem:[#allocation54_spill] sm:$0xff] %v8677_v46  ;;  %v3575_v45 = vadd.f32 %v3447_v50, %v3187_v39  ;;  %v1515_v52 = vmul.f32 %v11069_v24, %v8674_v15  ;;  %v1516_v42 = vmul.f32 %v11070_v4, %v8674_v15  ;;  %v4234_v0 = vunpack.c.h.b16 %v4052_v13 }
 0x9a5   :  { %11089 = vst [vmem:[#allocation56_spill] sm:$0xff] %v8680_v60  ;;  %v8693_v63 = vsel %vm4690_vm5, %v11094_v3, %v4749_v35  ;;  %v3576_v6 = vadd.f32 %v3448_v32, %v3188_v14  ;;  %v1903_v12 = vmul.f32 %v11071_v51, %v8677_v46  ;;  %v1904_v39 = vmul.f32 %v11075_v44, %v8677_v46 }
 0x9a6   :  { %11090 = vst [vmem:[#allocation33_spill] sm:$0xff] %v8684_v38  ;;  %v3963_v50 = vadd.f32 %v3835_v56, %v3575_v45  ;;  %v1643_v27 = vadd.f32 %v1515_v52, %v1255_v37  ;;  %v1644_v22 = vadd.f32 %v1516_v42, %v1256_v28  ;;  %v2291_v35 = vmul.f32 %v11076_v54, %v8680_v60  ;;  %v11098_v28 = vld [vmem:[#allocation154_spill] sm:$0xff] }
 0x9a7   :  { %11091 = vst [vmem:[#allocation35_spill] sm:$0xff] %v8687_v16  ;;  %v3964_v3 = vadd.f32 %v3836_v1, %v3576_v6  ;;  %v2679_v32 = vmul.f32 %v11010_v30, %v8684_v38  ;;  %v2680_v13 = vmul.f32 %v11079_v33, %v8684_v38  ;;  %v3067_v56 = vmul.f32 %v11080_v18, %v8687_v16 }
 0x9a8   :  { %11095 = vst [vmem:[#allocation60_spill] sm:$0xff] %v8693_v63  ;;  %v2292_v63 = vmul.f32 %v11077_v48, %v8680_v60  ;;  %v2031_v14 = vadd.f32 %v1903_v12, %v1643_v27  ;;  %v2032_v43 = vadd.f32 %v1904_v39, %v1644_v22  ;;  %v8714_v37 = vperm.slane %v11072_v23, 6 }
 0x9a9   :  { %v4051_v52 = vpack.c.bf16 %v3964_v3, %v3963_v50  ;;  %v8717_v1 = vperm.slane %v11072_v23, 7  ;;  %v8720_v45 = vperm.slane %v11098_v28, 0  ;;  %v8723_v42 = vperm.slane %v11098_v28, 1 }
 0x9aa   :  { %11096 = vst [vmem:[#allocation65_spill] sm:$0xff] %v8714_v37  ;;  %v2419_v6 = vadd.f32 %v2291_v35, %v2031_v14  ;;  %v2420_v27 = vadd.f32 %v2292_v63, %v2032_v43  ;;  %v3068_v12 = vmul.f32 %v11081_v36, %v8687_v16  ;;  %v3455_v39 = vmul.f32 %v11083_v20, %v8714_v37 }
 0x9ab   :  { %11097 = vst [vmem:[#allocation39_spill] sm:$0xff] %v8717_v1  ;;  %4529 = vperm.xlu0 %5362, %v4234_v0   ;;  %v4232_v22 = vunpack.c.h.b16 %v4051_v52  ;;  %v4231_v50 = vunpack.c.l.b16 %v4051_v52  ;;  %v3456_v23 = vmul.f32 %v11015_v11, %v8714_v37  ;;  %v3843_v3 = vmul.f32 %v11016_v9, %v8717_v1 }
 0x9ac   :  { %11099 = vst [vmem:[#allocation43_spill] sm:$0xff] %v8720_v45  ;;  %v2807_v29 = vadd.f32 %v2679_v32, %v2419_v6  ;;  %v2808_v47 = vadd.f32 %v2680_v13, %v2420_v27  ;;  %v1263_v0 = vmul.f32 %v11067_v7, %v8720_v45  ;;  %v1264_v63 = vmul.f32 %v11068_v31, %v8720_v45 }
 0x9ad   :  { %11100 = vst [vmem:[#allocation82_spill] sm:$0xff] %v8723_v42  ;;  %4523 = vperm.xlu2 %5361, %v4232_v22   ;;  %4520 = vperm.xlu1 %5360, %v4231_v50   ;;  %v1523_v43 = vmul.f32 %v11069_v24, %v8723_v42  ;;  %v1524_v35 = vmul.f32 %v11070_v4, %v8723_v42  ;;  %v8742_v14 = vperm.slane %v11098_v28, 2  ;;  %v8745_v32 = vperm.slane %v11098_v28, 3 }
 0x9ae   :  { %v3195_v13 = vadd.f32 %v3067_v56, %v2807_v29  ;;  %v3196_v52 = vadd.f32 %v3068_v12, %v2808_v47  ;;  %v8748_v6 = vperm.slane %v11098_v28, 4  ;;  %v8751_v27 = vperm.slane %v11098_v28, 5 }
 0x9af   :  { %11101 = vst [vmem:[#allocation144_spill] sm:$0xff] %v8742_v14  ;;  %v1651_v22 = vadd.f32 %v1523_v43, %v1263_v0  ;;  %v1652_v50 = vadd.f32 %v1524_v35, %v1264_v63  ;;  %v1911_v24 = vmul.f32 %v11071_v51, %v8742_v14  ;;  %v1912_v4 = vmul.f32 %v11075_v44, %v8742_v14  ;;  %v8765_v43 = vpop.permute.xlu0 %4418  ;;  %v4404_v35 = vpop.permute.xlu1 %4403 }
 0x9b0   :  { %11102 = vst [vmem:[#allocation34_spill] sm:$0xff] %v8745_v32  ;;  %v3583_v31 = vadd.f32 %v3455_v39, %v3195_v13  ;;  %v3584_v7 = vadd.f32 %v3456_v23, %v3196_v52  ;;  %v3844_v29 = vmul.f32 %v11084_v61, %v8717_v1  ;;  %v2299_v47 = vmul.f32 %v11076_v54, %v8745_v32  ;;  %v8771_v52 = vpop.permute.xlu2 %4433 }
 0x9b1   :  { %11103 = vst [vmem:[#allocation36_spill] sm:$0xff] %v8748_v6  ;;  %v2039_v56 = vadd.f32 %v1911_v24, %v1651_v22  ;;  %v2040_v12 = vadd.f32 %v1912_v4, %v1652_v50  ;;  %v2300_v0 = vmul.f32 %v11077_v48, %v8745_v32  ;;  %v2687_v63 = vmul.f32 %v11010_v30, %v8748_v6 }
 0x9b2   :  { %11104 = vst [vmem:[#allocation78_spill] sm:$0xff] %v8751_v27  ;;  %v3971_v44 = vadd.f32 %v3843_v3, %v3583_v31  ;;  %v3972_v39 = vadd.f32 %v3844_v29, %v3584_v7  ;;  %v2688_v23 = vmul.f32 %v11079_v33, %v8748_v6  ;;  %v3075_v13 = vmul.f32 %v11080_v18, %v8751_v27 }
 0x9b3   :  { %11105 = vst [vmem:[#allocation80_spill] sm:$0xff] %v8771_v52  ;;  %v2427_v24 = vadd.f32 %v2299_v47, %v2039_v56  ;;  %v2428_v4 = vadd.f32 %v2300_v0, %v2040_v12  ;;  %v8774_v22 = vperm.slane %v11098_v28, 6  ;;  %v8777_v50 = vperm.slane %v11098_v28, 7 }
 0x9b4   :  { %v4055_v30 = vpack.c.bf16 %v3972_v39, %v3971_v44  ;;  %v3076_v7 = vmul.f32 %v11081_v36, %v8751_v27  ;;  %v4753_v3 = vperm.slane %v4404_v35, %v11057_v41 }
 0x9b5   :  { %11106 = vst [vmem:[#allocation67_spill] sm:$0xff] %v8774_v22  ;;  %v2815_v29 = vadd.f32 %v2687_v63, %v2427_v24  ;;  %v2816_v18 = vadd.f32 %v2688_v23, %v2428_v4  ;;  %v3463_v47 = vmul.f32 %v11083_v20, %v8774_v22  ;;  %v3464_v44 = vmul.f32 %v11015_v11, %v8774_v22 }
 0x9b6   :  { %11107 = vst [vmem:[#allocation73_spill] sm:$0xff] %v8777_v50  ;;  %v4240_v12 = vunpack.c.h.b16 %v4055_v30  ;;  %v4239_v28 = vunpack.c.l.b16 %v4055_v30  ;;  %v3851_v0 = vmul.f32 %v11016_v9, %v8777_v50  ;;  %v11108_v63 = vperm.slane %v8583_v26, %v11055_v53 }
 0x9b7   :  { %v3203_v39 = vadd.f32 %v3075_v13, %v2815_v29  ;;  %v3204_v31 = vadd.f32 %v3076_v7, %v2816_v18  ;;  %v1257_v23 = vmul.f32 %v10951_v49, %v8628_v17  ;;  %v11109_v30 = vperm.slane %v8531_v19, %v7569_v8 }
 0x9b8   :  { %v4754_v35 = vsel %vm4666_vm13, %v4753_v3, %v11108_v63  ;;  %4547 = vperm.xlu2 %5361, %v4240_v12   ;;  %4544 = vperm.xlu1 %5360, %v4239_v28   ;;  %v1258_v13 = vmul.f32 %v10953_v2, %v8628_v17  ;;  %v1517_v18 = vmul.f32 %v10954_v57, %v8674_v15 }
 0x9b9   :  { %v8802_v24 = vsel %vm4670_vm14, %v11109_v30, %v4754_v35  ;;  %v3591_v26 = vadd.f32 %v3463_v47, %v3203_v39  ;;  %v3592_v4 = vadd.f32 %v3464_v44, %v3204_v31  ;;  %v3852_v7 = vmul.f32 %v11084_v61, %v8777_v50 }
 0x9ba   :  { %v1518_v3 = vmul.f32 %v11025_v59, %v8674_v15  ;;  %v1645_v29 = vadd.f32 %v1517_v18, %v1257_v23  ;;  %v1905_v19 = vmul.f32 %v11026_v40, %v8677_v46  ;;  %v1906_v12 = vmul.f32 %v11028_v58, %v8677_v46  ;;  %v11110_v46 = vld [vmem:[#allocation112_spill] sm:$0xff] }
 0x9bb   :  { %v2293_v28 = vmul.f32 %v11031_v10, %v8680_v60  ;;  %v3979_v63 = vadd.f32 %v3851_v0, %v3591_v26  ;;  %v3980_v35 = vadd.f32 %v3852_v7, %v3592_v4  ;;  %v2294_v31 = vmul.f32 %v11032_v25, %v8680_v60  ;;  %v11112_v7 = vld [vmem:[#allocation139_spill] sm:$0xff] }
 0x9bc   :  { %v1646_v47 = vadd.f32 %v1518_v3, %v1258_v13  ;;  %v2033_v44 = vadd.f32 %v1905_v19, %v1645_v29  ;;  %v2681_v39 = vmul.f32 %v11033_v34, %v8684_v38  ;;  %v2682_v23 = vmul.f32 %v11034_v62, %v8684_v38  ;;  %v11111_v13 = vld [vmem:[#allocation116_spill] sm:$0xff]  ;;  %v11113_v29 = vld [vmem:[#allocation141_spill] sm:$0xff] }
 0x9bd   :  { %v3069_v30 = vmul.f32 %v11035_v55, %v8687_v16  ;;  %v4059_v18 = vpack.c.bf16 %v3980_v35, %v3979_v63  ;;  %v3070_v0 = vmul.f32 %v11110_v46, %v8687_v16  ;;  %v3457_v26 = vmul.f32 %v11111_v13, %v8714_v37 }
 0x9be   :  { %v2034_v56 = vadd.f32 %v1906_v12, %v1646_v47  ;;  %v2421_v4 = vadd.f32 %v2293_v28, %v2033_v44  ;;  %v3458_v3 = vmul.f32 %v11112_v7, %v8714_v37  ;;  %v3845_v19 = vmul.f32 %v11113_v29, %v8717_v1  ;;  %v11114_v47 = vld [vmem:[#allocation124_spill] sm:$0xff] }
 0x9bf   :  { %v1265_v38 = vmul.f32 %v10951_v49, %v8720_v45  ;;  %v4248_v60 = vunpack.c.h.b16 %v4059_v18  ;;  %v4247_v52 = vunpack.c.l.b16 %v4059_v18  ;;  %v1266_v12 = vmul.f32 %v10953_v2, %v8720_v45 }
 0x9c0   :  { %v2422_v63 = vadd.f32 %v2294_v31, %v2034_v56  ;;  %v2809_v35 = vadd.f32 %v2681_v39, %v2421_v4  ;;  %v3846_v16 = vmul.f32 %v11114_v47, %v8717_v1  ;;  %v1525_v28 = vmul.f32 %v10954_v57, %v8723_v42  ;;  %v11115_v31 = vld [vmem:[#allocation155_spill] sm:$0xff] }
 0x9c1   :  { %v1526_v44 = vmul.f32 %v11025_v59, %v8723_v42  ;;  %4571 = vperm.xlu0 %5362, %v4248_v60   ;;  %4568 = vperm.xlu2 %5361, %v4247_v52   ;;  %v1913_v18 = vmul.f32 %v11026_v40, %v8742_v14  ;;  %v1914_v56 = vmul.f32 %v11028_v58, %v8742_v14  ;;  %v8849_v39 = vperm.slane %v11115_v31, 0 }
 0x9c2   :  { %v2810_v37 = vadd.f32 %v2682_v23, %v2422_v63  ;;  %v3197_v4 = vadd.f32 %v3069_v30, %v2809_v35  ;;  %v1653_v45 = vadd.f32 %v1525_v28, %v1265_v38  ;;  %v2301_v15 = vmul.f32 %v11031_v10, %v8745_v32  ;;  %v4428_v30 = vpop.permute.xlu0 %4427  ;;  %v4413_v28 = vpop.permute.xlu1 %4412 }
 0x9c3   :  { %11116 = vst [vmem:[#allocation45_spill] sm:$0xff] %v8849_v39  ;;  %v1654_v1 = vadd.f32 %v1526_v44, %v1266_v12  ;;  %v2302_v60 = vmul.f32 %v11032_v25, %v8745_v32  ;;  %v2689_v52 = vmul.f32 %v11033_v34, %v8748_v6  ;;  %v2690_v23 = vmul.f32 %v11034_v62, %v8748_v6 }
 0x9c4   :  { %v3198_v17 = vadd.f32 %v3070_v0, %v2810_v37  ;;  %v3585_v63 = vadd.f32 %v3457_v26, %v3197_v4  ;;  %v2041_v14 = vadd.f32 %v1913_v18, %v1653_v45  ;;  %v3077_v38 = vmul.f32 %v11035_v55, %v8751_v27  ;;  %v11117_v18 = vld [vmem:[#allocation26_spill] sm:$0xff] }
 0x9c5   :  { %v2042_v42 = vadd.f32 %v1914_v56, %v1654_v1  ;;  %v3078_v37 = vmul.f32 %v11110_v46, %v8751_v27  ;;  %v3465_v0 = vmul.f32 %v11111_v13, %v8774_v22  ;;  %v3466_v35 = vmul.f32 %v11112_v7, %v8774_v22 }
 0x9c6   :  { %v3586_v12 = vadd.f32 %v3458_v3, %v3198_v17  ;;  %v3973_v44 = vadd.f32 %v3845_v19, %v3585_v63  ;;  %v2429_v6 = vadd.f32 %v2301_v15, %v2041_v14  ;;  %v3853_v1 = vmul.f32 %v11113_v29, %v8777_v50  ;;  %v11119_v19 = vld [vmem:[#allocation162_spill] sm:$0xff]  ;;  %v11121_v14 = vld [vmem:[#allocation113_spill] sm:$0xff] }
 0x9c7   :  { %v2430_v26 = vadd.f32 %v2302_v60, %v2042_v42  ;;  %v3854_v17 = vmul.f32 %v11114_v47, %v8777_v50  ;;  %v4768_v3 = vperm.slane %v4428_v30, %v11057_v41  ;;  %v11118_v56 = vperm.slane %v11117_v18, %v7757_v5  ;;  %v11120_v42 = vld [vmem:[#allocation51_spill] sm:$0xff]  ;;  %v11126_v18 = vld [vmem:[#allocation30_spill] sm:$0xff] }
 0x9c8   :  { %v3974_v45 = vadd.f32 %v3846_v16, %v3586_v12  ;;  %v2817_v22 = vadd.f32 %v2689_v52, %v2429_v6  ;;  %v4759_v15 = vperm.slane %v4413_v28, %v11119_v19  ;;  %v1251_v60 = vmul.f32 %v11121_v14, %v11120_v42  ;;  %v11122_v16 = vld [vmem:[#allocation66_spill] sm:$0xff]  ;;  %v11125_v30 = vld [vmem:[#allocation79_spill] sm:$0xff] }
 0x9c9   :  { %v4758_v4 = vsel %vm4674_vm15, %v11118_v56, %v8802_v24  ;;  %v2818_v27 = vadd.f32 %v2690_v23, %v2430_v26  ;;  %v11123_v12 = vperm.slane %v11122_v16, %v11055_v53  ;;  %v1252_v32 = vmul.f32 %v11125_v30, %v11120_v42  ;;  %v11127_v5 = vld [vmem:[#allocation83_spill] sm:$0xff]  ;;  %v8890_v23 = vpop.permute.xlu2 %4442 }
 0x9ca   :  { %v4056_v63 = vpack.c.bf16 %v3974_v45, %v3973_v44  ;;  %v1511_v24 = vmul.f32 %v11127_v5, %v11126_v18  ;;  %v3205_v6 = vadd.f32 %v3077_v38, %v2817_v22  ;;  %11128 = vst [vmem:[#allocation150_spill] sm:$0xff] %v8890_v23  ;;  %v4760_v28 = vsel %vm4678_vm2, %v4759_v15, %v4758_v4  ;;  %v11129_v44 = vld [vmem:[#allocation121_spill] sm:$0xff]  ;;  %v11130_v56 = vld [vmem:[#allocation19_spill] sm:$0xff]  ;;  %v11135_v4 = vld [vmem:[#allocation92_spill] sm:$0xff] }
 0x9cb   :  { %v8884_v50 = vsel %vm4666_vm13, %v4768_v3, %v11123_v12  ;;  %v3206_v52 = vadd.f32 %v3078_v37, %v2818_v27  ;;  %v1512_v26 = vmul.f32 %v11129_v44, %v11126_v18  ;;  %v11131_v16 = vld [vmem:[#allocation147_spill] sm:$0xff]  ;;  %v11133_v22 = vld [vmem:[#allocation57_spill] sm:$0xff] }
 0x9cc   :  { %11124 = vst [vmem:[#allocation16_spill] sm:$0xff] %v8884_v50  ;;  %v4241_v45 = vunpack.c.l.b16 %v4056_v63  ;;  %v11132_v3 = vperm.slane %v11130_v56, %v11131_v16  ;;  %v4242_v53 = vunpack.c.h.b16 %v4056_v63  ;;  %v1639_v42 = vadd.f32 %v1511_v24, %v1251_v60  ;;  %v11134_v27 = vld [vmem:[#allocation125_spill] sm:$0xff]  ;;  %v11137_v56 = vld [vmem:[#allocation94_spill] sm:$0xff] }
 0x9cd   :  { %v3593_v50 = vadd.f32 %v3465_v0, %v3205_v6  ;;  %v3594_v30 = vadd.f32 %v3466_v35, %v3206_v52  ;;  %v1640_v5 = vadd.f32 %v1512_v26, %v1252_v32  ;;  %v1899_v38 = vmul.f32 %v11134_v27, %v11133_v22  ;;  %v11136_v18 = vld [vmem:[#allocation161_spill] sm:$0xff]  ;;  %v11140_v52 = vld [vmem:[#allocation146_spill] sm:$0xff] }
 0x9ce   :  { %v4762_v12 = vsel %vm4682_vm3, %v11132_v3, %v4760_v28  ;;  %4550 = vperm.xlu1 %5360, %v4241_v45   ;;  %4553 = vperm.xlu2 %5361, %v4242_v53   ;;  %v1900_v15 = vmul.f32 %v11135_v4, %v11133_v22  ;;  %v2287_v16 = vmul.f32 %v11137_v56, %v11136_v18  ;;  %v8908_v63 = vperm.slane %v11115_v31, 1  ;;  %v11139_v60 = vld [vmem:[#allocation97_spill] sm:$0xff]  ;;  %v11141_v28 = vld [vmem:[#allocation103_spill] sm:$0xff]  ;;  %v11144_v22 = vld [vmem:[#allocation18_spill] sm:$0xff] }
 0x9cf   :  { %v3981_v0 = vadd.f32 %v3853_v1, %v3593_v50  ;;  %v3982_v35 = vadd.f32 %v3854_v17, %v3594_v30  ;;  %v2027_v32 = vadd.f32 %v1899_v38, %v1639_v42  ;;  %v2288_v24 = vmul.f32 %v11139_v60, %v11136_v18  ;;  %v11142_v53 = vld [vmem:[#allocation133_spill] sm:$0xff]  ;;  %v11145_v50 = vld [vmem:[#allocation136_spill] sm:$0xff]  ;;  %v11146_v17 = vld [vmem:[#allocation114_spill] sm:$0xff]  ;;  %v4422_v30 = vpop.permute.xlu1 %4421 }
 0x9d0   :  { %11138 = vst [vmem:[#allocation17_spill] sm:$0xff] %v8908_v63  ;;  %v2028_v6 = vadd.f32 %v1900_v15, %v1640_v5  ;;  %v2675_v26 = vmul.f32 %v11141_v28, %v11140_v52  ;;  %v2676_v45 = vmul.f32 %v11142_v53, %v11140_v52  ;;  %v8917_v3 = vperm.slane %v11115_v31, 2  ;;  %v11147_v38 = vld [vmem:[#allocation149_spill] sm:$0xff]  ;;  %v11148_v15 = vld [vmem:[#allocation118_spill] sm:$0xff]  ;;  %v11149_v28 = vld [vmem:[#allocation140_spill] sm:$0xff] }
 0x9d1   :  { %v8919_v37 = vpack.c.bf16 %v3982_v35, %v3981_v0  ;;  %v2415_v23 = vadd.f32 %v2287_v16, %v2027_v32  ;;  %v3063_v1 = vmul.f32 %v11145_v50, %v11144_v22  ;;  %v3064_v42 = vmul.f32 %v11146_v17, %v11144_v22  ;;  %v11150_v53 = vld [vmem:[#allocation46_spill] sm:$0xff]  ;;  %v11154_v17 = vld [vmem:[#allocation48_spill] sm:$0xff] }
 0x9d2   :  { %11143 = vst [vmem:[#allocation44_spill] sm:$0xff] %v8917_v3  ;;  %v2416_v5 = vadd.f32 %v2288_v24, %v2028_v6  ;;  %v3451_v18 = vmul.f32 %v11148_v15, %v11147_v38  ;;  %v3452_v52 = vmul.f32 %v11149_v28, %v11147_v38  ;;  %v11151_v60 = vld [vmem:[#allocation142_spill] sm:$0xff]  ;;  %v11153_v22 = vperm.slane %v8765_v43, %v11086_v21  ;;  %v11155_v15 = vld [vmem:[#allocation55_spill] sm:$0xff] }
 0x9d3   :  { %v3839_v56 = vmul.f32 %v11151_v60, %v11150_v53  ;;  %v4249_v0 = vunpack.c.l.b16 %v8919_v37  ;;  %v2803_v16 = vadd.f32 %v2675_v26, %v2415_v23  ;;  %v11152_v35 = vld [vmem:[#allocation110_spill] sm:$0xff]  ;;  %v4919_v50 = vsel %vm927_vm7, %v11155_v15, %v11154_v17  ;;  %v11157_v60 = vld [vmem:[#allocation105_spill] sm:$0xff]  ;;  %v11158_v26 = vld [vmem:[#allocation60_spill] sm:$0xff] }
 0x9d4   :  { %v3840_v32 = vmul.f32 %v11152_v35, %v11150_v53  ;;  %v4764_v24 = vsel %vm4686_vm4, %v11153_v22, %v4762_v12  ;;  %v2804_v6 = vadd.f32 %v2676_v45, %v2416_v5  ;;  %v11156_v38 = vld [vmem:[#allocation158_spill] sm:$0xff]  ;;  %v1271_v4 = vmul.f32 %v11157_v60, %v8849_v39  ;;  %v11159_v35 = vld [vmem:[#allocation108_spill] sm:$0xff]  ;;  %v11160_v12 = vld [vmem:[#allocation117_spill] sm:$0xff]  ;;  %v8950_v5 = vpop.permute.xlu0 %4436 }
 0x9d5   :  { %v4765_v28 = vperm.slane %v4422_v30, %v11156_v38  ;;  %4574 = vperm.xlu0 %5362, %v4249_v0   ;;  %v3191_v23 = vadd.f32 %v3063_v1, %v2803_v16  ;;  %v4920_v53 = vsel %vm929_vm8, %v11158_v26, %v4919_v50  ;;  %v1272_v43 = vmul.f32 %v11159_v35, %v8849_v39  ;;  %v11161_v30 = vld [vmem:[#allocation86_spill] sm:$0xff]  ;;  %v11163_v26 = vld [vmem:[#allocation87_spill] sm:$0xff] }
 0x9d6   :  { %v1531_v22 = vmul.f32 %v11160_v12, %v8908_v63  ;;  %v3192_v45 = vadd.f32 %v3064_v42, %v2804_v6  ;;  %v1532_v15 = vmul.f32 %v11161_v30, %v8908_v63  ;;  %v1919_v1 = vmul.f32 %v11071_v51, %v8917_v3  ;;  %v8962_v42 = vpop.permute.xlu2 %4451 }
 0x9d7   :  { %v4766_v17 = vsel %vm4690_vm5, %v4765_v28, %v4764_v24  ;;  %v3579_v0 = vadd.f32 %v3451_v18, %v3191_v23  ;;  %v1920_v21 = vmul.f32 %v11163_v26, %v8917_v3  ;;  %11164 = vst [vmem:[#allocation25_spill] sm:$0xff] %v8962_v42  ;;  %v8965_v28 = vperm.slane %v11115_v31, 3 }
 0x9d8   :  { %v8958_v50 = vsel %vm931_vm9, %v4766_v17, %v4920_v53  ;;  %v1659_v16 = vadd.f32 %v1531_v22, %v1271_v4  ;;  %v3580_v12 = vadd.f32 %v3452_v52, %v3192_v45  ;;  %v1660_v6 = vadd.f32 %v1532_v15, %v1272_v43 }
 0x9d9   :  { %11162 = vst [vmem:[#allocation22_spill] sm:$0xff] %v8958_v50  ;;  %v8968_v24 = vperm.slane %v11115_v31, 4  ;;  %v3967_v30 = vadd.f32 %v3839_v56, %v3579_v0  ;;  %v8973_v4 = vperm.slane %v11115_v31, 5  ;;  %v2307_v52 = vmul.f32 %v11076_v54, %v8965_v28  ;;  %v11168_v56 = vld [vmem:[#allocation131_spill] sm:$0xff]  ;;  %v11170_v0 = vld [vmem:[#allocation109_spill] sm:$0xff] }
 0x9da   :  { %11165 = vst [vmem:[#allocation50_spill] sm:$0xff] %v8965_v28  ;;  %v2047_v53 = vadd.f32 %v1919_v1, %v1659_v16  ;;  %v3968_v23 = vadd.f32 %v3840_v32, %v3580_v12  ;;  %v2048_v22 = vadd.f32 %v1920_v21, %v1660_v6  ;;  %v2308_v43 = vmul.f32 %v11077_v48, %v8965_v28 }
 0x9db   :  { %11166 = vst [vmem:[#allocation53_spill] sm:$0xff] %v8968_v24  ;;  %v2695_v17 = vmul.f32 %v11168_v56, %v8968_v24  ;;  %v2696_v15 = vmul.f32 %v11079_v33, %v8968_v24  ;;  %v8986_v1 = vperm.slane %v11115_v31, 6  ;;  %v3083_v16 = vmul.f32 %v11170_v0, %v8973_v4 }
 0x9dc   :  { %11167 = vst [vmem:[#allocation29_spill] sm:$0xff] %v8973_v4  ;;  %v4053_v32 = vpack.c.bf16 %v3968_v23, %v3967_v30  ;;  %v2435_v21 = vadd.f32 %v2307_v52, %v2047_v53  ;;  %v2436_v12 = vadd.f32 %v2308_v43, %v2048_v22  ;;  %v3084_v6 = vmul.f32 %v11081_v36, %v8973_v4 }
 0x9dd   :  { %11169 = vst [vmem:[#allocation32_spill] sm:$0xff] %v8986_v1  ;;  %v8993_v45 = vperm.slane %v11115_v31, 7  ;;  %v1273_v18 = vmul.f32 %v10951_v49, %v8849_v39  ;;  %v1274_v50 = vmul.f32 %v10953_v2, %v8849_v39  ;;  %v3471_v23 = vmul.f32 %v11083_v20, %v8986_v1  ;;  %v11205_v49 = vld [vmem:[#allocation91_spill] sm:$0xff] }
 0x9de   :  { %v4235_v41 = vunpack.c.l.b16 %v4053_v32  ;;  %v4236_v42 = vunpack.c.h.b16 %v4053_v32  ;;  %v2823_v30 = vadd.f32 %v2695_v17, %v2435_v21  ;;  %v2824_v53 = vadd.f32 %v2696_v15, %v2436_v12 }
 0x9df   :  { %11171 = vst [vmem:[#allocation72_spill] sm:$0xff] %v8993_v45  ;;  %v3472_v22 = vmul.f32 %v11015_v11, %v8986_v1  ;;  %v1533_v31 = vmul.f32 %v10954_v57, %v8908_v63  ;;  %v1534_v52 = vmul.f32 %v11025_v59, %v8908_v63  ;;  %v3859_v17 = vmul.f32 %v11016_v9, %v8993_v45  ;;  %v11204_v59 = vld [vmem:[#allocation57_spill] sm:$0xff] }
 0x9e0   :  { %4532 = vperm.xlu1 %5360, %v4235_v41   ;;  %4535 = vperm.xlu0 %5362, %v4236_v42   ;;  %v3211_v43 = vadd.f32 %v3083_v16, %v2823_v30  ;;  %v3212_v39 = vadd.f32 %v3084_v6, %v2824_v53  ;;  %v1921_v21 = vmul.f32 %v11026_v40, %v8917_v3  ;;  %v11203_v40 = vld [vmem:[#allocation142_spill] sm:$0xff] }
 0x9e1   :  { %v1661_v15 = vadd.f32 %v1533_v31, %v1273_v18  ;;  %v1662_v32 = vadd.f32 %v1534_v52, %v1274_v50  ;;  %v1922_v12 = vmul.f32 %v11028_v58, %v8917_v3  ;;  %v3860_v63 = vmul.f32 %v11084_v61, %v8993_v45  ;;  %v9042_v3 = vpop.permute.xlu0 %4445  ;;  %v11202_v58 = vld [vmem:[#allocation39_spill] sm:$0xff] }
 0x9e2   :  { %v3599_v2 = vadd.f32 %v3471_v23, %v3211_v43  ;;  %v3600_v57 = vadd.f32 %v3472_v22, %v3212_v39  ;;  %v2309_v41 = vmul.f32 %v11031_v10, %v8965_v28  ;;  %v2310_v18 = vmul.f32 %v11032_v25, %v8965_v28  ;;  %v4431_v23 = vpop.permute.xlu1 %4430  ;;  %v11200_v25 = vld [vmem:[#allocation85_spill] sm:$0xff] }
 0x9e3   :  { %v2049_v42 = vadd.f32 %v1921_v21, %v1661_v15  ;;  %v2050_v16 = vadd.f32 %v1922_v12, %v1662_v32  ;;  %v2697_v50 = vmul.f32 %v11033_v34, %v8968_v24  ;;  %v2698_v53 = vmul.f32 %v11034_v62, %v8968_v24  ;;  %v11172_v12 = vld [vmem:[#allocation23_spill] sm:$0xff] }
 0x9e4   :  { %v3987_v6 = vadd.f32 %v3859_v17, %v3599_v2  ;;  %v3988_v30 = vadd.f32 %v3860_v63, %v3600_v57  ;;  %v3085_v39 = vmul.f32 %v11035_v55, %v8973_v4  ;;  %v3086_v52 = vmul.f32 %v11110_v46, %v8973_v4  ;;  %v11196_v46 = vld [vmem:[#allocation115_spill] sm:$0xff] }
 0x9e5   :  { %v2437_v22 = vadd.f32 %v2309_v41, %v2049_v42  ;;  %v2438_v31 = vadd.f32 %v2310_v18, %v2050_v16  ;;  %v3473_v43 = vmul.f32 %v11111_v13, %v8986_v1  ;;  %v3474_v2 = vmul.f32 %v11112_v7, %v8986_v1  ;;  %v11173_v18 = vld [vmem:[#allocation79_spill] sm:$0xff] }
 0x9e6   :  { %v4063_v15 = vpack.c.bf16 %v3988_v30, %v3987_v6  ;;  %v3861_v57 = vmul.f32 %v11113_v29, %v8993_v45  ;;  %v3862_v63 = vmul.f32 %v11114_v47, %v8993_v45  ;;  %v4770_v21 = vperm.slane %v4431_v23, %v7569_v8  ;;  %v11174_v30 = vld [vmem:[#allocation68_spill] sm:$0xff]  ;;  %v11175_v1 = vld [vmem:[#allocation83_spill] sm:$0xff] }
 0x9e7   :  { %v2825_v17 = vadd.f32 %v2697_v50, %v2437_v22  ;;  %v2826_v32 = vadd.f32 %v2698_v53, %v2438_v31  ;;  %v1259_v41 = vmul.f32 %v11121_v14, %v11172_v12  ;;  %v1260_v6 = vmul.f32 %v11173_v18, %v11172_v12  ;;  %v11176_v45 = vld [vmem:[#allocation16_spill] sm:$0xff]  ;;  %v11178_v22 = vld [vmem:[#allocation159_spill] sm:$0xff]  ;;  %v11180_v12 = vld [vmem:[#allocation54_spill] sm:$0xff] }
 0x9e8   :  { %v4256_v42 = vunpack.c.h.b16 %v4063_v15  ;;  %v4255_v16 = vunpack.c.l.b16 %v4063_v15  ;;  %v1519_v4 = vmul.f32 %v11175_v1, %v11174_v30  ;;  %v4771_v50 = vsel %vm4670_vm14, %v4770_v21, %v11176_v45  ;;  %v11177_v23 = vld [vmem:[#allocation80_spill] sm:$0xff] }
 0x9e9   :  { %v3213_v24 = vadd.f32 %v3085_v39, %v2825_v17  ;;  %v3214_v28 = vadd.f32 %v3086_v52, %v2826_v32  ;;  %v1520_v53 = vmul.f32 %v11129_v44, %v11174_v30  ;;  %v11179_v31 = vperm.slane %v11177_v23, %v11178_v22  ;;  %v11181_v29 = vld [vmem:[#allocation92_spill] sm:$0xff]  ;;  %v11183_v23 = vld [vmem:[#allocation94_spill] sm:$0xff] }
 0x9ea   :  { %4595 = vperm.xlu2 %5361, %v4256_v42   ;;  %4592 = vperm.xlu1 %5360, %v4255_v16   ;;  %v1647_v47 = vadd.f32 %v1519_v4, %v1259_v41  ;;  %v1907_v39 = vmul.f32 %v11134_v27, %v11180_v12  ;;  %v1908_v45 = vmul.f32 %v11181_v29, %v11180_v12  ;;  %v4250_v42 = vunpack.c.h.b16 %v8919_v37  ;;  %v11182_v30 = vld [vmem:[#allocation56_spill] sm:$0xff] }
 0x9eb   :  { %v4773_v15 = vsel %vm4674_vm15, %v11179_v31, %v4771_v50  ;;  %v3601_v52 = vadd.f32 %v3473_v43, %v3213_v24  ;;  %v3602_v17 = vadd.f32 %v3474_v2, %v3214_v28  ;;  %v1648_v32 = vadd.f32 %v1520_v53, %v1260_v6  ;;  %v11184_v31 = vld [vmem:[#allocation97_spill] sm:$0xff]  ;;  %v11186_v2 = vld [vmem:[#allocation103_spill] sm:$0xff]  ;;  %v11188_v21 = vld [vmem:[#allocation156_spill] sm:$0xff] }
 0x9ec   :  { %v2035_v16 = vadd.f32 %v1907_v39, %v1647_v47  ;;  %v2295_v7 = vmul.f32 %v11183_v23, %v11182_v30  ;;  %v2296_v24 = vmul.f32 %v11184_v31, %v11182_v30  ;;  %v11185_v43 = vld [vmem:[#allocation33_spill] sm:$0xff]  ;;  %v9068_v13 = vperm.slane %v11188_v21, 0  ;;  %v11190_v39 = vld [vmem:[#allocation35_spill] sm:$0xff] }
 0x9ed   :  { %v3989_v50 = vadd.f32 %v3861_v57, %v3601_v52  ;;  %v3990_v4 = vadd.f32 %v3862_v63, %v3602_v17  ;;  %v2036_v41 = vadd.f32 %v1908_v45, %v1648_v32  ;;  %v2683_v6 = vmul.f32 %v11186_v2, %v11185_v43  ;;  %v11187_v53 = vld [vmem:[#allocation133_spill] sm:$0xff]  ;;  %v11191_v57 = vld [vmem:[#allocation136_spill] sm:$0xff]  ;;  %v11192_v52 = vld [vmem:[#allocation114_spill] sm:$0xff] }
 0x9ee   :  { %v2423_v28 = vadd.f32 %v2295_v7, %v2035_v16  ;;  %v2684_v12 = vmul.f32 %v11187_v53, %v11185_v43  ;;  %11189 = vst [vmem:[#allocation76_spill] sm:$0xff] %v9068_v13  ;;  %v3071_v63 = vmul.f32 %v11191_v57, %v11190_v39  ;;  %v3072_v17 = vmul.f32 %v11192_v52, %v11190_v39  ;;  %v11193_v7 = vld [vmem:[#allocation65_spill] sm:$0xff]  ;;  %v11194_v45 = vld [vmem:[#allocation118_spill] sm:$0xff]  ;;  %v11195_v30 = vld [vmem:[#allocation51_spill] sm:$0xff] }
 0x9ef   :  { %v9070_v47 = vpack.c.bf16 %v3990_v4, %v3989_v50  ;;  %v2424_v37 = vadd.f32 %v2296_v24, %v2036_v41  ;;  %v3459_v16 = vmul.f32 %v11194_v45, %v11193_v7  ;;  %v1253_v55 = vmul.f32 %v11196_v46, %v11195_v30  ;;  %v11197_v43 = vld [vmem:[#allocation84_spill] sm:$0xff]  ;;  %v11198_v41 = vld [vmem:[#allocation30_spill] sm:$0xff] }
 0x9f0   :  { %v2811_v32 = vadd.f32 %v2683_v6, %v2423_v28  ;;  %v1254_v62 = vmul.f32 %v11197_v43, %v11195_v30  ;;  %v11199_v24 = vld [vmem:[#allocation88_spill] sm:$0xff]  ;;  %v1514_v10 = vmul.f32 %v11200_v25, %v11198_v41  ;;  %v3847_v46 = vmul.f32 %v11203_v40, %v11202_v58  ;;  %v11210_v25 = vld [vmem:[#allocation99_spill] sm:$0xff] }
 0x9f1   :  { %v4257_v50 = vunpack.c.l.b16 %v9070_v47  ;;  %v2812_v4 = vadd.f32 %v2684_v12, %v2424_v37  ;;  %v1513_v34 = vmul.f32 %v11199_v24, %v11198_v41  ;;  %v11201_v6 = vld [vmem:[#allocation140_spill] sm:$0xff]  ;;  %v1901_v30 = vmul.f32 %v11205_v49, %v11204_v59  ;;  %v11206_v24 = vld [vmem:[#allocation127_spill] sm:$0xff]  ;;  %v11209_v41 = vld [vmem:[#allocation130_spill] sm:$0xff] }
 0x9f2   :  { %4577 = vperm.xlu2 %5361, %v4250_v42   ;;  %v3199_v28 = vadd.f32 %v3071_v63, %v2811_v32  ;;  %v3460_v39 = vmul.f32 %v11201_v6, %v11193_v7  ;;  %v1642_v37 = vadd.f32 %v1514_v10, %v1254_v62  ;;  %v1902_v22 = vmul.f32 %v11206_v24, %v11204_v59  ;;  %v11207_v42 = vld [vmem:[#allocation110_spill] sm:$0xff]  ;;  %v11208_v32 = vld [vmem:[#allocation161_spill] sm:$0xff]  ;;  %v4440_v10 = vpop.permute.xlu1 %4439  ;;  %v9103_v62 = vpop.permute.xlu2 %4460 }
 0x9f3   :  { %4598 = vperm.xlu0 %5362, %v4257_v50   ;;  %v3200_v43 = vadd.f32 %v3072_v17, %v2812_v4  ;;  %v1641_v12 = vadd.f32 %v1513_v34, %v1253_v55  ;;  %v3848_v63 = vmul.f32 %v11207_v42, %v11202_v58  ;;  %v2289_v7 = vmul.f32 %v11209_v41, %v11208_v32  ;;  %v11211_v50 = vld [vmem:[#allocation146_spill] sm:$0xff]  ;;  %v11216_v41 = vld [vmem:[#allocation100_spill] sm:$0xff] }
 0x9f4   :  { %v3587_v45 = vadd.f32 %v3459_v16, %v3199_v28  ;;  %v2290_v40 = vmul.f32 %v11210_v25, %v11208_v32  ;;  %v2030_v49 = vadd.f32 %v1902_v22, %v1642_v37  ;;  %v11212_v17 = vld [vmem:[#allocation106_spill] sm:$0xff]  ;;  %v11215_v28 = vld [vmem:[#allocation137_spill] sm:$0xff]  ;;  %v11219_v37 = vld [vmem:[#allocation120_spill] sm:$0xff] }
 0x9f5   :  { %v3588_v6 = vadd.f32 %v3460_v39, %v3200_v43  ;;  %v2029_v52 = vadd.f32 %v1901_v30, %v1641_v12  ;;  %v2677_v34 = vmul.f32 %v11212_v17, %v11211_v50  ;;  %v11213_v55 = vld [vmem:[#allocation134_spill] sm:$0xff]  ;;  %v11217_v22 = vld [vmem:[#allocation149_spill] sm:$0xff]  ;;  %v11218_v30 = vld [vmem:[#allocation104_spill] sm:$0xff] }
 0x9f6   :  { %v3975_v59 = vadd.f32 %v3847_v46, %v3587_v45  ;;  %v2678_v16 = vmul.f32 %v11213_v55, %v11211_v50  ;;  %v11214_v4 = vld [vmem:[#allocation18_spill] sm:$0xff]  ;;  %v2418_v39 = vadd.f32 %v2290_v40, %v2030_v49  ;;  %v3453_v12 = vmul.f32 %v11218_v30, %v11217_v22  ;;  %v11223_v55 = vld [vmem:[#allocation147_spill] sm:$0xff] }
 0x9f7   :  { %v3065_v58 = vmul.f32 %v11215_v28, %v11214_v4  ;;  %v3066_v24 = vmul.f32 %v11216_v41, %v11214_v4  ;;  %v3976_v32 = vadd.f32 %v3848_v63, %v3588_v6  ;;  %v2417_v43 = vadd.f32 %v2289_v7, %v2029_v52  ;;  %v11220_v25 = vld [vmem:[#allocation46_spill] sm:$0xff] }
 0x9f8   :  { %v3454_v17 = vmul.f32 %v11219_v37, %v11217_v22  ;;  %v11221_v46 = vld [vmem:[#allocation126_spill] sm:$0xff]  ;;  %v11222_v50 = vperm.slane %v8950_v5, %v11119_v19  ;;  %v4776_v42 = vperm.slane %v4440_v10, %v11223_v55  ;;  %v2806_v49 = vadd.f32 %v2678_v16, %v2418_v39  ;;  %v11227_v16 = vld [vmem:[#allocation163_spill] sm:$0xff] }
 0x9f9   :  { %v3841_v45 = vmul.f32 %v11221_v46, %v11220_v25  ;;  %v9122_v4 = vpack.c.bf16 %v3976_v32, %v3975_v59  ;;  %v2805_v52 = vadd.f32 %v2677_v34, %v2417_v43  ;;  %v1279_v40 = vmul.f32 %v11157_v60, %v9068_v13  ;;  %v11226_v34 = vld [vmem:[#allocation150_spill] sm:$0xff]  ;;  %v11242_v37 = vld [vmem:[#allocation43_spill] sm:$0xff] }
 0x9fa   :  { %v4775_v28 = vsel %vm4678_vm2, %v11222_v50, %v4773_v15  ;;  %v1280_v6 = vmul.f32 %v11159_v35, %v9068_v13  ;;  %v9130_v63 = vperm.slane %v11188_v21, 1  ;;  %v9133_v5 = vperm.slane %v11188_v21, 2  ;;  %v11232_v50 = vld [vmem:[#allocation117_spill] sm:$0xff] }
 0x9fb   :  { %v4777_v7 = vsel %vm4682_vm3, %v4776_v42, %v4775_v28  ;;  %v4243_v15 = vunpack.c.l.b16 %v9122_v4  ;;  %v3193_v10 = vadd.f32 %v3065_v58, %v2805_v52  ;;  %v3194_v59 = vadd.f32 %v3066_v24, %v2806_v49  ;;  %v11229_v42 = vld [vmem:[#allocation143_spill] sm:$0xff]  ;;  %v11233_v58 = vld [vmem:[#allocation86_spill] sm:$0xff] }
 0x9fc   :  { %11224 = vst [vmem:[#allocation59_spill] sm:$0xff] %v9130_v63  ;;  %v11228_v32 = vperm.slane %v11226_v34, %v11227_v16  ;;  %v3842_v28 = vmul.f32 %v11229_v42, %v11220_v25  ;;  %v11230_v39 = vperm.slane %v9042_v3, %v11156_v38  ;;  %v1539_v46 = vmul.f32 %v11232_v50, %v9130_v63  ;;  %v9157_v34 = vpop.permute.xlu0 %4454  ;;  %v11244_v38 = vld [vmem:[#allocation25_spill] sm:$0xff] }
 0x9fd   :  { %11225 = vst [vmem:[#allocation63_spill] sm:$0xff] %v9133_v5  ;;  %v1540_v24 = vmul.f32 %v11233_v58, %v9130_v63  ;;  %4556 = vperm.xlu1 %5360, %v4243_v15   ;;  %v3581_v52 = vadd.f32 %v3453_v12, %v3193_v10  ;;  %v3582_v49 = vadd.f32 %v3454_v17, %v3194_v59  ;;  %v9155_v25 = vperm.slane %v11188_v21, 3  ;;  %v9169_v59 = vpop.permute.xlu2 %4469 }
 0x9fe   :  { %v4779_v43 = vsel %vm4686_vm4, %v11228_v32, %v4777_v7  ;;  %v1927_v7 = vmul.f32 %v11071_v51, %v9133_v5  ;;  %v1667_v3 = vadd.f32 %v1539_v46, %v1279_v40  ;;  %v9167_v10 = vperm.slane %v11188_v21, 5  ;;  %11237 = vst [vmem:[#allocation62_spill] sm:$0xff] %v9169_v59  ;;  %v11245_v59 = vld [vmem:[#allocation160_spill] sm:$0xff] }
 0x9ff   :  { %v9146_v22 = vsel %vm4690_vm5, %v11230_v39, %v4779_v43  ;;  %11234 = vst [vmem:[#allocation41_spill] sm:$0xff] %v9155_v25  ;;  %v1668_v32 = vadd.f32 %v1540_v24, %v1280_v6  ;;  %v1928_v43 = vmul.f32 %v11163_v26, %v9133_v5  ;;  %v9162_v39 = vperm.slane %v11188_v21, 4  ;;  %v11241_v24 = vld [vmem:[#allocation15_spill] sm:$0xff] }
 0xa00   :  { %11231 = vst [vmem:[#allocation38_spill] sm:$0xff] %v9146_v22  ;;  %v3969_v17 = vadd.f32 %v3841_v45, %v3581_v52  ;;  %v3970_v15 = vadd.f32 %v3842_v28, %v3582_v49  ;;  %v2055_v22 = vadd.f32 %v1927_v7, %v1667_v3  ;;  %v2315_v46 = vmul.f32 %v11076_v54, %v9155_v25 }
 0xa01   :  { %11235 = vst [vmem:[#allocation71_spill] sm:$0xff] %v9162_v39  ;;  %v2056_v42 = vadd.f32 %v1928_v43, %v1668_v32  ;;  %v2316_v40 = vmul.f32 %v11077_v48, %v9155_v25  ;;  %v2703_v45 = vmul.f32 %v11168_v56, %v9162_v39  ;;  %v9182_v28 = vperm.slane %v11188_v21, 6  ;;  %v4449_v32 = vpop.permute.xlu1 %4448 }
 0xa02   :  { %11236 = vst [vmem:[#allocation148_spill] sm:$0xff] %v9167_v10  ;;  %v9175_v6 = vpack.c.bf16 %v3970_v15, %v3969_v17  ;;  %v2443_v52 = vadd.f32 %v2315_v46, %v2055_v22  ;;  %v2704_v7 = vmul.f32 %v11079_v33, %v9162_v39  ;;  %v9187_v3 = vperm.slane %v11188_v21, 7 }
 0xa03   :  { %11239 = vst [vmem:[#allocation24_spill] sm:$0xff] %v9182_v28  ;;  %v2444_v49 = vadd.f32 %v2316_v40, %v2056_v42  ;;  %v3091_v15 = vmul.f32 %v11170_v0, %v9167_v10  ;;  %v3092_v12 = vmul.f32 %v11081_v36, %v9167_v10  ;;  %v3479_v46 = vmul.f32 %v11083_v20, %v9182_v28 }
 0xa04   :  { %11238 = vst [vmem:[#allocation42_spill] sm:$0xff] %v9175_v6  ;;  %v4237_v43 = vunpack.c.l.b16 %v9175_v6  ;;  %v2831_v22 = vadd.f32 %v2703_v45, %v2443_v52  ;;  %v3480_v21 = vmul.f32 %v11015_v11, %v9182_v28  ;;  %v3867_v40 = vmul.f32 %v11016_v9, %v9187_v3 }
 0xa05   :  { %11240 = vst [vmem:[#allocation49_spill] sm:$0xff] %v9187_v3  ;;  %v2832_v42 = vadd.f32 %v2704_v7, %v2444_v49  ;;  %v4782_v17 = vperm.slane %v4449_v32, %v11241_v24  ;;  %v1267_v30 = vmul.f32 %v11121_v14, %v11242_v37  ;;  %v1268_v41 = vmul.f32 %v11173_v18, %v11242_v37  ;;  %v11243_v49 = vld [vmem:[#allocation82_spill] sm:$0xff]  ;;  %v11247_v14 = vld [vmem:[#allocation144_spill] sm:$0xff] }
 0xa06   :  { %4538 = vperm.xlu0 %5362, %v4237_v43   ;;  %v3219_v45 = vadd.f32 %v3091_v15, %v2831_v22  ;;  %v1527_v7 = vmul.f32 %v11175_v1, %v11243_v49  ;;  %v1528_v6 = vmul.f32 %v11129_v44, %v11243_v49  ;;  %v3868_v43 = vmul.f32 %v11084_v61, %v9187_v3  ;;  %v11248_v44 = vld [vmem:[#allocation34_spill] sm:$0xff] }
 0xa07   :  { %v3220_v52 = vadd.f32 %v3092_v12, %v2832_v42  ;;  %v11246_v32 = vperm.slane %v11244_v38, %v11245_v59  ;;  %v1915_v37 = vmul.f32 %v11134_v27, %v11247_v14  ;;  %v1916_v12 = vmul.f32 %v11181_v29, %v11247_v14 }
 0xa08   :  { %v3607_v15 = vadd.f32 %v3479_v46, %v3219_v45  ;;  %v1655_v42 = vadd.f32 %v1527_v7, %v1267_v30  ;;  %v1656_v1 = vadd.f32 %v1528_v6, %v1268_v41  ;;  %v4258_v49 = vunpack.c.h.b16 %v9070_v47  ;;  %v11250_v30 = vld [vmem:[#allocation78_spill] sm:$0xff] }
 0xa09   :  { %v9217_v16 = vsel %vm4666_vm13, %v11246_v32, %v4782_v17  ;;  %v3608_v22 = vadd.f32 %v3480_v21, %v3220_v52  ;;  %v2303_v18 = vmul.f32 %v11183_v23, %v11248_v44  ;;  %v2304_v38 = vmul.f32 %v11184_v31, %v11248_v44  ;;  %v11249_v17 = vld [vmem:[#allocation36_spill] sm:$0xff]  ;;  %v11251_v47 = vld [vmem:[#allocation114_spill] sm:$0xff]  ;;  %v11252_v21 = vld [vmem:[#allocation67_spill] sm:$0xff] }
 0xa0a   :  { %v2691_v32 = vmul.f32 %v11186_v2, %v11249_v17  ;;  %v3995_v59 = vadd.f32 %v3867_v40, %v3607_v15  ;;  %v2043_v3 = vadd.f32 %v1915_v37, %v1655_v42  ;;  %v2044_v28 = vadd.f32 %v1916_v12, %v1656_v1  ;;  %v11253_v45 = vld [vmem:[#allocation118_spill] sm:$0xff]  ;;  %v11254_v40 = vld [vmem:[#allocation140_spill] sm:$0xff]  ;;  %v11255_v1 = vld [vmem:[#allocation73_spill] sm:$0xff] }
 0xa0b   :  { %v3996_v27 = vadd.f32 %v3868_v43, %v3608_v22  ;;  %v2692_v46 = vmul.f32 %v11187_v53, %v11249_v17  ;;  %v3079_v41 = vmul.f32 %v11191_v57, %v11250_v30  ;;  %v3080_v6 = vmul.f32 %v11251_v47, %v11250_v30  ;;  %v11256_v37 = vld [vmem:[#allocation142_spill] sm:$0xff]  ;;  %v11257_v15 = vld [vmem:[#allocation157_spill] sm:$0xff] }
 0xa0c   :  { %v3467_v52 = vmul.f32 %v11253_v45, %v11252_v21  ;;  %v2431_v44 = vadd.f32 %v2303_v18, %v2043_v3  ;;  %v2432_v14 = vadd.f32 %v2304_v38, %v2044_v28  ;;  %v3468_v43 = vmul.f32 %v11254_v40, %v11252_v21  ;;  %v9259_v21 = vpop.permute.xlu0 %4463 }
 0xa0d   :  { %v4067_v7 = vpack.c.bf16 %v3996_v27, %v3995_v59  ;;  %v3855_v12 = vmul.f32 %v11256_v37, %v11255_v1  ;;  %v9243_v22 = vperm.slane %v11257_v15, 0  ;;  %v9246_v42 = vperm.slane %v11257_v15, 1  ;;  %v9261_v37 = vpop.permute.xlu2 %4478 }
 0xa0e   :  { %4601 = vperm.xlu0 %5362, %v4258_v49   ;;  %v9249_v30 = vperm.slane %v11257_v15, 2  ;;  %v2819_v18 = vadd.f32 %v2691_v32, %v2431_v44  ;;  %v2820_v59 = vadd.f32 %v2692_v46, %v2432_v14  ;;  %v9266_v32 = vperm.slane %v11257_v15, 3 }
 0xa0f   :  { %11258 = vst [vmem:[#allocation52_spill] sm:$0xff] %v9243_v22  ;;  %v4264_v17 = vunpack.c.h.b16 %v4067_v7  ;;  %v4263_v27 = vunpack.c.l.b16 %v4067_v7  ;;  %v1287_v28 = vmul.f32 %v11157_v60, %v9243_v22  ;;  %v1288_v3 = vmul.f32 %v11159_v35, %v9243_v22 }
 0xa10   :  { %v1547_v49 = vmul.f32 %v11232_v50, %v9246_v42  ;;  %v1548_v38 = vmul.f32 %v11233_v58, %v9246_v42  ;;  %v3207_v44 = vadd.f32 %v3079_v41, %v2819_v18  ;;  %v3208_v14 = vadd.f32 %v3080_v6, %v2820_v59 }
 0xa11   :  { %4619 = vperm.xlu2 %5361, %v4264_v17   ;;  %4616 = vperm.xlu1 %5360, %v4263_v27   ;;  %v1935_v60 = vmul.f32 %v11071_v51, %v9249_v30  ;;  %v1936_v50 = vmul.f32 %v11163_v26, %v9249_v30  ;;  %v9271_v58 = vperm.slane %v11257_v15, 4  ;;  %v11259_v27 = vld [vmem:[#allocation110_spill] sm:$0xff]  ;;  %v2323_v6 = vmul.f32 %v11076_v54, %v9266_v32 }
 0xa12   :  { %v1675_v35 = vadd.f32 %v1547_v49, %v1287_v28  ;;  %v1676_v46 = vadd.f32 %v1548_v38, %v1288_v3  ;;  %v3595_v17 = vadd.f32 %v3467_v52, %v3207_v44  ;;  %v3596_v7 = vadd.f32 %v3468_v43, %v3208_v14 }
 0xa13   :  { %v3856_v41 = vmul.f32 %v11259_v27, %v11255_v1  ;;  %v2324_v59 = vmul.f32 %v11077_v48, %v9266_v32  ;;  %v2711_v28 = vmul.f32 %v11168_v56, %v9271_v58  ;;  %v9282_v49 = vperm.slane %v11257_v15, 5  ;;  %v11284_v27 = vld [vmem:[#allocation23_spill] sm:$0xff] }
 0xa14   :  { %v2063_v51 = vadd.f32 %v1935_v60, %v1675_v35  ;;  %v2064_v18 = vadd.f32 %v1936_v50, %v1676_v46  ;;  %v3983_v26 = vadd.f32 %v3855_v12, %v3595_v17  ;;  %v9285_v52 = vperm.slane %v11257_v15, 6  ;;  %v4458_v60 = vpop.permute.xlu1 %4457 }
 0xa15   :  { %v3984_v3 = vadd.f32 %v3856_v41, %v3596_v7  ;;  %v2712_v54 = vmul.f32 %v11079_v33, %v9271_v58  ;;  %v9290_v44 = vperm.slane %v11257_v15, 7  ;;  %v4791_v48 = vperm.slane %v9259_v21, %v11223_v55  ;;  %v11263_v41 = vld [vmem:[#allocation159_spill] sm:$0xff] }
 0xa16   :  { %11260 = vst [vmem:[#allocation28_spill] sm:$0xff] %v9285_v52  ;;  %v2451_v43 = vadd.f32 %v2323_v6, %v2063_v51  ;;  %v2452_v38 = vadd.f32 %v2324_v59, %v2064_v18  ;;  %v4244_v12 = vunpack.c.h.b16 %v9122_v4  ;;  %v3099_v14 = vmul.f32 %v11170_v0, %v9282_v49  ;;  %v9318_v18 = vpop.permute.xlu2 %4487  ;;  %v11266_v59 = vld [vmem:[#allocation77_spill] sm:$0xff]  ;;  %v11285_v55 = vld [vmem:[#allocation115_spill] sm:$0xff] }
 0xa17   :  { %11261 = vst [vmem:[#allocation31_spill] sm:$0xff] %v9290_v44  ;;  %v9294_v56 = vpack.c.bf16 %v3984_v3, %v3983_v26  ;;  %v3100_v50 = vmul.f32 %v11081_v36, %v9282_v49  ;;  %v3487_v33 = vmul.f32 %v11083_v20, %v9285_v52  ;;  %v3488_v21 = vmul.f32 %v11015_v11, %v9285_v52  ;;  %v11264_v20 = vld [vmem:[#allocation111_spill] sm:$0xff] }
 0xa18   :  { %v2839_v35 = vadd.f32 %v2711_v28, %v2451_v43  ;;  %v2840_v46 = vadd.f32 %v2712_v54, %v2452_v38  ;;  %v3875_v4 = vmul.f32 %v11016_v9, %v9290_v44  ;;  %v11262_v0 = vperm.slane %v9157_v34, %v7569_v8  ;;  %11265 = vst [vmem:[#allocation70_spill] sm:$0xff] %v9318_v18  ;;  %v9320_v9 = vpop.permute.xlu0 %4472  ;;  %v11268_v26 = vld [vmem:[#allocation119_spill] sm:$0xff]  ;;  %v11286_v18 = vld [vmem:[#allocation84_spill] sm:$0xff] }
 0xa19   :  { %v4251_v15 = vunpack.c.l.b16 %v9294_v56  ;;  %4559 = vperm.xlu1 %5360, %v4244_v12   ;;  %v4787_v6 = vperm.slane %v4458_v60, %v11263_v41  ;;  %v1281_v51 = vmul.f32 %v11264_v20, %v9068_v13  ;;  %v3876_v11 = vmul.f32 %v11084_v61, %v9290_v44  ;;  %v11269_v12 = vld [vmem:[#allocation123_spill] sm:$0xff] }
 0xa1a   :  { %v4786_v17 = vsel %vm4670_vm14, %v11262_v0, %v9217_v16  ;;  %v3227_v7 = vadd.f32 %v3099_v14, %v2839_v35  ;;  %v3228_v36 = vadd.f32 %v3100_v50, %v2840_v46  ;;  %v1282_v34 = vmul.f32 %v11266_v59, %v9068_v13  ;;  %v11267_v16 = vld [vmem:[#allocation81_spill] sm:$0xff] }
 0xa1b   :  { %4580 = vperm.xlu2 %5361, %v4251_v15   ;;  %v1541_v28 = vmul.f32 %v11267_v16, %v9130_v63  ;;  %v1542_v3 = vmul.f32 %v11268_v26, %v9130_v63  ;;  %v4788_v54 = vsel %vm4674_vm15, %v4787_v6, %v4786_v17  ;;  %v1929_v61 = vmul.f32 %v11269_v12, %v9133_v5  ;;  %v11271_v50 = vld [vmem:[#allocation89_spill] sm:$0xff]  ;;  %v11272_v6 = vld [vmem:[#allocation95_spill] sm:$0xff] }
 0xa1c   :  { %v3615_v43 = vadd.f32 %v3487_v33, %v3227_v7  ;;  %v3616_v38 = vadd.f32 %v3488_v21, %v3228_v36  ;;  %v11270_v14 = vperm.slane %v9103_v62, %v11119_v19  ;;  %v1930_v15 = vmul.f32 %v11271_v50, %v9133_v5  ;;  %v4467_v17 = vpop.permute.xlu1 %4466  ;;  %v11280_v5 = vld [vmem:[#allocation139_spill] sm:$0xff] }
 0xa1d   :  { %v1669_v35 = vadd.f32 %v1541_v28, %v1281_v51  ;;  %v1670_v46 = vadd.f32 %v1542_v3, %v1282_v34  ;;  %v2317_v62 = vmul.f32 %v11272_v6, %v9155_v25  ;;  %v11274_v3 = vld [vmem:[#allocation132_spill] sm:$0xff]  ;;  %v1262_v40 = vmul.f32 %v11286_v18, %v11284_v27  ;;  %v11293_v18 = vld [vmem:[#allocation62_spill] sm:$0xff] }
 0xa1e   :  { %v4790_v60 = vsel %vm4678_vm2, %v11270_v14, %v4788_v54  ;;  %v4003_v33 = vadd.f32 %v3875_v4, %v3615_v43  ;;  %v4004_v21 = vadd.f32 %v3876_v11, %v3616_v38  ;;  %v11273_v54 = vld [vmem:[#allocation129_spill] sm:$0xff]  ;;  %v2705_v14 = vmul.f32 %v11274_v3, %v9162_v39  ;;  %v11275_v4 = vld [vmem:[#allocation96_spill] sm:$0xff] }
 0xa1f   :  { %v2057_v7 = vadd.f32 %v1929_v61, %v1669_v35  ;;  %v2058_v36 = vadd.f32 %v1930_v15, %v1670_v46  ;;  %v2318_v51 = vmul.f32 %v11273_v54, %v9155_v25  ;;  %v2706_v11 = vmul.f32 %v11275_v4, %v9162_v39  ;;  %v11276_v61 = vld [vmem:[#allocation98_spill] sm:$0xff]  ;;  %v11277_v46 = vld [vmem:[#allocation112_spill] sm:$0xff]  ;;  %v11281_v39 = vld [vmem:[#allocation49_spill] sm:$0xff] }
 0xa20   :  { %v4071_v34 = vpack.c.bf16 %v4004_v21, %v4003_v33  ;;  %v3093_v35 = vmul.f32 %v11276_v61, %v9167_v10  ;;  %v3094_v15 = vmul.f32 %v11277_v46, %v9167_v10  ;;  %v11278_v21 = vld [vmem:[#allocation24_spill] sm:$0xff] }
 0xa21   :  { %v2445_v43 = vadd.f32 %v2317_v62, %v2057_v7  ;;  %v2446_v38 = vadd.f32 %v2318_v51, %v2058_v36  ;;  %v11279_v25 = vld [vmem:[#allocation116_spill] sm:$0xff]  ;;  %v3482_v63 = vmul.f32 %v11280_v5, %v11278_v21  ;;  %v11282_v7 = vld [vmem:[#allocation141_spill] sm:$0xff]  ;;  %v4792_v62 = vsel %vm4682_vm3, %v4791_v48, %v4790_v60  ;;  %v11283_v51 = vld [vmem:[#allocation163_spill] sm:$0xff] }
 0xa22   :  { %v4272_v0 = vunpack.c.h.b16 %v4071_v34  ;;  %v4271_v33 = vunpack.c.l.b16 %v4071_v34  ;;  %v3481_v28 = vmul.f32 %v11279_v25, %v11278_v21  ;;  %v3869_v36 = vmul.f32 %v11282_v7, %v11281_v39  ;;  %v9367_v21 = vpop.permute.xlu2 %4496  ;;  %v11289_v48 = vld [vmem:[#allocation85_spill] sm:$0xff] }
 0xa23   :  { %v2833_v13 = vadd.f32 %v2705_v14, %v2445_v43  ;;  %v2834_v1 = vadd.f32 %v2706_v11, %v2446_v38  ;;  %v4793_v10 = vperm.slane %v4467_v17, %v11283_v51  ;;  %v1261_v34 = vmul.f32 %v11285_v55, %v11284_v27  ;;  %v9369_v14 = vpop.permute.xlu0 %4481  ;;  %v11287_v11 = vld [vmem:[#allocation68_spill] sm:$0xff]  ;;  %v11291_v27 = vld [vmem:[#allocation54_spill] sm:$0xff] }
 0xa24   :  { %4643 = vperm.xlu0 %5362, %v4272_v0   ;;  %4640 = vperm.xlu2 %5361, %v4271_v33   ;;  %v11288_v43 = vld [vmem:[#allocation88_spill] sm:$0xff]  ;;  %v1522_v60 = vmul.f32 %v11289_v48, %v11287_v11  ;;  %v4252_v33 = vunpack.c.h.b16 %v9294_v56  ;;  %v11294_v55 = vld [vmem:[#allocation158_spill] sm:$0xff] }
 0xa25   :  { %v3221_v19 = vadd.f32 %v3093_v35, %v2833_v13  ;;  %v3222_v45 = vadd.f32 %v3094_v15, %v2834_v1  ;;  %v1521_v38 = vmul.f32 %v11288_v43, %v11287_v11  ;;  %v11290_v0 = vld [vmem:[#allocation124_spill] sm:$0xff]  ;;  %v4794_v51 = vsel %vm4686_vm4, %v4793_v10, %v4792_v62  ;;  %v11292_v13 = vld [vmem:[#allocation91_spill] sm:$0xff] }
 0xa26   :  { %v3870_v17 = vmul.f32 %v11290_v0, %v11281_v39  ;;  %v1909_v1 = vmul.f32 %v11292_v13, %v11291_v27  ;;  %v11295_v47 = vperm.slane %v11293_v18, %v11294_v55  ;;  %v1650_v39 = vadd.f32 %v1522_v60, %v1262_v40  ;;  %v11297_v10 = vld [vmem:[#allocation127_spill] sm:$0xff]  ;;  %v11304_v60 = vld [vmem:[#allocation134_spill] sm:$0xff] }
 0xa27   :  { %v3609_v35 = vadd.f32 %v3481_v28, %v3221_v19  ;;  %v3610_v15 = vadd.f32 %v3482_v63, %v3222_v45  ;;  %v1649_v57 = vadd.f32 %v1521_v38, %v1261_v34  ;;  %v1910_v62 = vmul.f32 %v11297_v10, %v11291_v27  ;;  %v11298_v45 = vld [vmem:[#allocation56_spill] sm:$0xff]  ;;  %v11299_v28 = vld [vmem:[#allocation130_spill] sm:$0xff]  ;;  %v11301_v34 = vld [vmem:[#allocation33_spill] sm:$0xff] }
 0xa28   :  { %v9385_v43 = vsel %vm4690_vm5, %v11295_v47, %v4794_v51  ;;  %v2297_v18 = vmul.f32 %v11299_v28, %v11298_v45  ;;  %v11300_v47 = vld [vmem:[#allocation99_spill] sm:$0xff]  ;;  %v11302_v38 = vld [vmem:[#allocation106_spill] sm:$0xff] }
 0xa29   :  { %11296 = vst [vmem:[#allocation74_spill] sm:$0xff] %v9385_v43  ;;  %v3997_v13 = vadd.f32 %v3869_v36, %v3609_v35  ;;  %v3998_v19 = vadd.f32 %v3870_v17, %v3610_v15  ;;  %v2037_v63 = vadd.f32 %v1909_v1, %v1649_v57  ;;  %v2038_v55 = vadd.f32 %v1910_v62, %v1650_v39  ;;  %v11303_v43 = vld [vmem:[#allocation42_spill] sm:$0xff]  ;;  %v11305_v17 = vld [vmem:[#allocation35_spill] sm:$0xff]  ;;  %v11306_v57 = vld [vmem:[#allocation137_spill] sm:$0xff] }
 0xa2a   :  { %v2298_v51 = vmul.f32 %v11300_v47, %v11298_v45  ;;  %v2685_v11 = vmul.f32 %v11302_v38, %v11301_v34  ;;  %v4238_v48 = vunpack.c.h.b16 %v11303_v43  ;;  %v2686_v36 = vmul.f32 %v11304_v60, %v11301_v34  ;;  %v11307_v62 = vld [vmem:[#allocation100_spill] sm:$0xff] }
 0xa2b   :  { %v9400_v56 = vpack.c.bf16 %v3998_v19, %v3997_v13  ;;  %v2425_v40 = vadd.f32 %v2297_v18, %v2037_v63  ;;  %v3073_v27 = vmul.f32 %v11306_v57, %v11305_v17  ;;  %v1289_v39 = vmul.f32 %v11264_v20, %v9243_v22  ;;  %v11309_v45 = vld [vmem:[#allocation104_spill] sm:$0xff] }
 0xa2c   :  { %4583 = vperm.xlu0 %5362, %v4252_v33   ;;  %v2426_v1 = vadd.f32 %v2298_v51, %v2038_v55  ;;  %v1290_v35 = vmul.f32 %v11266_v59, %v9243_v22  ;;  %v1549_v43 = vmul.f32 %v11267_v16, %v9246_v42  ;;  %v3074_v19 = vmul.f32 %v11307_v62, %v11305_v17  ;;  %v11308_v55 = vld [vmem:[#allocation65_spill] sm:$0xff]  ;;  %v11310_v16 = vld [vmem:[#allocation120_spill] sm:$0xff]  ;;  %v11311_v22 = vld [vmem:[#allocation39_spill] sm:$0xff] }
 0xa2d   :  { %v4265_v13 = vunpack.c.l.b16 %v9400_v56  ;;  %v2813_v15 = vadd.f32 %v2685_v11, %v2425_v40  ;;  %v1550_v63 = vmul.f32 %v11268_v26, %v9246_v42  ;;  %v3461_v18 = vmul.f32 %v11309_v45, %v11308_v55  ;;  %v11312_v26 = vld [vmem:[#allocation126_spill] sm:$0xff] }
 0xa2e   :  { %v2814_v33 = vadd.f32 %v2686_v36, %v2426_v1  ;;  %v1677_v20 = vadd.f32 %v1549_v43, %v1289_v39  ;;  %v1937_v59 = vmul.f32 %v11269_v12, %v9249_v30  ;;  %v3462_v34 = vmul.f32 %v11310_v16, %v11308_v55  ;;  %v9429_v43 = vpop.permute.xlu2 %4505 }
 0xa2f   :  { %4622 = vperm.xlu1 %5360, %v4265_v13   ;;  %v3201_v51 = vadd.f32 %v3073_v27, %v2813_v15  ;;  %v1678_v11 = vadd.f32 %v1550_v63, %v1290_v35  ;;  %v1938_v40 = vmul.f32 %v11271_v50, %v9249_v30  ;;  %v3849_v36 = vmul.f32 %v11312_v26, %v11311_v22  ;;  %v11314_v27 = vld [vmem:[#allocation143_spill] sm:$0xff]  ;;  %v9435_v63 = vpop.permute.xlu0 %4490  ;;  %v4476_v50 = vpop.permute.xlu1 %4475 }
 0xa30   :  { %v3202_v17 = vadd.f32 %v3074_v19, %v2814_v33  ;;  %v2065_v1 = vadd.f32 %v1937_v59, %v1677_v20  ;;  %v2325_v39 = vmul.f32 %v11272_v6, %v9266_v32  ;;  %11313 = vst [vmem:[#allocation58_spill] sm:$0xff] %v9429_v43  ;;  %v3850_v13 = vmul.f32 %v11314_v27, %v11311_v22 }
 0xa31   :  { %v3589_v12 = vadd.f32 %v3461_v18, %v3201_v51  ;;  %v2066_v15 = vadd.f32 %v1938_v40, %v1678_v11  ;;  %v2326_v35 = vmul.f32 %v11273_v54, %v9266_v32  ;;  %v2713_v55 = vmul.f32 %v11274_v3, %v9271_v58  ;;  %v11315_v11 = vld [vmem:[#allocation160_spill] sm:$0xff] }
 0xa32   :  { %v3590_v19 = vadd.f32 %v3462_v34, %v3202_v17  ;;  %v2453_v33 = vadd.f32 %v2325_v39, %v2065_v1  ;;  %v2714_v6 = vmul.f32 %v11275_v4, %v9271_v58  ;;  %v3101_v22 = vmul.f32 %v11276_v61, %v9282_v49  ;;  %v11316_v4 = vld [vmem:[#allocation45_spill] sm:$0xff]  ;;  %v11318_v39 = vld [vmem:[#allocation79_spill] sm:$0xff] }
 0xa33   :  { %v3977_v20 = vadd.f32 %v3849_v36, %v3589_v12  ;;  %v2454_v18 = vadd.f32 %v2326_v35, %v2066_v15  ;;  %v3102_v59 = vmul.f32 %v11277_v46, %v9282_v49  ;;  %v3489_v34 = vmul.f32 %v11279_v25, %v9285_v52  ;;  %v11317_v36 = vld [vmem:[#allocation113_spill] sm:$0xff]  ;;  %v11321_v35 = vld [vmem:[#allocation83_spill] sm:$0xff] }
 0xa34   :  { %v3978_v54 = vadd.f32 %v3850_v13, %v3590_v19  ;;  %v2841_v51 = vadd.f32 %v2713_v55, %v2453_v33  ;;  %v4798_v40 = vperm.slane %v4476_v50, %v11315_v11  ;;  %v3490_v3 = vmul.f32 %v11280_v5, %v9285_v52  ;;  %v11320_v15 = vld [vmem:[#allocation17_spill] sm:$0xff] }
 0xa35   :  { %v2842_v17 = vadd.f32 %v2714_v6, %v2454_v18  ;;  %v1275_v1 = vmul.f32 %v11317_v36, %v11316_v4  ;;  %v1276_v61 = vmul.f32 %v11318_v39, %v11316_v4  ;;  %v11319_v13 = vperm.slane %v9320_v9, %v11241_v24  ;;  %v11323_v6 = vld [vmem:[#allocation121_spill] sm:$0xff] }
 0xa36   :  { %v9454_v12 = vpack.c.bf16 %v3978_v54, %v3977_v20  ;;  %v3229_v46 = vadd.f32 %v3101_v22, %v2841_v51  ;;  %v1535_v50 = vmul.f32 %v11321_v35, %v11320_v15  ;;  %v3877_v5 = vmul.f32 %v11282_v7, %v9290_v44  ;;  %v11324_v54 = vld [vmem:[#allocation44_spill] sm:$0xff]  ;;  %v11325_v51 = vld [vmem:[#allocation125_spill] sm:$0xff] }
 0xa37   :  { %v4799_v25 = vsel %vm4666_vm13, %v4798_v40, %v11319_v13  ;;  %4541 = vperm.xlu1 %5360, %v4238_v48   ;;  %v3230_v19 = vadd.f32 %v3102_v59, %v2842_v17  ;;  %v11322_v33 = vperm.slane %v9261_v37, %v7569_v8  ;;  %v1536_v20 = vmul.f32 %v11323_v6, %v11320_v15  ;;  %v11335_v15 = vld [vmem:[#allocation162_spill] sm:$0xff] }
 0xa38   :  { %v4245_v9 = vunpack.c.l.b16 %v9454_v12  ;;  %v3617_v18 = vadd.f32 %v3489_v34, %v3229_v46  ;;  %v1663_v22 = vadd.f32 %v1535_v50, %v1275_v1  ;;  %v1923_v40 = vmul.f32 %v11325_v51, %v11324_v54  ;;  %v9481_v1 = vpop.permute.xlu2 %4514 }
 0xa39   :  { %v4801_v55 = vsel %vm4670_vm14, %v11322_v33, %v4799_v25  ;;  %v3618_v48 = vadd.f32 %v3490_v3, %v3230_v19  ;;  %v3878_v59 = vmul.f32 %v11290_v0, %v9290_v44  ;;  %v1664_v7 = vadd.f32 %v1536_v20, %v1276_v61  ;;  %v11326_v33 = vld [vmem:[#allocation50_spill] sm:$0xff]  ;;  %11327 = vst [vmem:[#allocation61_spill] sm:$0xff] %v9481_v1  ;;  %v4500_v61 = vpop.permute.xlu0 %4499  ;;  %v4485_v19 = vpop.permute.xlu1 %4484 }
 0xa3a   :  { %v1924_v37 = vmul.f32 %v11181_v29, %v11324_v54  ;;  %4562 = vperm.xlu2 %5361, %v4245_v9   ;;  %v4005_v17 = vadd.f32 %v3877_v5, %v3617_v18  ;;  %v2051_v25 = vadd.f32 %v1923_v40, %v1663_v22  ;;  %v2311_v34 = vmul.f32 %v11183_v23, %v11326_v33  ;;  %v11328_v5 = vld [vmem:[#allocation53_spill] sm:$0xff]  ;;  %v11330_v40 = vld [vmem:[#allocation136_spill] sm:$0xff] }
 0xa3b   :  { %v4006_v46 = vadd.f32 %v3878_v59, %v3618_v48  ;;  %v4266_v3 = vunpack.c.h.b16 %v9400_v56  ;;  %v2312_v0 = vmul.f32 %v11184_v31, %v11326_v33  ;;  %v2699_v9 = vmul.f32 %v11186_v2, %v11328_v5  ;;  %v11329_v22 = vld [vmem:[#allocation29_spill] sm:$0xff]  ;;  %v11331_v56 = vld [vmem:[#allocation114_spill] sm:$0xff] }
 0xa3c   :  { %v2052_v50 = vadd.f32 %v1924_v37, %v1664_v7  ;;  %v2439_v20 = vadd.f32 %v2311_v34, %v2051_v25  ;;  %v2700_v18 = vmul.f32 %v11187_v53, %v11328_v5  ;;  %v3087_v13 = vmul.f32 %v11330_v40, %v11329_v22  ;;  %v11332_v7 = vld [vmem:[#allocation32_spill] sm:$0xff]  ;;  %v11333_v37 = vld [vmem:[#allocation118_spill] sm:$0xff] }
 0xa3d   :  { %v9492_v43 = vpack.c.bf16 %v4006_v46, %v4005_v17  ;;  %v3088_v59 = vmul.f32 %v11331_v56, %v11329_v22  ;;  %v3475_v33 = vmul.f32 %v11333_v37, %v11332_v7  ;;  %v4813_v25 = vperm.slane %v4500_v61, %v11315_v11  ;;  %v11338_v22 = vld [vmem:[#allocation84_spill] sm:$0xff] }
 0xa3e   :  { %v2440_v48 = vadd.f32 %v2312_v0, %v2052_v50  ;;  %v2827_v54 = vadd.f32 %v2699_v9, %v2439_v20  ;;  %v11334_v34 = vperm.slane %v9369_v14, %v11263_v41  ;;  %v4804_v4 = vperm.slane %v4485_v19, %v11335_v15  ;;  %v11336_v50 = vld [vmem:[#allocation43_spill] sm:$0xff]  ;;  %v11342_v19 = vld [vmem:[#allocation88_spill] sm:$0xff]  ;;  %v11344_v15 = vld [vmem:[#allocation70_spill] sm:$0xff] }
 0xa3f   :  { %v4273_v17 = vunpack.c.l.b16 %v9492_v43  ;;  %v11337_v0 = vld [vmem:[#allocation115_spill] sm:$0xff]  ;;  %v1270_v44 = vmul.f32 %v11338_v22, %v11336_v50  ;;  %v11339_v61 = vperm.slane %v9367_v21, %v11241_v24  ;;  %v11347_v21 = vld [vmem:[#allocation85_spill] sm:$0xff] }
 0xa40   :  { %v4803_v5 = vsel %vm4674_vm15, %v11334_v34, %v4801_v55  ;;  %v2828_v46 = vadd.f32 %v2700_v18, %v2440_v48  ;;  %v1269_v8 = vmul.f32 %v11337_v0, %v11336_v50  ;;  %v3215_v52 = vadd.f32 %v3087_v13, %v2827_v54  ;;  %v11341_v55 = vld [vmem:[#allocation82_spill] sm:$0xff]  ;;  %v11343_v48 = vld [vmem:[#allocation140_spill] sm:$0xff]  ;;  %v11345_v41 = vld [vmem:[#allocation147_spill] sm:$0xff] }
 0xa41   :  { %v9513_v20 = vsel %vm4666_vm13, %v4813_v25, %v11339_v61  ;;  %v4805_v14 = vsel %vm4678_vm2, %v4804_v4, %v4803_v5  ;;  %v1529_v9 = vmul.f32 %v11342_v19, %v11341_v55  ;;  %4646 = vperm.xlu0 %5362, %v4273_v17   ;;  %v3476_v34 = vmul.f32 %v11343_v48, %v11332_v7  ;;  %v11348_v61 = vld [vmem:[#allocation72_spill] sm:$0xff]  ;;  %v11349_v4 = vld [vmem:[#allocation142_spill] sm:$0xff]  ;;  %v11351_v17 = vld [vmem:[#allocation91_spill] sm:$0xff] }
 0xa42   :  { %11340 = vst [vmem:[#allocation37_spill] sm:$0xff] %v9513_v20  ;;  %v3216_v18 = vadd.f32 %v3088_v59, %v2828_v46  ;;  %v11346_v50 = vperm.slane %v11344_v15, %v11345_v41  ;;  %v1530_v13 = vmul.f32 %v11347_v21, %v11341_v55  ;;  %4625 = vperm.xlu2 %5361, %v4266_v3   ;;  %v11350_v20 = vld [vmem:[#allocation144_spill] sm:$0xff]  ;;  %v11352_v7 = vld [vmem:[#allocation110_spill] sm:$0xff] }
 0xa43   :  { %v3603_v25 = vadd.f32 %v3475_v33, %v3215_v52  ;;  %v3863_v5 = vmul.f32 %v11349_v4, %v11348_v61  ;;  %v1657_v24 = vadd.f32 %v1529_v9, %v1269_v8  ;;  %v1917_v59 = vmul.f32 %v11351_v17, %v11350_v20  ;;  %v11354_v33 = vld [vmem:[#allocation34_spill] sm:$0xff]  ;;  %v9538_v8 = vpop.permute.xlu2 %4523 }
 0xa44   :  { %v4807_v54 = vsel %vm4682_vm3, %v11346_v50, %v4805_v14  ;;  %v3604_v46 = vadd.f32 %v3476_v34, %v3216_v18  ;;  %v3864_v19 = vmul.f32 %v11352_v7, %v11348_v61  ;;  %v1658_v22 = vadd.f32 %v1530_v13, %v1270_v44  ;;  %v11353_v14 = vld [vmem:[#allocation163_spill] sm:$0xff]  ;;  %11355 = vst [vmem:[#allocation40_spill] sm:$0xff] %v9538_v8  ;;  %v9544_v13 = vpop.permute.xlu0 %4508 }
 0xa45   :  { %v1918_v15 = vmul.f32 %v11297_v10, %v11350_v20  ;;  %v4808_v55 = vperm.slane %v9435_v63, %v11353_v14  ;;  %v3991_v3 = vadd.f32 %v3863_v5, %v3603_v25  ;;  %v2045_v52 = vadd.f32 %v1917_v59, %v1657_v24  ;;  %v4494_v20 = vpop.permute.xlu1 %4493  ;;  %v11356_v63 = vld [vmem:[#allocation36_spill] sm:$0xff]  ;;  %v11357_v5 = vld [vmem:[#allocation78_spill] sm:$0xff] }
 0xa46   :  { %v2305_v50 = vmul.f32 %v11299_v28, %v11354_v33  ;;  %v3992_v9 = vadd.f32 %v3864_v19, %v3604_v46  ;;  %v2306_v44 = vmul.f32 %v11300_v47, %v11354_v33  ;;  %v2693_v24 = vmul.f32 %v11302_v38, %v11356_v63  ;;  %v11359_v14 = vld [vmem:[#allocation158_spill] sm:$0xff] }
 0xa47   :  { %v2046_v34 = vadd.f32 %v1918_v15, %v1658_v22  ;;  %v2694_v25 = vmul.f32 %v11304_v60, %v11356_v63  ;;  %v3081_v19 = vmul.f32 %v11306_v57, %v11357_v5  ;;  %v3082_v22 = vmul.f32 %v11307_v62, %v11357_v5  ;;  %v11358_v15 = vld [vmem:[#allocation67_spill] sm:$0xff]  ;;  %v11360_v57 = vld [vmem:[#allocation73_spill] sm:$0xff] }
 0xa48   :  { %v2433_v41 = vadd.f32 %v2305_v50, %v2045_v52  ;;  %v4065_v59 = vpack.c.bf16 %v3992_v9, %v3991_v3  ;;  %v3469_v33 = vmul.f32 %v11309_v45, %v11358_v15  ;;  %v3470_v52 = vmul.f32 %v11310_v16, %v11358_v15 }
 0xa49   :  { %v2434_v46 = vadd.f32 %v2306_v44, %v2046_v34  ;;  %v4809_v50 = vsel %vm4686_vm4, %v4808_v55, %v4807_v54  ;;  %v4810_v1 = vperm.slane %v4494_v20, %v11359_v14  ;;  %v3857_v3 = vmul.f32 %v11312_v26, %v11360_v57  ;;  %v11362_v44 = vld [vmem:[#allocation76_spill] sm:$0xff]  ;;  %v11363_v55 = vld [vmem:[#allocation59_spill] sm:$0xff] }
 0xa4a   :  { %v2821_v18 = vadd.f32 %v2693_v24, %v2433_v41  ;;  %v4259_v63 = vunpack.c.l.b16 %v4065_v59  ;;  %v4260_v61 = vunpack.c.h.b16 %v4065_v59  ;;  %v1283_v41 = vmul.f32 %v11317_v36, %v11362_v44 }
 0xa4b   :  { %v2822_v60 = vadd.f32 %v2694_v25, %v2434_v46  ;;  %v9563_v34 = vsel %vm4690_vm5, %v4810_v1, %v4809_v50  ;;  %v1284_v24 = vmul.f32 %v11318_v39, %v11362_v44  ;;  %v1543_v20 = vmul.f32 %v11321_v35, %v11363_v55 }
 0xa4c   :  { %v3209_v9 = vadd.f32 %v3081_v19, %v2821_v18  ;;  %11361 = vst [vmem:[#allocation69_spill] sm:$0xff] %v9563_v34  ;;  %4604 = vperm.xlu1 %5360, %v4259_v63   ;;  %4607 = vperm.xlu0 %5362, %v4260_v61   ;;  %v1544_v25 = vmul.f32 %v11323_v6, %v11363_v55  ;;  %v4246_v18 = vunpack.c.h.b16 %v9454_v12  ;;  %v11364_v19 = vld [vmem:[#allocation63_spill] sm:$0xff]  ;;  %v11365_v63 = vld [vmem:[#allocation41_spill] sm:$0xff] }
 0xa4d   :  { %v3210_v54 = vadd.f32 %v3082_v22, %v2822_v60  ;;  %v3858_v1 = vmul.f32 %v11314_v27, %v11360_v57  ;;  %v1931_v59 = vmul.f32 %v11325_v51, %v11364_v19  ;;  %v1671_v15 = vadd.f32 %v1543_v20, %v1283_v41  ;;  %v11366_v27 = vld [vmem:[#allocation71_spill] sm:$0xff]  ;;  %v9588_v41 = vpop.permute.xlu2 %4547 }
 0xa4e   :  { %v3597_v5 = vadd.f32 %v3469_v33, %v3209_v9  ;;  %v1672_v50 = vadd.f32 %v1544_v25, %v1284_v24  ;;  %v1932_v60 = vmul.f32 %v11181_v29, %v11364_v19  ;;  %v2319_v33 = vmul.f32 %v11183_v23, %v11365_v63  ;;  %v9590_v24 = vpop.permute.xlu0 %4517 }
 0xa4f   :  { %v3598_v46 = vadd.f32 %v3470_v52, %v3210_v54  ;;  %v2320_v57 = vmul.f32 %v11184_v31, %v11365_v63  ;;  %v2059_v9 = vadd.f32 %v1931_v59, %v1671_v15  ;;  %v2707_v52 = vmul.f32 %v11186_v2, %v11366_v27  ;;  %v11367_v54 = vld [vmem:[#allocation148_spill] sm:$0xff]  ;;  %v4503_v59 = vpop.permute.xlu1 %4502 }
 0xa50   :  { %v3985_v61 = vadd.f32 %v3857_v3, %v3597_v5  ;;  %v2060_v34 = vadd.f32 %v1932_v60, %v1672_v50  ;;  %v2708_v3 = vmul.f32 %v11187_v53, %v11366_v27  ;;  %v3095_v20 = vmul.f32 %v11330_v40, %v11367_v54  ;;  %v11368_v5 = vld [vmem:[#allocation24_spill] sm:$0xff] }
 0xa51   :  { %v3986_v12 = vadd.f32 %v3858_v1, %v3598_v46  ;;  %v3096_v25 = vmul.f32 %v11331_v56, %v11367_v54  ;;  %v3483_v1 = vmul.f32 %v11333_v37, %v11368_v5  ;;  %v2447_v15 = vadd.f32 %v2319_v33, %v2059_v9  ;;  %v11369_v60 = vld [vmem:[#allocation52_spill] sm:$0xff] }
 0xa52   :  { %v2448_v50 = vadd.f32 %v2320_v57, %v2060_v34  ;;  %v1291_v22 = vmul.f32 %v11317_v36, %v11369_v60  ;;  %v3484_v8 = vmul.f32 %v11343_v48, %v11368_v5  ;;  %v1292_v27 = vmul.f32 %v11318_v39, %v11369_v60 }
 0xa53   :  { %v4062_v46 = vpack.c.bf16 %v3986_v12, %v3985_v61  ;;  %v1551_v63 = vmul.f32 %v11321_v35, %v9246_v42  ;;  %v1552_v54 = vmul.f32 %v11323_v6, %v9246_v42  ;;  %v2835_v33 = vadd.f32 %v2707_v52, %v2447_v15  ;;  %v11370_v6 = vld [vmem:[#allocation49_spill] sm:$0xff] }
 0xa54   :  { %4565 = vperm.xlu1 %5360, %v4246_v18   ;;  %v2836_v34 = vadd.f32 %v2708_v3, %v2448_v50  ;;  %v1939_v36 = vmul.f32 %v11325_v51, %v9249_v30  ;;  %v1940_v9 = vmul.f32 %v11181_v29, %v9249_v30  ;;  %v4274_v39 = vunpack.c.h.b16 %v9492_v43 }
 0xa55   :  { %v4253_v19 = vunpack.c.l.b16 %v4062_v46  ;;  %v4254_v61 = vunpack.c.h.b16 %v4062_v46  ;;  %v1679_v57 = vadd.f32 %v1551_v63, %v1291_v22  ;;  %v1680_v12 = vadd.f32 %v1552_v54, %v1292_v27 }
 0xa56   :  { %v3223_v35 = vadd.f32 %v3095_v20, %v2835_v33  ;;  %v3224_v5 = vadd.f32 %v3096_v25, %v2836_v34  ;;  %v3871_v18 = vmul.f32 %v11349_v4, %v11370_v6  ;;  %v2327_v27 = vmul.f32 %v11183_v23, %v9266_v32  ;;  %v9635_v15 = vpop.permute.xlu0 %4526 }
 0xa57   :  { %4586 = vperm.xlu2 %5361, %v4253_v19   ;;  %4589 = vperm.xlu0 %5362, %v4254_v61   ;;  %v2067_v46 = vadd.f32 %v1939_v36, %v1679_v57  ;;  %v2068_v52 = vadd.f32 %v1940_v9, %v1680_v12  ;;  %v2328_v51 = vmul.f32 %v11184_v31, %v9266_v32  ;;  %v11372_v61 = vld [vmem:[#allocation31_spill] sm:$0xff]  ;;  %v4512_v33 = vpop.permute.xlu1 %4511  ;;  %v11373_v57 = vld [vmem:[#allocation145_spill] sm:$0xff] }
 0xa58   :  { %v3611_v22 = vadd.f32 %v3483_v1, %v3223_v35  ;;  %v3612_v63 = vadd.f32 %v3484_v8, %v3224_v5  ;;  %v3872_v29 = vmul.f32 %v11352_v7, %v11370_v6  ;;  %v2715_v43 = vmul.f32 %v11186_v2, %v9271_v58  ;;  %v11371_v8 = vld [vmem:[#allocation28_spill] sm:$0xff]  ;;  %v9633_v1 = vpop.permute.xlu2 %4568 }
 0xa59   :  { %v2455_v19 = vadd.f32 %v2327_v27, %v2067_v46  ;;  %v2456_v3 = vadd.f32 %v2328_v51, %v2068_v52  ;;  %v2716_v54 = vmul.f32 %v11187_v53, %v9271_v58  ;;  %v3103_v20 = vmul.f32 %v11330_v40, %v9282_v49  ;;  %v11376_v46 = vld [vmem:[#allocation17_spill] sm:$0xff]  ;;  %v11377_v52 = vld [vmem:[#allocation88_spill] sm:$0xff] }
 0xa5a   :  { %v3999_v23 = vadd.f32 %v3871_v18, %v3611_v22  ;;  %v4000_v25 = vadd.f32 %v3872_v29, %v3612_v63  ;;  %v3104_v31 = vmul.f32 %v11331_v56, %v9282_v49  ;;  %v3491_v5 = vmul.f32 %v11333_v37, %v11371_v8  ;;  %v11374_v56 = vld [vmem:[#allocation45_spill] sm:$0xff]  ;;  %v11375_v37 = vld [vmem:[#allocation84_spill] sm:$0xff] }
 0xa5b   :  { %v2843_v2 = vadd.f32 %v2715_v43, %v2455_v19  ;;  %v2844_v50 = vadd.f32 %v2716_v54, %v2456_v3  ;;  %v3492_v53 = vmul.f32 %v11343_v48, %v11371_v8  ;;  %v3879_v40 = vmul.f32 %v11349_v4, %v11372_v61  ;;  %v11379_v63 = vld [vmem:[#allocation44_spill] sm:$0xff]  ;;  %v11380_v3 = vld [vmem:[#allocation58_spill] sm:$0xff]  ;;  %v11381_v54 = vld [vmem:[#allocation159_spill] sm:$0xff] }
 0xa5c   :  { %v4069_v34 = vpack.c.bf16 %v4000_v25, %v3999_v23  ;;  %v4815_v12 = vperm.slane %v4503_v59, %v11373_v57  ;;  %v1277_v36 = vmul.f32 %v11337_v0, %v11374_v56  ;;  %v1278_v9 = vmul.f32 %v11375_v37, %v11374_v56  ;;  %v11378_v59 = vld [vmem:[#allocation37_spill] sm:$0xff]  ;;  %v11384_v56 = vld [vmem:[#allocation50_spill] sm:$0xff] }
 0xa5d   :  { %v3231_v35 = vadd.f32 %v3103_v20, %v2843_v2  ;;  %v3232_v18 = vadd.f32 %v3104_v31, %v2844_v50  ;;  %v1537_v27 = vmul.f32 %v11377_v52, %v11376_v46  ;;  %v1538_v48 = vmul.f32 %v11347_v21, %v11376_v46  ;;  %v11383_v31 = vld [vmem:[#allocation162_spill] sm:$0xff] }
 0xa5e   :  { %v4267_v4 = vunpack.c.l.b16 %v4069_v34  ;;  %v3880_v51 = vmul.f32 %v11352_v7, %v11372_v61  ;;  %v4816_v22 = vsel %vm4670_vm14, %v4815_v12, %v11378_v59  ;;  %v1925_v29 = vmul.f32 %v11351_v17, %v11379_v63 }
 0xa5f   :  { %4649 = vperm.xlu2 %5361, %v4274_v39   ;;  %v3619_v43 = vadd.f32 %v3491_v5, %v3231_v35  ;;  %v3620_v19 = vadd.f32 %v3492_v53, %v3232_v18  ;;  %v11382_v20 = vperm.slane %v11380_v3, %v11381_v54  ;;  %v1665_v25 = vadd.f32 %v1537_v27, %v1277_v36  ;;  %v9684_v3 = vpop.permute.xlu0 %4529 }
 0xa60   :  { %v4819_v39 = vperm.slane %v9544_v13, %v11383_v31  ;;  %4628 = vperm.xlu1 %5360, %v4267_v4   ;;  %v1666_v2 = vadd.f32 %v1538_v48, %v1278_v9  ;;  %v1926_v50 = vmul.f32 %v11297_v10, %v11379_v63  ;;  %v2313_v35 = vmul.f32 %v11299_v28, %v11384_v56  ;;  %v11385_v9 = vld [vmem:[#allocation53_spill] sm:$0xff] }
 0xa61   :  { %v4818_v23 = vsel %vm4674_vm15, %v11382_v20, %v4816_v22  ;;  %v4007_v12 = vadd.f32 %v3879_v40, %v3619_v43  ;;  %v4008_v5 = vadd.f32 %v3880_v51, %v3620_v19  ;;  %v2053_v53 = vadd.f32 %v1925_v29, %v1665_v25  ;;  %v11386_v40 = vld [vmem:[#allocation134_spill] sm:$0xff]  ;;  %v11387_v22 = vld [vmem:[#allocation29_spill] sm:$0xff]  ;;  %v9682_v19 = vpop.permute.xlu2 %4553 }
 0xa62   :  { %v4825_v36 = vperm.slane %v9590_v24, %v11359_v14  ;;  %v4268_v18 = vunpack.c.h.b16 %v4069_v34  ;;  %v2054_v46 = vadd.f32 %v1926_v50, %v1666_v2  ;;  %v2314_v13 = vmul.f32 %v11300_v47, %v11384_v56  ;;  %v11388_v63 = vld [vmem:[#allocation137_spill] sm:$0xff]  ;;  %v11389_v34 = vld [vmem:[#allocation32_spill] sm:$0xff] }
 0xa63   :  { %v4073_v27 = vpack.c.bf16 %v4008_v5, %v4007_v12  ;;  %v2441_v4 = vadd.f32 %v2313_v35, %v2053_v53  ;;  %v2701_v48 = vmul.f32 %v11302_v38, %v11385_v9  ;;  %v2702_v51 = vmul.f32 %v11386_v40, %v11385_v9  ;;  %v11390_v50 = vld [vmem:[#allocation72_spill] sm:$0xff]  ;;  %v9690_v5 = vpop.permute.xlu1 %4520  ;;  %v11391_v35 = vld [vmem:[#allocation147_spill] sm:$0xff] }
 0xa64   :  { %v2442_v59 = vadd.f32 %v2314_v13, %v2054_v46  ;;  %v3089_v29 = vmul.f32 %v11388_v63, %v11387_v22  ;;  %v3090_v24 = vmul.f32 %v11307_v62, %v11387_v22  ;;  %v3477_v43 = vmul.f32 %v11309_v45, %v11389_v34 }
 0xa65   :  { %v4275_v20 = vunpack.c.l.b16 %v4073_v27  ;;  %v2829_v25 = vadd.f32 %v2701_v48, %v2441_v4  ;;  %v3478_v2 = vmul.f32 %v11310_v16, %v11389_v34  ;;  %v3865_v12 = vmul.f32 %v11312_v26, %v11390_v50  ;;  %v11394_v34 = vld [vmem:[#allocation163_spill] sm:$0xff] }
 0xa66   :  { %v2830_v53 = vadd.f32 %v2702_v51, %v2442_v59  ;;  %v4820_v56 = vsel %vm4678_vm2, %v4819_v39, %v4818_v23  ;;  %v4821_v46 = vperm.slane %v4512_v33, %v11391_v35  ;;  %v1285_v13 = vmul.f32 %v11337_v0, %v11362_v44  ;;  %v11392_v23 = vld [vmem:[#allocation63_spill] sm:$0xff] }
 0xa67   :  { %4631 = vperm.xlu2 %5361, %v4268_v18   ;;  %4652 = vperm.xlu0 %5362, %v4275_v20   ;;  %v3217_v9 = vadd.f32 %v3089_v29, %v2829_v25  ;;  %v1286_v4 = vmul.f32 %v11375_v37, %v11362_v44  ;;  %v1545_v48 = vmul.f32 %v11377_v52, %v11363_v55  ;;  %v11393_v29 = vld [vmem:[#allocation61_spill] sm:$0xff] }
 0xa68   :  { %v1546_v22 = vmul.f32 %v11347_v21, %v11363_v55  ;;  %v3218_v18 = vadd.f32 %v3090_v24, %v2830_v53  ;;  %v4822_v51 = vsel %vm4682_vm3, %v4821_v46, %v4820_v56  ;;  %v1933_v33 = vmul.f32 %v11351_v17, %v11392_v23  ;;  %v11396_v55 = vld [vmem:[#allocation143_spill] sm:$0xff]  ;;  %v11397_v56 = vld [vmem:[#allocation41_spill] sm:$0xff] }
 0xa69   :  { %v1934_v39 = vmul.f32 %v11297_v10, %v11392_v23  ;;  %v3605_v59 = vadd.f32 %v3477_v43, %v3217_v9  ;;  %v11395_v20 = vperm.slane %v11393_v29, %v11394_v34  ;;  %v1673_v25 = vadd.f32 %v1545_v48, %v1285_v13  ;;  %v11398_v13 = vld [vmem:[#allocation15_spill] sm:$0xff] }
 0xa6a   :  { %v1674_v7 = vadd.f32 %v1546_v22, %v1286_v4  ;;  %v3606_v14 = vadd.f32 %v3478_v2, %v3218_v18  ;;  %v3866_v24 = vmul.f32 %v11396_v55, %v11390_v50  ;;  %v2321_v46 = vmul.f32 %v11299_v28, %v11397_v56  ;;  %v9724_v4 = vpop.permute.xlu0 %4571  ;;  %v11399_v22 = vld [vmem:[#allocation71_spill] sm:$0xff] }
 0xa6b   :  { %v4824_v44 = vsel %vm4686_vm4, %v11395_v20, %v4822_v51  ;;  %v3993_v31 = vadd.f32 %v3865_v12, %v3605_v59  ;;  %v2061_v23 = vadd.f32 %v1933_v33, %v1673_v25  ;;  %v2322_v9 = vmul.f32 %v11300_v47, %v11397_v56  ;;  %v4545_v18 = vpop.permute.xlu1 %4544  ;;  %v9736_v20 = vpop.permute.xlu2 %4595 }
 0xa6c   :  { %v9714_v53 = vsel %vm4690_vm5, %v4825_v36, %v4824_v44  ;;  %v2062_v43 = vadd.f32 %v1934_v39, %v1674_v7  ;;  %v3994_v29 = vadd.f32 %v3866_v24, %v3606_v14  ;;  %v4276_v51 = vunpack.c.h.b16 %v4073_v27  ;;  %v11400_v14 = vld [vmem:[#allocation148_spill] sm:$0xff] }
 0xa6d   :  { %v4857_v2 = vperm.slane %v9633_v1, %v11398_v13  ;;  %v4830_v50 = vperm.slane %v9635_v15, %v11373_v57  ;;  %v2449_v36 = vadd.f32 %v2321_v46, %v2061_v23  ;;  %v2709_v12 = vmul.f32 %v11302_v38, %v11399_v22  ;;  %v11401_v46 = vld [vmem:[#allocation24_spill] sm:$0xff] }
 0xa6e   :  { %v2450_v48 = vadd.f32 %v2322_v9, %v2062_v43  ;;  %v2710_v7 = vmul.f32 %v11386_v40, %v11399_v22  ;;  %v4066_v33 = vpack.c.bf16 %v3994_v29, %v3993_v31  ;;  %v3097_v27 = vmul.f32 %v11388_v63, %v11400_v14 }
 0xa6f   :  { %v3098_v39 = vmul.f32 %v11307_v62, %v11400_v14  ;;  %v1293_v59 = vmul.f32 %v11337_v0, %v11369_v60  ;;  %4655 = vperm.xlu0 %5362, %v4276_v51   ;;  %v2837_v44 = vadd.f32 %v2709_v12, %v2449_v36  ;;  %v1294_v24 = vmul.f32 %v11375_v37, %v11369_v60 }
 0xa70   :  { %v2838_v25 = vadd.f32 %v2710_v7, %v2450_v48  ;;  %v1553_v31 = vmul.f32 %v11377_v52, %v9246_v42  ;;  %v4261_v56 = vunpack.c.l.b16 %v4066_v33  ;;  %v3485_v23 = vmul.f32 %v11309_v45, %v11401_v46 }
 0xa71   :  { %v3486_v43 = vmul.f32 %v11310_v16, %v11401_v46  ;;  %v1554_v0 = vmul.f32 %v11347_v21, %v9246_v42  ;;  %v3225_v9 = vadd.f32 %v3097_v27, %v2837_v44  ;;  %v1941_v36 = vmul.f32 %v11351_v17, %v9249_v30 }
 0xa72   :  { %v3226_v29 = vadd.f32 %v3098_v39, %v2838_v25  ;;  %v1681_v51 = vadd.f32 %v1553_v31, %v1293_v59  ;;  %4610 = vperm.xlu1 %5360, %v4261_v56   ;;  %v3873_v60 = vmul.f32 %v11312_v26, %v11370_v6  ;;  %v3874_v37 = vmul.f32 %v11396_v55, %v11370_v6  ;;  %v4575_v39 = vpop.permute.xlu0 %4574 }
 0xa73   :  { %v1682_v52 = vadd.f32 %v1554_v0, %v1294_v24  ;;  %v1942_v48 = vmul.f32 %v11297_v10, %v9249_v30  ;;  %v3613_v22 = vadd.f32 %v3485_v23, %v3225_v9  ;;  %v2329_v21 = vmul.f32 %v11299_v28, %v9266_v32  ;;  %v4551_v10 = vpop.permute.xlu1 %4550  ;;  %v11402_v23 = vld [vmem:[#allocation40_spill] sm:$0xff] }
 0xa74   :  { %v3614_v12 = vadd.f32 %v3486_v43, %v3226_v29  ;;  %v2069_v42 = vadd.f32 %v1941_v36, %v1681_v51  ;;  %v4262_v7 = vunpack.c.h.b16 %v4066_v33  ;;  %v2330_v17 = vmul.f32 %v11300_v47, %v9266_v32 }
 0xa75   :  { %v2070_v14 = vadd.f32 %v1942_v48, %v1682_v52  ;;  %v2717_v27 = vmul.f32 %v11302_v38, %v9271_v58  ;;  %v4001_v6 = vadd.f32 %v3873_v60, %v3613_v22  ;;  %v2718_v30 = vmul.f32 %v11386_v40, %v9271_v58  ;;  %v11405_v22 = vld [vmem:[#allocation162_spill] sm:$0xff] }
 0xa76   :  { %v4002_v59 = vadd.f32 %v3874_v37, %v3614_v12  ;;  %v2457_v44 = vadd.f32 %v2329_v21, %v2069_v42  ;;  %v3105_v28 = vmul.f32 %v11388_v63, %v9282_v49  ;;  %v3106_v33 = vmul.f32 %v11307_v62, %v9282_v49  ;;  %v4578_v62 = vpop.permute.xlu2 %4577 }
 0xa77   :  { %v2458_v25 = vadd.f32 %v2330_v17, %v2070_v14  ;;  %v3493_v32 = vmul.f32 %v11309_v45, %v11371_v8  ;;  %v3494_v24 = vmul.f32 %v11310_v16, %v11371_v8  ;;  %v4827_v31 = vperm.slane %v9690_v5, %v11398_v13 }
 0xa78   :  { %v4070_v47 = vpack.c.bf16 %v4002_v59, %v4001_v6  ;;  %v2845_v38 = vadd.f32 %v2717_v27, %v2457_v44  ;;  %v3881_v40 = vmul.f32 %v11312_v26, %v11372_v61  ;;  %v4858_v63 = vperm.slane %v9724_v4, %v11315_v11 }
 0xa79   :  { %v2846_v58 = vadd.f32 %v2718_v30, %v2458_v25  ;;  %v4842_v49 = vperm.slane %v4545_v18, %v11398_v13  ;;  %v4832_v46 = vperm.slane %v9684_v3, %v11381_v54  ;;  %v11403_v16 = vperm.slane %v11402_v23, %v11315_v11 }
 0xa7a   :  { %v4269_v56 = vunpack.c.l.b16 %v4070_v47  ;;  %v3233_v45 = vadd.f32 %v3105_v28, %v2845_v38  ;;  %4613 = vperm.xlu1 %5360, %v4262_v7   ;;  %v4859_v4 = vsel %vm4666_vm13, %v4858_v63, %v4857_v2  ;;  %v11404_v3 = vperm.slane %v9588_v41, %v11315_v11  ;;  %v4536_v1 = vpop.permute.xlu0 %4535  ;;  %v11406_v63 = vld [vmem:[#allocation69_spill] sm:$0xff] }
 0xa7b   :  { %v4829_v8 = vsel %vm4666_vm13, %v11403_v16, %v4827_v31  ;;  %v3234_v5 = vadd.f32 %v3106_v33, %v2846_v58  ;;  %v4862_v0 = vperm.slane %v4578_v62, %v11381_v54  ;;  %v4860_v9 = vperm.slane %v4575_v39, %v11373_v57  ;;  %v4533_v37 = vpop.permute.xlu1 %4532 }
 0xa7c   :  { %v4831_v26 = vsel %vm4670_vm14, %v4830_v50, %v4829_v8  ;;  %v4844_v18 = vsel %vm4666_vm13, %v11404_v3, %v4842_v49  ;;  %4634 = vperm.xlu2 %5361, %v4269_v56   ;;  %v3621_v43 = vadd.f32 %v3493_v32, %v3233_v45  ;;  %v4845_v15 = vperm.slane %v4551_v10, %v11373_v57 }
 0xa7d   :  { %v3622_v29 = vadd.f32 %v3494_v24, %v3234_v5  ;;  %v3882_v50 = vmul.f32 %v11396_v55, %v11372_v61  ;;  %v4833_v2 = vsel %vm4674_vm15, %v4832_v46, %v4831_v26  ;;  %v4847_v41 = vperm.slane %v9682_v19, %v11381_v54  ;;  %v11407_v5 = vld [vmem:[#allocation158_spill] sm:$0xff] }
 0xa7e   :  { %v4009_v51 = vadd.f32 %v3881_v40, %v3621_v43  ;;  %v4861_v36 = vsel %vm4670_vm14, %v4860_v9, %v4859_v4  ;;  %v4846_v60 = vsel %vm4670_vm14, %v4845_v15, %v4844_v18  ;;  %v4836_v48 = vperm.slane %v4536_v1, %v11391_v35  ;;  %v4620_v24 = vpop.permute.xlu2 %4619 }
 0xa7f   :  { %v4010_v52 = vadd.f32 %v3882_v50, %v3622_v29  ;;  %v4834_v12 = vperm.slane %v4533_v37, %v11405_v22  ;;  %v4863_v42 = vsel %vm4674_vm15, %v4862_v0, %v4861_v36  ;;  %v4848_v61 = vsel %vm4674_vm15, %v4847_v41, %v4846_v60  ;;  %v5215_v41 = vld [vmem:[#allocation6 + $0x18] sm:$0xff] }
 0xa80   :  { %v4270_v21 = vunpack.c.h.b16 %v4070_v47  ;;  %v4873_v59 = vperm.slane %v9736_v20, %v11315_v11  ;;  %v4888_v20 = vperm.slane %v4620_v24, %v11315_v11  ;;  %v4924_v49 = vsel %vm923_vm6, %v9714_v53, %v11406_v63  ;;  %4963 = vmatpush.bf16.msrb.mxu1 %v5215_v41 }
 0xa81   :  { %v4074_v55 = vpack.c.bf16 %v4010_v52, %v4009_v51  ;;  %v4835_v7 = vsel %vm4678_vm2, %v4834_v12, %v4833_v2 }
 0xa82   :  { %v4837_v19 = vsel %vm4682_vm3, %v4836_v48, %v4835_v7  ;;  %4637 = vperm.xlu1 %5360, %v4270_v21   ;;  %v4599_v27 = vpop.permute.xlu0 %4598 }
 0xa83   :  { %v4278_v14 = vunpack.c.h.b16 %v4074_v55  ;;  %v4277_v17 = vunpack.c.l.b16 %v4074_v55  ;;  %v4875_v39 = vperm.slane %v4599_v27, %v11373_v57  ;;  %v4593_v6 = vpop.permute.xlu1 %4592 }
 0xa84   :  { %v4872_v44 = vperm.slane %v4593_v6, %v11398_v13  ;;  %v5214_v6 = vld [vmem:[#allocation6 + $0x10] sm:$0xff] }
 0xa85   :  { %4661 = vperm.xlu0 %5362, %v4278_v14   ;;  %4658 = vperm.xlu2 %5361, %v4277_v17  }
 0xa86   :  { %v4874_v30 = vsel %vm4666_vm13, %v4873_v59, %v4872_v44  ;;  %v4581_v45 = vpop.permute.xlu2 %4580  ;;  %v11408_v59 = vld [vmem:[#allocation22_spill] sm:$0xff]  ;;  %4964 = vmatpush.bf16.msrb.mxu1 %v5214_v6  ;;  %v5500_v6 = vmov 128.0  }
 0xa87   :  { %v9819_v10 = vsel %vm4670_vm14, %v4875_v39, %v4874_v30  ;;  %v4864_v48 = vperm.slane %v4581_v45, %v11405_v22  ;;  %v11409_v44 = vld [vmem:[#allocation38_spill] sm:$0xff]  ;;  %5383 = vrcp.f32 %v5500_v6 }
 0xa88   :  { %v4922_v30 = vsel %vm933_vm10, %v11409_v44, %v11408_v59 }
 0xa89   :  { %v4865_v55 = vsel %vm4678_vm2, %v4864_v48, %v4863_v42  ;;  %v11410_v42 = vld [vmem:[#allocation74_spill] sm:$0xff] }
 0xa8a   :  { %v4539_v25 = vpop.permute.xlu0 %4538 }
 0xa8b   :  { %v4838_v28 = vperm.slane %v4539_v25, %v11394_v34  ;;  %v4557_v33 = vpop.permute.xlu1 %4556 }
 0xa8c   :  { %v4849_v32 = vperm.slane %v4557_v33, %v11405_v22  ;;  %v5213_v33 = vld [vmem:[#allocation6 + $0x8] sm:$0xff] }
 0xa8d   :  { %v4839_v47 = vsel %vm4686_vm4, %v4838_v28, %v4837_v19  ;;  %v4923_v28 = vsel %vm935_vm11, %v11410_v42, %v4922_v30  ;;  %4965 = vmatpush.bf16.msrb.mxu1 %v5213_v33  ;;  %v5384_v59 = vpop.eup %5383 }
 0xa8e   :  { %v4850_v38 = vsel %vm4678_vm2, %v4849_v32, %v4848_v61  ;;  %v9833_v16 = vpop.permute.xlu2 %4640  ;;  %v4980_v44 = vmul.f32 128.0, %v5384_v59  ;;  %vm4984_vm6 = vweird.f32 %v5384_v59 }
 0xa90   :  { %v4981_v30 = vsub.f32 1.0, %v4980_v44 }
 0xa92   :  { %v4602_v62 = vpop.permute.xlu0 %4601 }
 0xa93   :  { %v4617_v31 = vpop.permute.xlu1 %4616 }
 0xa94   :  { %v4887_v58 = vperm.slane %v4617_v31, %v11398_v13  ;;  %v4877_v31 = vperm.slane %v4602_v62, %v11381_v54 }
 0xa96   :  { %v4889_v40 = vsel %vm4666_vm13, %v4888_v20, %v4887_v58  ;;  %v4563_v43 = vpop.permute.xlu2 %4562  ;;  %v4878_v63 = vsel %vm4674_vm15, %v4877_v31, %v9819_v10  ;;  %v4902_v10 = vperm.slane %v9833_v16, %v11398_v13 }
 0xa97   :  { %v4853_v1 = vperm.slane %v4563_v43, %v11394_v34 }
 0xa9a   :  { %v9831_v23 = vpop.permute.xlu0 %4643 }
 0xa9b   :  { %v4560_v56 = vpop.permute.xlu1 %4559 }
 0xa9c   :  { %v4851_v15 = vperm.slane %v4560_v56, %v11391_v35 }
 0xa9e   :  { %v4626_v9 = vpop.permute.xlu2 %4625  ;;  %v4852_v29 = vsel %vm4682_vm3, %v4851_v15, %v4850_v38 }
 0xa9f   :  { %v4854_v36 = vsel %vm4686_vm4, %v4853_v1, %v4852_v29  ;;  %v4892_v43 = vperm.slane %v4626_v9, %v11381_v54 }
 0xaa2   :  { %v4584_v3 = vpop.permute.xlu0 %4583 }
 0xaa3   :  { %v4623_v46 = vpop.permute.xlu1 %4622  ;;  %v4866_v12 = vperm.slane %v4584_v3, %v11391_v35 }
 0xaa4   :  { %v4890_v58 = vperm.slane %v4623_v46, %v11373_v57 }
 0xaa5   :  { %v4867_v7 = vsel %vm4682_vm3, %v4866_v12, %v4865_v55 }
 0xaab   :  { %v4542_v8 = vpop.permute.xlu1 %4541 }
 0xaac   :  { %v4840_v26 = vperm.slane %v4542_v8, %v11407_v5 }
 0xaae   :  { %v4841_v4 = vsel %vm4690_vm5, %v4840_v26, %v4839_v47  ;;  %v5212_v47 = vld [vmem:[#allocation6] sm:$0xff]  ;;  %v4903_v26 = vperm.slane %v9831_v23, %v11315_v11 }
 0xaaf   :  { %v4925_v18 = vsel %vm925_vm0, %v4841_v4, %v4924_v49  ;;  %4966 = vmatpush.bf16.msrb.mxu1 %v5212_v47  ;;  %v4891_v4 = vsel %vm4670_vm14, %v4890_v58, %v4889_v40 }
 0xab0   :  { %v4904_v40 = vsel %vm4666_vm13, %v4903_v26, %v4902_v10 }
 0xab1   :  { %v4587_v52 = vpop.permute.xlu2 %4586 }
 0xab2   :  { %v4868_v21 = vperm.slane %v4587_v52, %v11394_v34 }
 0xab3   :  { %v9838_v0 = vpop.permute.xlu0 %4646 }
 0xab4   :  { %v4869_v17 = vsel %vm4686_vm4, %v4868_v21, %v4867_v7  ;;  %v4905_v62 = vperm.slane %v9838_v0, %v11373_v57  ;;  %v4893_v57 = vsel %vm4674_vm15, %v4892_v43, %v4891_v4 }
 0xab6   :  { %v4906_v29 = vsel %vm4670_vm14, %v4905_v62, %v4904_v40 }
 0xab9   :  { %v4650_v14 = vpop.permute.xlu2 %4649 }
 0xaba   :  { %v4907_v23 = vperm.slane %v4650_v14, %v11381_v54 }
 0xabe   :  { %v4605_v53 = vpop.permute.xlu1 %4604  ;;  %v4608_v50 = vpop.permute.xlu0 %4607 }
 0xabf   :  { %v4879_v20 = vperm.slane %v4605_v53, %v11405_v22  ;;  %v4881_v49 = vperm.slane %v4608_v50, %v11391_v35 }
 0xac1   :  { %v4632_v32 = vpop.permute.xlu2 %4631  ;;  %v4880_v45 = vsel %vm4678_vm2, %v4879_v20, %v4878_v63 }
 0xac2   :  { %v4882_v53 = vsel %vm4682_vm3, %v4881_v49, %v4880_v45  ;;  %v4896_v50 = vperm.slane %v4632_v32, %v11391_v35 }
 0xac6   :  { %v4566_v2 = vpop.permute.xlu1 %4565 }
 0xac7   :  { %v4855_v51 = vperm.slane %v4566_v2, %v11407_v5 }
 0xac9   :  { %v4856_v60 = vsel %vm4690_vm5, %v4855_v51, %v4854_v36  ;;  %v4590_v61 = vpop.permute.xlu0 %4589  ;;  %v4908_v51 = vsel %vm4674_vm15, %v4907_v23, %v4906_v29  ;;  %v5372_v23 = vld [vmem:[%s9943_s16] ss:$0 sm:$0xff]  ;;  %s5044_s16 = sshll.u32 %s9944_s17, 4  ;;  %s5045_s16 = int_to_ptr.hbm [resolvable:$true] %s5044_s16 }
 0xaca   :  { %v4926_v37 = vsel %vm927_vm7, %v4856_v60, %v4925_v18  ;;  %v4870_v19 = vperm.slane %v4590_v61, %v11407_v5 }
 0xacc   :  { %v4871_v27 = vsel %vm4690_vm5, %v4870_v19, %v4869_v17 }
 0xacd   :  { %v4927_v39 = vsel %vm929_vm8, %v4871_v27, %v4926_v37 }
 0xad2   :  { %v4629_v25 = vpop.permute.xlu1 %4628 }
 0xad3   :  { %v4894_v46 = vperm.slane %v4629_v25, %v11405_v22  ;;  %v4982_v25 = vmul.f32 %v5384_v59, %v4981_v30 }
 0xad5   :  { %v4895_v16 = vsel %vm4678_vm2, %v4894_v46, %v4893_v57  ;;  %v4983_v42 = vadd.f32 %v5384_v59, %v4982_v25 }
 0xad6   :  { %v4635_v56 = vpop.permute.xlu2 %4634  ;;  %v4897_v54 = vsel %vm4682_vm3, %v4896_v50, %v4895_v16 }
 0xad7   :  { %v4898_v41 = vperm.slane %v4635_v56, %v11394_v34 }
 0xad9   :  { %v4653_v38 = vpop.permute.xlu0 %4652  ;;  %v4899_v12 = vsel %vm4686_vm4, %v4898_v41, %v4897_v54 }
 0xada   :  { %v4909_v13 = vperm.slane %v4653_v38, %v11405_v22 }
 0xadc   :  { %v4910_v36 = vsel %vm4678_vm2, %v4909_v13, %v4908_v51 }
 0xadf   :  { %v4659_v2 = vpop.permute.xlu2 %4658 }
 0xae0   :  { %v4913_v52 = vperm.slane %v4659_v2, %v11394_v34 }
 0xae1   :  { %v4656_v3 = vpop.permute.xlu0 %4655 }
 0xae2   :  { %v4911_v1 = vperm.slane %v4656_v3, %v11391_v35 }
 0xae4   :  { %v4611_v24 = vpop.permute.xlu1 %4610  ;;  %v4912_v22 = vsel %vm4682_vm3, %v4911_v1, %v4910_v36 }
 0xae5   :  { %v4883_v8 = vperm.slane %v4611_v24, %v11394_v34  ;;  %v4914_v55 = vsel %vm4686_vm4, %v4913_v52, %v4912_v22  ;;  %v5370_v34 = vld [vmem:[%s9941_s14] ss:$0 sm:$0xff]  ;;  %s5501_s14 = smov [#allocation9]  }
 0xae6   :  { %s5055_s25 = sshll.u32 %s5501_s14, 4  ;;  %s5056_s25 = int_to_ptr.vmem [resolvable:$true] %s5055_s25 }
 0xae7   :  { %v4884_v11 = vsel %vm4686_vm4, %v4883_v8, %v4882_v53  ;;  %5063 = dma.vmem_to_hbm [thread:$0]  %s5056_s25, 256, %s5058_s28, [#allocation10], %s5502_s29, %s5502_s29, %s5503_s30  }
 0xaec   :  { %v4614_v18 = vpop.permute.xlu1 %4613 }
 0xaed   :  { %v4885_v15 = vperm.slane %v4614_v18, %v11407_v5 }
 0xaef   :  { %v4886_v0 = vsel %vm4690_vm5, %v4885_v15, %v4884_v11  ;;  %v5371_v15 = vld [vmem:[%s9942_s15] ss:$0 sm:$0xff]  ;;  %s5504_s15 = smov [#allocation8]  }
 0xaf0   :  { %v4928_v9 = vsel %vm931_vm9, %v4886_v0, %v4927_v39  ;;  %s5042_s4 = sshll.u32 %s5504_s15, 4  ;;  %s5043_s4 = int_to_ptr.vmem [resolvable:$true] %s5042_s4 }
 0xaf4   :  { %v4638_v60 = vpop.permute.xlu1 %4637 }
 0xaf5   :  { %v4900_v37 = vperm.slane %v4638_v60, %v11407_v5 }
 0xaf7   :  { %v4662_v48 = vpop.permute.xlu0 %4661  ;;  %v4901_v61 = vsel %vm4690_vm5, %v4900_v37, %v4899_v12 }
 0xaf8   :  { %v4915_v35 = vperm.slane %v4662_v48, %v11407_v5  ;;  %v4929_v21 = vsel %vm933_vm10, %v4901_v61, %v4928_v9 }
 0xafa   :  { %v4916_v7 = vsel %vm4690_vm5, %v4915_v35, %v4914_v55 }
 0xafb   :  { %v4930_v19 = vsel %vm935_vm11, %v4916_v7, %v4929_v21 }
 0xafc   :  { %v4931_v14 = vpack.c.b16 %v4930_v19, %v4923_v28  ;;  %v4985_v28 = vsel %vm4984_vm6, %v5384_v59, %v4983_v42 }
 0xafe   :  { %5191 = vmatmul.msk.bf16.vlgmr.msrb.gmra.mxu1 %vm179_vm1, %v4931_v14 }
 0xb7b   :  { %v4968_v17 = vpop.f32.mrf.mxu1 }
 0xb7c   :  { %v4969_v27 = vadd.f32 %v5370_v34, %v4968_v17 }
 0xb7e   :  { %4975 = vadd.xlane.f32.xlu1 %v4969_v27 }
 0xb83   :  { %v4970_v5 = vpop.f32.mrf.mxu1 }
 0xb84   :  { %v4971_v39 = vadd.f32 %v5370_v34, %v4970_v5 }
 0xb86   :  { %4977 = vadd.xlane.f32.xlu2 %v4971_v39 }
 0xbf1   :  { %v4976_v33 = vpop.xlane.xlu1 %4975 }
 0xbf2   :  { %v4986_v32 = vmul.f32 %v4985_v28, %v4976_v33 }
 0xbf4   :  { %v4988_v47 = vsub.f32 %v4969_v27, %v4986_v32 }
 0xbf6   :  { %v4990_v38 = vmul.f32 %v4988_v47, %v4988_v47 }
 0xbf8   :  { %4992 = vadd.xlane.f32.xlu0 %v4990_v38 }
 0xbf9   :  { %v4978_v24 = vpop.xlane.xlu2 %4977 }
 0xbfa   :  { %v4987_v31 = vmul.f32 %v4985_v28, %v4978_v24 }
 0xbfc   :  { %v4989_v20 = vsub.f32 %v4971_v39, %v4987_v31 }
 0xbfe   :  { %v4991_v58 = vmul.f32 %v4989_v20, %v4989_v20 }
 0xc00   :  { %4994 = vadd.xlane.f32.xlu1 %v4991_v58 }
 0xc6b   :  { %v4993_v63 = vpop.xlane.xlu0 %4992 }
 0xc6c   :  { %v4996_v49 = vmul.f32 %v4993_v63, %v4985_v28 }
 0xc6e   :  { %v4998_v56 = vadd.f32 1e-05, %v4996_v49 }
 0xc70   :  { %5385 = vrsqrt.f32 %v4998_v56  ;;  %vm5006_vm0 = vweird.f32 %v4998_v56 }
 0xc73   :  { %v4995_v45 = vpop.xlane.xlu1 %4994 }
 0xc74   :  { %v4997_v8 = vmul.f32 %v4995_v45, %v4985_v28 }
 0xc76   :  { %v5386_v26 = vpop.eup %5385  ;;  %v4999_v4 = vadd.f32 1e-05, %v4997_v8 }
 0xc77   :  { %v5001_v62 = vmul.f32 %v5386_v26, %v4998_v56  ;;  %vm5007_vm1 = vweird.f32 %v5386_v26 }
 0xc78   :  { %5387 = vrsqrt.f32 %v4999_v4  ;;  %vm5008_vm7 = vmor %vm5006_vm0, %vm5007_vm1  ;;  %vm5016_vm9 = vweird.f32 %v4999_v4 }
 0xc79   :  { %v5002_v46 = vmul.f32 %v5386_v26, %v5001_v62 }
 0xc7b   :  { %v5003_v3 = vmul.f32 0.5, %v5002_v46 }
 0xc7d   :  { %v5004_v18 = vsub.f32 1.5, %v5003_v3 }
 0xc7e   :  { %v5388_v10 = vpop.eup %5387 }
 0xc7f   :  { %v5005_v43 = vmul.f32 %v5386_v26, %v5004_v18  ;;  %v5011_v53 = vmul.f32 %v5388_v10, %v4999_v4  ;;  %vm5017_vm8 = vweird.f32 %v5388_v10 }
 0xc80   :  { %vm5018_vm10 = vmor %vm5016_vm9, %vm5017_vm8 }
 0xc81   :  { %v5009_v11 = vsel %vm5008_vm7, %v5386_v26, %v5005_v43  ;;  %v5012_v40 = vmul.f32 %v5388_v10, %v5011_v53 }
 0xc82   :  { %v5020_v57 = vmul.f32 %v5009_v11, %v4988_v47 }
 0xc83   :  { %v5013_v0 = vmul.f32 0.5, %v5012_v40 }
 0xc84   :  { %v5025_v29 = vmul.f32 %v5371_v15, %v5020_v57 }
 0xc85   :  { %v5014_v13 = vsub.f32 1.5, %v5013_v0 }
 0xc86   :  { %v5030_v16 = vadd.f32 %v5372_v23, %v5025_v29 }
 0xc87   :  { %v5015_v9 = vmul.f32 %v5388_v10, %v5014_v13 }
 0xc88   :  { %v5032_v50 = vmax.f32 %v5030_v16, 0.0 }
 0xc89   :  { %v5019_v1 = vsel %vm5018_vm10, %v5388_v10, %v5015_v9 }
 0xc8a   :  { %v5021_v2 = vmul.f32 %v5019_v1, %v4989_v20  ;;  %5034 = vst [vmem:[#allocation8] sm:$0xff] %v5032_v50 }
 0xc8c   :  { %v5026_v51 = vmul.f32 %v5371_v15, %v5021_v2 }
 0xc8e   :  { %v5031_v54 = vadd.f32 %v5372_v23, %v5026_v51 }
 0xc90   :  { %v5033_v41 = vmax.f32 %v5031_v54, 0.0 }
 0xc92   :  { %5035 = vst [vmem:[#allocation8 + $0x8] sm:$0xff] %v5033_v41 }
 0xc93   :  { %5050 = dma.vmem_to_hbm [thread:$0]  %s5043_s4, 256, %s5045_s16, [#allocation5], %s5502_s29, %s5502_s29, %s5503_s30  }
 0xc94   :  { %5489 = dma.done.wait [#allocation5], 256  }
 0xc95   :  { %5490 = vsyncadd [#allocation5], 4294967040 }
 0xc96   :  { %5491 = dma.done.wait [#allocation10], 256  }
 0xc97   :  { %5492 = vsyncadd [#allocation10], 4294967040 }
 0xc98   :  { %5072 = vsyncpa [#allocation4], 1 }
 0xc99   :  { %5073 = vsyncpa [#allocation7], 1 }
 0xc9a   :  { %5074 = vsyncpa [#allocation5], 1 }
 0xc9b   :  { %5075 = vsyncpa [#allocation10], 1 }

</bundles_post_ra>
